<compile_context>
chip_gen: v5e
topology: v5e:2x2
jax: 0.10.0
libtpu: 0.0.40
codegen_flags: <defaults>
</compile_context>

<pallas_src>
import functools

import numpy as np
import jax
import jax.numpy as jnp
from jax import lax
from jax.experimental import pallas as pl
from jax.experimental.pallas import tpu as pltpu


# ----------------------------------------------------------------------------
# Pallas kernel:  o = act_in(x + b_in) @ w     (bf16 MXU, f32 accumulate)
# ----------------------------------------------------------------------------
def _fused_matmul_kernel(x_ref, b_ref, w_ref, o_ref, *, act_in):
    x = x_ref[...] + b_ref[...]                 # previous layer's bias (f32)
    if act_in == "relu":
        x = jnp.maximum(x, 0.0)                 # previous layer's ReLU (f32)
    o_ref[...] = jnp.dot(x.astype(jnp.bfloat16), w_ref[...],
                         preferred_element_type=jnp.float32)


def _pick_tn(N):
    """Largest proper divisor of N that is a multiple of 128, else full N."""
    tn = N
    if N % 128 == 0:
        for t in range(128, N, 128):
            if N % t == 0:
                tn = t
    return tn


def _pick_tm(M, n_blocks_n, cap=512):
    """M tile: exact divisor (no padding) preferred; full-M block otherwise."""
    divs = [t for t in range(8, min(M - 1, cap) + 1, 8) if M % t == 0]
    if M <= cap and (n_blocks_n >= 2 or M < 64 or not divs):
        return M                                # single full-M block
    if divs:
        return max(divs)                        # exact split, zero padding
    return cap                                  # generic fallback (pads)


def fused_matmul(x, b_in, w_bf16, act_in="relu"):
    """act_in(x + b_in) @ w.  x:(M,K) f32, b_in:(K,) f32, w:(K,N) bf16."""
    M, K = x.shape
    Kw, N = w_bf16.shape
    assert K == Kw
    tn = _pick_tn(N)
    gn = N // tn
    tm = _pick_tm(M, gn)
    gm = pl.cdiv(M, tm)
    Mp = gm * tm
    if Mp != M:                                 # not hit by the Decoder shapes
        x = jnp.pad(x, ((0, Mp - M), (0, 0)))
    out = pl.pallas_call(
        functools.partial(_fused_matmul_kernel, act_in=act_in),
        out_shape=jax.ShapeDtypeStruct((Mp, N), jnp.float32),
        grid=(gn, gm),                          # M innermost: the (K, tn)
        in_specs=[                              # weight block stays resident
            pl.BlockSpec((tm, K), lambda j, i: (i, 0)),
            pl.BlockSpec((1, K), lambda j, i: (0, 0)),
            pl.BlockSpec((K, tn), lambda j, i: (0, j)),
        ],
        out_specs=pl.BlockSpec((tm, tn), lambda j, i: (i, j)),
        compiler_params=pltpu.CompilerParams(
            dimension_semantics=("parallel", "parallel")),
    )(x.astype(jnp.float32), b_in.reshape(1, K).astype(jnp.float32), w_bf16)
    return out if Mp == M else out[:M]


# ----------------------------------------------------------------------------
# col2im scatter-add (pure data movement: K^2 interior-pads + adds, one fusion)
# ----------------------------------------------------------------------------
def _col2im_add(y, K, s):
    """y: (B, H, W, K, K, C) contributions -> (B, Ho, Wo, C)."""
    B, H, W = y.shape[:3]
    zero = jnp.zeros((), y.dtype)
    out = None
    for kh in range(K):
        for kw in range(K):
            contrib = y[:, :, :, kh, kw, :]
            shifted = lax.pad(
                contrib, zero,
                ((0, 0, 0),
                 (kh, K - 1 - kh, s - 1),
                 (kw, K - 1 - kw, s - 1),
                 (0, 0, 0)))
            out = shifted if out is None else out + shifted
    return out


def _deconv_pallas(x_nhwc_pre, b_prev, w_r_bf16, K, stride):
    """ConvTranspose2d(stride, no padding) of relu(x_pre + b_prev).

    Returns the PRE-bias output in NHWC; this layer's own bias + activation
    are fused into the next Pallas kernel (or the final epilogue)."""
    B, H, W, Cin = x_nhwc_pre.shape
    Cout = w_r_bf16.shape[1] // (K * K)
    y = fused_matmul(x_nhwc_pre.reshape(B * H * W, Cin), b_prev, w_r_bf16,
                     act_in="relu")                       # (B*H*W, K*K*Cout)
    y = y.reshape(B, H, W, K, K, Cout)
    return _col2im_add(y, K, stride)                      # (B, Ho, Wo, Cout)


# ----------------------------------------------------------------------------
# One-time parameter prep: (kh, kw, cout)-ordered bf16 matmul weights
# ----------------------------------------------------------------------------
def prepare_params(params):
    def deconv_w(w):   # (Cin, Cout, K, K) -> (Cin, K*K*Cout) bf16
        cin = w.shape[0]
        return jnp.transpose(w, (0, 2, 3, 1)).reshape(cin, -1).astype(jnp.bfloat16)

    latent = params["fc1_w"].shape[1]
    return {
        "zero_in": jnp.zeros((latent,), jnp.float32),
        "fc1_w": params["fc1_w"].T.astype(jnp.bfloat16),   # (latent, 1024)
        "fc1_b": params["fc1_b"].astype(jnp.float32),
        "dc1_w": deconv_w(params["dc1_w"]), "dc1_b": params["dc1_b"].astype(jnp.float32),
        "dc2_w": deconv_w(params["dc2_w"]), "dc2_b": params["dc2_b"].astype(jnp.float32),
        "dc3_w": deconv_w(params["dc3_w"]), "dc3_b": params["dc3_b"].astype(jnp.float32),
        "dc4_w": deconv_w(params["dc4_w"]), "dc4_b": params["dc4_b"].astype(jnp.float32),
    }


# ----------------------------------------------------------------------------
# Decoder forward (Pallas)
# ----------------------------------------------------------------------------
def decoder_forward(p, x, return_logits=False):
    *bs, L = x.shape
    B = int(np.prod(bs)) if bs else 1
    h = x.reshape(B, L).astype(jnp.float32)

    # fc1: plain matmul (no input bias/act on the raw latent); its bias+ReLU
    # is fused into dc1's kernel prologue.
    h = fused_matmul(h, p["zero_in"], p["fc1_w"], act_in="none")     # (B, 1024)

    # deconv1 on a 1x1 input == pure matmul; (kh,kw,cout) output reshapes
    # straight to NHWC, no transpose, no overlap scatter.
    h = fused_matmul(h, p["fc1_b"], p["dc1_w"], act_in="relu")       # (B, 5*5*128)
    h = h.reshape(B, 5, 5, p["dc1_w"].shape[1] // 25)                # (B,5,5,128)

    # deconv2..4: scatter-form lowering, prev bias+ReLU fused in-kernel.
    h = _deconv_pallas(h, p["dc1_b"], p["dc2_w"], K=5, stride=2)     # (B,13,13,64)
    h = _deconv_pallas(h, p["dc2_b"], p["dc3_w"], K=6, stride=2)     # (B,30,30,32)
    h = _deconv_pallas(h, p["dc3_b"], p["dc4_w"], K=6, stride=2)     # (B,64,64,C)

    # TODO(synk): dc4 bias + sigmoid + NCHW transpose must follow the final
    # col2im, so they stay as one tiny XLA elementwise/layout epilogue.
    h = h + p["dc4_b"]
    if not return_logits:
        h = jax.nn.sigmoid(h)
    out = jnp.transpose(h, (0, 3, 1, 2))                             # NCHW
    return out.reshape(*bs, *out.shape[1:])


# ----------------------------------------------------------------------------
# Pure-JAX f32 reference (definition of ConvTranspose2d), validation only.
# ----------------------------------------------------------------------------
def _ref_conv_transpose(x_nhwc, w_pt, b, s):
    B, H, W, Cin = x_nhwc.shape
    _, Cout, K, _ = w_pt.shape
    Ho, Wo = (H - 1) * s + K, (W - 1) * s + K
    out = jnp.zeros((B, Ho, Wo, Cout), jnp.float32)
    for kh in range(K):
        for kw in range(K):
            contrib = jnp.einsum("bhwc,cd->bhwd", x_nhwc, w_pt[:, :, kh, kw])
            out = out.at[:, kh:kh + (H - 1) * s + 1:s,
                         kw:kw + (W - 1) * s + 1:s, :].add(contrib)
    return out + b


def decoder_forward_ref(params, x, return_logits=False):
    *bs, L = x.shape
    B = int(np.prod(bs)) if bs else 1
    h = x.reshape(B, L).astype(jnp.float32)
    h = jnp.maximum(h @ params["fc1_w"].T + params["fc1_b"], 0.0)
    h = h.reshape(B, 1, 1, -1)
    h = jnp.maximum(_ref_conv_transpose(h, params["dc1_w"], params["dc1_b"], 2), 0.0)
    h = jnp.maximum(_ref_conv_transpose(h, params["dc2_w"], params["dc2_b"], 2), 0.0)
    h = jnp.maximum(_ref_conv_transpose(h, params["dc3_w"], params["dc3_b"], 2), 0.0)
    h = _ref_conv_transpose(h, params["dc4_w"], params["dc4_b"], 2)
    if not return_logits:
        h = jax.nn.sigmoid(h)
    out_nchw = h.transpose(0, 3, 1, 2)
    return out_nchw.reshape(*bs, *out_nchw.shape[1:])


# ----------------------------------------------------------------------------
# Deterministic synthetic parameters (shapes from Decoder.__init__)
# ----------------------------------------------------------------------------
def init_params(key, latent_size, img_channels):
    ks = jax.random.split(key, 10)

    def w(k, shape, fan_in):
        return jax.random.normal(k, shape, jnp.float32) / np.sqrt(fan_in)

    return {
        "fc1_w": w(ks[0], (1024, latent_size), latent_size),
        "fc1_b": 0.01 * jax.random.normal(ks[1], (1024,), jnp.float32),
        "dc1_w": w(ks[2], (1024, 128, 5, 5), 1024),
        "dc1_b": 0.01 * jax.random.normal(ks[3], (128,), jnp.float32),
        "dc2_w": w(ks[4], (128, 64, 5, 5), 128 * 25),
        "dc2_b": 0.01 * jax.random.normal(ks[5], (64,), jnp.float32),
        "dc3_w": w(ks[6], (64, 32, 6, 6), 64 * 36),
        "dc3_b": 0.01 * jax.random.normal(ks[7], (32,), jnp.float32),
        "dc4_w": w(ks[8], (32, img_channels, 6, 6), 32 * 36),
        "dc4_b": 0.01 * jax.random.normal(ks[9], (img_channels,), jnp.float32),
    }


if __name__ == "__main__":
    latent_size = 32
    img_channels = 6          # 2 * 3, the module default
    key = jax.random.PRNGKey(0)
    kp, kx = jax.random.split(key)
    params = init_params(kp, latent_size, img_channels)
    prep = prepare_params(params)

    x = jax.random.normal(kx, (2, latent_size), jnp.float32)   # batch = 2

    fwd = jax.jit(decoder_forward, static_argnames=("return_logits",))
    out = jax.block_until_ready(fwd(prep, x))
    assert out.shape == (2, img_channels, 64, 64), out.shape

    ref = jax.block_until_ready(decoder_forward_ref(params, x))
    err = float(jnp.max(jnp.abs(out - ref)))
    assert err < 3e-2, f"max abs err {err}"    # bf16-weight MXU path tolerance

    print("KERNEL_OK")
</pallas_src>

<mosaic_0001>
module attributes {stable_mosaic.version = 11 : i64} {
  func.func @_fused_matmul_kernel(%arg0: i32, %arg1: i32, %arg2: memref<2x1024xf32, #tpu.memory_space<vmem>>, %arg3: memref<1x1024xf32, #tpu.memory_space<vmem>>, %arg4: memref<1024x640xbf16, #tpu.memory_space<vmem>>, %arg5: memref<2x640xf32, #tpu.memory_space<vmem>>) attributes {dimension_semantics = [#tpu.dimension_semantics<parallel>, #tpu.dimension_semantics<parallel>], iteration_bounds = array<i64: 5, 1>, scalar_prefetch = 0 : i64, scratch_operands = 0 : i64, tpu.core_type = #tpu.core_type<tc>, window_params = [{transform_indices = @transform_0, window_bounds = array<i64: 2, 1024>}, {pipeline_mode = #tpu.pipeline_mode<synchronous>, transform_indices = @transform_1, window_bounds = array<i64: 1, 1024>}, {transform_indices = @transform_2, window_bounds = array<i64: 1024, 640>}, {transform_indices = @transform_3, window_bounds = array<i64: 2, 640>}]} {
    %c0 = arith.constant 0 : index
    %c0_0 = arith.constant 0 : index
    %0 = vector.load %arg2[%c0, %c0_0] : memref<2x1024xf32, #tpu.memory_space<vmem>>, vector<2x1024xf32>
    %c0_1 = arith.constant 0 : index
    %c0_2 = arith.constant 0 : index
    %1 = vector.load %arg3[%c0_1, %c0_2] : memref<1x1024xf32, #tpu.memory_space<vmem>>, vector<1x1024xf32>
    %2 = vector.broadcast %1 : vector<1x1024xf32> to vector<2x1024xf32>
    %3 = arith.addf %0, %2 : vector<2x1024xf32>
    %cst = arith.constant 0.000000e+00 : f32
    %4 = vector.broadcast %cst : f32 to vector<2x1024xf32>
    %5 = arith.maximumf %3, %4 : vector<2x1024xf32>
    %6 = arith.truncf %5 : vector<2x1024xf32> to vector<2x1024xbf16>
    %c0_3 = arith.constant 0 : index
    %c0_4 = arith.constant 0 : index
    %7 = vector.load %arg4[%c0_3, %c0_4] : memref<1024x640xbf16, #tpu.memory_space<vmem>>, vector<1024x640xbf16>
    %cst_5 = arith.constant dense<0.000000e+00> : vector<2x640xf32>
    %8 = tpu.matmul %6, %7, %cst_5 {dimension_numbers = #tpu.dot_dimension_numbers<[1], [0], [0], [1], [0, 0, 1, 1], [], []>} : vector<2x1024xbf16>, vector<1024x640xbf16>, vector<2x640xf32> -> vector<2x640xf32>
    %c0_6 = arith.constant 0 : index
    %c0_7 = arith.constant 0 : index
    %9 = vector.load %arg5[%c0_6, %c0_7] : memref<2x640xf32, #tpu.memory_space<vmem>>, vector<2x640xf32>
    tpu.vector_store %arg5[%c0_6, %c0_7], %8 {strides = array<i32>} : memref<2x640xf32, #tpu.memory_space<vmem>>, vector<2x640xf32>,
    return
  }
  func.func @transform_0(%arg0: i32, %arg1: i32) -> (i32, i32) {
    %c0_i32 = arith.constant 0 : i32
    %c0_i32_0 = arith.constant 0 : i32
    return %arg1, %c0_i32 : i32, i32
  }
  func.func @transform_1(%arg0: i32, %arg1: i32) -> (i32, i32) {
    %c0_i32 = arith.constant 0 : i32
    %c0_i32_0 = arith.constant 0 : i32
    %c0_i32_1 = arith.constant 0 : i32
    return %c0_i32, %c0_i32_0 : i32, i32
  }
  func.func @transform_2(%arg0: i32, %arg1: i32) -> (i32, i32) {
    %c0_i32 = arith.constant 0 : i32
    %c0_i32_0 = arith.constant 0 : i32
    return %c0_i32, %arg0 : i32, i32
  }
  func.func @transform_3(%arg0: i32, %arg1: i32) -> (i32, i32) {
    %c0_i32 = arith.constant 0 : i32
    return %arg1, %arg0 : i32, i32
  }
}

module attributes {stable_mosaic.version = 11 : i64} {
  func.func @_fused_matmul_kernel(%arg0: i32, %arg1: i32, %arg2: memref<2x32xf32, #tpu.memory_space<vmem>>, %arg3: memref<1x32xf32, #tpu.memory_space<vmem>>, %arg4: memref<32x512xbf16, #tpu.memory_space<vmem>>, %arg5: memref<2x512xf32, #tpu.memory_space<vmem>>) attributes {dimension_semantics = [#tpu.dimension_semantics<parallel>, #tpu.dimension_semantics<parallel>], iteration_bounds = array<i64: 2, 1>, scalar_prefetch = 0 : i64, scratch_operands = 0 : i64, tpu.core_type = #tpu.core_type<tc>, window_params = [{transform_indices = @transform_0, window_bounds = array<i64: 2, 32>}, {pipeline_mode = #tpu.pipeline_mode<synchronous>, transform_indices = @transform_1, window_bounds = array<i64: 1, 32>}, {transform_indices = @transform_2, window_bounds = array<i64: 32, 512>}, {transform_indices = @transform_3, window_bounds = array<i64: 2, 512>}]} {
    %c0 = arith.constant 0 : index
    %c0_0 = arith.constant 0 : index
    %0 = vector.load %arg2[%c0, %c0_0] : memref<2x32xf32, #tpu.memory_space<vmem>>, vector<2x32xf32>
    %c0_1 = arith.constant 0 : index
    %c0_2 = arith.constant 0 : index
    %1 = vector.load %arg3[%c0_1, %c0_2] : memref<1x32xf32, #tpu.memory_space<vmem>>, vector<1x32xf32>
    %2 = vector.broadcast %1 : vector<1x32xf32> to vector<2x32xf32>
    %3 = arith.addf %0, %2 : vector<2x32xf32>
    %4 = arith.truncf %3 : vector<2x32xf32> to vector<2x32xbf16>
    %c0_3 = arith.constant 0 : index
    %c0_4 = arith.constant 0 : index
    %5 = vector.load %arg4[%c0_3, %c0_4] : memref<32x512xbf16, #tpu.memory_space<vmem>>, vector<32x512xbf16>
    %cst = arith.constant dense<0.000000e+00> : vector<2x512xf32>
    %6 = tpu.matmul %4, %5, %cst {dimension_numbers = #tpu.dot_dimension_numbers<[1], [0], [0], [1], [0, 0, 1, 1], [], []>} : vector<2x32xbf16>, vector<32x512xbf16>, vector<2x512xf32> -> vector<2x512xf32>
    %c0_5 = arith.constant 0 : index
    %c0_6 = arith.constant 0 : index
    %7 = vector.load %arg5[%c0_5, %c0_6] : memref<2x512xf32, #tpu.memory_space<vmem>>, vector<2x512xf32>
    tpu.vector_store %arg5[%c0_5, %c0_6], %6 {strides = array<i32>} : memref<2x512xf32, #tpu.memory_space<vmem>>, vector<2x512xf32>,
    return
  }
  func.func @transform_0(%arg0: i32, %arg1: i32) -> (i32, i32) {
    %c0_i32 = arith.constant 0 : i32
    %c0_i32_0 = arith.constant 0 : i32
    return %arg1, %c0_i32 : i32, i32
  }
  func.func @transform_1(%arg0: i32, %arg1: i32) -> (i32, i32) {
    %c0_i32 = arith.constant 0 : i32
    %c0_i32_0 = arith.constant 0 : i32
    %c0_i32_1 = arith.constant 0 : i32
    return %c0_i32, %c0_i32_0 : i32, i32
  }
  func.func @transform_2(%arg0: i32, %arg1: i32) -> (i32, i32) {
    %c0_i32 = arith.constant 0 : i32
    %c0_i32_0 = arith.constant 0 : i32
    return %c0_i32, %arg0 : i32, i32
  }
  func.func @transform_3(%arg0: i32, %arg1: i32) -> (i32, i32) {
    %c0_i32 = arith.constant 0 : i32
    return %arg1, %arg0 : i32, i32
  }
}

module attributes {stable_mosaic.version = 11 : i64} {
  func.func @_fused_matmul_kernel(%arg0: i32, %arg1: i32, %arg2: memref<50x128xf32, #tpu.memory_space<vmem>>, %arg3: memref<1x128xf32, #tpu.memory_space<vmem>>, %arg4: memref<128x1600xbf16, #tpu.memory_space<vmem>>, %arg5: memref<50x1600xf32, #tpu.memory_space<vmem>>) attributes {dimension_semantics = [#tpu.dimension_semantics<parallel>, #tpu.dimension_semantics<parallel>], iteration_bounds = array<i64: 1, 1>, scalar_prefetch = 0 : i64, scratch_operands = 0 : i64, tpu.core_type = #tpu.core_type<tc>, window_params = [{transform_indices = @transform_0, window_bounds = array<i64: 50, 128>}, {pipeline_mode = #tpu.pipeline_mode<synchronous>, transform_indices = @transform_1, window_bounds = array<i64: 1, 128>}, {transform_indices = @transform_2, window_bounds = array<i64: 128, 1600>}, {transform_indices = @transform_3, window_bounds = array<i64: 50, 1600>}]} {
    %c0 = arith.constant 0 : index
    %c0_0 = arith.constant 0 : index
    %0 = vector.load %arg2[%c0, %c0_0] : memref<50x128xf32, #tpu.memory_space<vmem>>, vector<50x128xf32>
    %c0_1 = arith.constant 0 : index
    %c0_2 = arith.constant 0 : index
    %1 = vector.load %arg3[%c0_1, %c0_2] : memref<1x128xf32, #tpu.memory_space<vmem>>, vector<1x128xf32>
    %2 = vector.broadcast %1 : vector<1x128xf32> to vector<50x128xf32>
    %3 = arith.addf %0, %2 : vector<50x128xf32>
    %cst = arith.constant 0.000000e+00 : f32
    %4 = vector.broadcast %cst : f32 to vector<50x128xf32>
    %5 = arith.maximumf %3, %4 : vector<50x128xf32>
    %6 = arith.truncf %5 : vector<50x128xf32> to vector<50x128xbf16>
    %c0_3 = arith.constant 0 : index
    %c0_4 = arith.constant 0 : index
    %7 = vector.load %arg4[%c0_3, %c0_4] : memref<128x1600xbf16, #tpu.memory_space<vmem>>, vector<128x1600xbf16>
    %cst_5 = arith.constant dense<0.000000e+00> : vector<50x1600xf32>
    %8 = tpu.matmul %6, %7, %cst_5 {dimension_numbers = #tpu.dot_dimension_numbers<[1], [0], [0], [1], [0, 0, 1, 1], [], []>} : vector<50x128xbf16>, vector<128x1600xbf16>, vector<50x1600xf32> -> vector<50x1600xf32>
    %c0_6 = arith.constant 0 : index
    %c0_7 = arith.constant 0 : index
    %9 = vector.load %arg5[%c0_6, %c0_7] : memref<50x1600xf32, #tpu.memory_space<vmem>>, vector<50x1600xf32>
    tpu.vector_store %arg5[%c0_6, %c0_7], %8 {strides = array<i32>} : memref<50x1600xf32, #tpu.memory_space<vmem>>, vector<50x1600xf32>,
    return
  }
  func.func @transform_0(%arg0: i32, %arg1: i32) -> (i32, i32) {
    %c0_i32 = arith.constant 0 : i32
    %c0_i32_0 = arith.constant 0 : i32
    return %arg1, %c0_i32 : i32, i32
  }
  func.func @transform_1(%arg0: i32, %arg1: i32) -> (i32, i32) {
    %c0_i32 = arith.constant 0 : i32
    %c0_i32_0 = arith.constant 0 : i32
    %c0_i32_1 = arith.constant 0 : i32
    return %c0_i32, %c0_i32_0 : i32, i32
  }
  func.func @transform_2(%arg0: i32, %arg1: i32) -> (i32, i32) {
    %c0_i32 = arith.constant 0 : i32
    %c0_i32_0 = arith.constant 0 : i32
    return %c0_i32, %arg0 : i32, i32
  }
  func.func @transform_3(%arg0: i32, %arg1: i32) -> (i32, i32) {
    %c0_i32 = arith.constant 0 : i32
    return %arg1, %arg0 : i32, i32
  }
}

module attributes {stable_mosaic.version = 11 : i64} {
  func.func @_fused_matmul_kernel(%arg0: i32, %arg1: i32, %arg2: memref<338x64xf32, #tpu.memory_space<vmem>>, %arg3: memref<1x64xf32, #tpu.memory_space<vmem>>, %arg4: memref<64x384xbf16, #tpu.memory_space<vmem>>, %arg5: memref<338x384xf32, #tpu.memory_space<vmem>>) attributes {dimension_semantics = [#tpu.dimension_semantics<parallel>, #tpu.dimension_semantics<parallel>], iteration_bounds = array<i64: 3, 1>, scalar_prefetch = 0 : i64, scratch_operands = 0 : i64, tpu.core_type = #tpu.core_type<tc>, window_params = [{transform_indices = @transform_0, window_bounds = array<i64: 338, 64>}, {pipeline_mode = #tpu.pipeline_mode<synchronous>, transform_indices = @transform_1, window_bounds = array<i64: 1, 64>}, {transform_indices = @transform_2, window_bounds = array<i64: 64, 384>}, {transform_indices = @transform_3, window_bounds = array<i64: 338, 384>}]} {
    %c0 = arith.constant 0 : index
    %c0_0 = arith.constant 0 : index
    %0 = vector.load %arg2[%c0, %c0_0] : memref<338x64xf32, #tpu.memory_space<vmem>>, vector<338x64xf32>
    %c0_1 = arith.constant 0 : index
    %c0_2 = arith.constant 0 : index
    %1 = vector.load %arg3[%c0_1, %c0_2] : memref<1x64xf32, #tpu.memory_space<vmem>>, vector<1x64xf32>
    %2 = vector.broadcast %1 : vector<1x64xf32> to vector<338x64xf32>
    %3 = arith.addf %0, %2 : vector<338x64xf32>
    %cst = arith.constant 0.000000e+00 : f32
    %4 = vector.broadcast %cst : f32 to vector<338x64xf32>
    %5 = arith.maximumf %3, %4 : vector<338x64xf32>
    %6 = arith.truncf %5 : vector<338x64xf32> to vector<338x64xbf16>
    %c0_3 = arith.constant 0 : index
    %c0_4 = arith.constant 0 : index
    %7 = vector.load %arg4[%c0_3, %c0_4] : memref<64x384xbf16, #tpu.memory_space<vmem>>, vector<64x384xbf16>
    %cst_5 = arith.constant dense<0.000000e+00> : vector<338x384xf32>
    %8 = tpu.matmul %6, %7, %cst_5 {dimension_numbers = #tpu.dot_dimension_numbers<[1], [0], [0], [1], [0, 0, 1, 1], [], []>} : vector<338x64xbf16>, vector<64x384xbf16>, vector<338x384xf32> -> vector<338x384xf32>
    %c0_6 = arith.constant 0 : index
    %c0_7 = arith.constant 0 : index
    %9 = vector.load %arg5[%c0_6, %c0_7] : memref<338x384xf32, #tpu.memory_space<vmem>>, vector<338x384xf32>
    tpu.vector_store %arg5[%c0_6, %c0_7], %8 {strides = array<i32>} : memref<338x384xf32, #tpu.memory_space<vmem>>, vector<338x384xf32>,
    return
  }
  func.func @transform_0(%arg0: i32, %arg1: i32) -> (i32, i32) {
    %c0_i32 = arith.constant 0 : i32
    %c0_i32_0 = arith.constant 0 : i32
    return %arg1, %c0_i32 : i32, i32
  }
  func.func @transform_1(%arg0: i32, %arg1: i32) -> (i32, i32) {
    %c0_i32 = arith.constant 0 : i32
    %c0_i32_0 = arith.constant 0 : i32
    %c0_i32_1 = arith.constant 0 : i32
    return %c0_i32, %c0_i32_0 : i32, i32
  }
  func.func @transform_2(%arg0: i32, %arg1: i32) -> (i32, i32) {
    %c0_i32 = arith.constant 0 : i32
    %c0_i32_0 = arith.constant 0 : i32
    return %c0_i32, %arg0 : i32, i32
  }
  func.func @transform_3(%arg0: i32, %arg1: i32) -> (i32, i32) {
    %c0_i32 = arith.constant 0 : i32
    return %arg1, %arg0 : i32, i32
  }
}

module attributes {stable_mosaic.version = 11 : i64} {
  func.func @_fused_matmul_kernel(%arg0: i32, %arg1: i32, %arg2: memref<360x32xf32, #tpu.memory_space<vmem>>, %arg3: memref<1x32xf32, #tpu.memory_space<vmem>>, %arg4: memref<32x216xbf16, #tpu.memory_space<vmem>>, %arg5: memref<360x216xf32, #tpu.memory_space<vmem>>) attributes {dimension_semantics = [#tpu.dimension_semantics<parallel>, #tpu.dimension_semantics<parallel>], iteration_bounds = array<i64: 1, 5>, scalar_prefetch = 0 : i64, scratch_operands = 0 : i64, tpu.core_type = #tpu.core_type<tc>, window_params = [{transform_indices = @transform_0, window_bounds = array<i64: 360, 32>}, {pipeline_mode = #tpu.pipeline_mode<synchronous>, transform_indices = @transform_1, window_bounds = array<i64: 1, 32>}, {transform_indices = @transform_2, window_bounds = array<i64: 32, 216>}, {transform_indices = @transform_3, window_bounds = array<i64: 360, 216>}]} {
    %c0 = arith.constant 0 : index
    %c0_0 = arith.constant 0 : index
    %0 = vector.load %arg2[%c0, %c0_0] : memref<360x32xf32, #tpu.memory_space<vmem>>, vector<360x32xf32>
    %c0_1 = arith.constant 0 : index
    %c0_2 = arith.constant 0 : index
    %1 = vector.load %arg3[%c0_1, %c0_2] : memref<1x32xf32, #tpu.memory_space<vmem>>, vector<1x32xf32>
    %2 = vector.broadcast %1 : vector<1x32xf32> to vector<360x32xf32>
    %3 = arith.addf %0, %2 : vector<360x32xf32>
    %cst = arith.constant 0.000000e+00 : f32
    %4 = vector.broadcast %cst : f32 to vector<360x32xf32>
    %5 = arith.maximumf %3, %4 : vector<360x32xf32>
    %6 = arith.truncf %5 : vector<360x32xf32> to vector<360x32xbf16>
    %c0_3 = arith.constant 0 : index
    %c0_4 = arith.constant 0 : index
    %7 = vector.load %arg4[%c0_3, %c0_4] : memref<32x216xbf16, #tpu.memory_space<vmem>>, vector<32x216xbf16>
    %cst_5 = arith.constant dense<0.000000e+00> : vector<360x216xf32>
    %8 = tpu.matmul %6, %7, %cst_5 {dimension_numbers = #tpu.dot_dimension_numbers<[1], [0], [0], [1], [0, 0, 1, 1], [], []>} : vector<360x32xbf16>, vector<32x216xbf16>, vector<360x216xf32> -> vector<360x216xf32>
    %c0_6 = arith.constant 0 : index
    %c0_7 = arith.constant 0 : index
    %9 = vector.load %arg5[%c0_6, %c0_7] : memref<360x216xf32, #tpu.memory_space<vmem>>, vector<360x216xf32>
    tpu.vector_store %arg5[%c0_6, %c0_7], %8 {strides = array<i32>} : memref<360x216xf32, #tpu.memory_space<vmem>>, vector<360x216xf32>,
    return
  }
  func.func @transform_0(%arg0: i32, %arg1: i32) -> (i32, i32) {
    %c0_i32 = arith.constant 0 : i32
    %c0_i32_0 = arith.constant 0 : i32
    return %arg1, %c0_i32 : i32, i32
  }
  func.func @transform_1(%arg0: i32, %arg1: i32) -> (i32, i32) {
    %c0_i32 = arith.constant 0 : i32
    %c0_i32_0 = arith.constant 0 : i32
    %c0_i32_1 = arith.constant 0 : i32
    return %c0_i32, %c0_i32_0 : i32, i32
  }
  func.func @transform_2(%arg0: i32, %arg1: i32) -> (i32, i32) {
    %c0_i32 = arith.constant 0 : i32
    %c0_i32_0 = arith.constant 0 : i32
    return %c0_i32, %arg0 : i32, i32
  }
  func.func @transform_3(%arg0: i32, %arg1: i32) -> (i32, i32) {
    %c0_i32 = arith.constant 0 : i32
    return %arg1, %arg0 : i32, i32
  }
}

</mosaic_0001>

<bundles_post_ra>
// kernel: decoder_forward.5
= control target key start
LH: loop header
LB: loop body
LE: loop exit
PB: predicated region body
PF: predicated region fallthrough
CT: control target
= control target key end

     0   :  { %8 = vsyncpa [#allocation3], 0  ;;  %s938_s0 = inlined_call_operand.hbm [shape: f32[2,32], index: 0, kind: input, shape index: {}]   ;;  %s939_s1 = inlined_call_operand.hbm [shape: f32[1,32], index: 1, kind: input, shape index: {}]   ;;  %s940_s2 = inlined_call_operand.hbm [shape: bf16[32,1024], index: 2, kind: input, shape index: {}]   ;;  %s941_s3 = inlined_call_operand.vmem [shape: f32[2,1024], index: 3, kind: output, shape index: {}]  }
   0x1   :  { %9 = vsyncpa [#allocation5], 0  ;;  %s808_s12 = smov 0   ;;  %s810_s13 = smov 0  }
   0x2   :  { %s812_s14 = smov 0   ;;  %s814_s15 = smov 0  }
   0x3   :  { %s816_s16 = smov 0   ;;  %s818_s17 = smov 0  }
   0x4 LB: > { %s491_s18 = sadd.s32 4294967295, %s781_s17   ;;  %s81_s19 = sadd.s32 1, %s769_s14  ;;  %s781_s17 = sphi %s818_s17, %s15_s17   ;;  %s777_s16 = sphi %s816_s16, %s951_s16   ;;  %s773_s15 = sphi %s814_s15, %s950_s15   ;;  %s769_s14 = sphi %s812_s14, %s949_s14   ;;  %s765_s13 = sphi %s810_s13, %s948_s13   ;;  %s761_s12 = sphi %s808_s12, %s947_s12  }
   0x5   : > { %p88_p0 = scmp.ne.s32.totalorder %s769_s14, %s765_s13  ;;  %p89_p1 = scmp.eq.s32.totalorder %s781_s17, 0 }
   0x6   : > { %p94_p2 = scmp.ne.s32.totalorder %s765_s13, %s761_s12  ;;  %p844_p3 = scmp.eq.s32.totalorder %s491_s18, 0 }
   0x7   : > { %p848_p4 = por %p89_p1, %p88_p0  ;;  %p493_p5 = scmp.ge.s32.totalorder %s781_s17, 1 }
   0x8   : > { %p855_p6 = por %p844_p3, %p94_p2  ;;  %p133_p7 = scmp.lt.s32.totalorder %s781_s17, 3 }
   0x9   : > { %s147_s25 = sshll.u32 %s938_s0, 4  ;;  %s783_s27 = smov [#allocation2]   ;;  %s148_s25 = int_to_ptr.hbm [resolvable:$true] %s147_s25 }
   0xa   : > { %p863_p8 = pnand %p493_p5, %p133_p7  ;;  %s149_s28 = sshll.u32 %s783_s27, 4  ;;  %s150_s28 = int_to_ptr.vmem [resolvable:$true] %s149_s28 }
   0xb   : > { %p576_p10 = scmp.lt.s32.totalorder %s781_s17, 2  ;;  %s159_s4 = sshll.u32 %s939_s1, 4  ;;  %s160_s4 = int_to_ptr.hbm [resolvable:$true] %s159_s4 }
   0xc   : > { %p563_p9 = pneg %p863_p8  ;;  %s784_s6 = smov [#allocation4]  }
   0xd   : > { %p877_p12 = pnand %p576_p10, %p848_p4  ;;  %s161_s7 = sshll.u32 %s784_s6, 4  ;;  %s162_s7 = int_to_ptr.vmem [resolvable:$true] %s161_s7 }
   0xe   : > { %p564_p11 = pnand %p563_p9, %p844_p3  ;;  %s172_s8 = sand.u32 1, %s781_s17  }
   0xf   : > { %s27_s9 = sadd.s32 1, %s777_s16  ;;  %s174_s10 = sand.u32 1, %s769_s14  }
  0x10   : > { %566 = dma.hbm_to_vmem [thread:$0]  (!%p564_p11), %s148_s25, 32, %s150_s28, [#allocation3]  }
  0x11   : > { %569 = dma.hbm_to_vmem [thread:$0]  (!%p564_p11), %s160_s4, 16, %s162_s7, [#allocation5]  }
  0x12   : > { %p29_p13 = scmp.ge.s32.totalorder %s27_s9, 2  ;;  %s497_s11 = sshll.u32 %s174_s10, 6 }
  0x13   : > { %s544_s12 = sshll.u32 %s777_s16, 4  ;;  %s176_s28 = scalar_lea.vmem [#allocation6], %s497_s11 }
  0x14   : > { %s953_s9 = smov (%p29_p13, %s27_s9), 0  ;;  %s181_s24 = scalar_lea.hbm %s940_s2, %s544_s12 }
  0x15   : > { %s78_s25 = ssub.s32 %s777_s16, %s953_s9  ;;  %s182_s27 = sshll.u32 %s181_s24, 4  ;;  %s183_s27 = int_to_ptr.hbm [resolvable:$true] %s182_s27 }
  0x16   : > { %p79_p0 = scmp.eq.s32.totalorder %s78_s25, 0  ;;  %s184_s29 = sshll.u32 %s176_s28, 4  ;;  %s185_s29 = int_to_ptr.vmem [resolvable:$true] %s184_s29 }
  0x17   : > { %s173_s4 = scalar_lea.sflag [#allocation3], %s172_s8  ;;  %s785_s6 = smov 512  }
  0x18   : > { %s895_s30 = scalar_select %p79_p0, %s769_s14, %s81_s19  }
  0x19   : > { %s786_s7 = smov 256   ;;  %s787_s10 = smov 16  }
  0x1a   : > { %573 = dma.hbm_to_vmem [thread:$0]  (!%p877_p12), %s183_s27, 1024, %s185_s29, %s173_s4, %s785_s6, %s786_s7, %s787_s10  }
  0x1b   : > { %196 = sbr.rel (%p863_p8) target bundleno = 191 (0xbf), region = 32 }
  0x20   : > { %748 = dma.done.wait (%p844_p3), [#allocation3], 32  }
  0x21   : > { %750 = vsyncadd (%p844_p3), [#allocation3], 4294967264 }
  0x22   : > { %752 = dma.done.wait (%p844_p3), [#allocation5], 16  }
  0x23   : > { %754 = vsyncadd (%p844_p3), [#allocation5], 4294967280  ;;  %s208_s19 = sand.u32 1, %s491_s18   ;;  %s210_s5 = sand.u32 1, %s765_s13  }
  0x24   : > { %s503_s26 = sshll.u32 %s210_s5, 6  ;;  %s209_s8 = scalar_lea.sflag [#allocation3], %s208_s19 }
  0x25   : > { %s212_s11 = scalar_lea.vmem [#allocation6], %s503_s26 }
  0x26   : > { %756 = dma.done.wait (%p855_p6), %s209_s8, 1024  }
  0x27   : > { %758 = vsyncadd (%p855_p6), %s209_s8, 4294966272  ;;  %v524_v0 = vld [vmem:[%s212_s11 + $0x20] sm:$0xf]  ;;  %v551_v1 = vld [vmem:[%s212_s11 + $0x2c] sm:$0xf0]  ;;  %vm307_vm0 = vcmask 261120  }
  0x28   : > { %v549_v2 = vld [vmem:[%s212_s11 + $0x24] sm:$0xf]  ;;  %v525_v3 = vor.u32 %v551_v1, %v524_v0  ;;  %v526_v4 = vld [vmem:[%s212_s11 + $0x30] sm:$0xf0]  ;;  %v532_v5 = vld [vmem:[%s212_s11 + $0x28] sm:$0xf] }
  0x29   : > { %v552_v6 = vld [vmem:[%s212_s11 + $0x34] sm:$0xf0]  ;;  %v529_v7 = vor.u32 %v549_v2, %v526_v4  ;;  %v550_v9 = vld [vmem:[%s212_s11 + $0x2c] sm:$0xf]  ;;  %v534_v10 = vld [vmem:[%s212_s11 + $0x38] sm:$0xf0] }
  0x2a   : > { %v533_v8 = vor.u32 %v552_v6, %v532_v5  ;;  %v508_v11 = vld [vmem:[%s212_s11] sm:$0xf]  ;;  %317 = vmatpush.bf16.msra.mxu0 %v525_v3  ;;  %v537_v12 = vor.u32 %v550_v9, %v534_v10  ;;  %v547_v13 = vld [vmem:[%s212_s11 + $0xc] sm:$0xf0]  ;;  %v545_v14 = vld [vmem:[%s212_s11 + $0x4] sm:$0xf] }
  0x2b   : > { %v510_v15 = vld [vmem:[%s212_s11 + $0x10] sm:$0xf0]  ;;  %330 = vmatpush.bf16.msra.mxu1 %v529_v7  ;;  %v509_v16 = vor.u32 %v547_v13, %v508_v11  ;;  %v516_v18 = vld [vmem:[%s212_s11 + $0x8] sm:$0xf]  ;;  %v548_v19 = vld [vmem:[%s212_s11 + $0x14] sm:$0xf0] }
  0x2c   : > { %343 = vmatpush.bf16.msra.mxu2 %v533_v8  ;;  %v513_v17 = vor.u32 %v545_v14, %v510_v15  ;;  %v546_v20 = vld [vmem:[%s212_s11 + $0xc] sm:$0xf]  ;;  %356 = vmatpush.bf16.msra.mxu3 %v537_v12  ;;  %v517_v21 = vor.u32 %v548_v19, %v516_v18  ;;  %v518_v22 = vld [vmem:[%s212_s11 + $0x18] sm:$0xf0]  ;;  %s504_s18 = sshll.u32 %s773_s15, 2  ;;  %vm370_vm1 = vcmask 1041408  }
  0x2d   : > { %v252_v23 = vld [vmem:[#allocation2] sm:$0x3]  ;;  %v521_v24 = vor.u32 %v546_v20, %v518_v22  ;;  %v632_v25 = vld [vmem:[#allocation4] ss:$0 sm:$0xff]  ;;  %p244_p1 = scmp.lt.s32.totalorder %s504_s18, 7  ;;  %vm372_vm2 = vcmask 1045508  }
  0x2e   : > { %318 = vmatpush.bf16.msra.mxu0 %v509_v16  ;;  %v257_v26 = vadd.f32 %v632_v25, %v252_v23  ;;  %vm374_vm3 = vcmask 1043456  }
  0x2f   : > { %331 = vmatpush.bf16.msra.mxu1 %v513_v17  ;;  %s955_s18 = smov (!%p244_p1, %s504_s18), 7 }
  0x30   : > { %344 = vmatpush.bf16.msra.mxu2 %v517_v21  ;;  %357 = vmatpush.bf16.msra.mxu3 %v521_v24  ;;  %v258_v27 = vpack.c.bf16 %v257_v26, %v257_v26  ;;  %s505_s20 = sshll.u32 %s955_s18, 1 }
  0x31   : > { %s249_s21 = scalar_lea.vmem %s941_s3, %s505_s20 }
  0x32   : > { %538 = vmatmul.msk.bf16.vlgmr.msra.gmra.mxu0 %vm307_vm0, %v258_v27  ;;  %539 = vmatmul.msk.bf16.vlgmr.msra.gmra.mxu1 %vm307_vm0, %v258_v27 }
  0x33   : > { %540 = vmatmul.msk.bf16.vlgmr.msra.gmra.mxu2 %vm307_vm0, %v258_v27  ;;  %541 = vmatmul.msk.bf16.vlgmr.msra.gmra.mxu3 %vm307_vm0, %v258_v27 }
  0xaf   : > { %v320_v28 = vpop.f32.mrf.mxu0  ;;  %v333_v29 = vpop.f32.mrf.mxu1 }
  0xb0   : > { %v367_v30 = vrot.slane %v333_v29, 6 }
  0xb2   : > { %v371_v37 = vsel %vm370_vm1, %v320_v28, %v367_v30 }
  0xb6   : > { %v346_v31 = vpop.f32.mrf.mxu2  ;;  %v359_v32 = vpop.f32.mrf.mxu3 }
  0xb7   : > { %v368_v33 = vrot.slane %v346_v31, 4  ;;  %v369_v34 = vrot.slane %v359_v32, 2  ;;  %v322_v35 = vpop.f32.mrf.mxu0  ;;  %v335_v36 = vpop.f32.mrf.mxu1 }
  0xb9   : > { %v373_v38 = vsel %vm372_vm2, %v368_v33, %v369_v34 }
  0xba   : > { %v375_v39 = vsel %vm374_vm3, %v371_v37, %v373_v38 }
  0xbb   : > { %377 = vst [vmem:[%s249_s21] sm:$0xff] %v375_v39 }
  0xbe   : > { %v348_v40 = vpop.f32.mrf.mxu2  ;;  %v361_v41 = vpop.f32.mrf.mxu3 }
  0xbf PF: > { %s15_s17 = sadd.s32 1, %s781_s17   ;;  %s947_s12 = smov %s765_s13 }
  0xc0   : > { %p12_p2 = scmp.ge.s32.totalorder %s15_s17, 4   ;;  %s948_s13 = smov %s769_s14 }
  0xc1   : > { %s949_s14 = smov %s895_s30  ;;  %s950_s15 = smov %s777_s16 }
  0xc2   : > { %s951_s16 = smov %s953_s9  ;;  %14 = sbr.rel (!%p12_p2) target bundleno = 4 (0x4), region = 80 }
  0xc7   :  { %408 = vsyncpa [#allocation3], 1 }
  0xc8   :  { %410 = vsyncpa [#allocation3 + $0x1], 1 }
  0xc9   :  { %411 = vsyncpa [#allocation5], 1 }

// kernel: decoder_forward.7
= control target key start
LH: loop header
LB: loop body
LE: loop exit
PB: predicated region body
PF: predicated region fallthrough
CT: control target
= control target key end

     0   :  { %8 = vsyncpa [#allocation3], 0  ;;  %s1723_s15 = smov [#allocation2]   ;;  %s2740_s0 = inlined_call_operand.vmem [shape: f32[50,128], index: 0, kind: input, shape index: {}]   ;;  %s2741_s1 = inlined_call_operand.hbm [shape: f32[1,128], index: 1, kind: input, shape index: {}]   ;;  %s2742_s2 = inlined_call_operand.vmem [shape: bf16[128,1600], index: 2, kind: input, shape index: {}]   ;;  %s2743_s3 = inlined_call_operand.vmem [shape: f32[50,1600], index: 3, kind: output, shape index: {}]  }
   0x1   :  { %s16_s14 = sshll.u32 %s2741_s1, 4  ;;  %s18_s16 = sshll.u32 %s1723_s15, 4  ;;  %s17_s14 = int_to_ptr.hbm [resolvable:$true] %s16_s14  ;;  %s19_s16 = int_to_ptr.vmem [resolvable:$true] %s18_s16 }
   0x2   :  { %21 = dma.hbm_to_vmem [thread:$0]  %s17_s14, 16, %s19_s16, [#allocation3]  }
   0x3   :  { %1721 = dma.done.wait [#allocation3], 16  }
   0x4   :  { %1722 = vsyncadd [#allocation3], 4294967280  ;;  %v1525_v0 = vld [vmem:[%s2742_s2 + $0x2d8] sm:$0xf]  ;;  %v1672_v1 = vld [vmem:[%s2742_s2 + $0x308] sm:$0xf0] }
   0x5   :  { %v1533_v2 = vld [vmem:[%s2742_s2 + $0x2e0] sm:$0xf]  ;;  %v1526_v3 = vor.u32 %v1672_v1, %v1525_v0  ;;  %v1673_v4 = vld [vmem:[%s2742_s2 + $0x310] sm:$0xf0]  ;;  %v1473_v5 = vld [vmem:[%s2742_s2 + $0x270] sm:$0xf] }
   0x6   :  { %v1659_v6 = vld [vmem:[%s2742_s2 + $0x2a0] sm:$0xf0]  ;;  %v1534_v7 = vor.u32 %v1673_v4, %v1533_v2  ;;  %v1481_v8 = vld [vmem:[%s2742_s2 + $0x278] sm:$0xf]  ;;  %v1660_v9 = vld [vmem:[%s2742_s2 + $0x2a8] sm:$0xf0] }
   0x7   :  { %1679 = vmatpush.bf16.msra.mxu1 %v1526_v3  ;;  %v1474_v10 = vor.u32 %v1659_v6, %v1473_v5  ;;  %697 = vmatpush.bf16.msra.mxu0 %v1526_v3  ;;  %v1482_v11 = vor.u32 %v1660_v9, %v1481_v8  ;;  %v1421_v12 = vld [vmem:[%s2742_s2 + $0x208] sm:$0xf]  ;;  %v1646_v13 = vld [vmem:[%s2742_s2 + $0x238] sm:$0xf0]  ;;  %v1429_v14 = vld [vmem:[%s2742_s2 + $0x210] sm:$0xf] }
   0x8   :  { %753 = vmatpush.bf16.msra.mxu2 %v1534_v7  ;;  %v1647_v15 = vld [vmem:[%s2742_s2 + $0x240] sm:$0xf0]  ;;  %v1422_v17 = vor.u32 %v1646_v13, %v1421_v12  ;;  %v1535_v18 = vld [vmem:[%s2742_s2 + $0x314] sm:$0xf0]  ;;  %v1369_v20 = vld [vmem:[%s2742_s2 + $0x1a0] sm:$0xf] }
   0x9   :  { %v1667_v16 = vld [vmem:[%s2742_s2 + $0x2e4] sm:$0xf]  ;;  %v1430_v19 = vor.u32 %v1647_v15, %v1429_v14  ;;  %v1633_v21 = vld [vmem:[%s2742_s2 + $0x1d0] sm:$0xf0]  ;;  %v1654_v23 = vld [vmem:[%s2742_s2 + $0x27c] sm:$0xf] }
   0xa   :  { %v1538_v22 = vor.u32 %v1667_v16, %v1535_v18  ;;  %v1377_v24 = vld [vmem:[%s2742_s2 + $0x1a8] sm:$0xf]  ;;  %v1634_v25 = vld [vmem:[%s2742_s2 + $0x1d8] sm:$0xf0]  ;;  %v1483_v26 = vld [vmem:[%s2742_s2 + $0x2ac] sm:$0xf0]  ;;  %v1370_v28 = vor.u32 %v1633_v21, %v1369_v20 }
   0xb   :  { %1680 = vmatpush.bf16.msra.mxu1 %v1474_v10  ;;  %698 = vmatpush.bf16.msra.mxu0 %v1474_v10  ;;  %v1486_v27 = vor.u32 %v1654_v23, %v1483_v26  ;;  %v1641_v29 = vld [vmem:[%s2742_s2 + $0x214] sm:$0xf]  ;;  %v1431_v30 = vld [vmem:[%s2742_s2 + $0x244] sm:$0xf0]  ;;  %v1378_v31 = vor.u32 %v1634_v25, %v1377_v24  ;;  %v1317_v32 = vld [vmem:[%s2742_s2 + $0x138] sm:$0xf] }
   0xc   :  { %754 = vmatpush.bf16.msra.mxu2 %v1482_v11  ;;  %781 = vmatpush.bf16.msra.mxu3 %v1538_v22  ;;  %v1620_v33 = vld [vmem:[%s2742_s2 + $0x168] sm:$0xf0]  ;;  %v1325_v34 = vld [vmem:[%s2742_s2 + $0x140] sm:$0xf]  ;;  %v1621_v35 = vld [vmem:[%s2742_s2 + $0x170] sm:$0xf0]  ;;  %v1434_v36 = vor.u32 %v1641_v29, %v1431_v30 }
   0xd   :  { %v1318_v37 = vor.u32 %v1620_v33, %v1317_v32  ;;  %v1628_v38 = vld [vmem:[%s2742_s2 + $0x1ac] sm:$0xf]  ;;  %v1379_v39 = vld [vmem:[%s2742_s2 + $0x1dc] sm:$0xf0]  ;;  %v1326_v40 = vor.u32 %v1621_v35, %v1325_v34  ;;  %v1265_v41 = vld [vmem:[%s2742_s2 + $0xd0] sm:$0xf] }
   0xe   :  { %v1607_v42 = vld [vmem:[%s2742_s2 + $0x100] sm:$0xf0]  ;;  %v1273_v43 = vld [vmem:[%s2742_s2 + $0xd8] sm:$0xf]  ;;  %v1608_v44 = vld [vmem:[%s2742_s2 + $0x108] sm:$0xf0]  ;;  %v1382_v46 = vor.u32 %v1628_v38, %v1379_v39 }
   0xf   :  { %1681 = vmatpush.bf16.msra.mxu1 %v1422_v17  ;;  %699 = vmatpush.bf16.msra.mxu0 %v1422_v17  ;;  %v1843_v45 = vld [vmem:[#allocation2] ss:$0 sm:$0xff]  ;;  %v33_v48 = vld [vmem:[%s2740_s0 + $0x28] sm:$0xff]  ;;  %v1266_v49 = vor.u32 %v1607_v42, %v1265_v41  ;;  %v1615_v51 = vld [vmem:[%s2742_s2 + $0x144] sm:$0xf]  ;;  %v1274_v53 = vor.u32 %v1608_v44, %v1273_v43  ;;  %vm1073_vm0 = vcmask 523264  }
  0x10   :  { %755 = vmatpush.bf16.msra.mxu2 %v1430_v19  ;;  %782 = vmatpush.bf16.msra.mxu3 %v1486_v27  ;;  %v32_v47 = vld [vmem:[%s2740_s0 + $0x20] sm:$0xff]  ;;  %v1213_v50 = vld [vmem:[%s2742_s2 + $0x68] sm:$0xf]  ;;  %v1327_v52 = vld [vmem:[%s2742_s2 + $0x174] sm:$0xf0]  ;;  %v44_v60 = vadd.f32 %v1843_v45, %v33_v48  ;;  %vm1152_vm1 = vcmask 517120  }
  0x11   :  { %v1594_v54 = vld [vmem:[%s2742_s2 + $0x98] sm:$0xf0]  ;;  %v28_v55 = vld [vmem:[%s2740_s0] sm:$0xff]  ;;  %v29_v56 = vld [vmem:[%s2740_s0 + $0x8] sm:$0xff]  ;;  %v43_v59 = vadd.f32 %v1843_v45, %v32_v47  ;;  %v1330_v62 = vor.u32 %v1615_v51, %v1327_v52 }
  0x12   :  { %v1221_v57 = vld [vmem:[%s2742_s2 + $0x70] sm:$0xf]  ;;  %v1595_v58 = vld [vmem:[%s2742_s2 + $0xa0] sm:$0xf0]  ;;  %v1161_v61 = vld [vmem:[%s2742_s2] sm:$0xf]  ;;  %v1214_v63 = vor.u32 %v1594_v54, %v1213_v50  ;;  %v39_v1 = vadd.f32 %v1843_v45, %v28_v55  ;;  %v40_v2 = vadd.f32 %v1843_v45, %v29_v56 }
  0x13   :  { %1682 = vmatpush.bf16.msra.mxu1 %v1370_v28  ;;  %700 = vmatpush.bf16.msra.mxu0 %v1370_v28  ;;  %v1581_v0 = vld [vmem:[%s2742_s2 + $0x30] sm:$0xf0]  ;;  %v1602_v3 = vld [vmem:[%s2742_s2 + $0xdc] sm:$0xf]  ;;  %v1275_v4 = vld [vmem:[%s2742_s2 + $0x10c] sm:$0xf0]  ;;  %v1222_v5 = vor.u32 %v1595_v58, %v1221_v57 }
  0x14   :  { %756 = vmatpush.bf16.msra.mxu2 %v1378_v31  ;;  %783 = vmatpush.bf16.msra.mxu3 %v1434_v36  ;;  %v1169_v6 = vld [vmem:[%s2742_s2 + $0x8] sm:$0xf]  ;;  %v1582_v7 = vld [vmem:[%s2742_s2 + $0x38] sm:$0xf0]  ;;  %v50_v9 = vmax.f32 %v43_v59, 0.0  ;;  %v51_v10 = vmax.f32 %v44_v60, 0.0  ;;  %v1278_v13 = vor.u32 %v1602_v3, %v1275_v4  ;;  %v1162_v17 = vor.u32 %v1581_v0, %v1161_v61 }
  0x15   :  { %v1666_v8 = vld [vmem:[%s2742_s2 + $0x2dc] sm:$0xf]  ;;  %v1527_v11 = vld [vmem:[%s2742_s2 + $0x30c] sm:$0xf0]  ;;  %v1541_v12 = vld [vmem:[%s2742_s2 + $0x2e8] sm:$0xf]  ;;  %v1170_v20 = vor.u32 %v1582_v7, %v1169_v6 }
  0x16   :  { %v1674_v14 = vld [vmem:[%s2742_s2 + $0x318] sm:$0xf0]  ;;  %v1549_v15 = vld [vmem:[%s2742_s2 + $0x2f0] sm:$0xf]  ;;  %v1675_v16 = vld [vmem:[%s2742_s2 + $0x320] sm:$0xf0]  ;;  %v1530_v21 = vor.u32 %v1666_v8, %v1527_v11  ;;  %v1930_v29 = vpack.c.bf16 %v51_v10, %v50_v9 }
  0x17   :  { %1683 = vmatpush.bf16.msra.mxu1 %v1318_v37  ;;  %701 = vmatpush.bf16.msra.mxu0 %v1318_v37  ;;  %v46_v18 = vmax.f32 %v39_v1, 0.0  ;;  %v47_v19 = vmax.f32 %v40_v2, 0.0  ;;  %v1589_v22 = vld [vmem:[%s2742_s2 + $0x74] sm:$0xf]  ;;  %v1223_v23 = vld [vmem:[%s2742_s2 + $0xa4] sm:$0xf0]  ;;  %v1542_v26 = vor.u32 %v1674_v14, %v1541_v12  ;;  %v1550_v27 = vor.u32 %v1675_v16, %v1549_v15 }
  0x18   :  { %757 = vmatpush.bf16.msra.mxu2 %v1326_v40  ;;  %784 = vmatpush.bf16.msra.mxu3 %v1382_v46  ;;  %v1653_v24 = vld [vmem:[%s2742_s2 + $0x274] sm:$0xf]  ;;  %v1475_v25 = vld [vmem:[%s2742_s2 + $0x2a4] sm:$0xf0]  ;;  %v1489_v28 = vld [vmem:[%s2742_s2 + $0x280] sm:$0xf]  ;;  %v1226_v36 = vor.u32 %v1589_v22, %v1223_v23 }
  0x19   :  { %v1661_v30 = vld [vmem:[%s2742_s2 + $0x2b0] sm:$0xf0]  ;;  %v1497_v31 = vld [vmem:[%s2742_s2 + $0x288] sm:$0xf]  ;;  %v1662_v32 = vld [vmem:[%s2742_s2 + $0x2b8] sm:$0xf0]  ;;  %v1941_v33 = vpack.c.bf16 %v47_v19, %v46_v18  ;;  %v1478_v37 = vor.u32 %v1653_v24, %v1475_v25 }
  0x1a   :  { %v1640_v34 = vld [vmem:[%s2742_s2 + $0x20c] sm:$0xf]  ;;  %v1423_v35 = vld [vmem:[%s2742_s2 + $0x23c] sm:$0xf0]  ;;  %v34_v40 = vld [vmem:[%s2740_s0 + $0x30] sm:$0x3]  ;;  %v1490_v41 = vor.u32 %v1661_v30, %v1489_v28  ;;  %v1498_v43 = vor.u32 %v1662_v32, %v1497_v31 }
  0x1b   :  { %1684 = vmatpush.bf16.msra.mxu1 %v1266_v49  ;;  %702 = vmatpush.bf16.msra.mxu0 %v1266_v49  ;;  %v1576_v38 = vld [vmem:[%s2742_s2 + $0xc] sm:$0xf]  ;;  %v1171_v39 = vld [vmem:[%s2742_s2 + $0x3c] sm:$0xf0]  ;;  %v1437_v42 = vld [vmem:[%s2742_s2 + $0x218] sm:$0xf]  ;;  %v1426_v52 = vor.u32 %v1640_v34, %v1423_v35  ;;  %v45_v55 = vadd.f32 %v1843_v45, %v34_v40 }
  0x1c   :  { %758 = vmatpush.bf16.msra.mxu2 %v1274_v53  ;;  %785 = vmatpush.bf16.msra.mxu3 %v1330_v62  ;;  %v1669_v44 = vld [vmem:[%s2742_s2 + $0x2f4] sm:$0xf]  ;;  %v1551_v46 = vld [vmem:[%s2742_s2 + $0x324] sm:$0xf0]  ;;  %v1648_v47 = vld [vmem:[%s2742_s2 + $0x248] sm:$0xf0]  ;;  %v1174_v50 = vor.u32 %v1576_v38, %v1171_v39 }
  0x1d   :  { %v1445_v48 = vld [vmem:[%s2742_s2 + $0x220] sm:$0xf]  ;;  %v1649_v49 = vld [vmem:[%s2742_s2 + $0x250] sm:$0xf0]  ;;  %v1627_v53 = vld [vmem:[%s2742_s2 + $0x1a4] sm:$0xf]  ;;  %v1554_v57 = vor.u32 %v1669_v44, %v1551_v46  ;;  %v1438_v58 = vor.u32 %v1648_v47, %v1437_v42 }
  0x1e   :  { %v30_v51 = vld [vmem:[%s2740_s0 + $0x10] sm:$0xff]  ;;  %v1371_v54 = vld [vmem:[%s2742_s2 + $0x1d4] sm:$0xf0]  ;;  %v1446_v60 = vor.u32 %v1649_v49, %v1445_v48  ;;  %v1656_v61 = vld [vmem:[%s2742_s2 + $0x28c] sm:$0xf] }
  0x1f   :  { %1685 = vmatpush.bf16.msra.mxu1 %v1214_v63  ;;  %703 = vmatpush.bf16.msra.mxu0 %v1214_v63  ;;  %v31_v56 = vld [vmem:[%s2740_s0 + $0x18] sm:$0xff]  ;;  %v1385_v59 = vld [vmem:[%s2742_s2 + $0x1b0] sm:$0xf]  ;;  %v1499_v62 = vld [vmem:[%s2742_s2 + $0x2bc] sm:$0xf0]  ;;  %v41_v2 = vadd.f32 %v1843_v45, %v30_v51  ;;  %v1374_v4 = vor.u32 %v1627_v53, %v1371_v54 }
  0x20   :  { %759 = vmatpush.bf16.msra.mxu2 %v1222_v5  ;;  %786 = vmatpush.bf16.msra.mxu3 %v1278_v13  ;;  %v1635_v63 = vld [vmem:[%s2742_s2 + $0x1e0] sm:$0xf0]  ;;  %v1393_v0 = vld [vmem:[%s2742_s2 + $0x1b8] sm:$0xf]  ;;  %v1636_v1 = vld [vmem:[%s2742_s2 + $0x1e8] sm:$0xf0]  ;;  %v42_v3 = vadd.f32 %v1843_v45, %v31_v56  ;;  %v1502_v8 = vor.u32 %v1656_v61, %v1499_v62 }
  0x21   :  { %v52_v5 = vmax.f32 %v45_v55, 0.0  ;;  %v1614_v6 = vld [vmem:[%s2742_s2 + $0x13c] sm:$0xf]  ;;  %v1319_v7 = vld [vmem:[%s2742_s2 + $0x16c] sm:$0xf0]  ;;  %v1386_v9 = vor.u32 %v1635_v63, %v1385_v59  ;;  %v1394_v45 = vor.u32 %v1636_v1, %v1393_v0  ;;  %v48_v16 = vmax.f32 %v41_v2, 0.0 }
  0x22   :  { %v1333_v10 = vld [vmem:[%s2742_s2 + $0x148] sm:$0xf]  ;;  %v1643_v11 = vld [vmem:[%s2742_s2 + $0x224] sm:$0xf]  ;;  %v1447_v12 = vld [vmem:[%s2742_s2 + $0x254] sm:$0xf0]  ;;  %v1322_v18 = vor.u32 %v1614_v6, %v1319_v7 }
  0x23   :  { %1686 = vmatpush.bf16.msra.mxu1 %v1162_v17  ;;  %704 = vmatpush.bf16.msra.mxu0 %v1162_v17  ;;  %v1622_v13 = vld [vmem:[%s2742_s2 + $0x178] sm:$0xf0]  ;;  %v1341_v14 = vld [vmem:[%s2742_s2 + $0x150] sm:$0xf]  ;;  %v1623_v15 = vld [vmem:[%s2742_s2 + $0x180] sm:$0xf0]  ;;  %v1450_v19 = vor.u32 %v1643_v11, %v1447_v12  ;;  %v2043_v24 = vpack.c.bf16 %v52_v5, %v52_v5 }
  0x24   :  { %760 = vmatpush.bf16.msra.mxu2 %v1170_v20  ;;  %787 = vmatpush.bf16.msra.mxu3 %v1226_v36  ;;  %v49_v17 = vmax.f32 %v42_v3, 0.0  ;;  %v1601_v20 = vld [vmem:[%s2742_s2 + $0xd4] sm:$0xf]  ;;  %v1334_v22 = vor.u32 %v1622_v13, %v1333_v10  ;;  %v1342_v23 = vor.u32 %v1623_v15, %v1341_v14  ;;  %v1281_v25 = vld [vmem:[%s2742_s2 + $0xe0] sm:$0xf] }
  0x25   :  { %v1588_v30 = vld [vmem:[%s2742_s2 + $0x6c] sm:$0xf]  ;;  %v1215_v31 = vld [vmem:[%s2742_s2 + $0x9c] sm:$0xf0]  ;;  %v1229_v34 = vld [vmem:[%s2742_s2 + $0x78] sm:$0xf] }
  0x26   :  { %715 = vmatmul.bf16.vlgmr.msra.gmra.mxu1 %v1930_v29  ;;  %705 = vmatmul.bf16.vlgmr.msra.gmra.mxu0 %v1941_v33  ;;  %v1596_v35 = vld [vmem:[%s2742_s2 + $0xa8] sm:$0xf0]  ;;  %v1575_v36 = vld [vmem:[%s2742_s2 + $0x4] sm:$0xf]  ;;  %v1289_v38 = vld [vmem:[%s2742_s2 + $0xe8] sm:$0xf] }
  0x27   :  { %725 = vmatpush.bf16.msrb.mxu1 %v1530_v21  ;;  %809 = vmatpush.bf16.msrb.mxu0 %v1542_v26  ;;  %v1267_v21 = vld [vmem:[%s2742_s2 + $0x104] sm:$0xf0]  ;;  %v1609_v26 = vld [vmem:[%s2742_s2 + $0x110] sm:$0xf0]  ;;  %v1610_v39 = vld [vmem:[%s2742_s2 + $0x118] sm:$0xf0]  ;;  %v1230_v48 = vor.u32 %v1596_v35, %v1229_v34 }
  0x28   :  { %865 = vmatpush.bf16.msrb.mxu2 %v1550_v27  ;;  %788 = vmatpush.bf16.msra.mxu3 %v1174_v50  ;;  %v2051_v27 = vpack.c.bf16 %v49_v17, %v48_v16  ;;  %v1270_v28 = vor.u32 %v1601_v20, %v1267_v21  ;;  %v1282_v32 = vor.u32 %v1609_v26, %v1281_v25  ;;  %v1630_v40 = vld [vmem:[%s2742_s2 + $0x1bc] sm:$0xf]  ;;  %v1668_v42 = vld [vmem:[%s2742_s2 + $0x2ec] sm:$0xf]  ;;  %v1177_v44 = vld [vmem:[%s2742_s2 + $0x10] sm:$0xf] }
  0x29   :  { %761 = vmatmul.bf16.vlgmr.msra.gmra.mxu2 %v1941_v33  ;;  %v1290_v46 = vor.u32 %v1610_v39, %v1289_v38  ;;  %v1395_v47 = vld [vmem:[%s2742_s2 + $0x1ec] sm:$0xf0]  ;;  %v1583_v49 = vld [vmem:[%s2742_s2 + $0x40] sm:$0xf0]  ;;  %v1557_v50 = vld [vmem:[%s2742_s2 + $0x2f8] sm:$0xf] }
  0x2a   :  { %v1398_v51 = vor.u32 %v1630_v40, %v1395_v47  ;;  %v1597_v53 = vld [vmem:[%s2742_s2 + $0xb0] sm:$0xf0]  ;;  %v1343_v55 = vld [vmem:[%s2742_s2 + $0x184] sm:$0xf0]  ;;  %v1676_v56 = vld [vmem:[%s2742_s2 + $0x328] sm:$0xf0]  ;;  %v1178_v63 = vor.u32 %v1583_v49, %v1177_v44 }
  0x2b   :  { %726 = vmatpush.bf16.msrb.mxu1 %v1478_v37  ;;  %810 = vmatpush.bf16.msrb.mxu0 %v1490_v41  ;;  %v1163_v37 = vld [vmem:[%s2742_s2 + $0x34] sm:$0xf0]  ;;  %v1218_v41 = vor.u32 %v1588_v30, %v1215_v31  ;;  %v1617_v54 = vld [vmem:[%s2742_s2 + $0x154] sm:$0xf]  ;;  %v1655_v0 = vld [vmem:[%s2742_s2 + $0x284] sm:$0xf]  ;;  %v1558_v2 = vor.u32 %v1676_v56, %v1557_v50 }
  0x2c   :  { %866 = vmatpush.bf16.msrb.mxu2 %v1498_v43  ;;  %893 = vmatpush.bf16.msrb.mxu3 %v1554_v57  ;;  %v1543_v43 = vld [vmem:[%s2742_s2 + $0x31c] sm:$0xf0]  ;;  %v1185_v59 = vld [vmem:[%s2742_s2 + $0x18] sm:$0xf]  ;;  %v1166_v61 = vor.u32 %v1575_v36, %v1163_v37  ;;  %v1663_v5 = vld [vmem:[%s2742_s2 + $0x2c0] sm:$0xf0] }
  0x2d   :  { %789 = vmatmul.bf16.vlgmr.msra.gmra.mxu3 %v1941_v33  ;;  %v1546_v62 = vor.u32 %v1668_v42, %v1543_v43  ;;  %v1491_v1 = vld [vmem:[%s2742_s2 + $0x2b4] sm:$0xf0]  ;;  %v1642_v7 = vld [vmem:[%s2742_s2 + $0x21c] sm:$0xf]  ;;  %v1453_v10 = vld [vmem:[%s2742_s2 + $0x228] sm:$0xf] }
  0x2e   :  { %v1494_v6 = vor.u32 %v1655_v0, %v1491_v1  ;;  %v1629_v12 = vld [vmem:[%s2742_s2 + $0x1b4] sm:$0xf]  ;;  %v1387_v13 = vld [vmem:[%s2742_s2 + $0x1e4] sm:$0xf0]  ;;  %v1604_v15 = vld [vmem:[%s2742_s2 + $0xec] sm:$0xf] }
  0x2f   :  { %727 = vmatpush.bf16.msrb.mxu1 %v1426_v52  ;;  %811 = vmatpush.bf16.msrb.mxu0 %v1438_v58  ;;  %v1237_v52 = vld [vmem:[%s2742_s2 + $0x80] sm:$0xf]  ;;  %v1346_v58 = vor.u32 %v1617_v54, %v1343_v55  ;;  %v1390_v20 = vor.u32 %v1629_v12, %v1387_v13  ;;  %v1591_v21 = vld [vmem:[%s2742_s2 + $0x84] sm:$0xf]  ;;  %v1616_v25 = vld [vmem:[%s2742_s2 + $0x14c] sm:$0xf] }
  0x30   :  { %867 = vmatpush.bf16.msrb.mxu2 %v1446_v60  ;;  %894 = vmatpush.bf16.msrb.mxu3 %v1502_v8  ;;  %v1238_v57 = vor.u32 %v1597_v53, %v1237_v52  ;;  %v1584_v60 = vld [vmem:[%s2742_s2 + $0x48] sm:$0xf0]  ;;  %v1439_v8 = vld [vmem:[%s2742_s2 + $0x24c] sm:$0xf0]  ;;  %v1291_v16 = vld [vmem:[%s2742_s2 + $0x11c] sm:$0xf0] }
  0x31   :  { %v1186_v3 = vor.u32 %v1584_v60, %v1185_v59  ;;  %v1442_v11 = vor.u32 %v1642_v7, %v1439_v8  ;;  %v1294_v17 = vor.u32 %v1604_v15, %v1291_v16  ;;  %v1335_v26 = vld [vmem:[%s2742_s2 + $0x17c] sm:$0xf0]  ;;  %v1578_v34 = vld [vmem:[%s2742_s2 + $0x1c] sm:$0xf]  ;;  %v1187_v35 = vld [vmem:[%s2742_s2 + $0x4c] sm:$0xf0] }
  0x32   :  { %v1349_v36 = vld [vmem:[%s2742_s2 + $0x158] sm:$0xf]  ;;  %v1624_v37 = vld [vmem:[%s2742_s2 + $0x188] sm:$0xf0]  ;;  %v1338_v38 = vor.u32 %v1616_v25, %v1335_v26  ;;  %v1603_v39 = vld [vmem:[%s2742_s2 + $0xe4] sm:$0xf] }
  0x33   :  { %728 = vmatpush.bf16.msrb.mxu1 %v1374_v4  ;;  %812 = vmatpush.bf16.msrb.mxu0 %v1386_v9  ;;  %v1505_v4 = vld [vmem:[%s2742_s2 + $0x290] sm:$0xf]  ;;  %v1283_v40 = vld [vmem:[%s2742_s2 + $0x114] sm:$0xf0]  ;;  %v1350_v42 = vor.u32 %v1624_v37, %v1349_v36  ;;  %v1590_v44 = vld [vmem:[%s2742_s2 + $0x7c] sm:$0xf] }
  0x34   :  { %868 = vmatpush.bf16.msrb.mxu2 %v1394_v45  ;;  %895 = vmatpush.bf16.msrb.mxu3 %v1450_v19  ;;  %v1506_v9 = vor.u32 %v1663_v5, %v1505_v4  ;;  %v1650_v45 = vld [vmem:[%s2742_s2 + $0x258] sm:$0xf0]  ;;  %v1637_v19 = vld [vmem:[%s2742_s2 + $0x1f0] sm:$0xf0]  ;;  %v1286_v43 = vor.u32 %v1603_v39, %v1283_v40  ;;  %v1664_v49 = vld [vmem:[%s2742_s2 + $0x2c8] sm:$0xf0] }
  0x35   :  { %v1454_v14 = vor.u32 %v1650_v45, %v1453_v10  ;;  %v1297_v50 = vld [vmem:[%s2742_s2 + $0xf0] sm:$0xf]  ;;  %v1611_v52 = vld [vmem:[%s2742_s2 + $0x120] sm:$0xf0]  ;;  %v1577_v53 = vld [vmem:[%s2742_s2 + $0x14] sm:$0xf] }
  0x36   :  { %720 = vmatmul.bf16.gmra.mxu1 %v2043_v24  ;;  %710 = vmatmul.bf16.gmra.mxu0 %v2051_v27  ;;  %v1179_v54 = vld [vmem:[%s2742_s2 + $0x44] sm:$0xf0]  ;;  %v1298_v55 = vor.u32 %v1611_v52, %v1297_v50  ;;  %v1671_v59 = vld [vmem:[%s2742_s2 + $0x304] sm:$0xf]  ;;  %v1658_v7 = vld [vmem:[%s2742_s2 + $0x29c] sm:$0xf] }
  0x37   :  { %729 = vmatpush.bf16.msrb.mxu1 %v1322_v18  ;;  %813 = vmatpush.bf16.msrb.mxu0 %v1334_v22  ;;  %v1401_v18 = vld [vmem:[%s2742_s2 + $0x1c0] sm:$0xf]  ;;  %v1239_v22 = vld [vmem:[%s2742_s2 + $0xb4] sm:$0xf0]  ;;  %v1182_v56 = vor.u32 %v1577_v53, %v1179_v54  ;;  %v1409_v5 = vld [vmem:[%s2742_s2 + $0x1c8] sm:$0xf] }
  0x38   :  { %869 = vmatpush.bf16.msrb.mxu2 %v1342_v23  ;;  %896 = vmatpush.bf16.msrb.mxu3 %v1398_v51  ;;  %v1565_v23 = vld [vmem:[%s2742_s2 + $0x300] sm:$0xf]  ;;  %v1402_v30 = vor.u32 %v1637_v19, %v1401_v18  ;;  %v1242_v31 = vor.u32 %v1591_v21, %v1239_v22  ;;  %v1585_v45 = vld [vmem:[%s2742_s2 + $0x50] sm:$0xf0]  ;;  %v1463_v19 = vld [vmem:[%s2742_s2 + $0x264] sm:$0xf0] }
  0x39   :  { %766 = vmatmul.bf16.gmra.mxu2 %v2051_v27  ;;  %v1193_v10 = vld [vmem:[%s2742_s2 + $0x20] sm:$0xf]  ;;  %v1657_v13 = vld [vmem:[%s2742_s2 + $0x294] sm:$0xf]  ;;  %v1573_v22 = vld [vmem:[%s2742_s2 + $0x308] sm:$0xf] }
  0x3a   :  { %v1194_v12 = vor.u32 %v1585_v45, %v1193_v10  ;;  %v1357_v15 = vld [vmem:[%s2742_s2 + $0x160] sm:$0xf]  ;;  %v1645_v18 = vld [vmem:[%s2742_s2 + $0x234] sm:$0xf]  ;;  %v1644_v26 = vld [vmem:[%s2742_s2 + $0x22c] sm:$0xf] }
  0x3b   :  { %730 = vmatpush.bf16.msrb.mxu1 %v1270_v28  ;;  %814 = vmatpush.bf16.msrb.mxu0 %v1282_v32  ;;  %v1677_v28 = vld [vmem:[%s2742_s2 + $0x330] sm:$0xf0]  ;;  %v1466_v21 = vor.u32 %v1645_v18, %v1463_v19  ;;  %v1411_v36 = vld [vmem:[%s2742_s2 + $0x1fc] sm:$0xf0]  ;;  %v1586_v52 = vld [vmem:[%s2742_s2 + $0x58] sm:$0xf0] }
  0x3c   :  { %870 = vmatpush.bf16.msrb.mxu2 %v1290_v46  ;;  %897 = vmatpush.bf16.msrb.mxu3 %v1346_v58  ;;  %v1566_v32 = vor.u32 %v1677_v28, %v1565_v23  ;;  %v1231_v46 = vld [vmem:[%s2742_s2 + $0xac] sm:$0xf0]  ;;  %v1651_v58 = vld [vmem:[%s2742_s2 + $0x260] sm:$0xf0]  ;;  %v1678_v23 = vld [vmem:[%s2742_s2 + $0x338] sm:$0xf0] }
  0x3d   :  { %794 = vmatmul.bf16.gmra.mxu3 %v2051_v27  ;;  %v1234_v47 = vor.u32 %v1590_v44, %v1231_v46  ;;  %v1574_v25 = vor.u32 %v1678_v23, %v1573_v22  ;;  %v1455_v28 = vld [vmem:[%s2742_s2 + $0x25c] sm:$0xf0]  ;;  %v1599_v46 = vld [vmem:[%s2742_s2 + $0xc0] sm:$0xf0]  ;;  %v1469_v54 = vld [vmem:[%s2742_s2 + $0x238] sm:$0xf] }
  0x3e   :  { %v1521_v37 = vld [vmem:[%s2742_s2 + $0x2a0] sm:$0xf]  ;;  %v1365_v45 = vld [vmem:[%s2742_s2 + $0x168] sm:$0xf]  ;;  %v1579_v18 = vld [vmem:[%s2742_s2 + $0x24] sm:$0xf] }
  0x3f   :  { %731 = vmatpush.bf16.msrb.mxu1 %v1218_v41  ;;  %815 = vmatpush.bf16.msrb.mxu0 %v1230_v48  ;;  %v1190_v41 = vor.u32 %v1578_v34, %v1187_v35  ;;  %v1513_v48 = vld [vmem:[%s2742_s2 + $0x298] sm:$0xf]  ;;  %v1632_v34 = vld [vmem:[%s2742_s2 + $0x1cc] sm:$0xf] }
  0x40   :  { %871 = vmatpush.bf16.msrb.mxu2 %v1238_v57  ;;  %898 = vmatpush.bf16.msrb.mxu3 %v1294_v17  ;;  %v1514_v51 = vor.u32 %v1664_v49, %v1513_v48  ;;  %v1461_v57 = vld [vmem:[%s2742_s2 + $0x230] sm:$0xf]  ;;  %v1625_v17 = vld [vmem:[%s2742_s2 + $0x190] sm:$0xf0]  ;;  %v1414_v39 = vor.u32 %v1632_v34, %v1411_v36  ;;  %v1359_v48 = vld [vmem:[%s2742_s2 + $0x194] sm:$0xf0] }
  0x41   :  { %v1462_v60 = vor.u32 %v1651_v58, %v1461_v57  ;;  %v1618_v57 = vld [vmem:[%s2742_s2 + $0x15c] sm:$0xf]  ;;  %v1351_v58 = vld [vmem:[%s2742_s2 + $0x18c] sm:$0xf0] }
  0x43   :  { %732 = vmatpush.bf16.msrb.mxu1 %v1166_v61  ;;  %816 = vmatpush.bf16.msrb.mxu0 %v1178_v63  ;;  %v1567_v61 = vld [vmem:[%s2742_s2 + $0x334] sm:$0xf0]  ;;  %v1598_v63 = vld [vmem:[%s2742_s2 + $0xb8] sm:$0xf0] }
  0x44   :  { %872 = vmatpush.bf16.msrb.mxu2 %v1186_v3  ;;  %899 = vmatpush.bf16.msrb.mxu3 %v1242_v31  ;;  %v1570_v0 = vor.u32 %v1671_v59, %v1567_v61  ;;  %v1559_v3 = vld [vmem:[%s2742_s2 + $0x32c] sm:$0xf0]  ;;  %v1305_v31 = vld [vmem:[%s2742_s2 + $0xf8] sm:$0xf]  ;;  %v1354_v59 = vor.u32 %v1618_v57, %v1351_v58 }
  0x45   :  { %v1307_v61 = vld [vmem:[%s2742_s2 + $0x12c] sm:$0xf0] }
  0x46   :  { %733 = vmatmul.bf16.vlgmr.msrb.gmra.mxu1 %v1941_v33  ;;  %817 = vmatmul.bf16.vlgmr.msrb.gmra.mxu0 %v1941_v33 }
  0x47   :  { %837 = vmatpush.bf16.msra.mxu1 %v1546_v62  ;;  %921 = vmatpush.bf16.msra.mxu0 %v1558_v2  ;;  %v1245_v62 = vld [vmem:[%s2742_s2 + $0x88] sm:$0xf]  ;;  %v1670_v2 = vld [vmem:[%s2742_s2 + $0x2fc] sm:$0xf] }
  0x48   :  { %977 = vmatpush.bf16.msra.mxu2 %v1566_v32  ;;  %900 = vmatpush.bf16.msrb.mxu3 %v1190_v41  ;;  %v1246_v1 = vor.u32 %v1598_v63, %v1245_v62  ;;  %v1562_v4 = vor.u32 %v1670_v2, %v1559_v3  ;;  %v1612_v32 = vld [vmem:[%s2742_s2 + $0x128] sm:$0xf0]  ;;  %v1631_v41 = vld [vmem:[%s2742_s2 + $0x1c4] sm:$0xf]  ;;  %v1417_v63 = vld [vmem:[%s2742_s2 + $0x1d0] sm:$0xf] }
  0x49   :  { %771 = vmatmul.bf16.gmra.mxu2 %v1930_v29  ;;  %v1306_v35 = vor.u32 %v1612_v32, %v1305_v31  ;;  %v1299_v3 = vld [vmem:[%s2742_s2 + $0x124] sm:$0xf0]  ;;  %v1587_v31 = vld [vmem:[%s2742_s2 + $0x60] sm:$0xf0] }
  0x4b   :  { %838 = vmatpush.bf16.msra.mxu1 %v1494_v6  ;;  %922 = vmatpush.bf16.msra.mxu0 %v1506_v9  ;;  %v1638_v6 = vld [vmem:[%s2742_s2 + $0x1f8] sm:$0xf0]  ;;  %v1515_v9 = vld [vmem:[%s2742_s2 + $0x2cc] sm:$0xf0] }
  0x4c   :  { %978 = vmatpush.bf16.msra.mxu2 %v1514_v51  ;;  %1005 = vmatpush.bf16.msra.mxu3 %v1570_v0  ;;  %v1410_v8 = vor.u32 %v1638_v6, %v1409_v5  ;;  %v1201_v51 = vld [vmem:[%s2742_s2 + $0x28] sm:$0xf]  ;;  %v1639_v0 = vld [vmem:[%s2742_s2 + $0x200] sm:$0xf0] }
  0x4d   :  { %799 = vmatmul.bf16.gmra.mxu3 %v1930_v29  ;;  %v1202_v53 = vor.u32 %v1586_v52, %v1201_v51  ;;  %v1418_v2 = vor.u32 %v1639_v0, %v1417_v63  ;;  %v1255_v5 = vld [vmem:[%s2742_s2 + $0xc4] sm:$0xf0] }
  0x4f   :  { %839 = vmatpush.bf16.msra.mxu1 %v1442_v11  ;;  %923 = vmatpush.bf16.msra.mxu0 %v1454_v14  ;;  %v1518_v11 = vor.u32 %v1658_v7, %v1515_v9  ;;  %v1507_v14 = vld [vmem:[%s2742_s2 + $0x2c4] sm:$0xf0]  ;;  %v1203_v9 = vld [vmem:[%s2742_s2 + $0x5c] sm:$0xf0] }
  0x50   :  { %979 = vmatpush.bf16.msra.mxu2 %v1462_v60  ;;  %v1510_v16 = vor.u32 %v1657_v13, %v1507_v14  ;;  %v1606_v60 = vld [vmem:[%s2742_s2 + $0xfc] sm:$0xf]  ;;  %v1592_v13 = vld [vmem:[%s2742_s2 + $0x8c] sm:$0xf]  ;;  %v1247_v14 = vld [vmem:[%s2742_s2 + $0xbc] sm:$0xf0] }
  0x51   :  { %1006 = vmatpush.bf16.msra.mxu3 %v1518_v11  ;;  %v1310_v62 = vor.u32 %v1606_v60, %v1307_v61  ;;  %v1626_v11 = vld [vmem:[%s2742_s2 + $0x198] sm:$0xf0] }
  0x53   :  { %840 = vmatpush.bf16.msra.mxu1 %v1390_v20  ;;  %924 = vmatpush.bf16.msra.mxu0 %v1402_v30  ;;  %v1358_v20 = vor.u32 %v1625_v17, %v1357_v15  ;;  %v1458_v30 = vor.u32 %v1644_v26, %v1455_v28  ;;  %v1250_v15 = vor.u32 %v1592_v13, %v1247_v14  ;;  %v1613_v17 = vld [vmem:[%s2742_s2 + $0x130] sm:$0xf0]  ;;  %v1600_v26 = vld [vmem:[%s2742_s2 + $0xc8] sm:$0xf0] }
  0x54   :  { %980 = vmatpush.bf16.msra.mxu2 %v1410_v8  ;;  %v1580_v8 = vld [vmem:[%s2742_s2 + $0x2c] sm:$0xf] }
  0x55   :  { %1007 = vmatpush.bf16.msra.mxu3 %v1466_v21  ;;  %v1206_v10 = vor.u32 %v1580_v8, %v1203_v9 }
  0x56   :  { %738 = vmatmul.bf16.gmra.mxu1 %v2051_v27  ;;  %822 = vmatmul.bf16.gmra.mxu0 %v2051_v27 }
  0x57   :  { %841 = vmatpush.bf16.msra.mxu1 %v1338_v38  ;;  %925 = vmatpush.bf16.msra.mxu0 %v1350_v42  ;;  %v1665_v38 = vld [vmem:[%s2742_s2 + $0x2d0] sm:$0xf0]  ;;  %v1403_v42 = vld [vmem:[%s2742_s2 + $0x1f4] sm:$0xf0] }
  0x58   :  { %981 = vmatpush.bf16.msra.mxu2 %v1358_v20  ;;  %v1522_v40 = vor.u32 %v1665_v38, %v1521_v37  ;;  %v1406_v44 = vor.u32 %v1631_v41, %v1403_v42  ;;  %v1195_v20 = vld [vmem:[%s2742_s2 + $0x54] sm:$0xf0] }
  0x59   :  { %776 = vmatmul.bf16.gmra.mxu2 %v2043_v24  ;;  %1008 = vmatpush.bf16.msra.mxu3 %v1414_v39  ;;  %v1198_v21 = vor.u32 %v1579_v18, %v1195_v20 }
  0x5b   :  { %842 = vmatpush.bf16.msra.mxu1 %v1286_v43  ;;  %926 = vmatpush.bf16.msra.mxu0 %v1298_v55  ;;  %v1253_v43 = vld [vmem:[%s2742_s2 + $0x90] sm:$0xf]  ;;  %v1652_v55 = vld [vmem:[%s2742_s2 + $0x268] sm:$0xf0] }
  0x5c   :  { %982 = vmatpush.bf16.msra.mxu2 %v1306_v35  ;;  %v1254_v49 = vor.u32 %v1599_v46, %v1253_v43 }
  0x5d   :  { %804 = vmatmul.bf16.gmra.mxu3 %v2043_v24 }
  0x5f   :  { %843 = vmatpush.bf16.msra.mxu1 %v1234_v47  ;;  %927 = vmatpush.bf16.msra.mxu0 %v1246_v1  ;;  %v1619_v47 = vld [vmem:[%s2742_s2 + $0x164] sm:$0xf]  ;;  %v1605_v1 = vld [vmem:[%s2742_s2 + $0xf4] sm:$0xf] }
  0x60   :  { %v1362_v50 = vor.u32 %v1619_v47, %v1359_v48  ;;  %983 = vmatpush.bf16.msra.mxu2 %v1254_v49  ;;  %v1302_v6 = vor.u32 %v1605_v1, %v1299_v3 }
  0x62   :  { %1009 = vmatpush.bf16.msra.mxu3 %v1362_v50 }
  0x63   :  { %844 = vmatpush.bf16.msra.mxu1 %v1182_v56  ;;  %928 = vmatpush.bf16.msra.mxu0 %v1194_v12  ;;  %v1470_v56 = vor.u32 %v1652_v55, %v1469_v54  ;;  %v1366_v12 = vor.u32 %v1626_v11, %v1365_v45 }
  0x64   :  { %984 = vmatpush.bf16.msra.mxu2 %v1202_v53 }
  0x66   :  { %743 = vmatmul.bf16.gmra.mxu1 %v1930_v29  ;;  %827 = vmatmul.bf16.gmra.mxu0 %v1930_v29 }
  0x67   :  { %949 = vmatpush.bf16.msrb.mxu1 %v1562_v4  ;;  %1033 = vmatpush.bf16.msrb.mxu0 %v1574_v25  ;;  %v1593_v4 = vld [vmem:[%s2742_s2 + $0x94] sm:$0xf] }
  0x68   :  { %1010 = vmatpush.bf16.msra.mxu3 %v1310_v62  ;;  %v1258_v7 = vor.u32 %v1593_v4, %v1255_v5 }
  0x69   :  { %873 = vmatmul.bf16.vlgmr.msrb.gmra.mxu2 %v1941_v33 }
  0x6a   :  { %1687 = vmatpush.bf16.msrb.mxu2 %v1574_v25  ;;  %v1261_v25 = vld [vmem:[%s2742_s2 + $0x98] sm:$0xf] }
  0x6b   :  { %950 = vmatpush.bf16.msrb.mxu1 %v1510_v16  ;;  %1034 = vmatpush.bf16.msrb.mxu0 %v1522_v40  ;;  %v1313_v16 = vld [vmem:[%s2742_s2 + $0x100] sm:$0xf]  ;;  %v1262_v28 = vor.u32 %v1600_v26, %v1261_v25 }
  0x6c   :  { %1011 = vmatpush.bf16.msra.mxu3 %v1258_v7  ;;  %v1314_v19 = vor.u32 %v1613_v17, %v1313_v16 }
  0x6d   :  { %901 = vmatmul.bf16.vlgmr.msrb.gmra.mxu3 %v1941_v33 }
  0x6e   :  { %1688 = vmatpush.bf16.msrb.mxu2 %v1522_v40 }
  0x6f   :  { %951 = vmatpush.bf16.msrb.mxu1 %v1458_v30  ;;  %1035 = vmatpush.bf16.msrb.mxu0 %v1470_v56  ;;  %v1209_v30 = vld [vmem:[%s2742_s2 + $0x30] sm:$0xf] }
  0x70   :  { %1012 = vmatpush.bf16.msra.mxu3 %v1206_v10  ;;  %v1210_v32 = vor.u32 %v1587_v31, %v1209_v30 }
  0x72   :  { %1689 = vmatpush.bf16.msrb.mxu2 %v1470_v56 }
  0x73   :  { %952 = vmatpush.bf16.msrb.mxu1 %v1406_v44  ;;  %1036 = vmatpush.bf16.msrb.mxu0 %v1418_v2 }
  0x76   :  { %748 = vmatmul.bf16.gmra.mxu1 %v2043_v24  ;;  %832 = vmatmul.bf16.gmra.mxu0 %v2043_v24 }
  0x77   :  { %953 = vmatpush.bf16.msrb.mxu1 %v1354_v59  ;;  %1690 = vmatpush.bf16.msrb.mxu2 %v1418_v2 }
  0x78   :  { %1037 = vmatpush.bf16.msrb.mxu0 %v1366_v12 }
  0x79   :  { %878 = vmatmul.bf16.gmra.mxu2 %v2051_v27 }
  0x7b   :  { %954 = vmatpush.bf16.msrb.mxu1 %v1302_v6  ;;  %1691 = vmatpush.bf16.msrb.mxu2 %v1366_v12 }
  0x7c   :  { %1038 = vmatpush.bf16.msrb.mxu0 %v1314_v19 }
  0x7d   :  { %906 = vmatmul.bf16.gmra.mxu3 %v2051_v27 }
  0x7f   :  { %955 = vmatpush.bf16.msrb.mxu1 %v1250_v15  ;;  %1692 = vmatpush.bf16.msrb.mxu2 %v1314_v19 }
  0x80   :  { %1039 = vmatpush.bf16.msrb.mxu0 %v1262_v28 }
  0x83   :  { %956 = vmatpush.bf16.msrb.mxu1 %v1198_v21  ;;  %1693 = vmatpush.bf16.msrb.mxu2 %v1262_v28 }
  0x84   :  { %1040 = vmatpush.bf16.msrb.mxu0 %v1210_v32 }
  0x86   :  { %845 = vmatmul.bf16.vlgmr.msra.gmra.mxu1 %v1941_v33  ;;  %929 = vmatmul.bf16.vlgmr.msra.gmra.mxu0 %v1941_v33 }
  0x87   :  { %1694 = vmatpush.bf16.msrb.mxu2 %v1210_v32 }
  0x89   :  { %883 = vmatmul.bf16.gmra.mxu2 %v1930_v29 }
  0x8d   :  { %911 = vmatmul.bf16.gmra.mxu3 %v1930_v29 }
  0x96   :  { %850 = vmatmul.bf16.gmra.mxu1 %v2051_v27  ;;  %934 = vmatmul.bf16.gmra.mxu0 %v2051_v27 }
  0x99   :  { %888 = vmatmul.bf16.gmra.mxu2 %v2043_v24 }
  0x9d   :  { %916 = vmatmul.bf16.gmra.mxu3 %v2043_v24 }
  0xa3   :  { %v716_v22 = vpop.f32.mrf.mxu1  ;;  %v706_v23 = vpop.f32.mrf.mxu0 }
  0xa4   :  { %1114 = vst [vmem:[%s2743_s3 + $0x1a0] sm:$0xff] %v716_v22 }
  0xa5   :  { %1061 = vst [vmem:[%s2743_s3] sm:$0xff] %v706_v23 }
  0xa6   :  { %855 = vmatmul.bf16.gmra.mxu1 %v1930_v29  ;;  %939 = vmatmul.bf16.gmra.mxu0 %v1930_v29 }
  0xa9   :  { %985 = vmatmul.bf16.vlgmr.msra.gmra.mxu2 %v1941_v33 }
  0xab   :  { %v718_v35 = vpop.f32.mrf.mxu1  ;;  %v708_v36 = vpop.f32.mrf.mxu0 }
  0xac   :  { %v762_v34 = vpop.f32.mrf.mxu2  ;;  %1127 = vst [vmem:[%s2743_s3 + $0x208] sm:$0xff] %v718_v35 }
  0xad   :  { %1063 = vst [vmem:[%s2743_s3 + $0x10] sm:$0xff] %v762_v34  ;;  %1013 = vmatmul.bf16.vlgmr.msra.gmra.mxu3 %v1941_v33 }
  0xae   :  { %1075 = vst [vmem:[%s2743_s3 + $0x68] sm:$0xff] %v708_v36 }
  0xb0   :  { %v790_v37 = vpop.f32.mrf.mxu3 }
  0xb1   :  { %1064 = vst [vmem:[%s2743_s3 + $0x18] sm:$0xff] %v790_v37 }
  0xb3   :  { %v721_v39 = vpop.f32.mrf.mxu1  ;;  %v711_v40 = vpop.f32.mrf.mxu0 }
  0xb4   :  { %v764_v38 = vpop.f32.mrf.mxu2  ;;  %1140 = vst [vmem:[%s2743_s3 + $0x270] sm:$0x3] %v721_v39 }
  0xb5   :  { %1077 = vst [vmem:[%s2743_s3 + $0x78] sm:$0xff] %v764_v38 }
  0xb6   :  { %1088 = vst [vmem:[%s2743_s3 + $0xd0] sm:$0xff] %v711_v40  ;;  %860 = vmatmul.bf16.gmra.mxu1 %v2043_v24  ;;  %944 = vmatmul.bf16.gmra.mxu0 %v2043_v24 }
  0xb8   :  { %v792_v41 = vpop.f32.mrf.mxu3 }
  0xb9   :  { %990 = vmatmul.bf16.gmra.mxu2 %v2051_v27  ;;  %1078 = vst [vmem:[%s2743_s3 + $0x80] sm:$0xff] %v792_v41 }
  0xbb   :  { %v723_v43 = vpop.f32.mrf.mxu1  ;;  %v713_v44 = vpop.f32.mrf.mxu0 }
  0xbc   :  { %v767_v42 = vpop.f32.mrf.mxu2  ;;  %1101 = vst [vmem:[%s2743_s3 + $0x138] sm:$0xff] %v713_v44 }
  0xbd   :  { %1090 = vst [vmem:[%s2743_s3 + $0xe0] sm:$0xff] %v767_v42  ;;  %1018 = vmatmul.bf16.gmra.mxu3 %v2051_v27 }
  0xc0   :  { %v795_v46 = vpop.f32.mrf.mxu3 }
  0xc1   :  { %1091 = vst [vmem:[%s2743_s3 + $0xe8] sm:$0xff] %v795_v46 }
  0xc3   :  { %v734_v48 = vpop.f32.mrf.mxu1  ;;  %v818_v49 = vpop.f32.mrf.mxu0 }
  0xc4   :  { %v769_v47 = vpop.f32.mrf.mxu2  ;;  %1062 = vst [vmem:[%s2743_s3 + $0x8] sm:$0xff] %v734_v48 }
  0xc5   :  { %1103 = vst [vmem:[%s2743_s3 + $0x148] sm:$0xff] %v769_v47 }
  0xc6   :  { %1065 = vst [vmem:[%s2743_s3 + $0x20] sm:$0xff] %v818_v49  ;;  %957 = vmatmul.bf16.vlgmr.msrb.gmra.mxu1 %v1941_v33  ;;  %1041 = vmatmul.bf16.vlgmr.msrb.gmra.mxu0 %v1941_v33 }
  0xc8   :  { %v797_v50 = vpop.f32.mrf.mxu3 }
  0xc9   :  { %995 = vmatmul.bf16.gmra.mxu2 %v1930_v29  ;;  %1104 = vst [vmem:[%s2743_s3 + $0x150] sm:$0xff] %v797_v50 }
  0xcb   :  { %v736_v52 = vpop.f32.mrf.mxu1  ;;  %v820_v53 = vpop.f32.mrf.mxu0 }
  0xcc   :  { %v772_v51 = vpop.f32.mrf.mxu2  ;;  %1076 = vst [vmem:[%s2743_s3 + $0x70] sm:$0xff] %v736_v52 }
  0xcd   :  { %1116 = vst [vmem:[%s2743_s3 + $0x1b0] sm:$0xff] %v772_v51  ;;  %1023 = vmatmul.bf16.gmra.mxu3 %v1930_v29 }
  0xce   :  { %1079 = vst [vmem:[%s2743_s3 + $0x88] sm:$0xff] %v820_v53 }
  0xd0   :  { %v800_v33 = vpop.f32.mrf.mxu3 }
  0xd1   :  { %1117 = vst [vmem:[%s2743_s3 + $0x1b8] sm:$0xff] %v800_v33 }
  0xd3   :  { %v739_v55 = vpop.f32.mrf.mxu1  ;;  %v823_v56 = vpop.f32.mrf.mxu0 }
  0xd4   :  { %v774_v54 = vpop.f32.mrf.mxu2  ;;  %1089 = vst [vmem:[%s2743_s3 + $0xd8] sm:$0xff] %v739_v55 }
  0xd5   :  { %1129 = vst [vmem:[%s2743_s3 + $0x218] sm:$0xff] %v774_v54 }
  0xd6   :  { %1092 = vst [vmem:[%s2743_s3 + $0xf0] sm:$0xff] %v823_v56  ;;  %962 = vmatmul.bf16.gmra.mxu1 %v2051_v27  ;;  %1046 = vmatmul.bf16.gmra.mxu0 %v2051_v27 }
  0xd8   :  { %v802_v57 = vpop.f32.mrf.mxu3 }
  0xd9   :  { %1000 = vmatmul.bf16.gmra.mxu2 %v2043_v24  ;;  %1130 = vst [vmem:[%s2743_s3 + $0x220] sm:$0xff] %v802_v57 }
  0xdb   :  { %v741_v59 = vpop.f32.mrf.mxu1  ;;  %v825_v60 = vpop.f32.mrf.mxu0 }
  0xdc   :  { %v777_v58 = vpop.f32.mrf.mxu2  ;;  %1102 = vst [vmem:[%s2743_s3 + $0x140] sm:$0xff] %v741_v59 }
  0xdd   :  { %1142 = vst [vmem:[%s2743_s3 + $0x280] sm:$0x3] %v777_v58  ;;  %1028 = vmatmul.bf16.gmra.mxu3 %v2043_v24 }
  0xde   :  { %1105 = vst [vmem:[%s2743_s3 + $0x158] sm:$0xff] %v825_v60 }
  0xe0   :  { %v805_v27 = vpop.f32.mrf.mxu3 }
  0xe1   :  { %1143 = vst [vmem:[%s2743_s3 + $0x288] sm:$0x3] %v805_v27 }
  0xe3   :  { %v744_v62 = vpop.f32.mrf.mxu1  ;;  %v828_v63 = vpop.f32.mrf.mxu0 }
  0xe4   :  { %v779_v61 = vpop.f32.mrf.mxu2  ;;  %1115 = vst [vmem:[%s2743_s3 + $0x1a8] sm:$0xff] %v744_v62 }
  0xe5   :  { %1118 = vst [vmem:[%s2743_s3 + $0x1c0] sm:$0xff] %v828_v63 }
  0xe6   :  { %967 = vmatmul.bf16.gmra.mxu1 %v1930_v29  ;;  %1051 = vmatmul.bf16.gmra.mxu0 %v1930_v29 }
  0xe8   :  { %v807_v0 = vpop.f32.mrf.mxu3 }
  0xe9   :  { %1056 = vmatmul.bf16.vlgmr.msrb.gmra.mxu2 %v2043_v24 }
  0xeb   :  { %v746_v2 = vpop.f32.mrf.mxu1  ;;  %v830_v3 = vpop.f32.mrf.mxu0 }
  0xec   :  { %v874_v1 = vpop.f32.mrf.mxu2  ;;  %1128 = vst [vmem:[%s2743_s3 + $0x210] sm:$0xff] %v746_v2 }
  0xed   :  { %1067 = vst [vmem:[%s2743_s3 + $0x30] sm:$0xff] %v874_v1 }
  0xee   :  { %1131 = vst [vmem:[%s2743_s3 + $0x228] sm:$0xff] %v830_v3 }
  0xf0   :  { %v902_v4 = vpop.f32.mrf.mxu3 }
  0xf1   :  { %1068 = vst [vmem:[%s2743_s3 + $0x38] sm:$0xff] %v902_v4 }
  0xf3   :  { %v749_v5 = vpop.f32.mrf.mxu1  ;;  %v833_v6 = vpop.f32.mrf.mxu0 }
  0xf4   :  { %v876_v29 = vpop.f32.mrf.mxu2  ;;  %1141 = vst [vmem:[%s2743_s3 + $0x278] sm:$0x3] %v749_v5 }
  0xf5   :  { %1081 = vst [vmem:[%s2743_s3 + $0x98] sm:$0xff] %v876_v29 }
  0xf6   :  { %1144 = vst [vmem:[%s2743_s3 + $0x290] sm:$0x3] %v833_v6  ;;  %972 = vmatmul.bf16.gmra.mxu1 %v2043_v24 }
  0xf8   :  { %v904_v7 = vpop.f32.mrf.mxu3 }
  0xf9   :  { %1082 = vst [vmem:[%s2743_s3 + $0xa0] sm:$0xff] %v904_v7 }
  0xfb   :  { %v751_v9 = vpop.f32.mrf.mxu1  ;;  %v835_v10 = vpop.f32.mrf.mxu0 }
  0xfc   :  { %v879_v8 = vpop.f32.mrf.mxu2 }
  0xfd   :  { %1094 = vst [vmem:[%s2743_s3 + $0x100] sm:$0xff] %v879_v8 }
 0x100   :  { %v907_v45 = vpop.f32.mrf.mxu3 }
 0x101   :  { %1095 = vst [vmem:[%s2743_s3 + $0x108] sm:$0xff] %v907_v45 }
 0x103   :  { %v846_v12 = vpop.f32.mrf.mxu1  ;;  %v930_v24 = vpop.f32.mrf.mxu0 }
 0x104   :  { %v881_v11 = vpop.f32.mrf.mxu2  ;;  %1066 = vst [vmem:[%s2743_s3 + $0x28] sm:$0xff] %v846_v12 }
 0x105   :  { %1107 = vst [vmem:[%s2743_s3 + $0x168] sm:$0xff] %v881_v11 }
 0x106   :  { %1069 = vst [vmem:[%s2743_s3 + $0x40] sm:$0xff] %v930_v24 }
 0x108   :  { %v909_v13 = vpop.f32.mrf.mxu3 }
 0x109   :  { %1108 = vst [vmem:[%s2743_s3 + $0x170] sm:$0xff] %v909_v13 }
 0x10b   :  { %v848_v15 = vpop.f32.mrf.mxu1  ;;  %v932_v16 = vpop.f32.mrf.mxu0 }
 0x10c   :  { %v884_v14 = vpop.f32.mrf.mxu2  ;;  %1080 = vst [vmem:[%s2743_s3 + $0x90] sm:$0xff] %v848_v15 }
 0x10d   :  { %1120 = vst [vmem:[%s2743_s3 + $0x1d0] sm:$0xff] %v884_v14 }
 0x10e   :  { %1083 = vst [vmem:[%s2743_s3 + $0xa8] sm:$0xff] %v932_v16 }
 0x110   :  { %v912_v17 = vpop.f32.mrf.mxu3 }
 0x111   :  { %1121 = vst [vmem:[%s2743_s3 + $0x1d8] sm:$0xff] %v912_v17 }
 0x113   :  { %v851_v19 = vpop.f32.mrf.mxu1  ;;  %v935_v20 = vpop.f32.mrf.mxu0 }
 0x114   :  { %v886_v18 = vpop.f32.mrf.mxu2  ;;  %1093 = vst [vmem:[%s2743_s3 + $0xf8] sm:$0xff] %v851_v19 }
 0x115   :  { %1133 = vst [vmem:[%s2743_s3 + $0x238] sm:$0xff] %v886_v18 }
 0x116   :  { %1096 = vst [vmem:[%s2743_s3 + $0x110] sm:$0xff] %v935_v20 }
 0x118   :  { %v914_v21 = vpop.f32.mrf.mxu3 }
 0x119   :  { %1134 = vst [vmem:[%s2743_s3 + $0x240] sm:$0xff] %v914_v21 }
 0x11b   :  { %v853_v23 = vpop.f32.mrf.mxu1  ;;  %v937_v25 = vpop.f32.mrf.mxu0 }
 0x11c   :  { %v889_v22 = vpop.f32.mrf.mxu2  ;;  %1106 = vst [vmem:[%s2743_s3 + $0x160] sm:$0xff] %v853_v23 }
 0x11d   :  { %1146 = vst [vmem:[%s2743_s3 + $0x2a0] sm:$0x3] %v889_v22 }
 0x11e   :  { %1109 = vst [vmem:[%s2743_s3 + $0x178] sm:$0xff] %v937_v25 }
 0x120   :  { %v917_v26 = vpop.f32.mrf.mxu3 }
 0x121   :  { %1147 = vst [vmem:[%s2743_s3 + $0x2a8] sm:$0x3] %v917_v26 }
 0x123   :  { %v856_v30 = vpop.f32.mrf.mxu1  ;;  %v940_v31 = vpop.f32.mrf.mxu0 }
 0x124   :  { %v891_v28 = vpop.f32.mrf.mxu2  ;;  %1119 = vst [vmem:[%s2743_s3 + $0x1c8] sm:$0xff] %v856_v30 }
 0x125   :  { %1122 = vst [vmem:[%s2743_s3 + $0x1e0] sm:$0xff] %v940_v31 }
 0x128   :  { %v919_v32 = vpop.f32.mrf.mxu3 }
 0x12b   :  { %v858_v35 = vpop.f32.mrf.mxu1  ;;  %v942_v36 = vpop.f32.mrf.mxu0 }
 0x12c   :  { %v986_v34 = vpop.f32.mrf.mxu2  ;;  %1132 = vst [vmem:[%s2743_s3 + $0x230] sm:$0xff] %v858_v35 }
 0x12d   :  { %1071 = vst [vmem:[%s2743_s3 + $0x50] sm:$0xff] %v986_v34 }
 0x12e   :  { %1135 = vst [vmem:[%s2743_s3 + $0x248] sm:$0xff] %v942_v36 }
 0x130   :  { %v1014_v37 = vpop.f32.mrf.mxu3 }
 0x131   :  { %1072 = vst [vmem:[%s2743_s3 + $0x58] sm:$0xff] %v1014_v37 }
 0x133   :  { %v861_v39 = vpop.f32.mrf.mxu1  ;;  %v945_v40 = vpop.f32.mrf.mxu0 }
 0x134   :  { %v988_v38 = vpop.f32.mrf.mxu2  ;;  %1145 = vst [vmem:[%s2743_s3 + $0x298] sm:$0x3] %v861_v39 }
 0x135   :  { %1085 = vst [vmem:[%s2743_s3 + $0xb8] sm:$0xff] %v988_v38 }
 0x136   :  { %1148 = vst [vmem:[%s2743_s3 + $0x2b0] sm:$0x3] %v945_v40 }
 0x138   :  { %v1016_v41 = vpop.f32.mrf.mxu3 }
 0x139   :  { %1086 = vst [vmem:[%s2743_s3 + $0xc0] sm:$0xff] %v1016_v41 }
 0x13b   :  { %v863_v43 = vpop.f32.mrf.mxu1  ;;  %v947_v44 = vpop.f32.mrf.mxu0 }
 0x13c   :  { %v991_v42 = vpop.f32.mrf.mxu2 }
 0x13d   :  { %1098 = vst [vmem:[%s2743_s3 + $0x120] sm:$0xff] %v991_v42 }
 0x140   :  { %v1019_v46 = vpop.f32.mrf.mxu3 }
 0x141   :  { %1099 = vst [vmem:[%s2743_s3 + $0x128] sm:$0xff] %v1019_v46 }
 0x143   :  { %v958_v48 = vpop.f32.mrf.mxu1  ;;  %v1042_v49 = vpop.f32.mrf.mxu0 }
 0x144   :  { %v993_v47 = vpop.f32.mrf.mxu2  ;;  %1070 = vst [vmem:[%s2743_s3 + $0x48] sm:$0xff] %v958_v48 }
 0x145   :  { %1111 = vst [vmem:[%s2743_s3 + $0x188] sm:$0xff] %v993_v47 }
 0x146   :  { %1074 = vst.msk [vmem:[%s2743_s3 + $0x60] sm:$0xff] %vm1073_vm0, %v1042_v49 }
 0x148   :  { %v1021_v50 = vpop.f32.mrf.mxu3 }
 0x149   :  { %1112 = vst [vmem:[%s2743_s3 + $0x190] sm:$0xff] %v1021_v50 }
 0x14b   :  { %v960_v52 = vpop.f32.mrf.mxu1  ;;  %v1044_v53 = vpop.f32.mrf.mxu0 }
 0x14c   :  { %v996_v51 = vpop.f32.mrf.mxu2  ;;  %1084 = vst [vmem:[%s2743_s3 + $0xb0] sm:$0xff] %v960_v52 }
 0x14d   :  { %1124 = vst [vmem:[%s2743_s3 + $0x1f0] sm:$0xff] %v996_v51 }
 0x14e   :  { %1087 = vst.msk [vmem:[%s2743_s3 + $0xc8] sm:$0xff] %vm1073_vm0, %v1044_v53 }
 0x150   :  { %v1024_v33 = vpop.f32.mrf.mxu3 }
 0x151   :  { %1125 = vst [vmem:[%s2743_s3 + $0x1f8] sm:$0xff] %v1024_v33 }
 0x153   :  { %v963_v55 = vpop.f32.mrf.mxu1  ;;  %v1047_v56 = vpop.f32.mrf.mxu0 }
 0x154   :  { %v998_v54 = vpop.f32.mrf.mxu2  ;;  %1097 = vst [vmem:[%s2743_s3 + $0x118] sm:$0xff] %v963_v55 }
 0x155   :  { %1137 = vst [vmem:[%s2743_s3 + $0x258] sm:$0xff] %v998_v54 }
 0x156   :  { %1100 = vst.msk [vmem:[%s2743_s3 + $0x130] sm:$0xff] %vm1073_vm0, %v1047_v56 }
 0x158   :  { %v1026_v57 = vpop.f32.mrf.mxu3 }
 0x159   :  { %1138 = vst [vmem:[%s2743_s3 + $0x260] sm:$0xff] %v1026_v57 }
 0x15b   :  { %v965_v59 = vpop.f32.mrf.mxu1  ;;  %v1049_v60 = vpop.f32.mrf.mxu0 }
 0x15c   :  { %v1001_v58 = vpop.f32.mrf.mxu2  ;;  %1110 = vst [vmem:[%s2743_s3 + $0x180] sm:$0xff] %v965_v59 }
 0x15d   :  { %1150 = vst [vmem:[%s2743_s3 + $0x2c0] sm:$0x3] %v1001_v58 }
 0x15e   :  { %1113 = vst.msk [vmem:[%s2743_s3 + $0x198] sm:$0xff] %vm1073_vm0, %v1049_v60 }
 0x160   :  { %v1029_v27 = vpop.f32.mrf.mxu3 }
 0x161   :  { %1151 = vst [vmem:[%s2743_s3 + $0x2c8] sm:$0x3] %v1029_v27 }
 0x163   :  { %v968_v62 = vpop.f32.mrf.mxu1  ;;  %v1052_v63 = vpop.f32.mrf.mxu0 }
 0x164   :  { %v1003_v61 = vpop.f32.mrf.mxu2  ;;  %1123 = vst [vmem:[%s2743_s3 + $0x1e8] sm:$0xff] %v968_v62 }
 0x165   :  { %1126 = vst.msk [vmem:[%s2743_s3 + $0x200] sm:$0xff] %vm1073_vm0, %v1052_v63 }
 0x168   :  { %v1031_v0 = vpop.f32.mrf.mxu3 }
 0x16b   :  { %v970_v2 = vpop.f32.mrf.mxu1  ;;  %v1054_v3 = vpop.f32.mrf.mxu0 }
 0x16c   :  { %v1057_v1 = vpop.f32.mrf.mxu2  ;;  %1136 = vst [vmem:[%s2743_s3 + $0x250] sm:$0xff] %v970_v2 }
 0x16d   :  { %1153 = vst.msk [vmem:[%s2743_s3 + $0x2d0] sm:$0x3] %vm1152_vm1, %v1057_v1 }
 0x16e   :  { %1139 = vst.msk [vmem:[%s2743_s3 + $0x268] sm:$0xff] %vm1073_vm0, %v1054_v3 }
 0x173   :  { %v973_v29 = vpop.f32.mrf.mxu1 }
 0x174   :  { %v1059_v4 = vpop.f32.mrf.mxu2  ;;  %1149 = vst [vmem:[%s2743_s3 + $0x2b8] sm:$0x3] %v973_v29 }
 0x17b   :  { %v975_v5 = vpop.f32.mrf.mxu1 }
 0x17c   :  { %1158 = vsyncpa [#allocation3], 1 }

// kernel: decoder_forward.6
= control target key start
LH: loop header
LB: loop body
LE: loop exit
PB: predicated region body
PF: predicated region fallthrough
CT: control target
= control target key end

     0   :  { %8 = vsyncpa [#allocation3], 0  ;;  %s5691_s0 = inlined_call_operand.vmem [shape: f32[2,1024], index: 0, kind: input, shape index: {}]   ;;  %s5692_s1 = inlined_call_operand.hbm [shape: f32[1,1024], index: 1, kind: input, shape index: {}]   ;;  %s5693_s2 = inlined_call_operand.hbm [shape: bf16[1024,3200], index: 2, kind: input, shape index: {}]   ;;  %s5694_s3 = inlined_call_operand.vmem [shape: f32[2,3200], index: 3, kind: output, shape index: {}]  }
   0x1   :  { %9 = vsyncpa [#allocation5], 0 }
   0x2   :  { %11 = vsyncpa [#allocation5 + $0x1], 0  ;;  %s4838_s12 = smov 0   ;;  %s4840_s13 = smov 0  }
   0x3   :  { %s4842_s14 = smov 0   ;;  %s4844_s15 = smov 0  }
   0x4   :  { %s4846_s16 = smov 0   ;;  %s4848_s17 = smov 0  }
   0x5 LB: > { %s3014_s18 = sadd.s32 4294967295, %s4812_s17   ;;  %s83_s19 = sadd.s32 1, %s4800_s14  ;;  %s4812_s17 = sphi %s4848_s17, %s17_s17   ;;  %s4808_s16 = sphi %s4846_s16, %s5704_s16   ;;  %s4804_s15 = sphi %s4844_s15, %s5703_s15   ;;  %s4800_s14 = sphi %s4842_s14, %s5702_s14   ;;  %s4796_s13 = sphi %s4840_s13, %s5701_s13   ;;  %s4792_s12 = sphi %s4838_s12, %s5700_s12  }
   0x6   : > { %p90_p0 = scmp.ne.s32.totalorder %s4800_s14, %s4796_s13  ;;  %p91_p1 = scmp.eq.s32.totalorder %s4812_s17, 0 }
   0x7   : > { %p96_p2 = scmp.ne.s32.totalorder %s4796_s13, %s4792_s12  ;;  %p4872_p3 = scmp.eq.s32.totalorder %s3014_s18, 0 }
   0x8   : > { %p4876_p4 = por %p91_p1, %p90_p0  ;;  %p3016_p5 = scmp.ge.s32.totalorder %s4812_s17, 1 }
   0x9   : > { %p4883_p6 = por %p4872_p3, %p96_p2  ;;  %p135_p7 = scmp.lt.s32.totalorder %s4812_s17, 6 }
   0xa   : > { %s155_s25 = sshll.u32 %s5692_s1, 4  ;;  %s4814_s27 = smov [#allocation2]   ;;  %s156_s25 = int_to_ptr.hbm [resolvable:$true] %s155_s25 }
   0xb   : > { %p4891_p8 = pnand %p3016_p5, %p135_p7  ;;  %s157_s28 = sshll.u32 %s4814_s27, 4  ;;  %s158_s28 = int_to_ptr.vmem [resolvable:$true] %s157_s28 }
   0xc   : > { %p4644_p10 = scmp.lt.s32.totalorder %s4812_s17, 5  ;;  %s29_s30 = sadd.s32 1, %s4808_s16 }
   0xd   : > { %p4635_p9 = pneg %p4891_p8  ;;  %p31_p13 = scmp.ge.s32.totalorder %s29_s30, 5 }
   0xe   : > { %p4902_p12 = pnand %p4644_p10, %p4876_p4  ;;  %s168_s4 = sand.u32 1, %s4800_s14  }
   0xf   : > { %p4636_p11 = pnand %p4635_p9, %p4872_p3  ;;  %s4306_s5 = smul.u32 20, %s4808_s16 }
  0x10   : > { %s5706_s30 = smov (%p31_p13, %s29_s30), 0  ;;  %s4627_s6 = smul.u32 2560, %s168_s4 }
  0x11   : > { %4638 = dma.hbm_to_vmem [thread:$0]  (!%p4636_p11), %s156_s25, 128, %s158_s28, [#allocation3]  }
  0x12   : > { %s80_s7 = ssub.s32 %s4808_s16, %s5706_s30  ;;  %s177_s10 = scalar_lea.hbm %s5693_s2, %s4306_s5 }
  0x13   : > { %p81_p0 = scmp.eq.s32.totalorder %s80_s7, 0  ;;  %s178_s11 = sshll.u32 %s177_s10, 4  ;;  %s179_s11 = int_to_ptr.hbm [resolvable:$true] %s178_s11 }
  0x14   : > { %s172_s12 = scalar_lea.vmem [#allocation4], %s4627_s6  ;;  %s169_s23 = scalar_lea.sflag [#allocation5], %s168_s4 }
  0x15   : > { %s180_s18 = sshll.u32 %s172_s12, 4  ;;  %s4815_s24 = smov 1600   ;;  %s181_s18 = int_to_ptr.vmem [resolvable:$true] %s180_s18 }
  0x16   : > { %s4919_s21 = scalar_select %p81_p0, %s4800_s14, %s83_s19  }
  0x17   : > { %s4816_s25 = smov 320   ;;  %s4817_s27 = smov 20  }
  0x18   : > { %4642 = dma.hbm_to_vmem [thread:$0]  (!%p4902_p12), %s179_s11, 40960, %s181_s18, %s169_s23, %s4815_s24, %s4816_s25, %s4817_s27  }
  0x19   : > { %192 = sbr.rel (%p4891_p8) target bundleno = 501 (0x1f5), region = 32 }
  0x1e   : > { %4783 = dma.done.wait (%p4872_p3), [#allocation3], 128  }
  0x1f   : > { %4785 = vsyncadd (%p4872_p3), [#allocation3], 4294967168  ;;  %s199_s19 = sand.u32 1, %s4796_s13  }
  0x20   : > { %s4628_s28 = smul.u32 2560, %s199_s19  ;;  %s200_s5 = scalar_lea.sflag [#allocation5], %s199_s19 }
  0x22   : > { %s4930_s4 = scalar_lea.vmem [#allocation4], %s4628_s28 }
  0x23   : > { %4787 = dma.done.wait (%p4883_p6), %s200_s5, 40960  }
  0x24   : > { %4789 = vsyncadd (%p4883_p6), %s200_s5, 4294926336  ;;  %v3166_v0 = vld [vmem:[%s4930_s4 + $0x118] sm:$0xf]  ;;  %v4344_v1 = vld [vmem:[%s4930_s4 + $0x128] sm:$0xf0]  ;;  %vm270_vm0 = vcmask 1041408  }
  0x25   : > { %v3326_v2 = vld [vmem:[%s4930_s4 + $0x258] sm:$0xf]  ;;  %v3167_v3 = vor.u32 %v4344_v1, %v3166_v0  ;;  %v4384_v4 = vld [vmem:[%s4930_s4 + $0x268] sm:$0xf0]  ;;  %v3146_v11 = vld [vmem:[%s4930_s4 + $0xf0] sm:$0xf] }
  0x26   : > { %v3486_v5 = vld [vmem:[%s4930_s4 + $0x398] sm:$0xf]  ;;  %v4424_v6 = vld [vmem:[%s4930_s4 + $0x3a8] sm:$0xf0]  ;;  %v3327_v7 = vor.u32 %v4384_v4, %v3326_v2  ;;  %v4339_v13 = vld [vmem:[%s4930_s4 + $0x100] sm:$0xf0] }
  0x27   : > { %v3487_v8 = vor.u32 %v4424_v6, %v3486_v5  ;;  %v3646_v9 = vld [vmem:[%s4930_s4 + $0x4d8] sm:$0xf]  ;;  %v4464_v10 = vld [vmem:[%s4930_s4 + $0x4e8] sm:$0xf0]  ;;  %2362 = vmatpush.bf16.msra.mxu0 %v3167_v3  ;;  %v3306_v14 = vld [vmem:[%s4930_s4 + $0x230] sm:$0xf]  ;;  %v3147_v16 = vor.u32 %v4339_v13, %v3146_v11 }
  0x28   : > { %v3647_v12 = vor.u32 %v4464_v10, %v3646_v9  ;;  %v4379_v15 = vld [vmem:[%s4930_s4 + $0x240] sm:$0xf0]  ;;  %2375 = vmatpush.bf16.msra.mxu1 %v3327_v7  ;;  %v3466_v18 = vld [vmem:[%s4930_s4 + $0x370] sm:$0xf]  ;;  %v3126_v23 = vld [vmem:[%s4930_s4 + $0xc8] sm:$0xf] }
  0x29   : > { %2388 = vmatpush.bf16.msra.mxu2 %v3487_v8  ;;  %v3307_v17 = vor.u32 %v4379_v15, %v3306_v14  ;;  %v4419_v19 = vld [vmem:[%s4930_s4 + $0x380] sm:$0xf0]  ;;  %v3626_v20 = vld [vmem:[%s4930_s4 + $0x4b0] sm:$0xf]  ;;  %v4334_v24 = vld [vmem:[%s4930_s4 + $0xd8] sm:$0xf0] }
  0x2a   : > { %2401 = vmatpush.bf16.msra.mxu3 %v3647_v12  ;;  %v3467_v21 = vor.u32 %v4419_v19, %v3466_v18  ;;  %v4459_v22 = vld [vmem:[%s4930_s4 + $0x4c0] sm:$0xf0]  ;;  %v3286_v26 = vld [vmem:[%s4930_s4 + $0x208] sm:$0xf]  ;;  %v4374_v27 = vld [vmem:[%s4930_s4 + $0x218] sm:$0xf0]  ;;  %v3127_v29 = vor.u32 %v4334_v24, %v3126_v23 }
  0x2b   : > { %v3627_v25 = vor.u32 %v4459_v22, %v3626_v20  ;;  %v3446_v28 = vld [vmem:[%s4930_s4 + $0x348] sm:$0xf]  ;;  %2363 = vmatpush.bf16.msra.mxu0 %v3147_v16  ;;  %v4414_v30 = vld [vmem:[%s4930_s4 + $0x358] sm:$0xf0]  ;;  %v3287_v33 = vor.u32 %v4374_v27, %v3286_v26  ;;  %v3106_v35 = vld [vmem:[%s4930_s4 + $0xa0] sm:$0xf] }
  0x2c   : > { %v3606_v31 = vld [vmem:[%s4930_s4 + $0x488] sm:$0xf]  ;;  %v4454_v32 = vld [vmem:[%s4930_s4 + $0x498] sm:$0xf0]  ;;  %2376 = vmatpush.bf16.msra.mxu1 %v3307_v17  ;;  %v3447_v34 = vor.u32 %v4414_v30, %v3446_v28  ;;  %v4329_v36 = vld [vmem:[%s4930_s4 + $0xb0] sm:$0xf0] }
  0x2d   : > { %2389 = vmatpush.bf16.msra.mxu2 %v3467_v21  ;;  %v3266_v37 = vld [vmem:[%s4930_s4 + $0x1e0] sm:$0xf]  ;;  %v3607_v38 = vor.u32 %v4454_v32, %v3606_v31  ;;  %v4369_v39 = vld [vmem:[%s4930_s4 + $0x1f0] sm:$0xf0]  ;;  %v3107_v44 = vor.u32 %v4329_v36, %v3106_v35  ;;  %v3086_v47 = vld [vmem:[%s4930_s4 + $0x78] sm:$0xf] }
  0x2e   : > { %2402 = vmatpush.bf16.msra.mxu3 %v3627_v25  ;;  %v3426_v40 = vld [vmem:[%s4930_s4 + $0x320] sm:$0xf]  ;;  %v4409_v41 = vld [vmem:[%s4930_s4 + $0x330] sm:$0xf0]  ;;  %v3267_v45 = vor.u32 %v4369_v39, %v3266_v37  ;;  %v4324_v48 = vld [vmem:[%s4930_s4 + $0x88] sm:$0xf0] }
  0x2f   : > { %v3586_v42 = vld [vmem:[%s4930_s4 + $0x460] sm:$0xf]  ;;  %v4449_v43 = vld [vmem:[%s4930_s4 + $0x470] sm:$0xf0]  ;;  %2364 = vmatpush.bf16.msra.mxu0 %v3127_v29  ;;  %v3427_v46 = vor.u32 %v4409_v41, %v3426_v40  ;;  %v3246_v49 = vld [vmem:[%s4930_s4 + $0x1b8] sm:$0xf]  ;;  %v3087_v56 = vor.u32 %v4324_v48, %v3086_v47 }
  0x30   : > { %2377 = vmatpush.bf16.msra.mxu1 %v3287_v33  ;;  %v3587_v50 = vor.u32 %v4449_v43, %v3586_v42  ;;  %v4364_v51 = vld [vmem:[%s4930_s4 + $0x1c8] sm:$0xf0]  ;;  %v3406_v52 = vld [vmem:[%s4930_s4 + $0x2f8] sm:$0xf]  ;;  %v3066_v59 = vld [vmem:[%s4930_s4 + $0x50] sm:$0xf] }
  0x31   : > { %2390 = vmatpush.bf16.msra.mxu2 %v3447_v34  ;;  %v4404_v53 = vld [vmem:[%s4930_s4 + $0x308] sm:$0xf0]  ;;  %v3566_v54 = vld [vmem:[%s4930_s4 + $0x438] sm:$0xf]  ;;  %v3247_v57 = vor.u32 %v4364_v51, %v3246_v49  ;;  %v4319_v60 = vld [vmem:[%s4930_s4 + $0x60] sm:$0xf0] }
  0x32   : > { %2403 = vmatpush.bf16.msra.mxu3 %v3607_v38  ;;  %v4444_v55 = vld [vmem:[%s4930_s4 + $0x448] sm:$0xf0]  ;;  %v3407_v58 = vor.u32 %v4404_v53, %v3406_v52  ;;  %v3226_v61 = vld [vmem:[%s4930_s4 + $0x190] sm:$0xf]  ;;  %v4359_v63 = vld [vmem:[%s4930_s4 + $0x1a0] sm:$0xf0]  ;;  %v3067_v4 = vor.u32 %v4319_v60, %v3066_v59 }
  0x33   : > { %2365 = vmatpush.bf16.msra.mxu0 %v3107_v44  ;;  %v3567_v62 = vor.u32 %v4444_v55, %v3566_v54  ;;  %v3386_v0 = vld [vmem:[%s4930_s4 + $0x2d0] sm:$0xf]  ;;  %v4399_v1 = vld [vmem:[%s4930_s4 + $0x2e0] sm:$0xf0]  ;;  %v3227_v5 = vor.u32 %v4359_v63, %v3226_v61  ;;  %v3046_v7 = vld [vmem:[%s4930_s4 + $0x28] sm:$0xf] }
  0x34   : > { %2378 = vmatpush.bf16.msra.mxu1 %v3267_v45  ;;  %v3546_v2 = vld [vmem:[%s4930_s4 + $0x410] sm:$0xf]  ;;  %v4439_v3 = vld [vmem:[%s4930_s4 + $0x420] sm:$0xf0]  ;;  %v3387_v6 = vor.u32 %v4399_v1, %v3386_v0  ;;  %v4314_v8 = vld [vmem:[%s4930_s4 + $0x38] sm:$0xf0] }
  0x35   : > { %2391 = vmatpush.bf16.msra.mxu2 %v3427_v46  ;;  %v3206_v9 = vld [vmem:[%s4930_s4 + $0x168] sm:$0xf]  ;;  %v3547_v10 = vor.u32 %v4439_v3, %v3546_v2  ;;  %v4354_v11 = vld [vmem:[%s4930_s4 + $0x178] sm:$0xf0]  ;;  %v3047_v16 = vor.u32 %v4314_v8, %v3046_v7  ;;  %v3026_v17 = vld [vmem:[%s4930_s4] sm:$0xf] }
  0x36   : > { %2404 = vmatpush.bf16.msra.mxu3 %v3587_v50  ;;  %v3366_v12 = vld [vmem:[%s4930_s4 + $0x2a8] sm:$0xf]  ;;  %v4394_v13 = vld [vmem:[%s4930_s4 + $0x2b8] sm:$0xf0]  ;;  %v4309_v18 = vld [vmem:[%s4930_s4 + $0x10] sm:$0xf0]  ;;  %v3207_v19 = vor.u32 %v4354_v11, %v3206_v9 }
  0x37   : > { %2366 = vmatpush.bf16.msra.mxu0 %v3087_v56  ;;  %v3526_v14 = vld [vmem:[%s4930_s4 + $0x3e8] sm:$0xf]  ;;  %v4434_v15 = vld [vmem:[%s4930_s4 + $0x3f8] sm:$0xf0]  ;;  %v3367_v20 = vor.u32 %v4394_v13, %v3366_v12  ;;  %v3186_v21 = vld [vmem:[%s4930_s4 + $0x140] sm:$0xf]  ;;  %v3027_v31 = vor.u32 %v4309_v18, %v3026_v17 }
  0x38   : > { %2379 = vmatpush.bf16.msra.mxu1 %v3247_v57  ;;  %v4349_v22 = vld [vmem:[%s4930_s4 + $0x150] sm:$0xf0]  ;;  %v3346_v23 = vld [vmem:[%s4930_s4 + $0x280] sm:$0xf]  ;;  %v3527_v24 = vor.u32 %v4434_v15, %v3526_v14  ;;  %v3806_v28 = vld [vmem:[%s4930_s4 + $0x618] sm:$0xf] }
  0x39   : > { %2392 = vmatpush.bf16.msra.mxu2 %v3407_v58  ;;  %v4389_v25 = vld [vmem:[%s4930_s4 + $0x290] sm:$0xf0]  ;;  %v3506_v26 = vld [vmem:[%s4930_s4 + $0x3c0] sm:$0xf]  ;;  %v4504_v29 = vld [vmem:[%s4930_s4 + $0x628] sm:$0xf0]  ;;  %v3187_v35 = vor.u32 %v4349_v22, %v3186_v21 }
  0x3a   : > { %2405 = vmatpush.bf16.msra.mxu3 %v3567_v62  ;;  %v4429_v27 = vld [vmem:[%s4930_s4 + $0x3d0] sm:$0xf0]  ;;  %v3966_v30 = vld [vmem:[%s4930_s4 + $0x758] sm:$0xf]  ;;  %v4544_v32 = vld [vmem:[%s4930_s4 + $0x768] sm:$0xf0]  ;;  %v3347_v36 = vor.u32 %v4389_v25, %v3346_v23  ;;  %v3807_v40 = vor.u32 %v4504_v29, %v3806_v28 }
  0x3b   : > { %2367 = vmatpush.bf16.msra.mxu0 %v3067_v4  ;;  %v4126_v33 = vld [vmem:[%s4930_s4 + $0x898] sm:$0xf]  ;;  %v4584_v34 = vld [vmem:[%s4930_s4 + $0x8a8] sm:$0xf0]  ;;  %v3507_v39 = vor.u32 %v4429_v27, %v3506_v26  ;;  %v3786_v41 = vld [vmem:[%s4930_s4 + $0x5f0] sm:$0xf]  ;;  %v3967_v42 = vor.u32 %v4544_v32, %v3966_v30 }
  0x3c   : > { %2380 = vmatpush.bf16.msra.mxu1 %v3227_v5  ;;  %v4286_v37 = vld [vmem:[%s4930_s4 + $0x9d8] sm:$0xf]  ;;  %v4624_v38 = vld [vmem:[%s4930_s4 + $0x9e8] sm:$0xf0]  ;;  %v4127_v43 = vor.u32 %v4584_v34, %v4126_v33  ;;  %v4499_v44 = vld [vmem:[%s4930_s4 + $0x600] sm:$0xf0] }
  0x3d   : > { %2393 = vmatpush.bf16.msra.mxu2 %v3387_v6  ;;  %v3946_v45 = vld [vmem:[%s4930_s4 + $0x730] sm:$0xf]  ;;  %v4539_v46 = vld [vmem:[%s4930_s4 + $0x740] sm:$0xf0]  ;;  %v4287_v47 = vor.u32 %v4624_v38, %v4286_v37  ;;  %v3766_v52 = vld [vmem:[%s4930_s4 + $0x5c8] sm:$0xf]  ;;  %v3787_v54 = vor.u32 %v4499_v44, %v3786_v41 }
  0x3e   : > { %2406 = vmatpush.bf16.msra.mxu3 %v3547_v10  ;;  %v4106_v48 = vld [vmem:[%s4930_s4 + $0x870] sm:$0xf]  ;;  %v4579_v49 = vld [vmem:[%s4930_s4 + $0x880] sm:$0xf0]  ;;  %v4494_v53 = vld [vmem:[%s4930_s4 + $0x5d8] sm:$0xf0]  ;;  %v3947_v56 = vor.u32 %v4539_v46, %v3946_v45 }
  0x3f   : > { %2368 = vmatpush.bf16.msra.mxu0 %v3047_v16  ;;  %v4266_v50 = vld [vmem:[%s4930_s4 + $0x9b0] sm:$0xf]  ;;  %v4619_v51 = vld [vmem:[%s4930_s4 + $0x9c0] sm:$0xf0]  ;;  %v3926_v55 = vld [vmem:[%s4930_s4 + $0x708] sm:$0xf]  ;;  %v4107_v57 = vor.u32 %v4579_v49, %v4106_v48  ;;  %v3767_v62 = vor.u32 %v4494_v53, %v3766_v52 }
  0x40   : > { %2381 = vmatpush.bf16.msra.mxu1 %v3207_v19  ;;  %v4534_v58 = vld [vmem:[%s4930_s4 + $0x718] sm:$0xf0]  ;;  %v4086_v59 = vld [vmem:[%s4930_s4 + $0x848] sm:$0xf]  ;;  %v4267_v61 = vor.u32 %v4619_v51, %v4266_v50  ;;  %v3746_v2 = vld [vmem:[%s4930_s4 + $0x5a0] sm:$0xf] }
  0x41   : > { %2394 = vmatpush.bf16.msra.mxu2 %v3367_v20  ;;  %v4574_v60 = vld [vmem:[%s4930_s4 + $0x858] sm:$0xf0]  ;;  %v4246_v63 = vld [vmem:[%s4930_s4 + $0x988] sm:$0xf]  ;;  %v3927_v7 = vor.u32 %v4534_v58, %v3926_v55  ;;  %v4489_v9 = vld [vmem:[%s4930_s4 + $0x5b0] sm:$0xf0] }
  0x42   : > { %2407 = vmatpush.bf16.msra.mxu3 %v3527_v24  ;;  %v4614_v0 = vld [vmem:[%s4930_s4 + $0x998] sm:$0xf0]  ;;  %v4087_v8 = vor.u32 %v4574_v60, %v4086_v59  ;;  %v3906_v10 = vld [vmem:[%s4930_s4 + $0x6e0] sm:$0xf]  ;;  %vm272_vm1 = vcmask 1045508   ;;  %vm274_vm2 = vcmask 1043456   ;;  %v3747_v23 = vor.u32 %v4489_v9, %v3746_v2 }
  0x43   : > { %2369 = vmatpush.bf16.msra.mxu0 %v3027_v31  ;;  %v5024_v1 = vld [vmem:[#allocation2] sm:$0xff]  ;;  %v4529_v11 = vld [vmem:[%s4930_s4 + $0x6f0] sm:$0xf0]  ;;  %v4247_v15 = vor.u32 %v4614_v0, %v4246_v63  ;;  %v4066_v16 = vld [vmem:[%s4930_s4 + $0x820] sm:$0xf]  ;;  %s242_s6 = smul.u32 5, %s4804_s15 }
  0x44   : > { %2382 = vmatpush.bf16.msra.mxu1 %v3187_v35  ;;  %v256_v3 = vperm.slane %v5024_v1, 0  ;;  %v257_v4 = vperm.slane %v5024_v1, 1  ;;  %v258_v5 = vperm.slane %v5024_v1, 2  ;;  %v259_v6 = vperm.slane %v5024_v1, 3  ;;  %v4569_v17 = vld [vmem:[%s4930_s4 + $0x830] sm:$0xf0] }
  0x45   : > { %2395 = vmatpush.bf16.msra.mxu2 %v3347_v36  ;;  %v252_v18 = vld [vmem:[%s5691_s0] sm:$0xff]  ;;  %v4226_v19 = vld [vmem:[%s4930_s4 + $0x960] sm:$0xf]  ;;  %v3907_v25 = vor.u32 %v4529_v11, %v3906_v10  ;;  %v4067_v26 = vor.u32 %v4569_v17, %v4066_v16  ;;  %v3726_v27 = vld [vmem:[%s4930_s4 + $0x578] sm:$0xf]  ;;  %v262_v63 = vperm.slane %v5024_v1, 6 }
  0x46   : > { %2408 = vmatpush.bf16.msra.mxu3 %v3507_v39  ;;  %v264_v12 = vrot.slane %v257_v4, 6  ;;  %v265_v13 = vrot.slane %v258_v5, 4  ;;  %v266_v14 = vrot.slane %v259_v6, 2  ;;  %v4609_v20 = vld [vmem:[%s4930_s4 + $0x970] sm:$0xf0]  ;;  %v260_v0 = vperm.slane %v5024_v1, 4 }
  0x47   : > { %2414 = vmatpush.bf16.msrb.mxu0 %v3807_v40  ;;  %v4484_v28 = vld [vmem:[%s4930_s4 + $0x588] sm:$0xf0]  ;;  %v3886_v29 = vld [vmem:[%s4930_s4 + $0x6b8] sm:$0xf]  ;;  %v4227_v31 = vor.u32 %v4609_v20, %v4226_v19  ;;  %v3706_v39 = vld [vmem:[%s4930_s4 + $0x550] sm:$0xf] }
  0x48   : > { %2427 = vmatpush.bf16.msrb.mxu1 %v3967_v42  ;;  %v271_v21 = vsel %vm270_vm0, %v256_v3, %v264_v12  ;;  %v273_v22 = vsel %vm272_vm1, %v265_v13, %v266_v14  ;;  %v4524_v32 = vld [vmem:[%s4930_s4 + $0x6c8] sm:$0xf0]  ;;  %v4046_v33 = vld [vmem:[%s4930_s4 + $0x7f8] sm:$0xf]  ;;  %v3727_v38 = vor.u32 %v4484_v28, %v3726_v27  ;;  %v4479_v42 = vld [vmem:[%s4930_s4 + $0x560] sm:$0xf0] }
  0x49   : > { %2440 = vmatpush.bf16.msrb.mxu2 %v4127_v43  ;;  %v275_v24 = vsel %vm274_vm2, %v271_v21, %v273_v22  ;;  %v4564_v34 = vld [vmem:[%s4930_s4 + $0x808] sm:$0xf0]  ;;  %v4206_v35 = vld [vmem:[%s4930_s4 + $0x938] sm:$0xf]  ;;  %v3887_v40 = vor.u32 %v4524_v32, %v3886_v29  ;;  %v3866_v43 = vld [vmem:[%s4930_s4 + $0x690] sm:$0xf]  ;;  %v3707_v50 = vor.u32 %v4479_v42, %v3706_v39 }
  0x4a   : > { %2453 = vmatpush.bf16.msrb.mxu3 %v4287_v47  ;;  %v281_v30 = vadd.f32 %v275_v24, %v252_v18  ;;  %v4604_v36 = vld [vmem:[%s4930_s4 + $0x948] sm:$0xf0]  ;;  %v4047_v41 = vor.u32 %v4564_v34, %v4046_v33  ;;  %v4519_v45 = vld [vmem:[%s4930_s4 + $0x6a0] sm:$0xf0]  ;;  %v4026_v46 = vld [vmem:[%s4930_s4 + $0x7d0] sm:$0xf] }
  0x4b   : > { %2415 = vmatpush.bf16.msrb.mxu0 %v3787_v54  ;;  %v4207_v44 = vor.u32 %v4604_v36, %v4206_v35  ;;  %v4559_v47 = vld [vmem:[%s4930_s4 + $0x7e0] sm:$0xf0]  ;;  %v4186_v48 = vld [vmem:[%s4930_s4 + $0x910] sm:$0xf]  ;;  %v3686_v51 = vld [vmem:[%s4930_s4 + $0x528] sm:$0xf]  ;;  %v3867_v54 = vor.u32 %v4519_v45, %v3866_v43 }
  0x4c   : > { %2428 = vmatpush.bf16.msrb.mxu1 %v3947_v56  ;;  %v283_v37 = vmax.f32 %v281_v30, 0.0  ;;  %v4599_v49 = vld [vmem:[%s4930_s4 + $0x920] sm:$0xf0]  ;;  %v4474_v52 = vld [vmem:[%s4930_s4 + $0x538] sm:$0xf0]  ;;  %v4027_v55 = vor.u32 %v4559_v47, %v4026_v46  ;;  %v263_v2 = vperm.slane %v5024_v1, 7 }
  0x4d   : > { %2441 = vmatpush.bf16.msrb.mxu2 %v4107_v57  ;;  %v3846_v53 = vld [vmem:[%s4930_s4 + $0x668] sm:$0xf]  ;;  %v4514_v56 = vld [vmem:[%s4930_s4 + $0x678] sm:$0xf0]  ;;  %v4187_v59 = vor.u32 %v4599_v49, %v4186_v48  ;;  %v3687_v5 = vor.u32 %v4474_v52, %v3686_v51  ;;  %v4469_v9 = vld [vmem:[%s4930_s4 + $0x510] sm:$0xf0] }
  0x4e   : > { %2454 = vmatpush.bf16.msrb.mxu3 %v4267_v61  ;;  %287 = vst [vmem:[#allocation1] ss:$4 sm:$0xff] %v283_v37  ;;  %v4006_v57 = vld [vmem:[%s4930_s4 + $0x7a8] sm:$0xf]  ;;  %v4554_v58 = vld [vmem:[%s4930_s4 + $0x7b8] sm:$0xf0]  ;;  %v3847_v6 = vor.u32 %v4514_v56, %v3846_v53 }
  0x4f   : > { %2416 = vmatpush.bf16.msrb.mxu0 %v3767_v62  ;;  %v4166_v60 = vld [vmem:[%s4930_s4 + $0x8e8] sm:$0xf]  ;;  %v4594_v61 = vld [vmem:[%s4930_s4 + $0x8f8] sm:$0xf0]  ;;  %v261_v62 = vperm.slane %v5024_v1, 5  ;;  %v269_v27 = vrot.slane %v263_v2, 2 }
  0x50   : > { %2429 = vmatpush.bf16.msrb.mxu1 %v3927_v7  ;;  %v4007_v7 = vor.u32 %v4554_v58, %v4006_v57  ;;  %v3826_v10 = vld [vmem:[%s4930_s4 + $0x640] sm:$0xf]  ;;  %v4509_v11 = vld [vmem:[%s4930_s4 + $0x650] sm:$0xf0]  ;;  %v4342_v24 = vld [vmem:[%s4930_s4 + $0x11c] sm:$0xf] }
  0x51   : > { %2442 = vmatpush.bf16.msrb.mxu2 %v4087_v8  ;;  %v3666_v8 = vld [vmem:[%s4930_s4 + $0x500] sm:$0xf]  ;;  %v4549_v17 = vld [vmem:[%s4930_s4 + $0x790] sm:$0xf0]  ;;  %v267_v22 = vrot.slane %v261_v62, 6  ;;  %v3827_v33 = vor.u32 %v4509_v11, %v3826_v10  ;;  %p245_p1 = scmp.lt.s32.totalorder %s242_s6, 24 }
  0x52   : > { %2455 = vmatpush.bf16.msrb.mxu3 %v4247_v15  ;;  %v4167_v15 = vor.u32 %v4594_v61, %v4166_v60  ;;  %v3986_v16 = vld [vmem:[%s4930_s4 + $0x780] sm:$0xf]  ;;  %v4589_v21 = vld [vmem:[%s4930_s4 + $0x8d0] sm:$0xf0]  ;;  %v4382_v28 = vld [vmem:[%s4930_s4 + $0x25c] sm:$0xf]  ;;  %v3667_v32 = vor.u32 %v4469_v9, %v3666_v8 }
  0x53   : > { %2417 = vmatpush.bf16.msrb.mxu0 %v3747_v23  ;;  %v4146_v20 = vld [vmem:[%s4930_s4 + $0x8c0] sm:$0xf]  ;;  %v268_v23 = vrot.slane %v262_v63, 4  ;;  %v3328_v29 = vld [vmem:[%s4930_s4 + $0x26c] sm:$0xf0]  ;;  %s5708_s6 = smov (!%p245_p1, %s242_s6), 24 }
  0x54   : > { %2430 = vmatpush.bf16.msrb.mxu1 %v3907_v25  ;;  %v3168_v25 = vld [vmem:[%s4930_s4 + $0x12c] sm:$0xf0]  ;;  %v4422_v30 = vld [vmem:[%s4930_s4 + $0x39c] sm:$0xf]  ;;  %v4147_v39 = vor.u32 %v4589_v21, %v4146_v20  ;;  %v3331_v42 = vor.u32 %v4382_v28, %v3328_v29  ;;  %v4337_v43 = vld [vmem:[%s4930_s4 + $0xf4] sm:$0xf] }
  0x55   : > { %2443 = vmatpush.bf16.msrb.mxu2 %v4067_v26  ;;  %v292_v3 = vld.sshfl [vmem:[#allocation1 + $0x10] sm:$0xff pattern:$0x73625140]  ;;  %v290_v4 = vld.sshfl [vmem:[#allocation1] sm:$0xff pattern:$0x73625140]  ;;  %v277_v37 = vsel %vm272_vm1, %v268_v23, %v269_v27 }
  0x56   : > { %2456 = vmatpush.bf16.msrb.mxu3 %v4227_v31  ;;  %v5076_v12 = vpack.c.bf16 %v292_v3, %v292_v3  ;;  %v5078_v1 = vpack.c.bf16 %v290_v4, %v290_v4  ;;  %v293_v13 = vld.sshfl [vmem:[#allocation1 + $0x18] sm:$0xff pattern:$0x73625140]  ;;  %v291_v14 = vld.sshfl [vmem:[#allocation1 + $0x8] sm:$0xff pattern:$0x73625140]  ;;  %v276_v31 = vsel %vm270_vm0, %v260_v0, %v267_v22 }
  0x57   : > { %2418 = vmatpush.bf16.msrb.mxu0 %v3727_v38  ;;  %v5082_v18 = vpack.c.bf16 %v293_v13, %v293_v13  ;;  %v5084_v19 = vpack.c.bf16 %v291_v14, %v291_v14  ;;  %v253_v26 = vld [vmem:[%s5691_s0 + $0x8] sm:$0xff]  ;;  %v3488_v34 = vld [vmem:[%s4930_s4 + $0x3ac] sm:$0xf0]  ;;  %v3987_v38 = vor.u32 %v4549_v17, %v3986_v16  ;;  %v4377_v45 = vld [vmem:[%s4930_s4 + $0x234] sm:$0xf]  ;;  %s3023_s7 = sshll.u32 %s5708_s6, 1 }
  0x58   : > { %2431 = vmatpush.bf16.msrb.mxu1 %v3887_v40  ;;  %2396 = vmatmul.bf16.vlgmr.msra.gmra.mxu2 %v5076_v12  ;;  %v4462_v35 = vld [vmem:[%s4930_s4 + $0x4dc] sm:$0xf]  ;;  %v3648_v36 = vld [vmem:[%s4930_s4 + $0x4ec] sm:$0xf0]  ;;  %v278_v40 = vsel %vm274_vm2, %v276_v31, %v277_v37  ;;  %v3491_v47 = vor.u32 %v4422_v30, %v3488_v34  ;;  %v3308_v49 = vld [vmem:[%s4930_s4 + $0x244] sm:$0xf0]  ;;  %s250_s9 = scalar_lea.vmem %s5694_s3, %s3023_s7 }
  0x59   : > { %2444 = vmatpush.bf16.msrb.mxu2 %v4047_v41  ;;  %2370 = vmatmul.bf16.vlgmr.msra.gmra.mxu0 %v5078_v1  ;;  %v3171_v41 = vor.u32 %v4342_v24, %v3168_v25  ;;  %v282_v46 = vadd.f32 %v278_v40, %v253_v26  ;;  %v3651_v48 = vor.u32 %v4462_v35, %v3648_v36  ;;  %v3468_v51 = vld [vmem:[%s4930_s4 + $0x384] sm:$0xf0]  ;;  %v4457_v52 = vld [vmem:[%s4930_s4 + $0x4b4] sm:$0xf]  ;;  %v4332_v57 = vld [vmem:[%s4930_s4 + $0xcc] sm:$0xf] }
  0x5a   : > { %2457 = vmatpush.bf16.msrb.mxu3 %v4207_v44  ;;  %2383 = vmatmul.bf16.vlgmr.msra.gmra.mxu1 %v5084_v19  ;;  %v3148_v44 = vld [vmem:[%s4930_s4 + $0x104] sm:$0xf0]  ;;  %v3311_v56 = vor.u32 %v4377_v45, %v3308_v49  ;;  %v3128_v58 = vld [vmem:[%s4930_s4 + $0xdc] sm:$0xf0]  ;;  %v4372_v61 = vld [vmem:[%s4930_s4 + $0x20c] sm:$0xf] }
  0x5b   : > { %2419 = vmatpush.bf16.msrb.mxu0 %v3707_v50  ;;  %2409 = vmatmul.bf16.vlgmr.msra.gmra.mxu3 %v5082_v18  ;;  %v4417_v50 = vld [vmem:[%s4930_s4 + $0x374] sm:$0xf]  ;;  %v3628_v53 = vld [vmem:[%s4930_s4 + $0x4c4] sm:$0xf0]  ;;  %v3288_v62 = vld [vmem:[%s4930_s4 + $0x21c] sm:$0xf0] }
  0x5c   : > { %2432 = vmatpush.bf16.msrb.mxu1 %v3867_v54  ;;  %v284_v54 = vmax.f32 %v282_v46, 0.0  ;;  %v3631_v60 = vor.u32 %v4457_v52, %v3628_v53  ;;  %v4412_v63 = vld [vmem:[%s4930_s4 + $0x34c] sm:$0xf]  ;;  %v3448_v0 = vld [vmem:[%s4930_s4 + $0x35c] sm:$0xf0] }
  0x5d   : > { %2445 = vmatpush.bf16.msrb.mxu2 %v4027_v55  ;;  %v3151_v55 = vor.u32 %v4337_v43, %v3148_v44  ;;  %v4452_v2 = vld [vmem:[%s4930_s4 + $0x48c] sm:$0xf]  ;;  %v3608_v3 = vld [vmem:[%s4930_s4 + $0x49c] sm:$0xf0]  ;;  %v4327_v4 = vld [vmem:[%s4930_s4 + $0xa4] sm:$0xf]  ;;  %v3451_v10 = vor.u32 %v4412_v63, %v3448_v0 }
  0x5e   : > { %2458 = vmatpush.bf16.msrb.mxu3 %v4187_v59  ;;  %289 = vst [vmem:[#allocation1 + $0x20] ss:$4 sm:$0xff] %v284_v54  ;;  %v3471_v59 = vor.u32 %v4417_v50, %v3468_v51  ;;  %v4367_v8 = vld [vmem:[%s4930_s4 + $0x1e4] sm:$0xf]  ;;  %v3268_v9 = vld [vmem:[%s4930_s4 + $0x1f4] sm:$0xf0]  ;;  %v3611_v11 = vor.u32 %v4452_v2, %v3608_v3 }
  0x5f   : > { %2420 = vmatpush.bf16.msrb.mxu0 %v3687_v5  ;;  %v3131_v5 = vor.u32 %v4332_v57, %v3128_v58  ;;  %v4407_v13 = vld [vmem:[%s4930_s4 + $0x324] sm:$0xf]  ;;  %v3428_v14 = vld [vmem:[%s4930_s4 + $0x334] sm:$0xf0]  ;;  %v3271_v22 = vor.u32 %v4367_v8, %v3268_v9  ;;  %v4322_v23 = vld [vmem:[%s4930_s4 + $0x7c] sm:$0xf] }
  0x60   : > { %2433 = vmatpush.bf16.msrb.mxu1 %v3847_v6  ;;  %v3291_v6 = vor.u32 %v4372_v61, %v3288_v62  ;;  %v3588_v16 = vld [vmem:[%s4930_s4 + $0x474] sm:$0xf0]  ;;  %v3088_v24 = vld [vmem:[%s4930_s4 + $0x8c] sm:$0xf0]  ;;  %v3431_v29 = vor.u32 %v4407_v13, %v3428_v14  ;;  %v4402_v35 = vld [vmem:[%s4930_s4 + $0x2fc] sm:$0xf] }
  0x61   : > { %2446 = vmatpush.bf16.msrb.mxu2 %v4007_v7  ;;  %v3108_v7 = vld [vmem:[%s4930_s4 + $0xb4] sm:$0xf0]  ;;  %v3248_v34 = vld [vmem:[%s4930_s4 + $0x1cc] sm:$0xf0]  ;;  %v4442_v37 = vld [vmem:[%s4930_s4 + $0x43c] sm:$0xf] }
  0x62   : > { %2459 = vmatpush.bf16.msrb.mxu3 %v4167_v15  ;;  %v4447_v15 = vld [vmem:[%s4930_s4 + $0x464] sm:$0xf]  ;;  %v3111_v21 = vor.u32 %v4327_v4, %v3108_v7  ;;  %v3408_v36 = vld [vmem:[%s4930_s4 + $0x30c] sm:$0xf0]  ;;  %v4357_v45 = vld [vmem:[%s4930_s4 + $0x194] sm:$0xf] }
  0x63   : > { %2421 = vmatpush.bf16.msrb.mxu0 %v3667_v32  ;;  %v3591_v32 = vor.u32 %v4447_v15, %v3588_v16  ;;  %v3411_v43 = vor.u32 %v4402_v35, %v3408_v36  ;;  %v3228_v46 = vld [vmem:[%s4930_s4 + $0x1a4] sm:$0xf0]  ;;  %v4437_v49 = vld [vmem:[%s4930_s4 + $0x414] sm:$0xf]  ;;  %v4312_v53 = vld [vmem:[%s4930_s4 + $0x2c] sm:$0xf] }
  0x64   : > { %2434 = vmatpush.bf16.msrb.mxu1 %v3827_v33  ;;  %v4362_v33 = vld [vmem:[%s4930_s4 + $0x1bc] sm:$0xf]  ;;  %v3548_v50 = vld [vmem:[%s4930_s4 + $0x424] sm:$0xf0]  ;;  %v3231_v52 = vor.u32 %v4357_v45, %v3228_v46  ;;  %v3048_v54 = vld [vmem:[%s4930_s4 + $0x3c] sm:$0xf0] }
  0x65   : > { %2447 = vmatpush.bf16.msrb.mxu2 %v3987_v38  ;;  %v296_v17 = vld.sshfl [vmem:[#allocation1 + $0x30] sm:$0xff pattern:$0x73625140]  ;;  %v294_v20 = vld.sshfl [vmem:[#allocation1 + $0x20] sm:$0xff pattern:$0x73625140]  ;;  %v3251_v40 = vor.u32 %v4362_v33, %v3248_v34  ;;  %v3051_v0 = vor.u32 %v4312_v53, %v3048_v54 }
  0x66   : > { %2460 = vmatpush.bf16.msrb.mxu3 %v4147_v39  ;;  %v5132_v25 = vpack.c.bf16 %v296_v17, %v296_v17  ;;  %v5134_v26 = vpack.c.bf16 %v294_v20, %v294_v20  ;;  %v297_v27 = vld.sshfl [vmem:[#allocation1 + $0x38] sm:$0xff pattern:$0x73625140]  ;;  %v295_v28 = vld.sshfl [vmem:[#allocation1 + $0x28] sm:$0xff pattern:$0x73625140]  ;;  %v3091_v39 = vor.u32 %v4322_v23, %v3088_v24 }
  0x67   : > { %2466 = vmatpush.bf16.msra.mxu0 %v3171_v41  ;;  %v5136_v30 = vpack.c.bf16 %v297_v27, %v297_v27  ;;  %v5138_v31 = vpack.c.bf16 %v295_v28, %v295_v28  ;;  %v3568_v38 = vld [vmem:[%s4930_s4 + $0x44c] sm:$0xf0]  ;;  %v4317_v41 = vld [vmem:[%s4930_s4 + $0x54] sm:$0xf]  ;;  %v4352_v57 = vld [vmem:[%s4930_s4 + $0x16c] sm:$0xf] }
  0x68   : > { %2479 = vmatpush.bf16.msra.mxu1 %v3331_v42  ;;  %2448 = vmatmul.bf16.vlgmr.msrb.gmra.mxu2 %v5132_v25  ;;  %v3068_v42 = vld [vmem:[%s4930_s4 + $0x64] sm:$0xf0]  ;;  %v3571_v44 = vor.u32 %v4442_v37, %v3568_v38  ;;  %v3208_v58 = vld [vmem:[%s4930_s4 + $0x17c] sm:$0xf0]  ;;  %v4432_v61 = vld [vmem:[%s4930_s4 + $0x3ec] sm:$0xf] }
  0x69   : > { %2492 = vmatpush.bf16.msra.mxu2 %v3491_v47  ;;  %2422 = vmatmul.bf16.vlgmr.msrb.gmra.mxu0 %v5134_v26  ;;  %v4397_v47 = vld [vmem:[%s4930_s4 + $0x2d4] sm:$0xf]  ;;  %v3071_v51 = vor.u32 %v4317_v41, %v3068_v42  ;;  %v3528_v62 = vld [vmem:[%s4930_s4 + $0x3fc] sm:$0xf0]  ;;  %v4307_v63 = vld [vmem:[%s4930_s4 + $0x4] sm:$0xf]  ;;  %v3211_v2 = vor.u32 %v4352_v57, %v3208_v58 }
  0x6a   : > { %2505 = vmatpush.bf16.msra.mxu3 %v3651_v48  ;;  %2435 = vmatmul.bf16.vlgmr.msrb.gmra.mxu1 %v5138_v31  ;;  %v3388_v48 = vld [vmem:[%s4930_s4 + $0x2e4] sm:$0xf0]  ;;  %v3028_v3 = vld [vmem:[%s4930_s4 + $0x14] sm:$0xf0]  ;;  %v4347_v4 = vld [vmem:[%s4930_s4 + $0x144] sm:$0xf]  ;;  %v3531_v7 = vor.u32 %v4432_v61, %v3528_v62 }
  0x6b   : > { %2467 = vmatpush.bf16.msra.mxu0 %v3151_v55  ;;  %2461 = vmatmul.bf16.vlgmr.msrb.gmra.mxu3 %v5136_v30  ;;  %v3391_v55 = vor.u32 %v4397_v47, %v3388_v48  ;;  %v4387_v8 = vld [vmem:[%s4930_s4 + $0x284] sm:$0xf]  ;;  %v3348_v9 = vld [vmem:[%s4930_s4 + $0x294] sm:$0xf0]  ;;  %v4502_v13 = vld [vmem:[%s4930_s4 + $0x61c] sm:$0xf]  ;;  %v3031_v20 = vor.u32 %v4307_v63, %v3028_v3 }
  0x6c   : > { %2480 = vmatpush.bf16.msra.mxu1 %v3311_v56  ;;  %v3551_v56 = vor.u32 %v4437_v49, %v3548_v50  ;;  %v3808_v14 = vld [vmem:[%s4930_s4 + $0x62c] sm:$0xf0]  ;;  %v4542_v15 = vld [vmem:[%s4930_s4 + $0x75c] sm:$0xf]  ;;  %v3351_v27 = vor.u32 %v4387_v8, %v3348_v9  ;;  %v4497_v33 = vld [vmem:[%s4930_s4 + $0x5f4] sm:$0xf] }
  0x6d   : > { %2493 = vmatpush.bf16.msra.mxu2 %v3471_v59  ;;  %v4392_v59 = vld [vmem:[%s4930_s4 + $0x2ac] sm:$0xf]  ;;  %v3968_v16 = vld [vmem:[%s4930_s4 + $0x76c] sm:$0xf0]  ;;  %v4582_v17 = vld [vmem:[%s4930_s4 + $0x89c] sm:$0xf] }
  0x6e   : > { %2506 = vmatpush.bf16.msra.mxu3 %v3631_v60  ;;  %v3368_v60 = vld [vmem:[%s4930_s4 + $0x2bc] sm:$0xf0]  ;;  %v4622_v23 = vld [vmem:[%s4930_s4 + $0x9dc] sm:$0xf]  ;;  %v4288_v24 = vld [vmem:[%s4930_s4 + $0x9ec] sm:$0xf0] }
  0x6f   : > { %2468 = vmatpush.bf16.msra.mxu0 %v3131_v5  ;;  %v3188_v5 = vld [vmem:[%s4930_s4 + $0x154] sm:$0xf0]  ;;  %v3788_v34 = vld [vmem:[%s4930_s4 + $0x604] sm:$0xf0]  ;;  %v4291_v36 = vor.u32 %v4622_v23, %v4288_v24  ;;  %v4537_v37 = vld [vmem:[%s4930_s4 + $0x734] sm:$0xf] }
  0x70   : > { %2481 = vmatpush.bf16.msra.mxu1 %v3291_v6  ;;  %v3371_v6 = vor.u32 %v4392_v59, %v3368_v60  ;;  %v3948_v38 = vld [vmem:[%s4930_s4 + $0x744] sm:$0xf0]  ;;  %v4617_v41 = vld [vmem:[%s4930_s4 + $0x9b4] sm:$0xf]  ;;  %v4492_v45 = vld [vmem:[%s4930_s4 + $0x5cc] sm:$0xf] }
  0x71   : > { %2494 = vmatpush.bf16.msra.mxu2 %v3451_v10  ;;  %v4427_v10 = vld [vmem:[%s4930_s4 + $0x3c4] sm:$0xf]  ;;  %v4268_v42 = vld [vmem:[%s4930_s4 + $0x9c4] sm:$0xf0]  ;;  %v3768_v46 = vld [vmem:[%s4930_s4 + $0x5dc] sm:$0xf0] }
  0x72   : > { %2507 = vmatpush.bf16.msra.mxu3 %v3611_v11  ;;  %v3508_v11 = vld [vmem:[%s4930_s4 + $0x3d4] sm:$0xf0]  ;;  %v4271_v48 = vor.u32 %v4617_v41, %v4268_v42  ;;  %v4532_v49 = vld [vmem:[%s4930_s4 + $0x70c] sm:$0xf]  ;;  %v3928_v50 = vld [vmem:[%s4930_s4 + $0x71c] sm:$0xf0] }
  0x73   : > { %2469 = vmatpush.bf16.msra.mxu0 %v3111_v21  ;;  %v3191_v21 = vor.u32 %v4347_v4, %v3188_v5  ;;  %v3511_v28 = vor.u32 %v4427_v10, %v3508_v11  ;;  %v4612_v53 = vld [vmem:[%s4930_s4 + $0x98c] sm:$0xf]  ;;  %v4248_v54 = vld [vmem:[%s4930_s4 + $0x99c] sm:$0xf0]  ;;  %v4487_v57 = vld [vmem:[%s4930_s4 + $0x5a4] sm:$0xf] }
  0x74   : > { %2482 = vmatpush.bf16.msra.mxu1 %v3271_v22  ;;  %v4128_v22 = vld [vmem:[%s4930_s4 + $0x8ac] sm:$0xf0]  ;;  %v3748_v58 = vld [vmem:[%s4930_s4 + $0x5b4] sm:$0xf0]  ;;  %v4251_v60 = vor.u32 %v4612_v53, %v4248_v54  ;;  %v4527_v61 = vld [vmem:[%s4930_s4 + $0x6e4] sm:$0xf] }
  0x75   : > { %2495 = vmatpush.bf16.msra.mxu2 %v3431_v29  ;;  %v3811_v29 = vor.u32 %v4502_v13, %v3808_v14  ;;  %v4131_v35 = vor.u32 %v4582_v17, %v4128_v22  ;;  %v3908_v62 = vld [vmem:[%s4930_s4 + $0x6f4] sm:$0xf0]  ;;  %v4567_v63 = vld [vmem:[%s4930_s4 + $0x824] sm:$0xf]  ;;  %v3751_v4 = vor.u32 %v4487_v57, %v3748_v58  ;;  %v4522_v10 = vld [vmem:[%s4930_s4 + $0x6bc] sm:$0xf] }
  0x76   : > { %2508 = vmatpush.bf16.msra.mxu3 %v3591_v32  ;;  %v3971_v32 = vor.u32 %v4542_v15, %v3968_v16  ;;  %v4228_v3 = vld [vmem:[%s4930_s4 + $0x974] sm:$0xf0]  ;;  %v3911_v5 = vor.u32 %v4527_v61, %v3908_v62  ;;  %v3888_v11 = vld [vmem:[%s4930_s4 + $0x6cc] sm:$0xf0]  ;;  %v4562_v13 = vld [vmem:[%s4930_s4 + $0x7fc] sm:$0xf] }
  0x77   : > { %2470 = vmatpush.bf16.msra.mxu0 %v3091_v39  ;;  %v4577_v39 = vld [vmem:[%s4930_s4 + $0x874] sm:$0xf]  ;;  %v4048_v14 = vld [vmem:[%s4930_s4 + $0x80c] sm:$0xf0]  ;;  %v4602_v15 = vld [vmem:[%s4930_s4 + $0x93c] sm:$0xf] }
  0x78   : > { %2483 = vmatpush.bf16.msra.mxu1 %v3251_v40  ;;  %v4108_v40 = vld [vmem:[%s4930_s4 + $0x884] sm:$0xf0]  ;;  %v4208_v16 = vld [vmem:[%s4930_s4 + $0x94c] sm:$0xf0]  ;;  %v4051_v23 = vor.u32 %v4562_v13, %v4048_v14  ;;  %v4512_v41 = vld [vmem:[%s4930_s4 + $0x66c] sm:$0xf] }
  0x79   : > { %2496 = vmatpush.bf16.msra.mxu2 %v3411_v43  ;;  %v3791_v43 = vor.u32 %v4497_v33, %v3788_v34  ;;  %v4111_v47 = vor.u32 %v4577_v39, %v4108_v40  ;;  %v3708_v22 = vld [vmem:[%s4930_s4 + $0x564] sm:$0xf0]  ;;  %v4211_v24 = vor.u32 %v4602_v15, %v4208_v16  ;;  %v4597_v33 = vld [vmem:[%s4930_s4 + $0x914] sm:$0xf]  ;;  %v3848_v42 = vld [vmem:[%s4930_s4 + $0x67c] sm:$0xf0] }
  0x7a   : > { %2509 = vmatpush.bf16.msra.mxu3 %v3571_v44  ;;  %v3951_v44 = vor.u32 %v4537_v37, %v3948_v38  ;;  %v4188_v34 = vld [vmem:[%s4930_s4 + $0x924] sm:$0xf0]  ;;  %v4472_v37 = vld [vmem:[%s4930_s4 + $0x52c] sm:$0xf]  ;;  %v3688_v38 = vld [vmem:[%s4930_s4 + $0x53c] sm:$0xf0] }
  0x7b   : > { %2471 = vmatpush.bf16.msra.mxu0 %v3071_v51  ;;  %v4572_v51 = vld [vmem:[%s4930_s4 + $0x84c] sm:$0xf]  ;;  %v4191_v40 = vor.u32 %v4597_v33, %v4188_v34  ;;  %v4587_v57 = vld [vmem:[%s4930_s4 + $0x8c4] sm:$0xf]  ;;  %v4148_v58 = vld [vmem:[%s4930_s4 + $0x8d4] sm:$0xf0] }
  0x7c   : > { %2484 = vmatpush.bf16.msra.mxu1 %v3231_v52  ;;  %v4088_v52 = vld [vmem:[%s4930_s4 + $0x85c] sm:$0xf0]  ;;  %v4385_v62 = vld [vmem:[%s4930_s4 + $0x270] sm:$0xf0]  ;;  %v3314_v15 = vld [vmem:[%s4930_s4 + $0x238] sm:$0xf] }
  0x7d   : > { %2497 = vmatpush.bf16.msra.mxu2 %v3391_v55  ;;  %v3771_v55 = vor.u32 %v4492_v45, %v3768_v46  ;;  %v4091_v59 = vor.u32 %v4572_v51, %v4088_v52  ;;  %v4592_v45 = vld [vmem:[%s4930_s4 + $0x8ec] sm:$0xf]  ;;  %v4168_v46 = vld [vmem:[%s4930_s4 + $0x8fc] sm:$0xf0]  ;;  %v4507_v51 = vld [vmem:[%s4930_s4 + $0x644] sm:$0xf] }
  0x7e   : > { %2510 = vmatpush.bf16.msra.mxu3 %v3551_v56  ;;  %v3931_v56 = vor.u32 %v4532_v49, %v3928_v50  ;;  %v3851_v49 = vor.u32 %v4512_v41, %v3848_v42  ;;  %v3668_v50 = vld [vmem:[%s4930_s4 + $0x514] sm:$0xf0]  ;;  %v4171_v54 = vor.u32 %v4592_v45, %v4168_v46  ;;  %v3334_v61 = vld [vmem:[%s4930_s4 + $0x260] sm:$0xf]  ;;  %v4380_v16 = vld [vmem:[%s4930_s4 + $0x248] sm:$0xf0] }
  0x7f   : > { %2472 = vmatpush.bf16.msra.mxu0 %v3051_v0  ;;  %v4068_v0 = vld [vmem:[%s4930_s4 + $0x834] sm:$0xf0]  ;;  %v3294_v33 = vld [vmem:[%s4930_s4 + $0x210] sm:$0xf]  ;;  %v4375_v34 = vld [vmem:[%s4930_s4 + $0x220] sm:$0xf0] }
  0x80   : > { %2485 = vmatpush.bf16.msra.mxu1 %v3211_v2  ;;  %v4607_v2 = vld [vmem:[%s4930_s4 + $0x964] sm:$0xf]  ;;  %v4071_v8 = vor.u32 %v4567_v63, %v4068_v0  ;;  %v3828_v52 = vld [vmem:[%s4930_s4 + $0x654] sm:$0xf0]  ;;  %v3494_v63 = vld [vmem:[%s4930_s4 + $0x3a0] sm:$0xf] }
  0x81   : > { %2498 = vmatpush.bf16.msra.mxu2 %v3371_v6  ;;  %v4482_v6 = vld [vmem:[%s4930_s4 + $0x57c] sm:$0xf]  ;;  %v4231_v9 = vor.u32 %v4607_v2, %v4228_v3  ;;  %v3831_v2 = vor.u32 %v4507_v51, %v3828_v52  ;;  %v4425_v3 = vld [vmem:[%s4930_s4 + $0x3b0] sm:$0xf0]  ;;  %v3114_v41 = vld [vmem:[%s4930_s4 + $0xa8] sm:$0xf] }
  0x82   : > { %2511 = vmatpush.bf16.msra.mxu3 %v3531_v7  ;;  %v3728_v7 = vld [vmem:[%s4930_s4 + $0x58c] sm:$0xf0]  ;;  %v3495_v13 = vor.u32 %v4425_v3, %v3494_v63  ;;  %v4330_v42 = vld [vmem:[%s4930_s4 + $0xb8] sm:$0xf0]  ;;  %v3274_v45 = vld [vmem:[%s4930_s4 + $0x1e8] sm:$0xf] }
  0x83   : > { %2473 = vmatpush.bf16.msra.mxu0 %v3031_v20  ;;  %v3731_v17 = vor.u32 %v4482_v6, %v3728_v7  ;;  %v3891_v20 = vor.u32 %v4522_v10, %v3888_v11  ;;  %v4151_v7 = vor.u32 %v4587_v57, %v4148_v58  ;;  %v3154_v10 = vld [vmem:[%s4930_s4 + $0xf8] sm:$0xf]  ;;  %v4340_v11 = vld [vmem:[%s4930_s4 + $0x108] sm:$0xf0]  ;;  %v4370_v46 = vld [vmem:[%s4930_s4 + $0x1f8] sm:$0xf0]  ;;  %v3115_v51 = vor.u32 %v4330_v42, %v3114_v41 }
  0x84   : > { %2486 = vmatpush.bf16.msra.mxu1 %v3191_v21  ;;  %v4477_v21 = vld [vmem:[%s4930_s4 + $0x554] sm:$0xf]  ;;  %v3275_v52 = vor.u32 %v4370_v46, %v3274_v45  ;;  %v3254_v57 = vld [vmem:[%s4930_s4 + $0x1c0] sm:$0xf]  ;;  %v4320_v3 = vld [vmem:[%s4930_s4 + $0x68] sm:$0xf0] }
  0x85   : > { %2499 = vmatpush.bf16.msra.mxu2 %v3351_v27  ;;  %v4517_v27 = vld [vmem:[%s4930_s4 + $0x694] sm:$0xf]  ;;  %v3514_v41 = vld [vmem:[%s4930_s4 + $0x3c8] sm:$0xf]  ;;  %v4430_v42 = vld [vmem:[%s4930_s4 + $0x3d8] sm:$0xf0] }
  0x86   : > { %2512 = vmatpush.bf16.msra.mxu3 %v3511_v28  ;;  %2474 = vmatmul.bf16.vlgmr.msra.gmra.mxu0 %v5078_v1  ;;  %v3868_v28 = vld [vmem:[%s4930_s4 + $0x6a4] sm:$0xf0]  ;;  %v4365_v58 = vld [vmem:[%s4930_s4 + $0x1d0] sm:$0xf0]  ;;  %v3974_v45 = vld [vmem:[%s4930_s4 + $0x760] sm:$0xf] }
  0x87   : > { %2518 = vmatpush.bf16.msrb.mxu0 %v3811_v29  ;;  %2487 = vmatmul.bf16.vlgmr.msra.gmra.mxu1 %v5084_v19  ;;  %v4557_v29 = vld [vmem:[%s4930_s4 + $0x7d4] sm:$0xf] }
  0x88   : > { %2531 = vmatpush.bf16.msrb.mxu1 %v3971_v32  ;;  %2500 = vmatmul.bf16.vlgmr.msra.gmra.mxu2 %v5076_v12  ;;  %v4028_v32 = vld [vmem:[%s4930_s4 + $0x7e4] sm:$0xf0]  ;;  %v4545_v46 = vld [vmem:[%s4930_s4 + $0x770] sm:$0xf0] }
  0x89   : > { %2544 = vmatpush.bf16.msrb.mxu2 %v4131_v35  ;;  %2513 = vmatmul.bf16.vlgmr.msra.gmra.mxu3 %v5082_v18  ;;  %v3711_v35 = vor.u32 %v4477_v21, %v3708_v22  ;;  %v4031_v39 = vor.u32 %v4557_v29, %v4028_v32  ;;  %v3634_v21 = vld [vmem:[%s4930_s4 + $0x4b8] sm:$0xf]  ;;  %v4460_v22 = vld [vmem:[%s4930_s4 + $0x4c8] sm:$0xf0] }
  0x8a   : > { %2557 = vmatpush.bf16.msrb.mxu3 %v4291_v36  ;;  %v3871_v36 = vor.u32 %v4517_v27, %v3868_v28  ;;  %v3134_v27 = vld [vmem:[%s4930_s4 + $0xd0] sm:$0xf]  ;;  %v4335_v28 = vld [vmem:[%s4930_s4 + $0xe0] sm:$0xf0]  ;;  %v3635_v32 = vor.u32 %v4460_v22, %v3634_v21 }
  0x8b   : > { %2519 = vmatpush.bf16.msrb.mxu0 %v3791_v43  ;;  %v4552_v43 = vld [vmem:[%s4930_s4 + $0x7ac] sm:$0xf]  ;;  %v3214_v21 = vld [vmem:[%s4930_s4 + $0x170] sm:$0xf]  ;;  %v4355_v22 = vld [vmem:[%s4930_s4 + $0x180] sm:$0xf0] }
  0x8c   : > { %2532 = vmatpush.bf16.msrb.mxu1 %v3951_v44  ;;  %v4008_v44 = vld [vmem:[%s4930_s4 + $0x7bc] sm:$0xf0] }
  0x8d   : > { %2545 = vmatpush.bf16.msrb.mxu2 %v4111_v47  ;;  %v4467_v47 = vld [vmem:[%s4930_s4 + $0x504] sm:$0xf]  ;;  %v4011_v53 = vor.u32 %v4552_v43, %v4008_v44 }
  0x8e   : > { %2558 = vmatpush.bf16.msrb.mxu3 %v4271_v48  ;;  %v3691_v48 = vor.u32 %v4472_v37, %v3688_v38  ;;  %v3671_v0 = vor.u32 %v4467_v47, %v3668_v50  ;;  %v3614_v37 = vld [vmem:[%s4930_s4 + $0x490] sm:$0xf]  ;;  %v4455_v38 = vld [vmem:[%s4930_s4 + $0x4a0] sm:$0xf0]  ;;  %v3434_v47 = vld [vmem:[%s4930_s4 + $0x328] sm:$0xf] }
  0x8f   : > { %2520 = vmatpush.bf16.msrb.mxu0 %v3771_v55  ;;  %v4547_v55 = vld [vmem:[%s4930_s4 + $0x784] sm:$0xf]  ;;  %v3615_v44 = vor.u32 %v4455_v38, %v3614_v37  ;;  %v4450_v50 = vld [vmem:[%s4930_s4 + $0x478] sm:$0xf0] }
  0x90   : > { %2533 = vmatpush.bf16.msrb.mxu1 %v3931_v56  ;;  %v3988_v56 = vld [vmem:[%s4930_s4 + $0x794] sm:$0xf0] }
  0x91   : > { %2546 = vmatpush.bf16.msrb.mxu2 %v4091_v59  ;;  %v3174_v59 = vld [vmem:[%s4930_s4 + $0x120] sm:$0xf]  ;;  %v3991_v6 = vor.u32 %v4547_v55, %v3988_v56 }
  0x92   : > { %2559 = vmatpush.bf16.msrb.mxu3 %v4251_v60  ;;  %v4345_v60 = vld [vmem:[%s4930_s4 + $0x130] sm:$0xf0] }
  0x93   : > { %2521 = vmatpush.bf16.msrb.mxu0 %v3751_v4  ;;  %v3654_v4 = vld [vmem:[%s4930_s4 + $0x4e0] sm:$0xf] }
  0x94   : > { %2534 = vmatpush.bf16.msrb.mxu1 %v3911_v5  ;;  %v4465_v5 = vld [vmem:[%s4930_s4 + $0x4f0] sm:$0xf0] }
  0x95   : > { %2547 = vmatpush.bf16.msrb.mxu2 %v4071_v8  ;;  %v3175_v8 = vor.u32 %v4345_v60, %v3174_v59  ;;  %v3655_v14 = vor.u32 %v4465_v5, %v3654_v4  ;;  %v3414_v59 = vld [vmem:[%s4930_s4 + $0x300] sm:$0xf]  ;;  %v4405_v60 = vld [vmem:[%s4930_s4 + $0x310] sm:$0xf0] }
  0x96   : > { %2560 = vmatpush.bf16.msrb.mxu3 %v4231_v9  ;;  %v3335_v9 = vor.u32 %v4385_v62, %v3334_v61  ;;  %v3574_v61 = vld [vmem:[%s4930_s4 + $0x440] sm:$0xf]  ;;  %v4445_v62 = vld [vmem:[%s4930_s4 + $0x450] sm:$0xf0]  ;;  %v3415_v4 = vor.u32 %v4405_v60, %v3414_v59 }
  0x97   : > { %2522 = vmatpush.bf16.msrb.mxu0 %v3731_v17  ;;  %v3474_v17 = vld [vmem:[%s4930_s4 + $0x378] sm:$0xf]  ;;  %v3575_v5 = vor.u32 %v4445_v62, %v3574_v61  ;;  %v4540_v62 = vld [vmem:[%s4930_s4 + $0x748] sm:$0xf0] }
  0x98   : > { %2535 = vmatpush.bf16.msrb.mxu1 %v3891_v20  ;;  %v4420_v20 = vld [vmem:[%s4930_s4 + $0x388] sm:$0xf0]  ;;  %v3954_v61 = vld [vmem:[%s4930_s4 + $0x738] sm:$0xf] }
  0x99   : > { %2548 = vmatpush.bf16.msrb.mxu2 %v4051_v23  ;;  %v3155_v23 = vor.u32 %v4340_v11, %v3154_v10  ;;  %v3475_v29 = vor.u32 %v4420_v20, %v3474_v17  ;;  %v3554_v10 = vld [vmem:[%s4930_s4 + $0x418] sm:$0xf]  ;;  %v4440_v11 = vld [vmem:[%s4930_s4 + $0x428] sm:$0xf0] }
  0x9a   : > { %2561 = vmatpush.bf16.msrb.mxu3 %v4211_v24  ;;  %v3315_v24 = vor.u32 %v4380_v16, %v3314_v15  ;;  %v3054_v15 = vld [vmem:[%s4930_s4 + $0x30] sm:$0xf]  ;;  %v4315_v16 = vld [vmem:[%s4930_s4 + $0x40] sm:$0xf0]  ;;  %v3555_v20 = vor.u32 %v4440_v11, %v3554_v10 }
  0x9b   : > { %2523 = vmatpush.bf16.msrb.mxu0 %v3711_v35  ;;  %v3454_v35 = vld [vmem:[%s4930_s4 + $0x350] sm:$0xf]  ;;  %v4535_v11 = vld [vmem:[%s4930_s4 + $0x720] sm:$0xf0] }
  0x9c   : > { %2536 = vmatpush.bf16.msrb.mxu1 %v3871_v36  ;;  %v4415_v36 = vld [vmem:[%s4930_s4 + $0x360] sm:$0xf0]  ;;  %v3934_v10 = vld [vmem:[%s4930_s4 + $0x710] sm:$0xf] }
  0x9d   : > { %2549 = vmatpush.bf16.msrb.mxu2 %v4031_v39  ;;  %v3135_v39 = vor.u32 %v4335_v28, %v3134_v27  ;;  %v3455_v43 = vor.u32 %v4415_v36, %v3454_v35  ;;  %v3534_v27 = vld [vmem:[%s4930_s4 + $0x3f0] sm:$0xf]  ;;  %v4435_v28 = vld [vmem:[%s4930_s4 + $0x400] sm:$0xf0]  ;;  %v3194_v35 = vld [vmem:[%s4930_s4 + $0x148] sm:$0xf] }
  0x9e   : > { %2562 = vmatpush.bf16.msrb.mxu3 %v4191_v40  ;;  %v3295_v40 = vor.u32 %v4375_v34, %v3294_v33  ;;  %v3215_v33 = vor.u32 %v4355_v22, %v3214_v21  ;;  %v4310_v34 = vld [vmem:[%s4930_s4 + $0x18] sm:$0xf0]  ;;  %v3535_v38 = vor.u32 %v4435_v28, %v3534_v27  ;;  %v3754_v21 = vld [vmem:[%s4930_s4 + $0x5a8] sm:$0xf] }
  0x9f   : > { %2524 = vmatpush.bf16.msrb.mxu0 %v3691_v48  ;;  %v4410_v48 = vld [vmem:[%s4930_s4 + $0x338] sm:$0xf0]  ;;  %v3914_v27 = vld [vmem:[%s4930_s4 + $0x6e8] sm:$0xf] }
  0xa0   : > { %2537 = vmatpush.bf16.msrb.mxu1 %v3851_v49  ;;  %v3594_v49 = vld [vmem:[%s4930_s4 + $0x468] sm:$0xf]  ;;  %v3435_v55 = vor.u32 %v4410_v48, %v3434_v47  ;;  %v4350_v36 = vld [vmem:[%s4930_s4 + $0x158] sm:$0xf0]  ;;  %v4134_v47 = vld [vmem:[%s4930_s4 + $0x8a0] sm:$0xf] }
  0xa1   : > { %2550 = vmatpush.bf16.msrb.mxu2 %v4011_v53  ;;  %v3094_v53 = vld [vmem:[%s4930_s4 + $0x80] sm:$0xf]  ;;  %v3595_v56 = vor.u32 %v4450_v50, %v3594_v49  ;;  %v3195_v49 = vor.u32 %v4350_v36, %v3194_v35  ;;  %v4585_v50 = vld [vmem:[%s4930_s4 + $0x8b0] sm:$0xf0]  ;;  %v4490_v22 = vld [vmem:[%s4930_s4 + $0x5b8] sm:$0xf0] }
  0xa2   : > { %2563 = vmatpush.bf16.msrb.mxu3 %v4171_v54  ;;  %v4325_v54 = vld [vmem:[%s4930_s4 + $0x90] sm:$0xf0]  ;;  %v4135_v59 = vor.u32 %v4585_v50, %v4134_v47  ;;  %v4530_v28 = vld [vmem:[%s4930_s4 + $0x6f8] sm:$0xf0]  ;;  %v3755_v35 = vor.u32 %v4490_v22, %v3754_v21  ;;  %v4480_v50 = vld [vmem:[%s4930_s4 + $0x568] sm:$0xf0] }
  0xa3   : > { %2525 = vmatpush.bf16.msrb.mxu0 %v3671_v0  ;;  %v3095_v63 = vor.u32 %v4325_v54, %v3094_v53  ;;  %v3255_v0 = vor.u32 %v4365_v58, %v3254_v57  ;;  %v3515_v54 = vor.u32 %v4430_v42, %v3514_v41  ;;  %v3794_v57 = vld [vmem:[%s4930_s4 + $0x5f8] sm:$0xf]  ;;  %v4500_v58 = vld [vmem:[%s4930_s4 + $0x608] sm:$0xf0]  ;;  %v3915_v36 = vor.u32 %v4530_v28, %v3914_v27  ;;  %v3894_v41 = vld [vmem:[%s4930_s4 + $0x6c0] sm:$0xf] }
  0xa4   : > { %2538 = vmatpush.bf16.msrb.mxu1 %v3831_v2  ;;  %v3074_v2 = vld [vmem:[%s4930_s4 + $0x58] sm:$0xf]  ;;  %v4525_v42 = vld [vmem:[%s4930_s4 + $0x6d0] sm:$0xf0]  ;;  %v4154_v21 = vld [vmem:[%s4930_s4 + $0x8c8] sm:$0xf] }
  0xa5   : > { %2551 = vmatpush.bf16.msrb.mxu2 %v3991_v6  ;;  %v3234_v6 = vld [vmem:[%s4930_s4 + $0x198] sm:$0xf]  ;;  %v4590_v22 = vld [vmem:[%s4930_s4 + $0x8d8] sm:$0xf0]  ;;  %v4383_v27 = vld [vmem:[%s4930_s4 + $0x264] sm:$0xf] }
  0xa6   : > { %2564 = vmatpush.bf16.msrb.mxu3 %v4151_v7  ;;  %2526 = vmatmul.bf16.vlgmr.msrb.gmra.mxu0 %v5134_v26  ;;  %v4360_v7 = vld [vmem:[%s4930_s4 + $0x1a8] sm:$0xf0]  ;;  %v3336_v28 = vld [vmem:[%s4930_s4 + $0x274] sm:$0xf0] }
  0xa7   : > { %2570 = vmatpush.bf16.msra.mxu0 %v3175_v8  ;;  %2539 = vmatmul.bf16.vlgmr.msrb.gmra.mxu1 %v5138_v31  ;;  %v3394_v8 = vld [vmem:[%s4930_s4 + $0x2d8] sm:$0xf] }
  0xa8   : > { %2583 = vmatpush.bf16.msra.mxu1 %v3335_v9  ;;  %2552 = vmatmul.bf16.vlgmr.msrb.gmra.mxu2 %v5132_v25  ;;  %v4400_v9 = vld [vmem:[%s4930_s4 + $0x2e8] sm:$0xf0] }
  0xa9   : > { %2596 = vmatpush.bf16.msra.mxu2 %v3495_v13  ;;  %2565 = vmatmul.bf16.vlgmr.msrb.gmra.mxu3 %v5136_v30  ;;  %v3075_v13 = vor.u32 %v4320_v3, %v3074_v2  ;;  %v3395_v17 = vor.u32 %v4400_v9, %v3394_v8  ;;  %v4274_v2 = vld [vmem:[%s4930_s4 + $0x9b8] sm:$0xf]  ;;  %v4620_v3 = vld [vmem:[%s4930_s4 + $0x9c8] sm:$0xf0] }
  0xaa   : > { %2609 = vmatpush.bf16.msra.mxu3 %v3655_v14  ;;  %v3235_v14 = vor.u32 %v4360_v7, %v3234_v6  ;;  %v3774_v6 = vld [vmem:[%s4930_s4 + $0x5d0] sm:$0xf]  ;;  %v4495_v7 = vld [vmem:[%s4930_s4 + $0x5e0] sm:$0xf0]  ;;  %v4275_v9 = vor.u32 %v4620_v3, %v4274_v2 }
  0xab   : > { %2571 = vmatpush.bf16.msra.mxu0 %v3155_v23  ;;  %v3374_v23 = vld [vmem:[%s4930_s4 + $0x2b0] sm:$0xf]  ;;  %v4515_v3 = vld [vmem:[%s4930_s4 + $0x680] sm:$0xf0] }
  0xac   : > { %2584 = vmatpush.bf16.msra.mxu1 %v3315_v24  ;;  %v4395_v24 = vld [vmem:[%s4930_s4 + $0x2c0] sm:$0xf0]  ;;  %v3854_v2 = vld [vmem:[%s4930_s4 + $0x670] sm:$0xf] }
  0xad   : > { %2597 = vmatpush.bf16.msra.mxu2 %v3475_v29  ;;  %v3034_v29 = vld [vmem:[%s4930_s4 + $0x8] sm:$0xf]  ;;  %v3375_v37 = vor.u32 %v4395_v24, %v3374_v23 }
  0xae   : > { %2610 = vmatpush.bf16.msra.mxu3 %v3635_v32  ;;  %v3055_v32 = vor.u32 %v4315_v16, %v3054_v15  ;;  %v3035_v48 = vor.u32 %v4310_v34, %v3034_v29  ;;  %v4254_v15 = vld [vmem:[%s4930_s4 + $0x990] sm:$0xf]  ;;  %v4615_v16 = vld [vmem:[%s4930_s4 + $0x9a0] sm:$0xf0]  ;;  %v4074_v29 = vld [vmem:[%s4930_s4 + $0x828] sm:$0xf] }
  0xaf   : > { %2572 = vmatpush.bf16.msra.mxu0 %v3135_v39  ;;  %v3354_v39 = vld [vmem:[%s4930_s4 + $0x288] sm:$0xf]  ;;  %v4255_v24 = vor.u32 %v4615_v16, %v4254_v15  ;;  %v4610_v34 = vld [vmem:[%s4930_s4 + $0x978] sm:$0xf0] }
  0xb0   : > { %2585 = vmatpush.bf16.msra.mxu1 %v3295_v40  ;;  %v4390_v40 = vld [vmem:[%s4930_s4 + $0x298] sm:$0xf0] }
  0xb1   : > { %2598 = vmatpush.bf16.msra.mxu2 %v3455_v43  ;;  %v3814_v43 = vld [vmem:[%s4930_s4 + $0x620] sm:$0xf]  ;;  %v3355_v53 = vor.u32 %v4390_v40, %v3354_v39 }
  0xb2   : > { %2611 = vmatpush.bf16.msra.mxu3 %v3615_v44  ;;  %v4505_v44 = vld [vmem:[%s4930_s4 + $0x630] sm:$0xf0] }
  0xb3   : > { %2573 = vmatpush.bf16.msra.mxu0 %v3115_v51  ;;  %v4294_v51 = vld [vmem:[%s4930_s4 + $0x9e0] sm:$0xf] }
  0xb4   : > { %2586 = vmatpush.bf16.msra.mxu1 %v3275_v52  ;;  %v4625_v52 = vld [vmem:[%s4930_s4 + $0x9f0] sm:$0xf0] }
  0xb5   : > { %2599 = vmatpush.bf16.msra.mxu2 %v3435_v55  ;;  %v3815_v55 = vor.u32 %v4505_v44, %v3814_v43  ;;  %v4295_v60 = vor.u32 %v4625_v52, %v4294_v51  ;;  %v4054_v43 = vld [vmem:[%s4930_s4 + $0x800] sm:$0xf]  ;;  %v4565_v44 = vld [vmem:[%s4930_s4 + $0x810] sm:$0xf0] }
  0xb6   : > { %2612 = vmatpush.bf16.msra.mxu3 %v3595_v56  ;;  %v3975_v56 = vor.u32 %v4545_v46, %v3974_v45  ;;  %v4214_v45 = vld [vmem:[%s4930_s4 + $0x940] sm:$0xf]  ;;  %v4605_v46 = vld [vmem:[%s4930_s4 + $0x950] sm:$0xf0]  ;;  %v4055_v51 = vor.u32 %v4565_v44, %v4054_v43 }
  0xb7   : > { %2574 = vmatpush.bf16.msra.mxu0 %v3095_v63  ;;  %v4114_v63 = vld [vmem:[%s4930_s4 + $0x878] sm:$0xf]  ;;  %v4215_v52 = vor.u32 %v4605_v46, %v4214_v45  ;;  %v4378_v46 = vld [vmem:[%s4930_s4 + $0x23c] sm:$0xf] }
  0xb8   : > { %2587 = vmatpush.bf16.msra.mxu1 %v3255_v0  ;;  %v4580_v0 = vld [vmem:[%s4930_s4 + $0x888] sm:$0xf0] }
  0xb9   : > { %2600 = vmatpush.bf16.msra.mxu2 %v3415_v4  ;;  %v3795_v4 = vor.u32 %v4500_v58, %v3794_v57  ;;  %v4115_v8 = vor.u32 %v4580_v0, %v4114_v63  ;;  %v4194_v57 = vld [vmem:[%s4930_s4 + $0x918] sm:$0xf]  ;;  %v4600_v58 = vld [vmem:[%s4930_s4 + $0x928] sm:$0xf0] }
  0xba   : > { %2613 = vmatpush.bf16.msra.mxu3 %v3575_v5  ;;  %v3955_v5 = vor.u32 %v4540_v62, %v3954_v61  ;;  %v3694_v61 = vld [vmem:[%s4930_s4 + $0x530] sm:$0xf]  ;;  %v4475_v62 = vld [vmem:[%s4930_s4 + $0x540] sm:$0xf0]  ;;  %v4195_v0 = vor.u32 %v4600_v58, %v4194_v57  ;;  %v3136_v57 = vld [vmem:[%s4930_s4 + $0xe4] sm:$0xf0] }
  0xbb   : > { %2575 = vmatpush.bf16.msra.mxu0 %v3075_v13  ;;  %v4094_v13 = vld [vmem:[%s4930_s4 + $0x850] sm:$0xf] }
  0xbc   : > { %2588 = vmatpush.bf16.msra.mxu1 %v3235_v14  ;;  %v4575_v14 = vld [vmem:[%s4930_s4 + $0x860] sm:$0xf0] }
  0xbd   : > { %2601 = vmatpush.bf16.msra.mxu2 %v3395_v17  ;;  %v3775_v17 = vor.u32 %v4495_v7, %v3774_v6  ;;  %v4095_v23 = vor.u32 %v4575_v14, %v4094_v13  ;;  %v4174_v6 = vld [vmem:[%s4930_s4 + $0x8f0] sm:$0xf]  ;;  %v4595_v7 = vld [vmem:[%s4930_s4 + $0x900] sm:$0xf0]  ;;  %v3834_v13 = vld [vmem:[%s4930_s4 + $0x648] sm:$0xf] }
  0xbe   : > { %2614 = vmatpush.bf16.msra.mxu3 %v3555_v20  ;;  %v3935_v20 = vor.u32 %v4535_v11, %v3934_v10  ;;  %v3855_v10 = vor.u32 %v4515_v3, %v3854_v2  ;;  %v4470_v11 = vld [vmem:[%s4930_s4 + $0x518] sm:$0xf0]  ;;  %v4175_v16 = vor.u32 %v4595_v7, %v4174_v6  ;;  %v3616_v2 = vld [vmem:[%s4930_s4 + $0x4a4] sm:$0xf0] }
  0xbf   : > { %2576 = vmatpush.bf16.msra.mxu0 %v3055_v32  ;;  %v4570_v32 = vld [vmem:[%s4930_s4 + $0x838] sm:$0xf0] }
  0xc0   : > { %2589 = vmatpush.bf16.msra.mxu1 %v3215_v33  ;;  %v4234_v33 = vld [vmem:[%s4930_s4 + $0x968] sm:$0xf]  ;;  %v4075_v39 = vor.u32 %v4570_v32, %v4074_v29  ;;  %v4510_v14 = vld [vmem:[%s4930_s4 + $0x658] sm:$0xf0]  ;;  %v4423_v29 = vld [vmem:[%s4930_s4 + $0x3a4] sm:$0xf] }
  0xc1   : > { %2602 = vmatpush.bf16.msra.mxu2 %v3375_v37  ;;  %v3734_v37 = vld [vmem:[%s4930_s4 + $0x580] sm:$0xf]  ;;  %v4235_v40 = vor.u32 %v4610_v34, %v4234_v33  ;;  %v3835_v33 = vor.u32 %v4510_v14, %v3834_v13  ;;  %v3496_v34 = vld [vmem:[%s4930_s4 + $0x3b4] sm:$0xf0]  ;;  %v4368_v14 = vld [vmem:[%s4930_s4 + $0x1ec] sm:$0xf] }
  0xc2   : > { %2615 = vmatpush.bf16.msra.mxu3 %v3535_v38  ;;  %v4485_v38 = vld [vmem:[%s4930_s4 + $0x590] sm:$0xf0]  ;;  %v3499_v43 = vor.u32 %v4423_v29, %v3496_v34  ;;  %v3096_v29 = vld [vmem:[%s4930_s4 + $0x94] sm:$0xf0]  ;;  %v4363_v34 = vld [vmem:[%s4930_s4 + $0x1c4] sm:$0xf] }
  0xc3   : > { %2577 = vmatpush.bf16.msra.mxu0 %v3035_v48  ;;  %v3735_v47 = vor.u32 %v4485_v38, %v3734_v37  ;;  %v3895_v48 = vor.u32 %v4525_v42, %v3894_v41  ;;  %v4155_v38 = vor.u32 %v4590_v22, %v4154_v21  ;;  %v4338_v41 = vld [vmem:[%s4930_s4 + $0xfc] sm:$0xf]  ;;  %v3156_v42 = vld [vmem:[%s4930_s4 + $0x10c] sm:$0xf0]  ;;  %v3436_v21 = vld [vmem:[%s4930_s4 + $0x33c] sm:$0xf0] }
  0xc4   : > { %2590 = vmatpush.bf16.msra.mxu1 %v3195_v49  ;;  %v3714_v49 = vld [vmem:[%s4930_s4 + $0x558] sm:$0xf]  ;;  %v4448_v22 = vld [vmem:[%s4930_s4 + $0x46c] sm:$0xf] }
  0xc5   : > { %2603 = vmatpush.bf16.msra.mxu2 %v3355_v53  ;;  %v3874_v53 = vld [vmem:[%s4930_s4 + $0x698] sm:$0xf] }
  0xc6   : > { %2616 = vmatpush.bf16.msra.mxu3 %v3515_v54  ;;  %2578 = vmatmul.bf16.vlgmr.msra.gmra.mxu0 %v5078_v1  ;;  %v4520_v54 = vld [vmem:[%s4930_s4 + $0x6a8] sm:$0xf0] }
  0xc7   : > { %2622 = vmatpush.bf16.msrb.mxu0 %v3815_v55  ;;  %2591 = vmatmul.bf16.vlgmr.msra.gmra.mxu1 %v5084_v19  ;;  %v4034_v55 = vld [vmem:[%s4930_s4 + $0x7d8] sm:$0xf] }
  0xc8   : > { %2635 = vmatpush.bf16.msrb.mxu1 %v3975_v56  ;;  %2604 = vmatmul.bf16.vlgmr.msra.gmra.mxu2 %v5076_v12  ;;  %v4560_v56 = vld [vmem:[%s4930_s4 + $0x7e8] sm:$0xf0] }
  0xc9   : > { %2648 = vmatpush.bf16.msrb.mxu2 %v4135_v59  ;;  %2617 = vmatmul.bf16.vlgmr.msra.gmra.mxu3 %v5082_v18  ;;  %v3715_v59 = vor.u32 %v4480_v50, %v3714_v49  ;;  %v4035_v63 = vor.u32 %v4560_v56, %v4034_v55  ;;  %v3476_v50 = vld [vmem:[%s4930_s4 + $0x38c] sm:$0xf0]  ;;  %v4333_v56 = vld [vmem:[%s4930_s4 + $0xd4] sm:$0xf] }
  0xca   : > { %2661 = vmatpush.bf16.msrb.mxu3 %v4295_v60  ;;  %v3875_v60 = vor.u32 %v4520_v54, %v3874_v53  ;;  %v3159_v54 = vor.u32 %v4338_v41, %v3156_v42  ;;  %v3139_v6 = vor.u32 %v4333_v56, %v3136_v57 }
  0xcb   : > { %2623 = vmatpush.bf16.msrb.mxu0 %v3795_v4  ;;  %v4014_v4 = vld [vmem:[%s4930_s4 + $0x7b0] sm:$0xf] }
  0xcc   : > { %2636 = vmatpush.bf16.msrb.mxu1 %v3955_v5  ;;  %v4555_v5 = vld [vmem:[%s4930_s4 + $0x7c0] sm:$0xf0] }
  0xcd   : > { %2649 = vmatpush.bf16.msrb.mxu2 %v4115_v8  ;;  %v3674_v8 = vld [vmem:[%s4930_s4 + $0x508] sm:$0xf]  ;;  %v4015_v15 = vor.u32 %v4555_v5, %v4014_v4 }
  0xce   : > { %2662 = vmatpush.bf16.msrb.mxu3 %v4275_v9  ;;  %v3695_v9 = vor.u32 %v4475_v62, %v3694_v61  ;;  %v3675_v32 = vor.u32 %v4470_v11, %v3674_v8  ;;  %v3296_v61 = vld [vmem:[%s4930_s4 + $0x224] sm:$0xf0]  ;;  %v4413_v62 = vld [vmem:[%s4930_s4 + $0x354] sm:$0xf]  ;;  %v4328_v8 = vld [vmem:[%s4930_s4 + $0xac] sm:$0xf] }
  0xcf   : > { %2624 = vmatpush.bf16.msrb.mxu0 %v3775_v17  ;;  %v3994_v17 = vld [vmem:[%s4930_s4 + $0x788] sm:$0xf] }
  0xd0   : > { %2637 = vmatpush.bf16.msrb.mxu1 %v3935_v20  ;;  %v4550_v20 = vld [vmem:[%s4930_s4 + $0x798] sm:$0xf0] }
  0xd1   : > { %2650 = vmatpush.bf16.msrb.mxu2 %v4095_v23  ;;  %v4343_v23 = vld [vmem:[%s4930_s4 + $0x124] sm:$0xf]  ;;  %v3995_v37 = vor.u32 %v4550_v20, %v3994_v17 }
  0xd2   : > { %2663 = vmatpush.bf16.msrb.mxu3 %v4255_v24  ;;  %v3176_v24 = vld [vmem:[%s4930_s4 + $0x134] sm:$0xf0] }
  0xd3   : > { %2625 = vmatpush.bf16.msrb.mxu0 %v3755_v35  ;;  %v4463_v35 = vld [vmem:[%s4930_s4 + $0x4e4] sm:$0xf] }
  0xd4   : > { %2638 = vmatpush.bf16.msrb.mxu1 %v3915_v36  ;;  %v3656_v36 = vld [vmem:[%s4930_s4 + $0x4f4] sm:$0xf0] }
  0xd5   : > { %2651 = vmatpush.bf16.msrb.mxu2 %v4075_v39  ;;  %v3179_v39 = vor.u32 %v4343_v23, %v3176_v24  ;;  %v3659_v44 = vor.u32 %v4463_v35, %v3656_v36  ;;  %v3596_v23 = vld [vmem:[%s4930_s4 + $0x47c] sm:$0xf0]  ;;  %v3256_v35 = vld [vmem:[%s4930_s4 + $0x1d4] sm:$0xf0]  ;;  %v4403_v36 = vld [vmem:[%s4930_s4 + $0x304] sm:$0xf] }
  0xd6   : > { %2664 = vmatpush.bf16.msrb.mxu3 %v4235_v40  ;;  %v3339_v40 = vor.u32 %v4383_v27, %v3336_v28  ;;  %v2371_v45 = vpop.f32.mrf.mxu0  ;;  %v4323_v28 = vld [vmem:[%s4930_s4 + $0x84] sm:$0xf] }
  0xd7   : > { %2626 = vmatpush.bf16.msrb.mxu0 %v3735_v47  ;;  %v3316_v47 = vld [vmem:[%s4930_s4 + $0x24c] sm:$0xf0]  ;;  %v2384_v49 = vpop.f32.mrf.mxu1  ;;  %v3099_v42 = vor.u32 %v4323_v28, %v3096_v29  ;;  %v3816_v28 = vld [vmem:[%s4930_s4 + $0x634] sm:$0xf0]  ;;  %v4543_v29 = vld [vmem:[%s4930_s4 + $0x764] sm:$0xf] }
  0xd8   : > { %2639 = vmatpush.bf16.msrb.mxu1 %v3895_v48  ;;  %v4418_v48 = vld [vmem:[%s4930_s4 + $0x37c] sm:$0xf]  ;;  %v2385_v53 = vadd.f32 %v2384_v49, %v2371_v45  ;;  %v3319_v55 = vor.u32 %v4378_v46, %v3316_v47  ;;  %v3076_v45 = vld [vmem:[%s4930_s4 + $0x6c] sm:$0xf0] }
  0xd9   : > { %2652 = vmatpush.bf16.msrb.mxu2 %v4055_v51  ;;  %v4458_v51 = vld [vmem:[%s4930_s4 + $0x4bc] sm:$0xf]  ;;  %v3479_v58 = vor.u32 %v4418_v48, %v3476_v50  ;;  %v3236_v49 = vld [vmem:[%s4930_s4 + $0x1ac] sm:$0xf0] }
  0xda   : > { %2665 = vmatpush.bf16.msrb.mxu3 %v4215_v52  ;;  %v3636_v52 = vld [vmem:[%s4930_s4 + $0x4cc] sm:$0xf0]  ;;  %v4358_v48 = vld [vmem:[%s4930_s4 + $0x19c] sm:$0xf] }
  0xdb   : > { %2627 = vmatpush.bf16.msrb.mxu0 %v3715_v59  ;;  %v3639_v59 = vor.u32 %v4458_v51, %v3636_v52  ;;  %v2397_v3 = vpop.f32.mrf.mxu2  ;;  %v4398_v50 = vld [vmem:[%s4930_s4 + $0x2dc] sm:$0xf]  ;;  %v3396_v51 = vld [vmem:[%s4930_s4 + $0x2ec] sm:$0xf0] }
  0xdc   : > { %2640 = vmatpush.bf16.msrb.mxu1 %v3875_v60  ;;  %v4373_v60 = vld [vmem:[%s4930_s4 + $0x214] sm:$0xf]  ;;  %v2398_v4 = vadd.f32 %v2397_v3, %v2385_v53  ;;  %v4438_v52 = vld [vmem:[%s4930_s4 + $0x41c] sm:$0xf]  ;;  %v3556_v53 = vld [vmem:[%s4930_s4 + $0x42c] sm:$0xf0] }
  0xdd   : > { %2653 = vmatpush.bf16.msrb.mxu2 %v4035_v63  ;;  %v3456_v63 = vld [vmem:[%s4930_s4 + $0x364] sm:$0xf0]  ;;  %v3299_v7 = vor.u32 %v4373_v60, %v3296_v61  ;;  %v3399_v61 = vor.u32 %v4398_v50, %v3396_v51  ;;  %v4538_v50 = vld [vmem:[%s4930_s4 + $0x73c] sm:$0xf]  ;;  %v3956_v51 = vld [vmem:[%s4930_s4 + $0x74c] sm:$0xf0] }
  0xde   : > { %2666 = vmatpush.bf16.msrb.mxu3 %v4195_v0  ;;  %v4453_v0 = vld [vmem:[%s4930_s4 + $0x494] sm:$0xf]  ;;  %v2410_v5 = vpop.f32.mrf.mxu3  ;;  %v2373_v13 = vpop.f32.mrf.mxu0  ;;  %v3056_v60 = vld [vmem:[%s4930_s4 + $0x44] sm:$0xf0] }
  0xdf   : > { %2628 = vmatpush.bf16.msrb.mxu0 %v3695_v9  ;;  %v3116_v9 = vld [vmem:[%s4930_s4 + $0xbc] sm:$0xf0]  ;;  %v3619_v11 = vor.u32 %v4453_v0, %v3616_v2  ;;  %v2411_v17 = vadd.f32 %v2410_v5, %v2398_v4  ;;  %v2386_v20 = vpop.f32.mrf.mxu1  ;;  %v3216_v0 = vld [vmem:[%s4930_s4 + $0x184] sm:$0xf0]  ;;  %v4393_v2 = vld [vmem:[%s4930_s4 + $0x2b4] sm:$0xf] }
  0xe0   : > { %2641 = vmatpush.bf16.msrb.mxu1 %v3855_v10  ;;  %v3459_v10 = vor.u32 %v4413_v62, %v3456_v63  ;;  %v3119_v24 = vor.u32 %v4328_v8, %v3116_v9  ;;  %v3559_v62 = vor.u32 %v4438_v52, %v3556_v53  ;;  %v4353_v63 = vld [vmem:[%s4930_s4 + $0x174] sm:$0xf]  ;;  %v3376_v4 = vld [vmem:[%s4930_s4 + $0x2c4] sm:$0xf0]  ;;  %v3196_v13 = vld [vmem:[%s4930_s4 + $0x15c] sm:$0xf0] }
  0xe1   : > { %2654 = vmatpush.bf16.msrb.mxu2 %v4015_v15  ;;  %v3276_v15 = vld [vmem:[%s4930_s4 + $0x1fc] sm:$0xf0]  ;;  %v4433_v5 = vld [vmem:[%s4930_s4 + $0x3f4] sm:$0xf]  ;;  %v3219_v9 = vor.u32 %v4353_v63, %v3216_v0  ;;  %v4578_v52 = vld [vmem:[%s4930_s4 + $0x87c] sm:$0xf] }
  0xe2   : > { %2667 = vmatpush.bf16.msrb.mxu3 %v4175_v16  ;;  %v4408_v16 = vld [vmem:[%s4930_s4 + $0x32c] sm:$0xf]  ;;  %v3279_v27 = vor.u32 %v4368_v14, %v3276_v15  ;;  %v3379_v15 = vor.u32 %v4393_v2, %v3376_v4  ;;  %v3356_v20 = vld [vmem:[%s4930_s4 + $0x29c] sm:$0xf0]  ;;  %v4116_v53 = vld [vmem:[%s4930_s4 + $0x88c] sm:$0xf0] }
  0xe3   : > { %2629 = vmatpush.bf16.msrb.mxu0 %v3675_v32  ;;  %v3439_v32 = vor.u32 %v4408_v16, %v3436_v21  ;;  %v4428_v21 = vld [vmem:[%s4930_s4 + $0x3cc] sm:$0xf]  ;;  %v4533_v0 = vld [vmem:[%s4930_s4 + $0x714] sm:$0xf]  ;;  %v3936_v2 = vld [vmem:[%s4930_s4 + $0x724] sm:$0xf0] }
  0xe4   : > { %2642 = vmatpush.bf16.msrb.mxu1 %v3835_v33  ;;  %v3599_v33 = vor.u32 %v4448_v22, %v3596_v23  ;;  %v4096_v4 = vld [vmem:[%s4930_s4 + $0x864] sm:$0xf0] }
  0xe5   : > { %2655 = vmatpush.bf16.msrb.mxu2 %v3995_v37  ;;  %v3416_v37 = vld [vmem:[%s4930_s4 + $0x314] sm:$0xf0] }
  0xe6   : > { %2668 = vmatpush.bf16.msrb.mxu3 %v4155_v38  ;;  %2630 = vmatmul.bf16.vlgmr.msrb.gmra.mxu0 %v5134_v26  ;;  %v4443_v38 = vld [vmem:[%s4930_s4 + $0x444] sm:$0xf]  ;;  %v2412_v41 = vpop.f32.mrf.mxu3  ;;  %v3419_v46 = vor.u32 %v4403_v36, %v3416_v37 }
  0xe7   : > { %2674 = vmatpush.bf16.msra.mxu0 %v3179_v39  ;;  %2643 = vmatmul.bf16.vlgmr.msrb.gmra.mxu1 %v5138_v31  ;;  %v3576_v39 = vld [vmem:[%s4930_s4 + $0x454] sm:$0xf0]  ;;  %v2436_v56 = vpop.f32.mrf.mxu1 }
  0xe8   : > { %2687 = vmatpush.bf16.msra.mxu1 %v3339_v40  ;;  %2656 = vmatmul.bf16.vlgmr.msrb.gmra.mxu2 %v5132_v25  ;;  %v2399_v40 = vpop.f32.mrf.mxu2  ;;  %v3579_v47 = vor.u32 %v4443_v38, %v3576_v39  ;;  %v4136_v38 = vld [vmem:[%s4930_s4 + $0x8b4] sm:$0xf0]  ;;  %v4623_v39 = vld [vmem:[%s4930_s4 + $0x9e4] sm:$0xf] }
  0xe9   : > { %2700 = vmatpush.bf16.msra.mxu2 %v3499_v43  ;;  %2669 = vmatmul.bf16.vlgmr.msrb.gmra.mxu3 %v5136_v30  ;;  %v3259_v43 = vor.u32 %v4363_v34, %v3256_v35  ;;  %v4296_v40 = vld [vmem:[%s4930_s4 + $0x9f4] sm:$0xf0] }
  0xea   : > { %2713 = vmatpush.bf16.msra.mxu3 %v3659_v44  ;;  %v4318_v44 = vld [vmem:[%s4930_s4 + $0x5c] sm:$0xf] }
  0xeb   : > { %2675 = vmatpush.bf16.msra.mxu0 %v3159_v54  ;;  %v2423_v54 = vpop.f32.mrf.mxu0  ;;  %v3079_v57 = vor.u32 %v4318_v44, %v3076_v45 }
  0xec   : > { %2688 = vmatpush.bf16.msra.mxu1 %v3319_v55  ;;  %v2424_v55 = vadd.f32 %v2423_v54, %v2411_v17  ;;  %v4388_v17 = vld [vmem:[%s4930_s4 + $0x28c] sm:$0xf]  ;;  %v4618_v54 = vld [vmem:[%s4930_s4 + $0x9bc] sm:$0xf] }
  0xed   : > { %2701 = vmatpush.bf16.msra.mxu2 %v3479_v58  ;;  %v3239_v58 = vor.u32 %v4358_v48, %v3236_v49  ;;  %v4299_v49 = vor.u32 %v4623_v39, %v4296_v40  ;;  %v4056_v39 = vld [vmem:[%s4930_s4 + $0x814] sm:$0xf0]  ;;  %v4603_v40 = vld [vmem:[%s4930_s4 + $0x944] sm:$0xf] }
  0xee   : > { %2714 = vmatpush.bf16.msra.mxu3 %v3639_v59  ;;  %v4313_v59 = vld [vmem:[%s4930_s4 + $0x34] sm:$0xf]  ;;  %v2437_v3 = vadd.f32 %v2436_v56, %v2424_v55  ;;  %v2462_v23 = vpop.f32.mrf.mxu3  ;;  %v4276_v55 = vld [vmem:[%s4930_s4 + $0x9cc] sm:$0xf0] }
  0xef   : > { %2676 = vmatpush.bf16.msra.mxu0 %v3139_v6  ;;  %v3536_v6 = vld [vmem:[%s4930_s4 + $0x404] sm:$0xf0]  ;;  %v3059_v8 = vor.u32 %v4313_v59, %v3056_v60  ;;  %v2438_v41 = vpop.f32.mrf.mxu1  ;;  %v4493_v59 = vld [vmem:[%s4930_s4 + $0x5d4] sm:$0xf]  ;;  %v4279_v63 = vor.u32 %v4618_v54, %v4276_v55  ;;  %v4196_v54 = vld [vmem:[%s4930_s4 + $0x92c] sm:$0xf0] }
  0xf0   : > { %2689 = vmatpush.bf16.msra.mxu1 %v3299_v7  ;;  %v4308_v7 = vld [vmem:[%s4930_s4 + $0xc] sm:$0xf]  ;;  %v2449_v14 = vpop.f32.mrf.mxu2  ;;  %v3539_v16 = vor.u32 %v4433_v5, %v3536_v6  ;;  %v3776_v60 = vld [vmem:[%s4930_s4 + $0x5e4] sm:$0xf0]  ;;  %v4613_v5 = vld [vmem:[%s4930_s4 + $0x994] sm:$0xf] }
  0xf1   : > { %2702 = vmatpush.bf16.msra.mxu2 %v3459_v10  ;;  %v3036_v10 = vld [vmem:[%s4930_s4 + $0x1c] sm:$0xf0]  ;;  %v2450_v22 = vadd.f32 %v2449_v14, %v2437_v3  ;;  %v4573_v3 = vld [vmem:[%s4930_s4 + $0x854] sm:$0xf]  ;;  %v4256_v6 = vld [vmem:[%s4930_s4 + $0x9a4] sm:$0xf0] }
  0xf2   : > { %2715 = vmatpush.bf16.msra.mxu3 %v3619_v11  ;;  %v4348_v11 = vld [vmem:[%s4930_s4 + $0x14c] sm:$0xf]  ;;  %v3039_v36 = vor.u32 %v4308_v7, %v3036_v10  ;;  %v3779_v7 = vor.u32 %v4493_v59, %v3776_v60  ;;  %v3756_v10 = vld [vmem:[%s4930_s4 + $0x5bc] sm:$0xf0]  ;;  %v4216_v41 = vld [vmem:[%s4930_s4 + $0x954] sm:$0xf0] }
  0xf3   : > { %2677 = vmatpush.bf16.msra.mxu0 %v3119_v24  ;;  %v3516_v24 = vld [vmem:[%s4930_s4 + $0x3dc] sm:$0xf0]  ;;  %v2425_v34 = vpop.f32.mrf.mxu0  ;;  %v5451_v35 = vadd.f32 %v2462_v23, %v2450_v22  ;;  %v3199_v37 = vor.u32 %v4348_v11, %v3196_v13  ;;  %v4099_v11 = vor.u32 %v4573_v3, %v4096_v4  ;;  %v4259_v13 = vor.u32 %v4613_v5, %v4256_v6  ;;  %v4528_v14 = vld [vmem:[%s4930_s4 + $0x6ec] sm:$0xf]  ;;  %v4473_v60 = vld [vmem:[%s4930_s4 + $0x534] sm:$0xf] }
  0xf4   : > { %2690 = vmatpush.bf16.msra.mxu1 %v3279_v27  ;;  %v4503_v27 = vld [vmem:[%s4930_s4 + $0x624] sm:$0xf]  ;;  %v4513_v3 = vld [vmem:[%s4930_s4 + $0x674] sm:$0xf]  ;;  %v3856_v4 = vld [vmem:[%s4930_s4 + $0x684] sm:$0xf0] }
  0xf5   : > { %2703 = vmatpush.bf16.msra.mxu2 %v3439_v32  ;;  %v3976_v32 = vld [vmem:[%s4930_s4 + $0x774] sm:$0xf0]  ;;  %v3819_v44 = vor.u32 %v4503_v27, %v3816_v28  ;;  %v4483_v27 = vld [vmem:[%s4930_s4 + $0x584] sm:$0xf]  ;;  %v4553_v5 = vld [vmem:[%s4930_s4 + $0x7b4] sm:$0xf] }
  0xf6   : > { %2716 = vmatpush.bf16.msra.mxu3 %v3599_v33  ;;  %v4583_v33 = vld [vmem:[%s4930_s4 + $0x8a4] sm:$0xf]  ;;  %v3979_v45 = vor.u32 %v4543_v29, %v3976_v32  ;;  %v3736_v28 = vld [vmem:[%s4930_s4 + $0x594] sm:$0xf0]  ;;  %v4016_v6 = vld [vmem:[%s4930_s4 + $0x7c4] sm:$0xf0] }
  0xf7   : > { %2678 = vmatpush.bf16.msra.mxu0 %v3099_v42  ;;  %v3359_v42 = vor.u32 %v4388_v17, %v3356_v20  ;;  %v4139_v48 = vor.u32 %v4583_v33, %v4136_v38  ;;  %v4076_v17 = vld [vmem:[%s4930_s4 + $0x83c] sm:$0xf0]  ;;  %v4608_v20 = vld [vmem:[%s4930_s4 + $0x96c] sm:$0xf]  ;;  %v4523_v34 = vld [vmem:[%s4930_s4 + $0x6c4] sm:$0xf] }
  0xf8   : > { %2691 = vmatpush.bf16.msra.mxu1 %v3259_v43  ;;  %v3519_v43 = vor.u32 %v4428_v21, %v3516_v24  ;;  %v2451_v56 = vpop.f32.mrf.mxu2  ;;  %v4236_v21 = vld [vmem:[%s4930_s4 + $0x97c] sm:$0xf0] }
  0xf9   : > { %2704 = vmatpush.bf16.msra.mxu2 %v3419_v46  ;;  %v4498_v46 = vld [vmem:[%s4930_s4 + $0x5fc] sm:$0xf]  ;;  %v4239_v33 = vor.u32 %v4608_v20, %v4236_v21  ;;  %v4548_v20 = vld [vmem:[%s4930_s4 + $0x78c] sm:$0xf]  ;;  %v3996_v21 = vld [vmem:[%s4930_s4 + $0x79c] sm:$0xf0] }
  0xfa   : > { %2717 = vmatpush.bf16.msra.mxu3 %v3579_v47  ;;  %v3796_v47 = vld [vmem:[%s4930_s4 + $0x60c] sm:$0xf0] }
  0xfb   : > { %2679 = vmatpush.bf16.msra.mxu0 %v3079_v57  ;;  %v3799_v57 = vor.u32 %v4498_v46, %v3796_v47  ;;  %v4219_v47 = vor.u32 %v4603_v40, %v4216_v41  ;;  %v4466_v40 = vld [vmem:[%s4930_s4 + $0x4f8] sm:$0xf0]  ;;  %v3999_v41 = vor.u32 %v4548_v20, %v3996_v21 }
  0xfc   : > { %2692 = vmatpush.bf16.msra.mxu1 %v3239_v58  ;;  %v3959_v58 = vor.u32 %v4538_v50, %v3956_v51  ;;  %v4558_v50 = vld [vmem:[%s4930_s4 + $0x7dc] sm:$0xf] }
  0xfd   : > { %2705 = vmatpush.bf16.msra.mxu2 %v3399_v61  ;;  %v2464_v61 = vpop.f32.mrf.mxu3 }
  0xfe   : > { %2718 = vmatpush.bf16.msra.mxu3 %v3559_v62  ;;  %v4119_v62 = vor.u32 %v4578_v52, %v4116_v53  ;;  %v4036_v52 = vld [vmem:[%s4930_s4 + $0x7ec] sm:$0xf0]  ;;  %v4598_v53 = vld [vmem:[%s4930_s4 + $0x91c] sm:$0xf]  ;;  %v3696_v61 = vld [vmem:[%s4930_s4 + $0x544] sm:$0xf0] }
  0xff   : > { %2680 = vmatpush.bf16.msra.mxu0 %v3059_v8  ;;  %v3939_v8 = vor.u32 %v4533_v0, %v3936_v2  ;;  %v4039_v0 = vor.u32 %v4558_v50, %v4036_v52  ;;  %v4199_v2 = vor.u32 %v4598_v53, %v4196_v54  ;;  %v4381_v50 = vld [vmem:[%s4930_s4 + $0x250] sm:$0xf0]  ;;  %v3642_v53 = vld [vmem:[%s4930_s4 + $0x4c0] sm:$0xf] }
 0x100   : > { %2693 = vmatpush.bf16.msra.mxu1 %v3219_v9  ;;  %v4488_v9 = vld [vmem:[%s4930_s4 + $0x5ac] sm:$0xf]  ;;  %v4421_v52 = vld [vmem:[%s4930_s4 + $0x390] sm:$0xf0] }
 0x101   : > { %2706 = vmatpush.bf16.msra.mxu2 %v3379_v15  ;;  %v3916_v15 = vld [vmem:[%s4930_s4 + $0x6fc] sm:$0xf0]  ;;  %v3759_v23 = vor.u32 %v4488_v9, %v3756_v10  ;;  %v4468_v9 = vld [vmem:[%s4930_s4 + $0x50c] sm:$0xf]  ;;  %v3699_v10 = vor.u32 %v4473_v60, %v3696_v61  ;;  %v4461_v54 = vld [vmem:[%s4930_s4 + $0x4d0] sm:$0xf0] }
 0x102   : > { %2719 = vmatpush.bf16.msra.mxu3 %v3539_v16  ;;  %v4568_v16 = vld [vmem:[%s4930_s4 + $0x82c] sm:$0xf]  ;;  %v3919_v24 = vor.u32 %v4528_v14, %v3916_v15  ;;  %v3836_v15 = vld [vmem:[%s4930_s4 + $0x65c] sm:$0xf0]  ;;  %v3643_v60 = vor.u32 %v4461_v54, %v3642_v53  ;;  %v3302_v61 = vld [vmem:[%s4930_s4 + $0x218] sm:$0xf] }
 0x103   : > { %2681 = vmatpush.bf16.msra.mxu0 %v3039_v36  ;;  %v2475_v22 = vpop.f32.mrf.mxu0  ;;  %v4079_v32 = vor.u32 %v4568_v16, %v4076_v17  ;;  %v3896_v36 = vld [vmem:[%s4930_s4 + $0x6d4] sm:$0xf0]  ;;  %v4508_v14 = vld [vmem:[%s4930_s4 + $0x64c] sm:$0xf]  ;;  %v4019_v16 = vor.u32 %v4553_v5, %v4016_v6  ;;  %v3562_v53 = vld [vmem:[%s4930_s4 + $0x420] sm:$0xf] }
 0x104   : > { %2694 = vmatpush.bf16.msra.mxu1 %v3199_v37  ;;  %v2488_v29 = vpop.f32.mrf.mxu1  ;;  %v4563_v37 = vld [vmem:[%s4930_s4 + $0x804] sm:$0xf]  ;;  %v4441_v54 = vld [vmem:[%s4930_s4 + $0x430] sm:$0xf0] }
 0x105   : > { %2707 = vmatpush.bf16.msra.mxu2 %v3359_v42  ;;  %v2489_v38 = vadd.f32 %v2488_v29, %v2475_v22  ;;  %v3739_v42 = vor.u32 %v4483_v27, %v3736_v28  ;;  %v4059_v46 = vor.u32 %v4563_v37, %v4056_v39  ;;  %v4588_v22 = vld [vmem:[%s4930_s4 + $0x8cc] sm:$0xf]  ;;  %v3182_v27 = vld [vmem:[%s4930_s4 + $0x128] sm:$0xf]  ;;  %v4346_v28 = vld [vmem:[%s4930_s4 + $0x138] sm:$0xf0]  ;;  %v3839_v37 = vor.u32 %v4508_v14, %v3836_v15 }
 0x106   : > { %2720 = vmatpush.bf16.msra.mxu3 %v3519_v43  ;;  %2682 = vmatmul.bf16.vlgmr.msra.gmra.mxu0 %v5078_v1  ;;  %v3899_v43 = vor.u32 %v4523_v34, %v3896_v36  ;;  %v3502_v34 = vld [vmem:[%s4930_s4 + $0x3a8] sm:$0xf]  ;;  %v3442_v14 = vld [vmem:[%s4930_s4 + $0x330] sm:$0xf]  ;;  %v4411_v15 = vld [vmem:[%s4930_s4 + $0x340] sm:$0xf0] }
 0x107   : > { %2726 = vmatpush.bf16.msrb.mxu0 %v3819_v44  ;;  %2695 = vmatmul.bf16.vlgmr.msra.gmra.mxu1 %v5084_v19  ;;  %v4478_v44 = vld [vmem:[%s4930_s4 + $0x55c] sm:$0xf]  ;;  %v3662_v39 = vld [vmem:[%s4930_s4 + $0x4e8] sm:$0xf] }
 0x108   : > { %2739 = vmatpush.bf16.msrb.mxu1 %v3979_v45  ;;  %2708 = vmatmul.bf16.vlgmr.msra.gmra.mxu2 %v5076_v12  ;;  %v3716_v45 = vld [vmem:[%s4930_s4 + $0x56c] sm:$0xf0] }
 0x109   : > { %2752 = vmatpush.bf16.msrb.mxu2 %v4139_v48  ;;  %2721 = vmatmul.bf16.vlgmr.msra.gmra.mxu3 %v5082_v18  ;;  %v4518_v48 = vld [vmem:[%s4930_s4 + $0x69c] sm:$0xf] }
 0x10a   : > { %2765 = vmatpush.bf16.msrb.mxu3 %v4299_v49  ;;  %v3876_v49 = vld [vmem:[%s4930_s4 + $0x6ac] sm:$0xf0] }
 0x10b   : > { %2727 = vmatpush.bf16.msrb.mxu0 %v3799_v57  ;;  %v2501_v51 = vpop.f32.mrf.mxu2  ;;  %v2477_v57 = vpop.f32.mrf.mxu0  ;;  %v3879_v59 = vor.u32 %v4518_v48, %v3876_v49  ;;  %v3663_v48 = vor.u32 %v4466_v40, %v3662_v39  ;;  %v3322_v49 = vld [vmem:[%s4930_s4 + $0x240] sm:$0xf]  ;;  %v3582_v39 = vld [vmem:[%s4930_s4 + $0x448] sm:$0xf]  ;;  %v4446_v40 = vld [vmem:[%s4930_s4 + $0x458] sm:$0xf0] }
 0x10c   : > { %2740 = vmatpush.bf16.msrb.mxu1 %v3959_v58  ;;  %v2502_v55 = vadd.f32 %v2501_v51, %v2489_v38  ;;  %v2514_v56 = vpop.f32.mrf.mxu3  ;;  %v3719_v58 = vor.u32 %v4478_v44, %v3716_v45  ;;  %v4426_v38 = vld [vmem:[%s4930_s4 + $0x3b8] sm:$0xf0]  ;;  %v3162_v45 = vld [vmem:[%s4930_s4 + $0x100] sm:$0xf]  ;;  %v3142_v57 = vld [vmem:[%s4930_s4 + $0xd8] sm:$0xf] }
 0x10d   : > { %2753 = vmatpush.bf16.msrb.mxu2 %v4119_v62  ;;  %v3482_v51 = vld [vmem:[%s4930_s4 + $0x380] sm:$0xf] }
 0x10e   : > { %2766 = vmatpush.bf16.msrb.mxu3 %v4279_v63  ;;  %v5502_v62 = vadd.f32 %v2514_v56, %v2502_v55  ;;  %v2490_v63 = vpop.f32.mrf.mxu1  ;;  %v3323_v56 = vor.u32 %v4381_v50, %v3322_v49  ;;  %v3402_v49 = vld [vmem:[%s4930_s4 + $0x2e0] sm:$0xf] }
 0x10f   : > { %2728 = vmatpush.bf16.msrb.mxu0 %v3779_v7  ;;  %v4593_v7 = vld [vmem:[%s4930_s4 + $0x8f4] sm:$0xf]  ;;  %v4376_v63 = vld [vmem:[%s4930_s4 + $0x228] sm:$0xf0] }
 0x110   : > { %2741 = vmatpush.bf16.msrb.mxu1 %v3939_v8  ;;  %v4176_v8 = vld [vmem:[%s4930_s4 + $0x904] sm:$0xf0]  ;;  %v3303_v6 = vor.u32 %v4376_v63, %v3302_v61  ;;  %v3222_v61 = vld [vmem:[%s4930_s4 + $0x178] sm:$0xf] }
 0x111   : > { %2754 = vmatpush.bf16.msrb.mxu2 %v4099_v11  ;;  %v3859_v11 = vor.u32 %v4513_v3, %v3856_v4  ;;  %v4179_v17 = vor.u32 %v4593_v7, %v4176_v8  ;;  %v3622_v3 = vld [vmem:[%s4930_s4 + $0x498] sm:$0xf]  ;;  %v4456_v4 = vld [vmem:[%s4930_s4 + $0x4a8] sm:$0xf0]  ;;  %v3122_v7 = vld [vmem:[%s4930_s4 + $0xb0] sm:$0xf] }
 0x112   : > { %2767 = vmatpush.bf16.msrb.mxu3 %v4259_v13  ;;  %v3676_v13 = vld [vmem:[%s4930_s4 + $0x51c] sm:$0xf0]  ;;  %v4331_v8 = vld [vmem:[%s4930_s4 + $0xc0] sm:$0xf0] }
 0x113   : > { %2729 = vmatpush.bf16.msrb.mxu0 %v3759_v23  ;;  %v2503_v23 = vpop.f32.mrf.mxu2  ;;  %v3679_v36 = vor.u32 %v4468_v9, %v3676_v13  ;;  %v4371_v13 = vld [vmem:[%s4930_s4 + $0x200] sm:$0xf0]  ;;  %v3123_v21 = vor.u32 %v4331_v8, %v3122_v7  ;;  %v3542_v7 = vld [vmem:[%s4930_s4 + $0x3f8] sm:$0xf]  ;;  %v4436_v8 = vld [vmem:[%s4930_s4 + $0x408] sm:$0xf0] }
 0x114   : > { %2742 = vmatpush.bf16.msrb.mxu1 %v3919_v24  ;;  %v4156_v24 = vld [vmem:[%s4930_s4 + $0x8dc] sm:$0xf0]  ;;  %v2516_v29 = vpop.f32.mrf.mxu3 }
 0x115   : > { %2755 = vmatpush.bf16.msrb.mxu2 %v4079_v32  ;;  %v3342_v32 = vld [vmem:[%s4930_s4 + $0x268] sm:$0xf]  ;;  %v3443_v29 = vor.u32 %v4411_v15, %v3442_v14  ;;  %v4311_v14 = vld [vmem:[%s4930_s4 + $0x20] sm:$0xf0]  ;;  %v3202_v15 = vld [vmem:[%s4930_s4 + $0x150] sm:$0xf] }
 0x116   : > { %2768 = vmatpush.bf16.msrb.mxu3 %v4239_v33  ;;  %v4386_v33 = vld [vmem:[%s4930_s4 + $0x278] sm:$0xf0] }
 0x117   : > { %2730 = vmatpush.bf16.msrb.mxu0 %v3739_v42  ;;  %v4159_v42 = vor.u32 %v4588_v22, %v4156_v24  ;;  %v3343_v44 = vor.u32 %v4386_v33, %v3342_v32  ;;  %v3262_v33 = vld [vmem:[%s4930_s4 + $0x1c8] sm:$0xf] }
 0x118   : > { %2743 = vmatpush.bf16.msrb.mxu1 %v3899_v43  ;;  %v3183_v43 = vor.u32 %v4346_v28, %v3182_v27  ;;  %v3102_v27 = vld [vmem:[%s4930_s4 + $0x88] sm:$0xf]  ;;  %v4326_v28 = vld [vmem:[%s4930_s4 + $0x98] sm:$0xf0] }
 0x119   : > { %2756 = vmatpush.bf16.msrb.mxu2 %v4059_v46  ;;  %v4341_v46 = vld [vmem:[%s4930_s4 + $0x110] sm:$0xf0] }
 0x11a   : > { %2769 = vmatpush.bf16.msrb.mxu3 %v4219_v47  ;;  %v3503_v47 = vor.u32 %v4426_v38, %v3502_v34  ;;  %v3163_v55 = vor.u32 %v4341_v46, %v3162_v45  ;;  %v4366_v34 = vld [vmem:[%s4930_s4 + $0x1d8] sm:$0xf0]  ;;  %v3583_v45 = vor.u32 %v4446_v40, %v3582_v39  ;;  %v4302_v39 = vld [vmem:[%s4930_s4 + $0x9e8] sm:$0xf] }
 0x11b   : > { %2731 = vmatpush.bf16.msrb.mxu0 %v3719_v58  ;;  %v4336_v58 = vld [vmem:[%s4930_s4 + $0xe8] sm:$0xf0]  ;;  %v4406_v38 = vld [vmem:[%s4930_s4 + $0x318] sm:$0xf0] }
 0x11c   : > { %2744 = vmatpush.bf16.msrb.mxu1 %v3879_v59  ;;  %v3483_v59 = vor.u32 %v4421_v52, %v3482_v51  ;;  %v3143_v5 = vor.u32 %v4336_v58, %v3142_v57  ;;  %v4401_v52 = vld [vmem:[%s4930_s4 + $0x2f0] sm:$0xf0]  ;;  %v4626_v40 = vld [vmem:[%s4930_s4 + $0x9f8] sm:$0xf0] }
 0x11d   : > { %2757 = vmatpush.bf16.msrb.mxu2 %v4039_v0  ;;  %v3462_v0 = vld [vmem:[%s4930_s4 + $0x358] sm:$0xf] }
 0x11e   : > { %2770 = vmatpush.bf16.msrb.mxu3 %v4199_v2  ;;  %v4416_v2 = vld [vmem:[%s4930_s4 + $0x368] sm:$0xf0] }
 0x11f   : > { %2732 = vmatpush.bf16.msrb.mxu0 %v3699_v10  ;;  %v3463_v9 = vor.u32 %v4416_v2, %v3462_v0  ;;  %v3623_v10 = vor.u32 %v4456_v4, %v3622_v3  ;;  %v3403_v0 = vor.u32 %v4401_v52, %v3402_v49  ;;  %v3563_v2 = vor.u32 %v4441_v54, %v3562_v53  ;;  %v4356_v3 = vld [vmem:[%s4930_s4 + $0x188] sm:$0xf0]  ;;  %v3382_v4 = vld [vmem:[%s4930_s4 + $0x2b8] sm:$0xf]  ;;  %v4541_v49 = vld [vmem:[%s4930_s4 + $0x750] sm:$0xf0] }
 0x120   : > { %2745 = vmatpush.bf16.msrb.mxu1 %v3859_v11  ;;  %v3282_v11 = vld [vmem:[%s4930_s4 + $0x1f0] sm:$0xf]  ;;  %v4282_v52 = vld [vmem:[%s4930_s4 + $0x9c0] sm:$0xf]  ;;  %v4621_v53 = vld [vmem:[%s4930_s4 + $0x9d0] sm:$0xf0] }
 0x121   : > { %2758 = vmatpush.bf16.msrb.mxu2 %v4019_v16  ;;  %v3602_v16 = vld [vmem:[%s4930_s4 + $0x470] sm:$0xf]  ;;  %v3283_v22 = vor.u32 %v4371_v13, %v3282_v11  ;;  %v3223_v13 = vor.u32 %v4356_v3, %v3222_v61  ;;  %v4536_v61 = vld [vmem:[%s4930_s4 + $0x728] sm:$0xf0] }
 0x122   : > { %2771 = vmatpush.bf16.msrb.mxu3 %v4179_v17  ;;  %v4451_v17 = vld [vmem:[%s4930_s4 + $0x480] sm:$0xf0]  ;;  %v4616_v3 = vld [vmem:[%s4930_s4 + $0x9a8] sm:$0xf0] }
 0x123   : > { %2733 = vmatpush.bf16.msrb.mxu0 %v3679_v36  ;;  %v2527_v20 = vpop.f32.mrf.mxu0  ;;  %v3603_v32 = vor.u32 %v4451_v17, %v3602_v16  ;;  %v3422_v36 = vld [vmem:[%s4930_s4 + $0x308] sm:$0xf]  ;;  %v4351_v16 = vld [vmem:[%s4930_s4 + $0x160] sm:$0xf0] }
 0x124   : > { %2746 = vmatpush.bf16.msrb.mxu1 %v3839_v37  ;;  %v2528_v23 = vadd.f32 %v2527_v20, %v5502_v62  ;;  %v2540_v24 = vpop.f32.mrf.mxu1  ;;  %v3103_v62 = vor.u32 %v4326_v28, %v3102_v27  ;;  %v3543_v20 = vor.u32 %v4436_v8, %v3542_v7  ;;  %v3822_v27 = vld [vmem:[%s4930_s4 + $0x628] sm:$0xf]  ;;  %v4506_v28 = vld [vmem:[%s4930_s4 + $0x638] sm:$0xf0]  ;;  %v3922_v8 = vld [vmem:[%s4930_s4 + $0x6f0] sm:$0xf] }
 0x125   : > { %2759 = vmatpush.bf16.msrb.mxu2 %v3999_v41  ;;  %v3263_v41 = vor.u32 %v4366_v34, %v3262_v33  ;;  %v4546_v33 = vld [vmem:[%s4930_s4 + $0x778] sm:$0xf0]  ;;  %v4142_v34 = vld [vmem:[%s4930_s4 + $0x8a8] sm:$0xf] }
 0x126   : > { %2772 = vmatpush.bf16.msrb.mxu3 %v4159_v42  ;;  %2734 = vmatmul.bf16.vlgmr.msrb.gmra.mxu0 %v5134_v26  ;;  %v2541_v37 = vadd.f32 %v2540_v24, %v2528_v23  ;;  %v3082_v42 = vld [vmem:[%s4930_s4 + $0x60] sm:$0xf]  ;;  %v4431_v24 = vld [vmem:[%s4930_s4 + $0x3e0] sm:$0xf0] }
 0x127   : > { %2778 = vmatpush.bf16.msra.mxu0 %v3183_v43  ;;  %2747 = vmatmul.bf16.vlgmr.msrb.gmra.mxu1 %v5138_v31  ;;  %v4321_v43 = vld [vmem:[%s4930_s4 + $0x70] sm:$0xf0] }
 0x128   : > { %2791 = vmatpush.bf16.msra.mxu1 %v3343_v44  ;;  %2760 = vmatmul.bf16.vlgmr.msrb.gmra.mxu2 %v5132_v25  ;;  %v3423_v44 = vor.u32 %v4406_v38, %v3422_v36  ;;  %v3083_v57 = vor.u32 %v4321_v43, %v3082_v42  ;;  %v4586_v38 = vld [vmem:[%s4930_s4 + $0x8b8] sm:$0xf0]  ;;  %v3823_v42 = vor.u32 %v4506_v28, %v3822_v27  ;;  %v4062_v27 = vld [vmem:[%s4930_s4 + $0x808] sm:$0xf] }
 0x129   : > { %2804 = vmatpush.bf16.msra.mxu2 %v3503_v47  ;;  %2773 = vmatmul.bf16.vlgmr.msrb.gmra.mxu3 %v5136_v30  ;;  %v3242_v47 = vld [vmem:[%s4930_s4 + $0x1a0] sm:$0xf] }
 0x12a   : > { %2817 = vmatpush.bf16.msra.mxu3 %v3663_v48  ;;  %v4361_v48 = vld [vmem:[%s4930_s4 + $0x1b0] sm:$0xf0] }
 0x12b   : > { %2779 = vmatpush.bf16.msra.mxu0 %v3163_v55  ;;  %v2553_v46 = vpop.f32.mrf.mxu2  ;;  %v2529_v55 = vpop.f32.mrf.mxu0  ;;  %v3243_v58 = vor.u32 %v4361_v48, %v3242_v47  ;;  %v4303_v47 = vor.u32 %v4626_v40, %v4302_v39  ;;  %v3962_v48 = vld [vmem:[%s4930_s4 + $0x740] sm:$0xf] }
 0x12c   : > { %2792 = vmatpush.bf16.msra.mxu1 %v3323_v56  ;;  %v2554_v50 = vadd.f32 %v2553_v46, %v2541_v37  ;;  %v2566_v51 = vpop.f32.mrf.mxu3  ;;  %v2542_v63 = vpop.f32.mrf.mxu1  ;;  %v3203_v37 = vor.u32 %v4351_v16, %v3202_v15  ;;  %v4143_v46 = vor.u32 %v4586_v38, %v4142_v34  ;;  %v3963_v55 = vor.u32 %v4541_v49, %v3962_v48  ;;  %v4481_v38 = vld [vmem:[%s4930_s4 + $0x570] sm:$0xf0] }
 0x12d   : > { %2805 = vmatpush.bf16.msra.mxu2 %v3483_v59  ;;  %v3062_v59 = vld [vmem:[%s4930_s4 + $0x38] sm:$0xf] }
 0x12e   : > { %2818 = vmatpush.bf16.msra.mxu3 %v3643_v60  ;;  %v2567_v56 = vadd.f32 %v2566_v51, %v2554_v50  ;;  %v4316_v60 = vld [vmem:[%s4930_s4 + $0x48] sm:$0xf0]  ;;  %v4122_v50 = vld [vmem:[%s4930_s4 + $0x880] sm:$0xf]  ;;  %v4581_v51 = vld [vmem:[%s4930_s4 + $0x890] sm:$0xf0] }
 0x12f   : > { %2780 = vmatpush.bf16.msra.mxu0 %v3143_v5  ;;  %v4396_v5 = vld [vmem:[%s4930_s4 + $0x2c8] sm:$0xf0]  ;;  %v3063_v11 = vor.u32 %v4316_v60, %v3062_v59  ;;  %v4283_v59 = vor.u32 %v4621_v53, %v4282_v52  ;;  %v3942_v60 = vld [vmem:[%s4930_s4 + $0x718] sm:$0xf] }
 0x130   : > { %2793 = vmatpush.bf16.msra.mxu1 %v3303_v6  ;;  %v2886_v6 = vrot.slane %v2567_v56, 6  ;;  %v3383_v17 = vor.u32 %v4396_v5, %v3382_v4  ;;  %v3782_v56 = vld [vmem:[%s4930_s4 + $0x5d8] sm:$0xf]  ;;  %v3943_v5 = vor.u32 %v4536_v61, %v3942_v60  ;;  %v4476_v53 = vld [vmem:[%s4930_s4 + $0x548] sm:$0xf0] }
 0x131   : > { %2806 = vmatpush.bf16.msra.mxu2 %v3463_v9  ;;  %v3042_v9 = vld [vmem:[%s4930_s4 + $0x10] sm:$0xf]  ;;  %v4102_v63 = vld [vmem:[%s4930_s4 + $0x858] sm:$0xf]  ;;  %v4556_v61 = vld [vmem:[%s4930_s4 + $0x7c8] sm:$0xf0] }
 0x132   : > { %2819 = vmatpush.bf16.msra.mxu3 %v3623_v10  ;;  %v5582_v10 = vsel %vm270_vm0, %v5451_v35, %v2886_v6  ;;  %v3362_v35 = vld [vmem:[%s4930_s4 + $0x290] sm:$0xf]  ;;  %v3043_v36 = vor.u32 %v4311_v14, %v3042_v9  ;;  %v4491_v6 = vld [vmem:[%s4930_s4 + $0x5c0] sm:$0xf0]  ;;  %v3702_v52 = vld [vmem:[%s4930_s4 + $0x538] sm:$0xf] }
 0x133   : > { %2781 = vmatpush.bf16.msra.mxu0 %v3123_v21  ;;  %v4391_v21 = vld [vmem:[%s4930_s4 + $0x2a0] sm:$0xf0]  ;;  %v2555_v23 = vpop.f32.mrf.mxu2  ;;  %v4022_v60 = vld [vmem:[%s4930_s4 + $0x7b8] sm:$0xf] }
 0x134   : > { %2794 = vmatpush.bf16.msra.mxu1 %v3283_v22  ;;  %v3522_v22 = vld [vmem:[%s4930_s4 + $0x3d0] sm:$0xf]  ;;  %v4531_v9 = vld [vmem:[%s4930_s4 + $0x700] sm:$0xf0]  ;;  %v3902_v23 = vld [vmem:[%s4930_s4 + $0x6c8] sm:$0xf] }
 0x135   : > { %2807 = vmatpush.bf16.msra.mxu2 %v3443_v29  ;;  %v2568_v29 = vpop.f32.mrf.mxu3  ;;  %v3923_v16 = vor.u32 %v4531_v9, %v3922_v8  ;;  %v4002_v8 = vld [vmem:[%s4930_s4 + $0x790] sm:$0xf] }
 0x136   : > { %2820 = vmatpush.bf16.msra.mxu3 %v3603_v32  ;;  %v3982_v32 = vld [vmem:[%s4930_s4 + $0x768] sm:$0xf]  ;;  %v4566_v29 = vld [vmem:[%s4930_s4 + $0x818] sm:$0xf0] }
 0x137   : > { %2782 = vmatpush.bf16.msra.mxu0 %v3103_v62  ;;  %v3363_v62 = vor.u32 %v4391_v21, %v3362_v35  ;;  %v3983_v43 = vor.u32 %v4546_v33, %v3982_v32  ;;  %v4222_v32 = vld [vmem:[%s4930_s4 + $0x948] sm:$0xf]  ;;  %v4606_v33 = vld [vmem:[%s4930_s4 + $0x958] sm:$0xf0]  ;;  %v4063_v39 = vor.u32 %v4566_v29, %v4062_v27 }
 0x138   : > { %2795 = vmatpush.bf16.msra.mxu1 %v3263_v41  ;;  %v3523_v41 = vor.u32 %v4431_v24, %v3522_v22  ;;  %v4526_v24 = vld [vmem:[%s4930_s4 + $0x6d8] sm:$0xf0]  ;;  %v4223_v40 = vor.u32 %v4606_v33, %v4222_v32 }
 0x139   : > { %2808 = vmatpush.bf16.msra.mxu2 %v3423_v44  ;;  %v3802_v44 = vld [vmem:[%s4930_s4 + $0x600] sm:$0xf] }
 0x13a   : > { %2821 = vmatpush.bf16.msra.mxu3 %v3583_v45  ;;  %v4501_v45 = vld [vmem:[%s4930_s4 + $0x610] sm:$0xf0] }
 0x13b   : > { %2783 = vmatpush.bf16.msra.mxu0 %v3083_v57  ;;  %v3803_v54 = vor.u32 %v4501_v45, %v3802_v44  ;;  %v4496_v57 = vld [vmem:[%s4930_s4 + $0x5e8] sm:$0xf0]  ;;  %v4561_v44 = vld [vmem:[%s4930_s4 + $0x7f0] sm:$0xf0]  ;;  %v4202_v45 = vld [vmem:[%s4930_s4 + $0x920] sm:$0xf] }
 0x13c   : > { %2796 = vmatpush.bf16.msra.mxu1 %v3243_v58  ;;  %v4123_v58 = vor.u32 %v4581_v51, %v4122_v50  ;;  %v3783_v4 = vor.u32 %v4496_v57, %v3782_v56 }
 0x13d   : > { %2809 = vmatpush.bf16.msra.mxu2 %v3403_v0  ;;  %v4576_v0 = vld [vmem:[%s4930_s4 + $0x868] sm:$0xf0] }
 0x13e   : > { %2822 = vmatpush.bf16.msra.mxu3 %v3563_v2  ;;  %v4262_v2 = vld [vmem:[%s4930_s4 + $0x998] sm:$0xf] }
 0x13f   : > { %2784 = vmatpush.bf16.msra.mxu0 %v3063_v11  ;;  %v4263_v7 = vor.u32 %v4616_v3, %v4262_v2  ;;  %v4082_v11 = vld [vmem:[%s4930_s4 + $0x830] sm:$0xf]  ;;  %v3703_v2 = vor.u32 %v4476_v53, %v3702_v52 }
 0x140   : > { %2797 = vmatpush.bf16.msra.mxu1 %v3223_v13  ;;  %v4611_v13 = vld [vmem:[%s4930_s4 + $0x980] sm:$0xf0] }
 0x141   : > { %2810 = vmatpush.bf16.msra.mxu2 %v3383_v17  ;;  %v3742_v17 = vld [vmem:[%s4930_s4 + $0x588] sm:$0xf] }
 0x142   : > { %2823 = vmatpush.bf16.msra.mxu3 %v3543_v20  ;;  %v4486_v20 = vld [vmem:[%s4930_s4 + $0x598] sm:$0xf0] }
 0x143   : > { %2785 = vmatpush.bf16.msra.mxu0 %v3043_v36  ;;  %v2579_v14 = vpop.f32.mrf.mxu0  ;;  %v3743_v34 = vor.u32 %v4486_v20, %v3742_v17  ;;  %v3903_v36 = vor.u32 %v4526_v24, %v3902_v23 }
 0x144   : > { %2798 = vmatpush.bf16.msra.mxu1 %v3203_v37  ;;  %v2592_v35 = vpop.f32.mrf.mxu1  ;;  %v3722_v37 = vld [vmem:[%s4930_s4 + $0x560] sm:$0xf] }
 0x145   : > { %2811 = vmatpush.bf16.msra.mxu2 %v3363_v62  ;;  %v2593_v28 = vadd.f32 %v2592_v35, %v2579_v14  ;;  %v3882_v62 = vld [vmem:[%s4930_s4 + $0x6a0] sm:$0xf]  ;;  %v3723_v50 = vor.u32 %v4481_v38, %v3722_v37 }
 0x146   : > { %2824 = vmatpush.bf16.msra.mxu3 %v3523_v41  ;;  %2786 = vmatmul.bf16.vlgmr.msra.gmra.mxu0 %v5078_v1  ;;  %v4571_v1 = vld [vmem:[%s4930_s4 + $0x840] sm:$0xf0]  ;;  %v4521_v41 = vld [vmem:[%s4930_s4 + $0x6b0] sm:$0xf0] }
 0x147   : > { %2830 = vmatpush.bf16.msrb.mxu0 %v3823_v42  ;;  %2799 = vmatmul.bf16.vlgmr.msra.gmra.mxu1 %v5084_v19  ;;  %v4242_v19 = vld [vmem:[%s4930_s4 + $0x970] sm:$0xf]  ;;  %v4083_v21 = vor.u32 %v4571_v1, %v4082_v11  ;;  %v4042_v42 = vld [vmem:[%s4930_s4 + $0x7e0] sm:$0xf]  ;;  %v3883_v51 = vor.u32 %v4521_v41, %v3882_v62  ;;  %v4551_v11 = vld [vmem:[%s4930_s4 + $0x7a0] sm:$0xf0] }
 0x148   : > { %2843 = vmatpush.bf16.msrb.mxu1 %v3983_v43  ;;  %2812 = vmatmul.bf16.vlgmr.msra.gmra.mxu2 %v5076_v12  ;;  %v3762_v12 = vld [vmem:[%s4930_s4 + $0x5b0] sm:$0xf]  ;;  %v4243_v22 = vor.u32 %v4611_v13, %v4242_v19  ;;  %v4043_v56 = vor.u32 %v4561_v44, %v4042_v42  ;;  %v4591_v19 = vld [vmem:[%s4930_s4 + $0x8e0] sm:$0xf0] }
 0x149   : > { %2856 = vmatpush.bf16.msrb.mxu2 %v4143_v46  ;;  %2825 = vmatmul.bf16.vlgmr.msra.gmra.mxu3 %v5082_v18  ;;  %v4103_v18 = vor.u32 %v4576_v0, %v4102_v63  ;;  %v3763_v15 = vor.u32 %v4491_v6, %v3762_v12  ;;  %v4601_v46 = vld [vmem:[%s4930_s4 + $0x930] sm:$0xf0]  ;;  %v4182_v63 = vld [vmem:[%s4930_s4 + $0x8f8] sm:$0xf]  ;;  %v4596_v0 = vld [vmem:[%s4930_s4 + $0x908] sm:$0xf0]  ;;  %v4023_v12 = vor.u32 %v4556_v61, %v4022_v60 }
 0x14a   : > { %2869 = vmatpush.bf16.msrb.mxu3 %v4303_v47  ;;  %v4203_v57 = vor.u32 %v4601_v46, %v4202_v45  ;;  %v4183_v6 = vor.u32 %v4596_v0, %v4182_v63  ;;  %v4162_v1 = vld [vmem:[%s4930_s4 + $0x8d0] sm:$0xf] }
 0x14b   : > { %2831 = vmatpush.bf16.msrb.mxu0 %v3803_v54  ;;  %v2605_v43 = vpop.f32.mrf.mxu2  ;;  %v2581_v49 = vpop.f32.mrf.mxu0  ;;  %v4163_v17 = vor.u32 %v4591_v19, %v4162_v1 }
 0x14c   : > { %2844 = vmatpush.bf16.msrb.mxu1 %v3963_v55  ;;  %v2606_v47 = vadd.f32 %v2605_v43, %v2593_v28  ;;  %v2618_v48 = vpop.f32.mrf.mxu3  ;;  %v2594_v55 = vpop.f32.mrf.mxu1 }
 0x14d   : > { %2857 = vmatpush.bf16.msrb.mxu2 %v4123_v58  ;;  %v3862_v58 = vld [vmem:[%s4930_s4 + $0x678] sm:$0xf] }
 0x14e   : > { %2870 = vmatpush.bf16.msrb.mxu3 %v4283_v59  ;;  %v5645_v54 = vadd.f32 %v2618_v48, %v2606_v47  ;;  %v4516_v59 = vld [vmem:[%s4930_s4 + $0x688] sm:$0xf0] }
 0x14f   : > { %2832 = vmatpush.bf16.msrb.mxu0 %v3783_v4  ;;  %v3863_v3 = vor.u32 %v4516_v59, %v3862_v58  ;;  %v3682_v4 = vld [vmem:[%s4930_s4 + $0x510] sm:$0xf] }
 0x150   : > { %2845 = vmatpush.bf16.msrb.mxu1 %v3943_v5  ;;  %v4471_v5 = vld [vmem:[%s4930_s4 + $0x520] sm:$0xf0] }
 0x151   : > { %2858 = vmatpush.bf16.msrb.mxu2 %v4103_v18  ;;  %v3842_v18 = vld [vmem:[%s4930_s4 + $0x650] sm:$0xf]  ;;  %v3683_v14 = vor.u32 %v4471_v5, %v3682_v4 }
 0x152   : > { %2871 = vmatpush.bf16.msrb.mxu3 %v4263_v7  ;;  %v4511_v7 = vld [vmem:[%s4930_s4 + $0x660] sm:$0xf0] }
 0x153   : > { %2833 = vmatpush.bf16.msrb.mxu0 %v3763_v15  ;;  %v2607_v9 = vpop.f32.mrf.mxu2  ;;  %v3843_v15 = vor.u32 %v4511_v7, %v3842_v18 }
 0x154   : > { %2846 = vmatpush.bf16.msrb.mxu1 %v3923_v16  ;;  %v2620_v13 = vpop.f32.mrf.mxu3  ;;  %v4003_v16 = vor.u32 %v4551_v11, %v4002_v8 }
 0x155   : > { %2859 = vmatpush.bf16.msrb.mxu2 %v4083_v21 }
 0x156   : > { %2872 = vmatpush.bf16.msrb.mxu3 %v4243_v22 }
 0x157   : > { %2834 = vmatpush.bf16.msrb.mxu0 %v3743_v34 }
 0x158   : > { %2847 = vmatpush.bf16.msrb.mxu1 %v3903_v36 }
 0x159   : > { %2860 = vmatpush.bf16.msrb.mxu2 %v4063_v39 }
 0x15a   : > { %2873 = vmatpush.bf16.msrb.mxu3 %v4223_v40 }
 0x15b   : > { %2835 = vmatpush.bf16.msrb.mxu0 %v3723_v50 }
 0x15c   : > { %2848 = vmatpush.bf16.msrb.mxu1 %v3883_v51 }
 0x15d   : > { %2861 = vmatpush.bf16.msrb.mxu2 %v4043_v56 }
 0x15e   : > { %2874 = vmatpush.bf16.msrb.mxu3 %v4203_v57 }
 0x15f   : > { %2836 = vmatpush.bf16.msrb.mxu0 %v3703_v2 }
 0x160   : > { %2849 = vmatpush.bf16.msrb.mxu1 %v3863_v3 }
 0x161   : > { %2862 = vmatpush.bf16.msrb.mxu2 %v4023_v12 }
 0x162   : > { %2875 = vmatpush.bf16.msrb.mxu3 %v4183_v6 }
 0x163   : > { %2837 = vmatpush.bf16.msrb.mxu0 %v3683_v14  ;;  %v2631_v20 = vpop.f32.mrf.mxu0 }
 0x164   : > { %2850 = vmatpush.bf16.msrb.mxu1 %v3843_v15  ;;  %v2644_v35 = vpop.f32.mrf.mxu1 }
 0x165   : > { %2863 = vmatpush.bf16.msrb.mxu2 %v4003_v16 }
 0x166   : > { %2876 = vmatpush.bf16.msrb.mxu3 %v4163_v17  ;;  %2838 = vmatmul.bf16.vlgmr.msrb.gmra.mxu0 %v5134_v26 }
 0x167   : > { %2851 = vmatmul.bf16.vlgmr.msrb.gmra.mxu1 %v5138_v31 }
 0x168   : > { %2864 = vmatmul.bf16.vlgmr.msrb.gmra.mxu2 %v5132_v25 }
 0x169   : > { %2877 = vmatmul.bf16.vlgmr.msrb.gmra.mxu3 %v5136_v30  ;;  %v2632_v30 = vadd.f32 %v2631_v20, %v5645_v54 }
 0x16b   : > { %v2657_v21 = vpop.f32.mrf.mxu2  ;;  %v2633_v23 = vpop.f32.mrf.mxu0  ;;  %v2645_v40 = vadd.f32 %v2644_v35, %v2632_v30 }
 0x16c   : > { %v2670_v22 = vpop.f32.mrf.mxu3  ;;  %v2646_v24 = vpop.f32.mrf.mxu1 }
 0x16d   : > { %v2658_v43 = vadd.f32 %v2657_v21, %v2645_v40 }
 0x16f   : > { %v2671_v46 = vadd.f32 %v2670_v22, %v2658_v43 }
 0x171   : > { %v2887_v52 = vrot.slane %v2671_v46, 4 }
 0x173   : > { %v2659_v27 = vpop.f32.mrf.mxu2 }
 0x174   : > { %v2672_v28 = vpop.f32.mrf.mxu3 }
 0x183   : > { %v2683_v29 = vpop.f32.mrf.mxu0 }
 0x184   : > { %v2696_v32 = vpop.f32.mrf.mxu1 }
 0x185   : > { %v2697_v25 = vadd.f32 %v2696_v32, %v2683_v29 }
 0x18b   : > { %v2709_v33 = vpop.f32.mrf.mxu2  ;;  %v2685_v26 = vpop.f32.mrf.mxu0 }
 0x18c   : > { %v2722_v34 = vpop.f32.mrf.mxu3  ;;  %v2698_v36 = vpop.f32.mrf.mxu1  ;;  %v2710_v38 = vadd.f32 %v2709_v33, %v2697_v25 }
 0x18e   : > { %v2723_v39 = vadd.f32 %v2722_v34, %v2710_v38 }
 0x193   : > { %v2711_v31 = vpop.f32.mrf.mxu2 }
 0x194   : > { %v2724_v37 = vpop.f32.mrf.mxu3 }
 0x1a3   : > { %v2735_v62 = vpop.f32.mrf.mxu0 }
 0x1a4   : > { %v2736_v41 = vadd.f32 %v2735_v62, %v2723_v39  ;;  %v2748_v42 = vpop.f32.mrf.mxu1 }
 0x1a6   : > { %v2749_v44 = vadd.f32 %v2748_v42, %v2736_v41 }
 0x1ab   : > { %v2761_v45 = vpop.f32.mrf.mxu2  ;;  %v2737_v49 = vpop.f32.mrf.mxu0 }
 0x1ac   : > { %v2762_v47 = vadd.f32 %v2761_v45, %v2749_v44  ;;  %v2774_v48 = vpop.f32.mrf.mxu3  ;;  %v2750_v51 = vpop.f32.mrf.mxu1 }
 0x1ae   : > { %v2775_v50 = vadd.f32 %v2774_v48, %v2762_v47 }
 0x1b0   : > { %v2888_v53 = vrot.slane %v2775_v50, 2 }
 0x1b2   : > { %v2890_v54 = vsel %vm272_vm1, %v2887_v52, %v2888_v53 }
 0x1b3   : > { %v2891_v55 = vsel %vm274_vm2, %v5582_v10, %v2890_v54  ;;  %v2763_v56 = vpop.f32.mrf.mxu2 }
 0x1b4   : > { %v2776_v57 = vpop.f32.mrf.mxu3  ;;  %2893 = vst [vmem:[%s250_s9] sm:$0xff] %v2891_v55 }
 0x1c3   : > { %v2787_v58 = vpop.f32.mrf.mxu0 }
 0x1c4   : > { %v2800_v59 = vpop.f32.mrf.mxu1 }
 0x1c5   : > { %v2801_v4 = vadd.f32 %v2800_v59, %v2787_v58 }
 0x1cb   : > { %v2813_v60 = vpop.f32.mrf.mxu2  ;;  %v2789_v63 = vpop.f32.mrf.mxu0 }
 0x1cc   : > { %v2826_v61 = vpop.f32.mrf.mxu3  ;;  %v2802_v0 = vpop.f32.mrf.mxu1  ;;  %v2814_v5 = vadd.f32 %v2813_v60, %v2801_v4 }
 0x1ce   : > { %v2827_v12 = vadd.f32 %v2826_v61, %v2814_v5 }
 0x1d3   : > { %v2815_v2 = vpop.f32.mrf.mxu2 }
 0x1d4   : > { %v2828_v3 = vpop.f32.mrf.mxu3 }
 0x1e3   : > { %v2839_v6 = vpop.f32.mrf.mxu0 }
 0x1e4   : > { %v2852_v18 = vpop.f32.mrf.mxu1  ;;  %v2840_v7 = vadd.f32 %v2839_v6, %v2827_v12 }
 0x1e6   : > { %v2853_v8 = vadd.f32 %v2852_v18, %v2840_v7 }
 0x1eb   : > { %v2865_v9 = vpop.f32.mrf.mxu2  ;;  %v2841_v1 = vpop.f32.mrf.mxu0 }
 0x1ec   : > { %v2878_v10 = vpop.f32.mrf.mxu3  ;;  %v2866_v11 = vadd.f32 %v2865_v9, %v2853_v8  ;;  %v2854_v19 = vpop.f32.mrf.mxu1 }
 0x1ee   : > { %v2879_v13 = vadd.f32 %v2878_v10, %v2866_v11 }
 0x1f0   : > { %2894 = vst [vmem:[%s250_s9 + $0x8] sm:$0x3] %v2879_v13 }
 0x1f3   : > { %v2867_v14 = vpop.f32.mrf.mxu2 }
 0x1f4   : > { %v2880_v15 = vpop.f32.mrf.mxu3 }
 0x1f5 PF: > { %s17_s17 = sadd.s32 1, %s4812_s17   ;;  %s5700_s12 = smov %s4796_s13 }
 0x1f6   : > { %p14_p2 = scmp.ge.s32.totalorder %s17_s17, 7   ;;  %s5701_s13 = smov %s4800_s14 }
 0x1f7   : > { %s5702_s14 = smov %s4919_s21  ;;  %s5703_s15 = smov %s4808_s16 }
 0x1f8   : > { %s5704_s16 = smov %s5706_s30  ;;  %16 = sbr.rel (!%p14_p2) target bundleno = 5 (0x5), region = 81 }
 0x1fd   :  { %2925 = vsyncpa [#allocation3], 1 }
 0x1fe   :  { %2927 = vsyncpa [#allocation3 + $0x1], 1 }
 0x1ff   :  { %2928 = vsyncpa [#allocation5], 1 }
 0x200   :  { %2930 = vsyncpa [#allocation5 + $0x1], 1 }

// kernel: decoder_forward.8
= control target key start
LH: loop header
LB: loop body
LE: loop exit
PB: predicated region body
PF: predicated region fallthrough
CT: control target
= control target key end

     0   :  { %s1693_s12 = smov 0   ;;  %s1695_s13 = smov 0   ;;  %s2480_s0 = inlined_call_operand.vmem [shape: f32[338,64], index: 0, kind: input, shape index: {}]   ;;  %s2481_s1 = inlined_call_operand.vmem [shape: f32[1,64], index: 1, kind: input, shape index: {}]   ;;  %s2482_s2 = inlined_call_operand.vmem [shape: bf16[64,1152], index: 2, kind: input, shape index: {}]   ;;  %s2483_s3 = inlined_call_operand.vmem [shape: f32[338,1152], index: 3, kind: output, shape index: {}]  }
   0x1   :  { %s1697_s14 = smov 0   ;;  %s1699_s15 = smov 0  }
   0x2   :  { %s1701_s16 = smov 0  }
   0x3 LB: > { %s25_s17 = sadd.s32 1, %s1667_s15  ;;  %s1423_s18 = sadd.s32 4294967295, %s1671_s16   ;;  %s1671_s16 = sphi %s1701_s16, %s13_s16   ;;  %s1667_s15 = sphi %s1699_s15, %s2488_s15   ;;  %s1663_s14 = sphi %s1697_s14, %s2487_s14   ;;  %s1659_s13 = sphi %s1695_s13, %s2486_s13   ;;  %s1655_s12 = sphi %s1693_s12, %s2485_s12  }
   0x4   : > { %p27_p0 = scmp.ge.s32.totalorder %s25_s17, 3  ;;  %p86_p1 = scmp.ne.s32.totalorder %s1659_s13, %s1655_s12 }
   0x5   : > { %p87_p2 = scmp.eq.s32.totalorder %s1671_s16, 0  ;;  %p118_p4 = scmp.eq.s32.totalorder %s1423_s18, 2 }
   0x6   : > { %s2490_s17 = smov (%p27_p0, %s25_s17), 0  ;;  %s79_s20 = sadd.s32 1, %s1659_s13 }
   0x7   : > { %p88_p3 = por %p87_p2, %p86_p1  ;;  %s76_s19 = ssub.s32 %s1667_s15, %s2490_s17 }
   0x8   : > { %p77_p5 = scmp.eq.s32.totalorder %s76_s19, 0  ;;  %p1728_p6 = por %p118_p4, %p86_p1 }
   0x9   : > { %p1427_p7 = scmp.ge.s32.totalorder %s1671_s16, 3 }
   0xa   : > { %s1733_s22 = scalar_select %p77_p5, %s1659_s13, %s79_s20  }
   0xb   : > { %152 = sbr.rel (%p1427_p7) target bundleno = 37 (0x25), region = 24 }
  0x10   : > { %155 = sbr.rel (!%p88_p3) target bundleno = 37 (0x25), region = 28  ;;  %s157_s23 = sand.u32 (%p88_p3), 1, %s1659_s13  }
  0x11   : > { %s1563_s24 = smul.u32 (%p88_p3), 12, %s1667_s15 }
  0x12   : > { %s1589_s25 = smul.u32 (%p88_p3), 96, %s157_s23 }
  0x13   : > { %s1741_s28 = scalar_lea.vmem (%p88_p3), %s2482_s2, %s1563_s24 }
  0x14   : > { %v177_v0 = vld [vmem:[%s1741_s28] sm:$0xff] (%p88_p3)  ;;  %v181_v2 = vld [vmem:[%s1741_s28 + $0x48] sm:$0xff] (%p88_p3)  ;;  %s159_s29 = scalar_lea.vmem (%p88_p3), [#allocation2], %s1589_s25  ;;  %v185_v4 = vld [vmem:[%s1741_s28 + $0x90] sm:$0xff] (%p88_p3) }
  0x15   : > { %v179_v1 = vld [vmem:[%s1741_s28 + $0x24] sm:$0xff]  ;;  %178 = vst [vmem:[%s159_s29] sm:$0xff] %v177_v0  ;;  %v183_v3 = vld [vmem:[%s1741_s28 + $0x6c] sm:$0xff]  ;;  %v187_v5 = vld [vmem:[%s1741_s28 + $0xb4] sm:$0xff] }
  0x16   : > { %180 = vst [vmem:[%s159_s29 + $0xc] sm:$0xff] %v179_v1  ;;  %v189_v6 = vld [vmem:[%s1741_s28 + $0xd8] sm:$0xff]  ;;  %v1429_v8 = vld [vmem:[%s1741_s28 + $0x8] sm:$0xf]  ;;  %v1431_v9 = vld [vmem:[%s1741_s28 + $0x2c] sm:$0xf] }
  0x17   : > { %182 = vst [vmem:[%s159_s29 + $0x18] sm:$0xff] %v181_v2  ;;  %v191_v7 = vld [vmem:[%s1741_s28 + $0xfc] sm:$0xff]  ;;  %v1433_v10 = vld [vmem:[%s1741_s28 + $0x50] sm:$0xf]  ;;  %v1435_v11 = vld [vmem:[%s1741_s28 + $0x74] sm:$0xf] }
  0x18   : > { %184 = vst [vmem:[%s159_s29 + $0x24] sm:$0xff] %v183_v3  ;;  %v1437_v12 = vld [vmem:[%s1741_s28 + $0x98] sm:$0xf]  ;;  %v1439_v13 = vld [vmem:[%s1741_s28 + $0xbc] sm:$0xf] }
  0x19   : > { %186 = vst [vmem:[%s159_s29 + $0x30] sm:$0xff] %v185_v4  ;;  %v1441_v14 = vld [vmem:[%s1741_s28 + $0xe0] sm:$0xf]  ;;  %v1443_v15 = vld [vmem:[%s1741_s28 + $0x104] sm:$0xf] }
  0x1a   : > { %188 = vst [vmem:[%s159_s29 + $0x3c] sm:$0xff] %v187_v5 }
  0x1b   : > { %190 = vst [vmem:[%s159_s29 + $0x48] sm:$0xff] %v189_v6 }
  0x1c   : > { %192 = vst [vmem:[%s159_s29 + $0x54] sm:$0xff] %v191_v7 }
  0x1d   : > { %1430 = vst [vmem:[%s159_s29 + $0x8] sm:$0xf] %v1429_v8 }
  0x1e   : > { %1432 = vst [vmem:[%s159_s29 + $0x14] sm:$0xf] %v1431_v9 }
  0x1f   : > { %1434 = vst [vmem:[%s159_s29 + $0x20] sm:$0xf] %v1433_v10 }
  0x20   : > { %1436 = vst [vmem:[%s159_s29 + $0x2c] sm:$0xf] %v1435_v11 }
  0x21   : > { %1438 = vst [vmem:[%s159_s29 + $0x38] sm:$0xf] %v1437_v12 }
  0x22   : > { %1440 = vst [vmem:[%s159_s29 + $0x44] sm:$0xf] %v1439_v13 }
  0x23   : > { %1442 = vst [vmem:[%s159_s29 + $0x50] sm:$0xf] %v1441_v14 }
  0x24   : > { %1444 = vst [vmem:[%s159_s29 + $0x5c] sm:$0xf] %v1443_v15 }
  0x25 PF: > { %p1445_p8 = scmp.ge.s32.totalorder %s1671_s16, 1  ;;  %p221_p9 = scmp.lt.s32.totalorder %s1671_s16, 4 }
  0x27   : > { %p222_p10 = pnand %p1445_p8, %p221_p9 }
  0x28   : > { %s228_s30 = sand.u32 (!%p222_p10), 1, %s1655_s12  }
  0x29   : > { %225 = sbr.rel (%p222_p10) target bundleno = 520 (0x208), region = 54 }
  0x2a   : > { %s1590_s4 = smul.u32 (!%p222_p10), 96, %s228_s30 }
  0x2b   : > { %s1591_s8 = smul.u32 (!%p222_p10), 1032, %s228_s30 }
  0x2c   : > { %s1764_s5 = scalar_lea.vmem (!%p222_p10), [#allocation2], %s1590_s4 }
  0x2d   : > { %s1963_s9 = scalar_lea.vmem (!%p222_p10), [#allocation3], %s1591_s8 }
  0x2e   : > { %v1484_v16 = vld [vmem:[%s1764_s5 + $0x48] sm:$0xf]  ;;  %v1574_v17 = vld [vmem:[%s1764_s5 + $0x50] sm:$0xf0]  ;;  %v1771_v18 = vld [vmem:[%s2481_s1] ss:$0 sm:$0xff] }
  0x2f   : > { %v1485_v19 = vor.u32 %v1574_v17, %v1484_v16  ;;  %v1573_v20 = vld [vmem:[%s1764_s5 + $0x4c] sm:$0xf]  ;;  %v1486_v21 = vld [vmem:[%s1764_s5 + $0x54] sm:$0xf0]  ;;  %v1492_v22 = vld [vmem:[%s1764_s5 + $0x50] sm:$0xf] }
  0x30   : > { %v265_v23 = vld [vmem:[%s2480_s0] sm:$0xff]  ;;  %v266_v24 = vld [vmem:[%s2480_s0 + $0x8] sm:$0xff]  ;;  %v1489_v25 = vor.u32 %v1573_v20, %v1486_v21  ;;  %v1575_v26 = vld [vmem:[%s1764_s5 + $0x58] sm:$0xf0]  ;;  %vm500_vm0 = vcmask 523264   ;;  %s1576_s29 = smul.u32 (%p1728_p6), 24, %s1663_s14 }
  0x31   : > { %v1472_v27 = vld [vmem:[%s1764_s5 + $0x30] sm:$0xf]  ;;  %v1571_v28 = vld [vmem:[%s1764_s5 + $0x38] sm:$0xf0]  ;;  %571 = vmatpush.bf16.msra.mxu0 %v1485_v19  ;;  %v1785_v29 = vor.u32 %v1575_v26, %v1492_v22  ;;  %v1570_v31 = vld [vmem:[%s1764_s5 + $0x34] sm:$0xf]  ;;  %1577 = vmatpush.bf16.msra.mxu3 %v1485_v19  ;;  %v312_v43 = vadd.f32 %v1771_v18, %v265_v23  ;;  %v313_v44 = vadd.f32 %v1771_v18, %v266_v24 }
  0x32   : > { %v1473_v30 = vor.u32 %v1571_v28, %v1472_v27  ;;  %v1474_v32 = vld [vmem:[%s1764_s5 + $0x3c] sm:$0xf0]  ;;  %v1480_v33 = vld [vmem:[%s1764_s5 + $0x38] sm:$0xf]  ;;  %689 = vmatpush.bf16.msra.mxu1 %v1489_v25  ;;  %v1572_v35 = vld [vmem:[%s1764_s5 + $0x40] sm:$0xf0]  ;;  %s2207_s6 = scalar_lea.vmem (%p1728_p6), %s2483_s3, %s1576_s29 }
  0x33   : > { %v1477_v34 = vor.u32 %v1570_v31, %v1474_v32  ;;  %v1460_v36 = vld [vmem:[%s1764_s5 + $0x18] sm:$0xf]  ;;  %v1568_v37 = vld [vmem:[%s1764_s5 + $0x20] sm:$0xf0]  ;;  %807 = vmatpush.bf16.msra.mxu2 %v1785_v29  ;;  %v1794_v38 = vor.u32 %v1572_v35, %v1480_v33  ;;  %v1567_v39 = vld [vmem:[%s1764_s5 + $0x1c] sm:$0xf] }
  0x34   : > { %v1462_v40 = vld [vmem:[%s1764_s5 + $0x24] sm:$0xf0]  ;;  %v1468_v41 = vld [vmem:[%s1764_s5 + $0x20] sm:$0xf]  ;;  %v1569_v42 = vld [vmem:[%s1764_s5 + $0x28] sm:$0xf0]  ;;  %v1461_v45 = vor.u32 %v1568_v37, %v1460_v36 }
  0x35   : > { %572 = vmatpush.bf16.msra.mxu0 %v1473_v30  ;;  %1578 = vmatpush.bf16.msra.mxu3 %v1473_v30  ;;  %v1465_v46 = vor.u32 %v1567_v39, %v1462_v40  ;;  %v1448_v47 = vld [vmem:[%s1764_s5] sm:$0xf]  ;;  %v1565_v48 = vld [vmem:[%s1764_s5 + $0x8] sm:$0xf0]  ;;  %v299_v49 = vld [vmem:[%s2480_s0 + $0x110] sm:$0xff]  ;;  %v1469_v50 = vor.u32 %v1569_v42, %v1468_v41  ;;  %v355_v57 = vmax.f32 %v312_v43, 0.0 }
  0x36   : > { %690 = vmatpush.bf16.msra.mxu1 %v1477_v34  ;;  %v1564_v51 = vld [vmem:[%s1764_s5 + $0x4] sm:$0xf]  ;;  %v1450_v52 = vld [vmem:[%s1764_s5 + $0xc] sm:$0xf0]  ;;  %v300_v53 = vld [vmem:[%s2480_s0 + $0x118] sm:$0xff]  ;;  %v346_v54 = vadd.f32 %v1771_v18, %v299_v49  ;;  %v356_v58 = vmax.f32 %v313_v44, 0.0  ;;  %v1449_v60 = vor.u32 %v1565_v48, %v1448_v47 }
  0x37   : > { %808 = vmatpush.bf16.msra.mxu2 %v1794_v38  ;;  %v1456_v55 = vld [vmem:[%s1764_s5 + $0x8] sm:$0xf]  ;;  %v1566_v56 = vld [vmem:[%s1764_s5 + $0x10] sm:$0xf0]  ;;  %v347_v59 = vadd.f32 %v1771_v18, %v300_v53  ;;  %v1453_v62 = vor.u32 %v1564_v51, %v1450_v52  ;;  %v268_v4 = vld [vmem:[%s2480_s0 + $0x18] sm:$0xff] }
  0x38   : > { %v389_v61 = vmax.f32 %v346_v54, 0.0  ;;  %v1457_v0 = vor.u32 %v1566_v56, %v1456_v55  ;;  %v398_v1 = vpack.c.bf16 %v356_v58, %v355_v57  ;;  %v267_v3 = vld [vmem:[%s2480_s0 + $0x10] sm:$0xff]  ;;  %v301_v5 = vld [vmem:[%s2480_s0 + $0x120] sm:$0xff]  ;;  %v302_v6 = vld [vmem:[%s2480_s0 + $0x128] sm:$0xff]  ;;  %v315_v8 = vadd.f32 %v1771_v18, %v268_v4 }
  0x39   : > { %573 = vmatpush.bf16.msra.mxu0 %v1461_v45  ;;  %1579 = vmatpush.bf16.msra.mxu3 %v1461_v45  ;;  %v390_v63 = vmax.f32 %v347_v59, 0.0  ;;  %v314_v7 = vadd.f32 %v1771_v18, %v267_v3  ;;  %v348_v9 = vadd.f32 %v1771_v18, %v301_v5  ;;  %v349_v10 = vadd.f32 %v1771_v18, %v302_v6  ;;  %v269_v17 = vld [vmem:[%s2480_s0 + $0x20] sm:$0xff]  ;;  %v270_v19 = vld [vmem:[%s2480_s0 + $0x28] sm:$0xff]  ;;  %v303_v20 = vld [vmem:[%s2480_s0 + $0x130] sm:$0xff] }
  0x3a   : > { %691 = vmatpush.bf16.msra.mxu1 %v1465_v46  ;;  %v358_v12 = vmax.f32 %v315_v8, 0.0  ;;  %v304_v21 = vld [vmem:[%s2480_s0 + $0x138] sm:$0xff]  ;;  %v316_v22 = vadd.f32 %v1771_v18, %v269_v17  ;;  %v317_v23 = vadd.f32 %v1771_v18, %v270_v19  ;;  %v350_v24 = vadd.f32 %v1771_v18, %v303_v20  ;;  %v271_v32 = vld [vmem:[%s2480_s0 + $0x30] sm:$0xff]  ;;  %v306_v35 = vld [vmem:[%s2480_s0 + $0x148] sm:$0xff] }
  0x3b   : > { %809 = vmatpush.bf16.msra.mxu2 %v1469_v50  ;;  %v1817_v2 = vpack.c.bf16 %v390_v63, %v389_v61  ;;  %v357_v11 = vmax.f32 %v314_v7, 0.0  ;;  %v391_v13 = vmax.f32 %v348_v9, 0.0  ;;  %v392_v14 = vmax.f32 %v349_v10, 0.0  ;;  %v272_v33 = vld [vmem:[%s2480_s0 + $0x38] sm:$0xff]  ;;  %v274_v47 = vld [vmem:[%s2480_s0 + $0x48] sm:$0xff]  ;;  %v275_v57 = vld [vmem:[%s2480_s0 + $0x50] sm:$0xff] }
  0x3c   : > { %v359_v26 = vmax.f32 %v316_v22, 0.0  ;;  %v360_v27 = vmax.f32 %v317_v23, 0.0  ;;  %v393_v28 = vmax.f32 %v350_v24, 0.0  ;;  %v318_v36 = vadd.f32 %v1771_v18, %v271_v32  ;;  %v307_v48 = vld [vmem:[%s2480_s0 + $0x150] sm:$0x3]  ;;  %v276_v58 = vld [vmem:[%s2480_s0 + $0x58] sm:$0xff] }
  0x3d   : > { %574 = vmatpush.bf16.msra.mxu0 %v1449_v60  ;;  %1580 = vmatpush.bf16.msra.mxu3 %v1449_v60  ;;  %v399_v15 = vpack.c.bf16 %v358_v12, %v357_v11  ;;  %v1841_v16 = vpack.c.bf16 %v392_v14, %v391_v13  ;;  %v319_v37 = vadd.f32 %v1771_v18, %v272_v33  ;;  %v279_v8 = vld [vmem:[%s2480_s0 + $0x70] sm:$0xff]  ;;  %v280_v9 = vld [vmem:[%s2480_s0 + $0x78] sm:$0xff]  ;;  %v282_v17 = vld [vmem:[%s2480_s0 + $0x88] sm:$0xff] }
  0x3e   : > { %692 = vmatpush.bf16.msra.mxu1 %v1453_v62  ;;  %v400_v30 = vpack.c.bf16 %v360_v27, %v359_v26  ;;  %v353_v39 = vadd.f32 %v1771_v18, %v306_v35  ;;  %v361_v40 = vmax.f32 %v318_v36, 0.0  ;;  %v354_v51 = vadd.f32 %v1771_v18, %v307_v48  ;;  %v283_v26 = vld [vmem:[%s2480_s0 + $0x90] sm:$0xff]  ;;  %v284_v27 = vld [vmem:[%s2480_s0 + $0x98] sm:$0xff] }
  0x3f   : > { %810 = vmatpush.bf16.msra.mxu2 %v1457_v0  ;;  %v362_v41 = vmax.f32 %v319_v37, 0.0  ;;  %v322_v59 = vadd.f32 %v1771_v18, %v275_v57  ;;  %v323_v60 = vadd.f32 %v1771_v18, %v276_v58  ;;  %v326_v10 = vadd.f32 %v1771_v18, %v279_v8 }
  0x40   : > { %1494 = vmatmul.msk.bf16.vlgmr.msra.gmra.mxu0 %vm500_vm0, %v398_v1  ;;  %1511 = vmatmul.msk.bf16.vlgmr.msra.gmra.mxu3 %vm500_vm0, %v1817_v2  ;;  %v396_v43 = vmax.f32 %v353_v39, 0.0  ;;  %v397_v54 = vmax.f32 %v354_v51, 0.0  ;;  %v327_v11 = vadd.f32 %v1771_v18, %v280_v9  ;;  %v329_v20 = vadd.f32 %v1771_v18, %v282_v17 }
  0x41   : > { %1581 = vmatpush.bf16.msrb.mxu3 %v1489_v25  ;;  %1516 = vmatmul.msk.bf16.vlgmr.msra.gmra.mxu1 %vm500_vm0, %v398_v1  ;;  %v351_v25 = vadd.f32 %v1771_v18, %v304_v21  ;;  %v401_v44 = vpack.c.bf16 %v362_v41, %v361_v40  ;;  %v365_v61 = vmax.f32 %v322_v59, 0.0  ;;  %v369_v12 = vmax.f32 %v326_v10, 0.0  ;;  %v287_v59 = vld [vmem:[%s2480_s0 + $0xb0] sm:$0xff]  ;;  %v289_v10 = vld [vmem:[%s2480_s0 + $0xc0] sm:$0xff] }
  0x42   : > { %1538 = vmatmul.msk.bf16.vlgmr.msra.gmra.mxu2 %vm500_vm0, %v398_v1  ;;  %v1907_v56 = vpack.c.bf16 %v397_v54, %v397_v54  ;;  %v278_v1 = vld [vmem:[%s2480_s0 + $0x68] sm:$0xff]  ;;  %v370_v13 = vmax.f32 %v327_v11, 0.0  ;;  %v372_v22 = vmax.f32 %v329_v20, 0.0 }
  0x43   : > { %v325_v4 = vadd.f32 %v1771_v18, %v278_v1  ;;  %v290_v11 = vld [vmem:[%s2480_s0 + $0xc8] sm:$0xff] }
  0x44   : > { %v405_v14 = vpack.c.bf16 %v370_v13, %v369_v12  ;;  %v336_v13 = vadd.f32 %v1771_v18, %v289_v10 }
  0x45   : > { %1582 = vmatpush.bf16.msrb.mxu3 %v1477_v34  ;;  %v305_v34 = vld [vmem:[%s2480_s0 + $0x140] sm:$0xff]  ;;  %v368_v6 = vmax.f32 %v325_v4, 0.0 }
  0x49   : > { %1583 = vmatpush.bf16.msrb.mxu3 %v1465_v46  ;;  %v273_v46 = vld [vmem:[%s2480_s0 + $0x40] sm:$0xff] }
  0x4a   : > { %v320_v49 = vadd.f32 %v1771_v18, %v273_v46 }
  0x4c   : > { %v363_v52 = vmax.f32 %v320_v49, 0.0 }
  0x4d   : > { %1584 = vmatpush.bf16.msrb.mxu3 %v1453_v62  ;;  %v366_v62 = vmax.f32 %v323_v60, 0.0  ;;  %v288_v60 = vld [vmem:[%s2480_s0 + $0xb8] sm:$0xff] }
  0x4f   : > { %v403_v63 = vpack.c.bf16 %v366_v62, %v365_v61  ;;  %v334_v62 = vadd.f32 %v1771_v18, %v287_v59 }
  0x50   : > { %1495 = vmatmul.msk.bf16.gmra.mxu0 %vm500_vm0, %v399_v15  ;;  %1512 = vmatmul.msk.bf16.gmra.mxu3 %vm500_vm0, %v1841_v16 }
  0x51   : > { %1585 = vmatpush.bf16.msra.mxu3 %v1785_v29  ;;  %1517 = vmatmul.msk.bf16.gmra.mxu1 %vm500_vm0, %v399_v15  ;;  %v394_v29 = vmax.f32 %v351_v25, 0.0 }
  0x52   : > { %1539 = vmatmul.msk.bf16.gmra.mxu2 %vm500_vm0, %v399_v15  ;;  %v281_v15 = vld [vmem:[%s2480_s0 + $0x80] sm:$0xff] }
  0x53   : > { %v1865_v31 = vpack.c.bf16 %v394_v29, %v393_v28  ;;  %v328_v19 = vadd.f32 %v1771_v18, %v281_v15  ;;  %v330_v29 = vadd.f32 %v1771_v18, %v283_v26  ;;  %v291_v26 = vld [vmem:[%s2480_s0 + $0xd0] sm:$0xff] }
  0x55   : > { %1586 = vmatpush.bf16.msra.mxu3 %v1794_v38  ;;  %v352_v38 = vadd.f32 %v1771_v18, %v305_v34  ;;  %v371_v21 = vmax.f32 %v328_v19, 0.0  ;;  %v373_v35 = vmax.f32 %v330_v29, 0.0  ;;  %v379_v19 = vmax.f32 %v336_v13, 0.0 }
  0x56   : > { %v338_v29 = vadd.f32 %v1771_v18, %v291_v26 }
  0x57   : > { %v395_v42 = vmax.f32 %v352_v38, 0.0  ;;  %v406_v23 = vpack.c.bf16 %v372_v22, %v371_v21 }
  0x59   : > { %1587 = vmatpush.bf16.msra.mxu3 %v1469_v50  ;;  %v1888_v45 = vpack.c.bf16 %v396_v43, %v395_v42  ;;  %v321_v50 = vadd.f32 %v1771_v18, %v274_v47  ;;  %v285_v42 = vld [vmem:[%s2480_s0 + $0xa0] sm:$0xff]  ;;  %v286_v43 = vld [vmem:[%s2480_s0 + $0xa8] sm:$0xff] }
  0x5a   : > { %v332_v46 = vadd.f32 %v1771_v18, %v285_v42  ;;  %v333_v47 = vadd.f32 %v1771_v18, %v286_v43  ;;  %v294_v42 = vld [vmem:[%s2480_s0 + $0xe8] sm:$0xff] }
  0x5b   : > { %v364_v53 = vmax.f32 %v321_v50, 0.0 }
  0x5c   : > { %v375_v51 = vmax.f32 %v332_v46, 0.0  ;;  %v341_v46 = vadd.f32 %v1771_v18, %v294_v42 }
  0x5d   : > { %1588 = vmatpush.bf16.msra.mxu3 %v1457_v0  ;;  %v402_v55 = vpack.c.bf16 %v364_v53, %v363_v52  ;;  %v277_v0 = vld [vmem:[%s2480_s0 + $0x60] sm:$0xff]  ;;  %v376_v52 = vmax.f32 %v333_v47, 0.0 }
  0x5e   : > { %v324_v3 = vadd.f32 %v1771_v18, %v277_v0 }
  0x5f   : > { %v408_v54 = vpack.c.bf16 %v376_v52, %v375_v51 }
  0x60   : > { %1496 = vmatmul.msk.bf16.gmra.mxu0 %vm500_vm0, %v400_v30  ;;  %1513 = vmatmul.msk.bf16.gmra.mxu3 %vm500_vm0, %v1865_v31  ;;  %v367_v5 = vmax.f32 %v324_v3, 0.0  ;;  %v377_v3 = vmax.f32 %v334_v62, 0.0 }
  0x61   : > { %1518 = vmatmul.msk.bf16.gmra.mxu1 %vm500_vm0, %v400_v30 }
  0x62   : > { %1540 = vmatmul.msk.bf16.gmra.mxu2 %vm500_vm0, %v400_v30  ;;  %v404_v7 = vpack.c.bf16 %v368_v6, %v367_v5  ;;  %v331_v30 = vadd.f32 %v1771_v18, %v284_v27  ;;  %v292_v27 = vld [vmem:[%s2480_s0 + $0xd8] sm:$0xff] }
  0x64   : > { %v374_v36 = vmax.f32 %v331_v30, 0.0  ;;  %v339_v30 = vadd.f32 %v1771_v18, %v292_v27 }
  0x66   : > { %v407_v38 = vpack.c.bf16 %v374_v36, %v373_v35  ;;  %v382_v35 = vmax.f32 %v339_v30, 0.0 }
  0x70   : > { %1497 = vmatmul.msk.bf16.gmra.mxu0 %vm500_vm0, %v401_v44  ;;  %1514 = vmatmul.msk.bf16.gmra.mxu3 %vm500_vm0, %v1888_v45 }
  0x71   : > { %1519 = vmatmul.msk.bf16.gmra.mxu1 %vm500_vm0, %v401_v44 }
  0x72   : > { %1541 = vmatmul.msk.bf16.gmra.mxu2 %vm500_vm0, %v401_v44 }
  0x80   : > { %1498 = vmatmul.msk.bf16.gmra.mxu0 %vm500_vm0, %v402_v55  ;;  %1515 = vmatmul.msk.bf16.gmra.mxu3 %vm500_vm0, %v1907_v56 }
  0x81   : > { %1520 = vmatmul.msk.bf16.gmra.mxu1 %vm500_vm0, %v402_v55 }
  0x82   : > { %1542 = vmatmul.msk.bf16.gmra.mxu2 %vm500_vm0, %v402_v55 }
  0x90   : > { %1499 = vmatmul.msk.bf16.gmra.mxu0 %vm500_vm0, %v403_v63  ;;  %1533 = vmatmul.msk.bf16.vlgmr.msrb.gmra.mxu3 %vm500_vm0, %v1817_v2 }
  0x91   : > { %1521 = vmatmul.msk.bf16.gmra.mxu1 %vm500_vm0, %v403_v63 }
  0x92   : > { %1543 = vmatmul.msk.bf16.gmra.mxu2 %vm500_vm0, %v403_v63  ;;  %v335_v63 = vadd.f32 %v1771_v18, %v288_v60 }
  0x94   : > { %v378_v4 = vmax.f32 %v335_v63, 0.0 }
  0x96   : > { %v409_v6 = vpack.c.bf16 %v378_v4, %v377_v3 }
  0xa0   : > { %1500 = vmatmul.msk.bf16.gmra.mxu0 %vm500_vm0, %v404_v7  ;;  %1534 = vmatmul.msk.bf16.gmra.mxu3 %vm500_vm0, %v1841_v16 }
  0xa1   : > { %1522 = vmatmul.msk.bf16.gmra.mxu1 %vm500_vm0, %v404_v7 }
  0xa2   : > { %1544 = vmatmul.msk.bf16.gmra.mxu2 %vm500_vm0, %v404_v7 }
  0xb0   : > { %1501 = vmatmul.msk.bf16.gmra.mxu0 %vm500_vm0, %v405_v14  ;;  %1535 = vmatmul.msk.bf16.gmra.mxu3 %vm500_vm0, %v1865_v31 }
  0xb1   : > { %1523 = vmatmul.msk.bf16.gmra.mxu1 %vm500_vm0, %v405_v14 }
  0xb2   : > { %1545 = vmatmul.msk.bf16.gmra.mxu2 %vm500_vm0, %v405_v14  ;;  %v337_v14 = vadd.f32 %v1771_v18, %v290_v11 }
  0xb4   : > { %v380_v20 = vmax.f32 %v337_v14, 0.0 }
  0xb6   : > { %v410_v22 = vpack.c.bf16 %v380_v20, %v379_v19 }
  0xbd   : > { %v576_v24 = vpop.f32.mrf.mxu0 }
  0xbe   : > { %921 = vst [vmem:[%s1963_s9] sm:$0xff] %v576_v24  ;;  %v694_v25 = vpop.f32.mrf.mxu1 }
  0xbf   : > { %922 = vst [vmem:[%s1963_s9 + $0x8] sm:$0xff] %v694_v25 }
  0xc0   : > { %1502 = vmatmul.msk.bf16.gmra.mxu0 %vm500_vm0, %v406_v23  ;;  %1536 = vmatmul.msk.bf16.gmra.mxu3 %vm500_vm0, %v1888_v45 }
  0xc1   : > { %1524 = vmatmul.msk.bf16.gmra.mxu1 %vm500_vm0, %v406_v23 }
  0xc2   : > { %1546 = vmatmul.msk.bf16.gmra.mxu2 %vm500_vm0, %v406_v23 }
  0xc3   : > { %v661_v28 = vpop.f32.mrf.mxu3 }
  0xc4   : > { %1023 = vst [vmem:[%s1963_s9 + $0x330] sm:$0xff] %v661_v28 }
  0xc5   : > { %v812_v32 = vpop.f32.mrf.mxu2  ;;  %v578_v33 = vpop.f32.mrf.mxu0 }
  0xc6   : > { %923 = vst [vmem:[%s1963_s9 + $0x10] sm:$0xff] %v812_v32  ;;  %v696_v34 = vpop.f32.mrf.mxu1 }
  0xc7   : > { %924 = vst [vmem:[%s1963_s9 + $0x18] sm:$0xff] %v578_v33 }
  0xc8   : > { %925 = vst [vmem:[%s1963_s9 + $0x20] sm:$0xff] %v696_v34  ;;  %v381_v34 = vmax.f32 %v338_v29, 0.0 }
  0xcb   : > { %v663_v37 = vpop.f32.mrf.mxu3 }
  0xcc   : > { %1026 = vst [vmem:[%s1963_s9 + $0x348] sm:$0xff] %v663_v37  ;;  %v411_v37 = vpack.c.bf16 %v382_v35, %v381_v34 }
  0xcd   : > { %v814_v39 = vpop.f32.mrf.mxu2  ;;  %v581_v40 = vpop.f32.mrf.mxu0 }
  0xce   : > { %926 = vst [vmem:[%s1963_s9 + $0x28] sm:$0xff] %v814_v39  ;;  %v699_v41 = vpop.f32.mrf.mxu1 }
  0xcf   : > { %927 = vst [vmem:[%s1963_s9 + $0x30] sm:$0xff] %v581_v40 }
  0xd0   : > { %928 = vst [vmem:[%s1963_s9 + $0x38] sm:$0xff] %v699_v41  ;;  %1503 = vmatmul.msk.bf16.gmra.mxu0 %vm500_vm0, %v407_v38  ;;  %1537 = vmatmul.msk.bf16.gmra.mxu3 %vm500_vm0, %v1907_v56  ;;  %v293_v41 = vld [vmem:[%s2480_s0 + $0xe0] sm:$0xff] }
  0xd1   : > { %1525 = vmatmul.msk.bf16.gmra.mxu1 %vm500_vm0, %v407_v38 }
  0xd2   : > { %1547 = vmatmul.msk.bf16.gmra.mxu2 %vm500_vm0, %v407_v38 }
  0xd3   : > { %v666_v44 = vpop.f32.mrf.mxu3 }
  0xd4   : > { %1029 = vst [vmem:[%s1963_s9 + $0x360] sm:$0xff] %v666_v44  ;;  %v340_v44 = vadd.f32 %v1771_v18, %v293_v41 }
  0xd5   : > { %v817_v48 = vpop.f32.mrf.mxu2  ;;  %v583_v49 = vpop.f32.mrf.mxu0 }
  0xd6   : > { %929 = vst [vmem:[%s1963_s9 + $0x40] sm:$0xff] %v817_v48  ;;  %v701_v50 = vpop.f32.mrf.mxu1 }
  0xd7   : > { %930 = vst [vmem:[%s1963_s9 + $0x48] sm:$0xff] %v583_v49  ;;  %v383_v49 = vmax.f32 %v340_v44, 0.0 }
  0xd8   : > { %931 = vst [vmem:[%s1963_s9 + $0x50] sm:$0xff] %v701_v50  ;;  %v384_v50 = vmax.f32 %v341_v46, 0.0 }
  0xda   : > { %v412_v52 = vpack.c.bf16 %v384_v50, %v383_v49 }
  0xdb   : > { %v668_v53 = vpop.f32.mrf.mxu3 }
  0xdc   : > { %1032 = vst [vmem:[%s1963_s9 + $0x378] sm:$0xff] %v668_v53 }
  0xdd   : > { %v819_v55 = vpop.f32.mrf.mxu2  ;;  %v586_v57 = vpop.f32.mrf.mxu0 }
  0xde   : > { %932 = vst [vmem:[%s1963_s9 + $0x58] sm:$0xff] %v819_v55  ;;  %v704_v58 = vpop.f32.mrf.mxu1 }
  0xdf   : > { %933 = vst [vmem:[%s1963_s9 + $0x60] sm:$0xff] %v586_v57  ;;  %v295_v57 = vld [vmem:[%s2480_s0 + $0xf0] sm:$0xff] }
  0xe0   : > { %934 = vst [vmem:[%s1963_s9 + $0x68] sm:$0xff] %v704_v58  ;;  %1504 = vmatmul.msk.bf16.gmra.mxu0 %vm500_vm0, %v408_v54  ;;  %1555 = vmatmul.msk.bf16.vlgmr.msra.gmra.mxu3 %vm500_vm0, %v1817_v2  ;;  %v296_v58 = vld [vmem:[%s2480_s0 + $0xf8] sm:$0xff]  ;;  %v342_v60 = vadd.f32 %v1771_v18, %v295_v57 }
  0xe1   : > { %1526 = vmatmul.msk.bf16.gmra.mxu1 %vm500_vm0, %v408_v54 }
  0xe2   : > { %1548 = vmatmul.msk.bf16.gmra.mxu2 %vm500_vm0, %v408_v54 }
  0xe3   : > { %v671_v61 = vpop.f32.mrf.mxu3 }
  0xe4   : > { %1035 = vst [vmem:[%s1963_s9 + $0x390] sm:$0xff] %v671_v61  ;;  %v343_v61 = vadd.f32 %v1771_v18, %v296_v58 }
  0xe5   : > { %v822_v2 = vpop.f32.mrf.mxu2  ;;  %v588_v0 = vpop.f32.mrf.mxu0 }
  0xe6   : > { %935 = vst [vmem:[%s1963_s9 + $0x70] sm:$0xff] %v822_v2  ;;  %v706_v1 = vpop.f32.mrf.mxu1  ;;  %v385_v2 = vmax.f32 %v342_v60, 0.0 }
  0xe7   : > { %936 = vst [vmem:[%s1963_s9 + $0x78] sm:$0xff] %v588_v0  ;;  %v386_v0 = vmax.f32 %v343_v61, 0.0 }
  0xe8   : > { %937 = vst [vmem:[%s1963_s9 + $0x80] sm:$0xff] %v706_v1 }
  0xe9   : > { %v413_v3 = vpack.c.bf16 %v386_v0, %v385_v2 }
  0xeb   : > { %v673_v5 = vpop.f32.mrf.mxu3 }
  0xec   : > { %1038 = vst [vmem:[%s1963_s9 + $0x3a8] sm:$0xff] %v673_v5 }
  0xed   : > { %v824_v7 = vpop.f32.mrf.mxu2  ;;  %v591_v8 = vpop.f32.mrf.mxu0 }
  0xee   : > { %938 = vst [vmem:[%s1963_s9 + $0x88] sm:$0xff] %v824_v7  ;;  %v709_v9 = vpop.f32.mrf.mxu1  ;;  %v297_v7 = vld [vmem:[%s2480_s0 + $0x100] sm:$0xff] }
  0xef   : > { %939 = vst [vmem:[%s1963_s9 + $0x90] sm:$0xff] %v591_v8  ;;  %v298_v8 = vld [vmem:[%s2480_s0 + $0x108] sm:$0xff]  ;;  %v344_v10 = vadd.f32 %v1771_v18, %v297_v7 }
  0xf0   : > { %940 = vst [vmem:[%s1963_s9 + $0x98] sm:$0xff] %v709_v9  ;;  %1505 = vmatmul.msk.bf16.gmra.mxu0 %vm500_vm0, %v409_v6  ;;  %1556 = vmatmul.msk.bf16.gmra.mxu3 %vm500_vm0, %v1841_v16  ;;  %v345_v11 = vadd.f32 %v1771_v18, %v298_v8 }
  0xf1   : > { %1527 = vmatmul.msk.bf16.gmra.mxu1 %vm500_vm0, %v409_v6 }
  0xf2   : > { %1549 = vmatmul.msk.bf16.gmra.mxu2 %vm500_vm0, %v409_v6 }
  0xf3   : > { %v676_v12 = vpop.f32.mrf.mxu3 }
  0xf4   : > { %1041 = vst [vmem:[%s1963_s9 + $0x3c0] sm:$0xff] %v676_v12 }
  0xf5   : > { %v827_v16 = vpop.f32.mrf.mxu2  ;;  %v593_v15 = vpop.f32.mrf.mxu0 }
  0xf6   : > { %941 = vst [vmem:[%s1963_s9 + $0xa0] sm:$0xff] %v827_v16  ;;  %v711_v17 = vpop.f32.mrf.mxu1  ;;  %v387_v16 = vmax.f32 %v344_v10, 0.0 }
  0xf7   : > { %942 = vst [vmem:[%s1963_s9 + $0xa8] sm:$0xff] %v593_v15  ;;  %v388_v15 = vmax.f32 %v345_v11, 0.0 }
  0xf8   : > { %943 = vst [vmem:[%s1963_s9 + $0xb0] sm:$0xff] %v711_v17 }
  0xf9   : > { %v414_v19 = vpack.c.bf16 %v388_v15, %v387_v16 }
  0xfb   : > { %v678_v21 = vpop.f32.mrf.mxu3 }
  0xfc   : > { %1044 = vst [vmem:[%s1963_s9 + $0x3d8] sm:$0xff] %v678_v21 }
  0xfd   : > { %v829_v23 = vpop.f32.mrf.mxu2  ;;  %v596_v24 = vpop.f32.mrf.mxu0 }
  0xfe   : > { %944 = vst [vmem:[%s1963_s9 + $0xb8] sm:$0xff] %v829_v23  ;;  %v714_v25 = vpop.f32.mrf.mxu1 }
  0xff   : > { %945 = vst [vmem:[%s1963_s9 + $0xc0] sm:$0xff] %v596_v24 }
 0x100   : > { %946 = vst [vmem:[%s1963_s9 + $0xc8] sm:$0xff] %v714_v25  ;;  %1506 = vmatmul.msk.bf16.gmra.mxu0 %vm500_vm0, %v410_v22  ;;  %1557 = vmatmul.msk.bf16.gmra.mxu3 %vm500_vm0, %v1865_v31 }
 0x101   : > { %1528 = vmatmul.msk.bf16.gmra.mxu1 %vm500_vm0, %v410_v22 }
 0x102   : > { %1550 = vmatmul.msk.bf16.gmra.mxu2 %vm500_vm0, %v410_v22 }
 0x103   : > { %v681_v28 = vpop.f32.mrf.mxu3 }
 0x104   : > { %1047 = vst [vmem:[%s1963_s9 + $0x3f0] sm:$0x3] %v681_v28 }
 0x105   : > { %v832_v31 = vpop.f32.mrf.mxu2  ;;  %v598_v32 = vpop.f32.mrf.mxu0 }
 0x106   : > { %947 = vst [vmem:[%s1963_s9 + $0xd0] sm:$0xff] %v832_v31  ;;  %v716_v33 = vpop.f32.mrf.mxu1 }
 0x107   : > { %948 = vst [vmem:[%s1963_s9 + $0xd8] sm:$0xff] %v598_v32 }
 0x108   : > { %949 = vst [vmem:[%s1963_s9 + $0xe0] sm:$0xff] %v716_v33 }
 0x10b   : > { %v683_v36 = vpop.f32.mrf.mxu3 }
 0x10d   : > { %v834_v38 = vpop.f32.mrf.mxu2  ;;  %v601_v39 = vpop.f32.mrf.mxu0 }
 0x10e   : > { %950 = vst [vmem:[%s1963_s9 + $0xe8] sm:$0xff] %v834_v38  ;;  %v719_v40 = vpop.f32.mrf.mxu1 }
 0x10f   : > { %951 = vst [vmem:[%s1963_s9 + $0xf0] sm:$0xff] %v601_v39 }
 0x110   : > { %952 = vst [vmem:[%s1963_s9 + $0xf8] sm:$0xff] %v719_v40  ;;  %1507 = vmatmul.msk.bf16.gmra.mxu0 %vm500_vm0, %v411_v37  ;;  %1558 = vmatmul.msk.bf16.gmra.mxu3 %vm500_vm0, %v1888_v45 }
 0x111   : > { %1529 = vmatmul.msk.bf16.gmra.mxu1 %vm500_vm0, %v411_v37 }
 0x112   : > { %1551 = vmatmul.msk.bf16.gmra.mxu2 %vm500_vm0, %v411_v37 }
 0x113   : > { %v779_v43 = vpop.f32.mrf.mxu3 }
 0x114   : > { %1024 = vst [vmem:[%s1963_s9 + $0x338] sm:$0xff] %v779_v43 }
 0x115   : > { %v837_v45 = vpop.f32.mrf.mxu2  ;;  %v603_v47 = vpop.f32.mrf.mxu0 }
 0x116   : > { %953 = vst [vmem:[%s1963_s9 + $0x100] sm:$0xff] %v837_v45  ;;  %v721_v48 = vpop.f32.mrf.mxu1 }
 0x117   : > { %954 = vst [vmem:[%s1963_s9 + $0x108] sm:$0xff] %v603_v47 }
 0x118   : > { %955 = vst [vmem:[%s1963_s9 + $0x110] sm:$0xff] %v721_v48 }
 0x11b   : > { %v781_v51 = vpop.f32.mrf.mxu3 }
 0x11c   : > { %1027 = vst [vmem:[%s1963_s9 + $0x350] sm:$0xff] %v781_v51 }
 0x11d   : > { %v839_v53 = vpop.f32.mrf.mxu2  ;;  %v606_v54 = vpop.f32.mrf.mxu0 }
 0x11e   : > { %956 = vst [vmem:[%s1963_s9 + $0x118] sm:$0xff] %v839_v53  ;;  %v724_v55 = vpop.f32.mrf.mxu1 }
 0x11f   : > { %957 = vst [vmem:[%s1963_s9 + $0x120] sm:$0xff] %v606_v54 }
 0x120   : > { %958 = vst [vmem:[%s1963_s9 + $0x128] sm:$0xff] %v724_v55  ;;  %1508 = vmatmul.msk.bf16.gmra.mxu0 %vm500_vm0, %v412_v52  ;;  %1559 = vmatmul.msk.bf16.gmra.mxu3 %vm500_vm0, %v1907_v56 }
 0x121   : > { %1530 = vmatmul.msk.bf16.gmra.mxu1 %vm500_vm0, %v412_v52 }
 0x122   : > { %1552 = vmatmul.msk.bf16.gmra.mxu2 %vm500_vm0, %v412_v52 }
 0x123   : > { %v784_v59 = vpop.f32.mrf.mxu3 }
 0x124   : > { %1030 = vst [vmem:[%s1963_s9 + $0x368] sm:$0xff] %v784_v59 }
 0x125   : > { %v842_v56 = vpop.f32.mrf.mxu2  ;;  %v608_v62 = vpop.f32.mrf.mxu0 }
 0x126   : > { %959 = vst [vmem:[%s1963_s9 + $0x130] sm:$0xff] %v842_v56  ;;  %v726_v63 = vpop.f32.mrf.mxu1 }
 0x127   : > { %960 = vst [vmem:[%s1963_s9 + $0x138] sm:$0xff] %v608_v62 }
 0x128   : > { %961 = vst [vmem:[%s1963_s9 + $0x140] sm:$0xff] %v726_v63 }
 0x12b   : > { %v786_v1 = vpop.f32.mrf.mxu3 }
 0x12c   : > { %1033 = vst [vmem:[%s1963_s9 + $0x380] sm:$0xff] %v786_v1 }
 0x12d   : > { %v844_v4 = vpop.f32.mrf.mxu2  ;;  %v611_v5 = vpop.f32.mrf.mxu0 }
 0x12e   : > { %962 = vst [vmem:[%s1963_s9 + $0x148] sm:$0xff] %v844_v4  ;;  %v729_v6 = vpop.f32.mrf.mxu1 }
 0x12f   : > { %963 = vst [vmem:[%s1963_s9 + $0x150] sm:$0xff] %v611_v5 }
 0x130   : > { %964 = vst [vmem:[%s1963_s9 + $0x158] sm:$0xff] %v729_v6  ;;  %1509 = vmatmul.msk.bf16.gmra.mxu0 %vm500_vm0, %v413_v3 }
 0x131   : > { %1531 = vmatmul.msk.bf16.gmra.mxu1 %vm500_vm0, %v413_v3 }
 0x132   : > { %1553 = vmatmul.msk.bf16.gmra.mxu2 %vm500_vm0, %v413_v3 }
 0x133   : > { %v789_v9 = vpop.f32.mrf.mxu3 }
 0x134   : > { %1036 = vst [vmem:[%s1963_s9 + $0x398] sm:$0xff] %v789_v9 }
 0x135   : > { %v847_v12 = vpop.f32.mrf.mxu2  ;;  %v613_v13 = vpop.f32.mrf.mxu0 }
 0x136   : > { %965 = vst [vmem:[%s1963_s9 + $0x160] sm:$0xff] %v847_v12  ;;  %v731_v14 = vpop.f32.mrf.mxu1 }
 0x137   : > { %966 = vst [vmem:[%s1963_s9 + $0x168] sm:$0xff] %v613_v13 }
 0x138   : > { %967 = vst [vmem:[%s1963_s9 + $0x170] sm:$0xff] %v731_v14 }
 0x13b   : > { %v791_v17 = vpop.f32.mrf.mxu3 }
 0x13c   : > { %1039 = vst [vmem:[%s1963_s9 + $0x3b0] sm:$0xff] %v791_v17 }
 0x13d   : > { %v849_v20 = vpop.f32.mrf.mxu2  ;;  %v616_v18 = vpop.f32.mrf.mxu0 }
 0x13e   : > { %968 = vst [vmem:[%s1963_s9 + $0x178] sm:$0xff] %v849_v20  ;;  %v734_v21 = vpop.f32.mrf.mxu1 }
 0x13f   : > { %969 = vst [vmem:[%s1963_s9 + $0x180] sm:$0xff] %v616_v18 }
 0x140   : > { %970 = vst [vmem:[%s1963_s9 + $0x188] sm:$0xff] %v734_v21  ;;  %1510 = vmatmul.msk.bf16.gmra.mxu0 %vm500_vm0, %v414_v19 }
 0x141   : > { %1532 = vmatmul.msk.bf16.gmra.mxu1 %vm500_vm0, %v414_v19 }
 0x142   : > { %1554 = vmatmul.msk.bf16.gmra.mxu2 %vm500_vm0, %v414_v19 }
 0x143   : > { %v794_v22 = vpop.f32.mrf.mxu3 }
 0x144   : > { %1042 = vst [vmem:[%s1963_s9 + $0x3c8] sm:$0xff] %v794_v22 }
 0x145   : > { %v852_v23 = vpop.f32.mrf.mxu2  ;;  %v618_v24 = vpop.f32.mrf.mxu0 }
 0x146   : > { %971 = vst [vmem:[%s1963_s9 + $0x190] sm:$0xff] %v852_v23  ;;  %v736_v25 = vpop.f32.mrf.mxu1 }
 0x147   : > { %972 = vst [vmem:[%s1963_s9 + $0x198] sm:$0xff] %v618_v24  ;;  %v1075_v24 = vld [vmem:[%s1963_s9] sm:$0xff] (%p1728_p6) }
 0x148   : > { %973 = vst [vmem:[%s1963_s9 + $0x1a0] sm:$0xff] %v736_v25  ;;  %v1077_v25 = vld [vmem:[%s1963_s9 + $0x8] sm:$0xff] (%p1728_p6) }
 0x149   : > { %1076 = vst [vmem:[%s2207_s6] sm:$0xff] (%p1728_p6), %v1075_v24 }
 0x14a   : > { %1078 = vst [vmem:[%s2207_s6 + $0x8] sm:$0xff] (%p1728_p6), %v1077_v25 }
 0x14b   : > { %v796_v26 = vpop.f32.mrf.mxu3 }
 0x14c   : > { %1045 = vst [vmem:[%s1963_s9 + $0x3e0] sm:$0xff] %v796_v26  ;;  %v1079_v26 = vld [vmem:[%s1963_s9 + $0x10] sm:$0xff] (%p1728_p6) }
 0x14d   : > { %v854_v27 = vpop.f32.mrf.mxu2  ;;  %v621_v28 = vpop.f32.mrf.mxu0  ;;  %1080 = vst [vmem:[%s2207_s6 + $0x10] sm:$0xff] (%p1728_p6), %v1079_v26 }
 0x14e   : > { %974 = vst [vmem:[%s1963_s9 + $0x1a8] sm:$0xff] %v854_v27  ;;  %v739_v29 = vpop.f32.mrf.mxu1  ;;  %v1081_v27 = vld [vmem:[%s1963_s9 + $0x18] sm:$0xff] (%p1728_p6) }
 0x14f   : > { %975 = vst [vmem:[%s1963_s9 + $0x1b0] sm:$0xff] %v621_v28  ;;  %v1083_v28 = vld [vmem:[%s1963_s9 + $0x20] sm:$0xff] (%p1728_p6) }
 0x150   : > { %976 = vst [vmem:[%s1963_s9 + $0x1b8] sm:$0xff] %v739_v29  ;;  %v1085_v29 = vld [vmem:[%s1963_s9 + $0x28] sm:$0xff] (%p1728_p6) }
 0x151   : > { %1082 = vst [vmem:[%s2207_s6 + $0x48] sm:$0xff] (%p1728_p6), %v1081_v27 }
 0x152   : > { %1084 = vst [vmem:[%s2207_s6 + $0x50] sm:$0xff] (%p1728_p6), %v1083_v28 }
 0x153   : > { %v799_v30 = vpop.f32.mrf.mxu3  ;;  %1086 = vst [vmem:[%s2207_s6 + $0x58] sm:$0xff] (%p1728_p6), %v1085_v29 }
 0x154   : > { %1048 = vst [vmem:[%s1963_s9 + $0x3f8] sm:$0x3] %v799_v30  ;;  %v1087_v30 = vld [vmem:[%s1963_s9 + $0x30] sm:$0xff] (%p1728_p6) }
 0x155   : > { %v857_v31 = vpop.f32.mrf.mxu2  ;;  %v623_v32 = vpop.f32.mrf.mxu0  ;;  %1088 = vst [vmem:[%s2207_s6 + $0x90] sm:$0xff] (%p1728_p6), %v1087_v30 }
 0x156   : > { %977 = vst [vmem:[%s1963_s9 + $0x1c0] sm:$0xff] %v857_v31  ;;  %v741_v33 = vpop.f32.mrf.mxu1  ;;  %v1089_v31 = vld [vmem:[%s1963_s9 + $0x38] sm:$0xff] (%p1728_p6) }
 0x157   : > { %978 = vst [vmem:[%s1963_s9 + $0x1c8] sm:$0xff] %v623_v32  ;;  %v1091_v32 = vld [vmem:[%s1963_s9 + $0x40] sm:$0xff] (%p1728_p6) }
 0x158   : > { %979 = vst [vmem:[%s1963_s9 + $0x1d0] sm:$0xff] %v741_v33  ;;  %v1093_v33 = vld [vmem:[%s1963_s9 + $0x48] sm:$0xff] (%p1728_p6) }
 0x159   : > { %1090 = vst [vmem:[%s2207_s6 + $0x98] sm:$0xff] (%p1728_p6), %v1089_v31 }
 0x15a   : > { %1092 = vst [vmem:[%s2207_s6 + $0xa0] sm:$0xff] (%p1728_p6), %v1091_v32 }
 0x15b   : > { %v801_v34 = vpop.f32.mrf.mxu3  ;;  %1094 = vst [vmem:[%s2207_s6 + $0xd8] sm:$0xff] (%p1728_p6), %v1093_v33 }
 0x15c   : > { %v1095_v34 = vld [vmem:[%s1963_s9 + $0x50] sm:$0xff] (%p1728_p6) }
 0x15d   : > { %v859_v35 = vpop.f32.mrf.mxu2  ;;  %v626_v36 = vpop.f32.mrf.mxu0  ;;  %1096 = vst [vmem:[%s2207_s6 + $0xe0] sm:$0xff] (%p1728_p6), %v1095_v34 }
 0x15e   : > { %980 = vst [vmem:[%s1963_s9 + $0x1d8] sm:$0xff] %v859_v35  ;;  %v744_v37 = vpop.f32.mrf.mxu1  ;;  %v1097_v35 = vld [vmem:[%s1963_s9 + $0x58] sm:$0xff] (%p1728_p6) }
 0x15f   : > { %981 = vst [vmem:[%s1963_s9 + $0x1e0] sm:$0xff] %v626_v36  ;;  %v1099_v36 = vld [vmem:[%s1963_s9 + $0x60] sm:$0xff] (%p1728_p6) }
 0x160   : > { %982 = vst [vmem:[%s1963_s9 + $0x1e8] sm:$0xff] %v744_v37  ;;  %v1101_v37 = vld [vmem:[%s1963_s9 + $0x68] sm:$0xff] (%p1728_p6) }
 0x161   : > { %1098 = vst [vmem:[%s2207_s6 + $0xe8] sm:$0xff] (%p1728_p6), %v1097_v35 }
 0x162   : > { %1100 = vst [vmem:[%s2207_s6 + $0x120] sm:$0xff] (%p1728_p6), %v1099_v36 }
 0x163   : > { %v897_v38 = vpop.f32.mrf.mxu3  ;;  %1102 = vst [vmem:[%s2207_s6 + $0x128] sm:$0xff] (%p1728_p6), %v1101_v37 }
 0x164   : > { %1025 = vst [vmem:[%s1963_s9 + $0x340] sm:$0xff] %v897_v38  ;;  %v1103_v38 = vld [vmem:[%s1963_s9 + $0x70] sm:$0xff] (%p1728_p6) }
 0x165   : > { %v862_v39 = vpop.f32.mrf.mxu2  ;;  %v628_v40 = vpop.f32.mrf.mxu0  ;;  %1104 = vst [vmem:[%s2207_s6 + $0x130] sm:$0xff] (%p1728_p6), %v1103_v38 }
 0x166   : > { %983 = vst [vmem:[%s1963_s9 + $0x1f0] sm:$0xff] %v862_v39  ;;  %v746_v41 = vpop.f32.mrf.mxu1  ;;  %v1105_v39 = vld [vmem:[%s1963_s9 + $0x78] sm:$0xff] (%p1728_p6) }
 0x167   : > { %984 = vst [vmem:[%s1963_s9 + $0x1f8] sm:$0xff] %v628_v40  ;;  %v1107_v40 = vld [vmem:[%s1963_s9 + $0x80] sm:$0xff] (%p1728_p6) }
 0x168   : > { %985 = vst [vmem:[%s1963_s9 + $0x200] sm:$0xff] %v746_v41  ;;  %v1109_v41 = vld [vmem:[%s1963_s9 + $0x88] sm:$0xff] (%p1728_p6) }
 0x169   : > { %1106 = vst [vmem:[%s2207_s6 + $0x168] sm:$0xff] (%p1728_p6), %v1105_v39 }
 0x16a   : > { %1108 = vst [vmem:[%s2207_s6 + $0x170] sm:$0xff] (%p1728_p6), %v1107_v40 }
 0x16b   : > { %v899_v42 = vpop.f32.mrf.mxu3  ;;  %1110 = vst [vmem:[%s2207_s6 + $0x178] sm:$0xff] (%p1728_p6), %v1109_v41 }
 0x16c   : > { %1028 = vst [vmem:[%s1963_s9 + $0x358] sm:$0xff] %v899_v42  ;;  %v1111_v42 = vld [vmem:[%s1963_s9 + $0x90] sm:$0xff] (%p1728_p6) }
 0x16d   : > { %v864_v43 = vpop.f32.mrf.mxu2  ;;  %v631_v44 = vpop.f32.mrf.mxu0  ;;  %1112 = vst [vmem:[%s2207_s6 + $0x1b0] sm:$0xff] (%p1728_p6), %v1111_v42 }
 0x16e   : > { %986 = vst [vmem:[%s1963_s9 + $0x208] sm:$0xff] %v864_v43  ;;  %v749_v46 = vpop.f32.mrf.mxu1  ;;  %v1113_v43 = vld [vmem:[%s1963_s9 + $0x98] sm:$0xff] (%p1728_p6) }
 0x16f   : > { %987 = vst [vmem:[%s1963_s9 + $0x210] sm:$0xff] %v631_v44  ;;  %v1115_v44 = vld [vmem:[%s1963_s9 + $0xa0] sm:$0xff] (%p1728_p6) }
 0x170   : > { %988 = vst [vmem:[%s1963_s9 + $0x218] sm:$0xff] %v749_v46  ;;  %v1117_v46 = vld [vmem:[%s1963_s9 + $0xa8] sm:$0xff] (%p1728_p6)  ;;  %v1203_v24 = vld [vmem:[%s1963_s9 + $0x200] sm:$0xff] (%p1728_p6) }
 0x171   : > { %1114 = vst [vmem:[%s2207_s6 + $0x1b8] sm:$0xff] (%p1728_p6), %v1113_v43 }
 0x172   : > { %1116 = vst [vmem:[%s2207_s6 + $0x1c0] sm:$0xff] (%p1728_p6), %v1115_v44 }
 0x173   : > { %v902_v45 = vpop.f32.mrf.mxu3  ;;  %1118 = vst [vmem:[%s2207_s6 + $0x1f8] sm:$0xff] (%p1728_p6), %v1117_v46 }
 0x174   : > { %1031 = vst [vmem:[%s1963_s9 + $0x370] sm:$0xff] %v902_v45  ;;  %v1119_v45 = vld [vmem:[%s1963_s9 + $0xb0] sm:$0xff] (%p1728_p6) }
 0x175   : > { %v867_v47 = vpop.f32.mrf.mxu2  ;;  %v633_v48 = vpop.f32.mrf.mxu0  ;;  %1120 = vst [vmem:[%s2207_s6 + $0x200] sm:$0xff] (%p1728_p6), %v1119_v45  ;;  %v1205_v25 = vld [vmem:[%s1963_s9 + $0x208] sm:$0xff] (%p1728_p6) }
 0x176   : > { %989 = vst [vmem:[%s1963_s9 + $0x220] sm:$0xff] %v867_v47  ;;  %v751_v49 = vpop.f32.mrf.mxu1  ;;  %v1121_v47 = vld [vmem:[%s1963_s9 + $0xb8] sm:$0xff] (%p1728_p6)  ;;  %v1207_v26 = vld [vmem:[%s1963_s9 + $0x210] sm:$0xff] (%p1728_p6) }
 0x177   : > { %990 = vst [vmem:[%s1963_s9 + $0x228] sm:$0xff] %v633_v48  ;;  %v1123_v48 = vld [vmem:[%s1963_s9 + $0xc0] sm:$0xff] (%p1728_p6)  ;;  %v1209_v27 = vld [vmem:[%s1963_s9 + $0x218] sm:$0xff] (%p1728_p6) }
 0x178   : > { %991 = vst [vmem:[%s1963_s9 + $0x230] sm:$0xff] %v751_v49  ;;  %v1125_v49 = vld [vmem:[%s1963_s9 + $0xc8] sm:$0xff] (%p1728_p6) }
 0x179   : > { %1122 = vst [vmem:[%s2207_s6 + $0x208] sm:$0xff] (%p1728_p6), %v1121_v47 }
 0x17a   : > { %1124 = vst [vmem:[%s2207_s6 + $0x240] sm:$0xff] (%p1728_p6), %v1123_v48 }
 0x17b   : > { %v904_v50 = vpop.f32.mrf.mxu3  ;;  %1126 = vst [vmem:[%s2207_s6 + $0x248] sm:$0xff] (%p1728_p6), %v1125_v49 }
 0x17c   : > { %1034 = vst [vmem:[%s1963_s9 + $0x388] sm:$0xff] %v904_v50  ;;  %v1127_v50 = vld [vmem:[%s1963_s9 + $0xd0] sm:$0xff] (%p1728_p6) }
 0x17d   : > { %v869_v51 = vpop.f32.mrf.mxu2  ;;  %v636_v52 = vpop.f32.mrf.mxu0  ;;  %1128 = vst [vmem:[%s2207_s6 + $0x250] sm:$0xff] (%p1728_p6), %v1127_v50  ;;  %v1211_v28 = vld [vmem:[%s1963_s9 + $0x220] sm:$0xff] (%p1728_p6) }
 0x17e   : > { %992 = vst [vmem:[%s1963_s9 + $0x238] sm:$0xff] %v869_v51  ;;  %v754_v53 = vpop.f32.mrf.mxu1  ;;  %v1129_v51 = vld [vmem:[%s1963_s9 + $0xd8] sm:$0xff] (%p1728_p6)  ;;  %v1213_v29 = vld [vmem:[%s1963_s9 + $0x228] sm:$0xff] (%p1728_p6) }
 0x17f   : > { %993 = vst [vmem:[%s1963_s9 + $0x240] sm:$0xff] %v636_v52  ;;  %v1131_v52 = vld [vmem:[%s1963_s9 + $0xe0] sm:$0xff] (%p1728_p6)  ;;  %v1215_v30 = vld [vmem:[%s1963_s9 + $0x230] sm:$0xff] (%p1728_p6) }
 0x180   : > { %994 = vst [vmem:[%s1963_s9 + $0x248] sm:$0xff] %v754_v53  ;;  %v1133_v53 = vld [vmem:[%s1963_s9 + $0xe8] sm:$0xff] (%p1728_p6) }
 0x181   : > { %1130 = vst [vmem:[%s2207_s6 + $0x288] sm:$0xff] (%p1728_p6), %v1129_v51 }
 0x182   : > { %1132 = vst [vmem:[%s2207_s6 + $0x290] sm:$0xff] (%p1728_p6), %v1131_v52 }
 0x183   : > { %v907_v54 = vpop.f32.mrf.mxu3  ;;  %1134 = vst [vmem:[%s2207_s6 + $0x298] sm:$0xff] (%p1728_p6), %v1133_v53 }
 0x184   : > { %1037 = vst [vmem:[%s1963_s9 + $0x3a0] sm:$0xff] %v907_v54  ;;  %v1135_v54 = vld [vmem:[%s1963_s9 + $0xf0] sm:$0xff] (%p1728_p6) }
 0x185   : > { %v872_v55 = vpop.f32.mrf.mxu2  ;;  %v638_v57 = vpop.f32.mrf.mxu0  ;;  %1136 = vst [vmem:[%s2207_s6 + $0x2d0] sm:$0xff] (%p1728_p6), %v1135_v54  ;;  %v1217_v31 = vld [vmem:[%s1963_s9 + $0x238] sm:$0xff] (%p1728_p6) }
 0x186   : > { %995 = vst [vmem:[%s1963_s9 + $0x250] sm:$0xff] %v872_v55  ;;  %v756_v58 = vpop.f32.mrf.mxu1  ;;  %v1137_v55 = vld [vmem:[%s1963_s9 + $0xf8] sm:$0xff] (%p1728_p6)  ;;  %v1219_v32 = vld [vmem:[%s1963_s9 + $0x240] sm:$0xff] (%p1728_p6) }
 0x187   : > { %996 = vst [vmem:[%s1963_s9 + $0x258] sm:$0xff] %v638_v57  ;;  %v1139_v57 = vld [vmem:[%s1963_s9 + $0x100] sm:$0xff] (%p1728_p6)  ;;  %v1221_v33 = vld [vmem:[%s1963_s9 + $0x248] sm:$0xff] (%p1728_p6) }
 0x188   : > { %997 = vst [vmem:[%s1963_s9 + $0x260] sm:$0xff] %v756_v58  ;;  %v1141_v58 = vld [vmem:[%s1963_s9 + $0x108] sm:$0xff] (%p1728_p6) }
 0x189   : > { %1138 = vst [vmem:[%s2207_s6 + $0x2d8] sm:$0xff] (%p1728_p6), %v1137_v55 }
 0x18a   : > { %1140 = vst [vmem:[%s2207_s6 + $0x2e0] sm:$0xff] (%p1728_p6), %v1139_v57 }
 0x18b   : > { %v909_v59 = vpop.f32.mrf.mxu3  ;;  %1142 = vst [vmem:[%s2207_s6 + $0x318] sm:$0xff] (%p1728_p6), %v1141_v58 }
 0x18c   : > { %1040 = vst [vmem:[%s1963_s9 + $0x3b8] sm:$0xff] %v909_v59  ;;  %v1143_v59 = vld [vmem:[%s1963_s9 + $0x110] sm:$0xff] (%p1728_p6) }
 0x18d   : > { %v874_v60 = vpop.f32.mrf.mxu2  ;;  %v641_v61 = vpop.f32.mrf.mxu0  ;;  %1144 = vst [vmem:[%s2207_s6 + $0x320] sm:$0xff] (%p1728_p6), %v1143_v59  ;;  %v1223_v34 = vld [vmem:[%s1963_s9 + $0x250] sm:$0xff] (%p1728_p6) }
 0x18e   : > { %998 = vst [vmem:[%s1963_s9 + $0x268] sm:$0xff] %v874_v60  ;;  %v759_v56 = vpop.f32.mrf.mxu1  ;;  %v1145_v60 = vld [vmem:[%s1963_s9 + $0x118] sm:$0xff] (%p1728_p6) }
 0x18f   : > { %999 = vst [vmem:[%s1963_s9 + $0x270] sm:$0xff] %v641_v61  ;;  %v1147_v61 = vld [vmem:[%s1963_s9 + $0x120] sm:$0xff] (%p1728_p6)  ;;  %v1225_v35 = vld [vmem:[%s1963_s9 + $0x258] sm:$0xff] (%p1728_p6) }
 0x190   : > { %1000 = vst [vmem:[%s1963_s9 + $0x278] sm:$0xff] %v759_v56  ;;  %v1149_v56 = vld [vmem:[%s1963_s9 + $0x128] sm:$0xff] (%p1728_p6)  ;;  %v1227_v36 = vld [vmem:[%s1963_s9 + $0x260] sm:$0xff] (%p1728_p6) }
 0x191   : > { %1146 = vst [vmem:[%s2207_s6 + $0x328] sm:$0xff] (%p1728_p6), %v1145_v60 }
 0x192   : > { %1148 = vst [vmem:[%s2207_s6 + $0x360] sm:$0xff] (%p1728_p6), %v1147_v61 }
 0x193   : > { %v912_v62 = vpop.f32.mrf.mxu3  ;;  %1150 = vst [vmem:[%s2207_s6 + $0x368] sm:$0xff] (%p1728_p6), %v1149_v56 }
 0x194   : > { %1043 = vst [vmem:[%s1963_s9 + $0x3d0] sm:$0xff] %v912_v62  ;;  %v1151_v62 = vld [vmem:[%s1963_s9 + $0x130] sm:$0xff] (%p1728_p6) }
 0x195   : > { %v877_v63 = vpop.f32.mrf.mxu2  ;;  %v643_v2 = vpop.f32.mrf.mxu0  ;;  %1152 = vst [vmem:[%s2207_s6 + $0x370] sm:$0xff] (%p1728_p6), %v1151_v62  ;;  %v1229_v37 = vld [vmem:[%s1963_s9 + $0x268] sm:$0xff] (%p1728_p6)  ;;  %v1279_v62 = vld [vmem:[%s1963_s9 + $0x330] sm:$0xff] (%p1728_p6) }
 0x196   : > { %1001 = vst [vmem:[%s1963_s9 + $0x280] sm:$0xff] %v877_v63  ;;  %v761_v0 = vpop.f32.mrf.mxu1  ;;  %v1153_v63 = vld [vmem:[%s1963_s9 + $0x138] sm:$0xff] (%p1728_p6)  ;;  %v1231_v38 = vld [vmem:[%s1963_s9 + $0x270] sm:$0xff] (%p1728_p6) }
 0x197   : > { %1002 = vst [vmem:[%s1963_s9 + $0x288] sm:$0xff] %v643_v2  ;;  %v1155_v2 = vld [vmem:[%s1963_s9 + $0x140] sm:$0xff] (%p1728_p6)  ;;  %v1233_v39 = vld [vmem:[%s1963_s9 + $0x278] sm:$0xff] (%p1728_p6) }
 0x198   : > { %1003 = vst [vmem:[%s1963_s9 + $0x290] sm:$0xff] %v761_v0  ;;  %v1157_v0 = vld [vmem:[%s1963_s9 + $0x148] sm:$0xff] (%p1728_p6) }
 0x199   : > { %1154 = vst [vmem:[%s2207_s6 + $0x3a8] sm:$0xff] (%p1728_p6), %v1153_v63  ;;  %v1281_v63 = vld [vmem:[%s1963_s9 + $0x338] sm:$0xff] (%p1728_p6) }
 0x19a   : > { %1156 = vst [vmem:[%s2207_s6 + $0x3b0] sm:$0xff] (%p1728_p6), %v1155_v2  ;;  %v1283_v2 = vld [vmem:[%s1963_s9 + $0x340] sm:$0xff] (%p1728_p6) }
 0x19b   : > { %v914_v1 = vpop.f32.mrf.mxu3  ;;  %1158 = vst [vmem:[%s2207_s6 + $0x3b8] sm:$0xff] (%p1728_p6), %v1157_v0  ;;  %v1285_v0 = vld [vmem:[%s1963_s9 + $0x348] sm:$0xff] (%p1728_p6) }
 0x19c   : > { %1046 = vst [vmem:[%s1963_s9 + $0x3e8] sm:$0xff] %v914_v1  ;;  %v1159_v1 = vld [vmem:[%s1963_s9 + $0x150] sm:$0xff] (%p1728_p6) }
 0x19d   : > { %v879_v3 = vpop.f32.mrf.mxu2  ;;  %v646_v4 = vpop.f32.mrf.mxu0  ;;  %1160 = vst [vmem:[%s2207_s6 + $0x3f0] sm:$0xff] (%p1728_p6), %v1159_v1  ;;  %v1235_v40 = vld [vmem:[%s1963_s9 + $0x280] sm:$0xff] (%p1728_p6)  ;;  %v1287_v1 = vld [vmem:[%s1963_s9 + $0x350] sm:$0xff] (%p1728_p6) }
 0x19e   : > { %1004 = vst [vmem:[%s1963_s9 + $0x298] sm:$0xff] %v879_v3  ;;  %v764_v5 = vpop.f32.mrf.mxu1  ;;  %v1161_v3 = vld [vmem:[%s1963_s9 + $0x158] sm:$0xff] (%p1728_p6)  ;;  %v1237_v41 = vld [vmem:[%s1963_s9 + $0x288] sm:$0xff] (%p1728_p6) }
 0x19f   : > { %1005 = vst [vmem:[%s1963_s9 + $0x2a0] sm:$0xff] %v646_v4  ;;  %v1163_v4 = vld [vmem:[%s1963_s9 + $0x160] sm:$0xff] (%p1728_p6)  ;;  %v1239_v42 = vld [vmem:[%s1963_s9 + $0x290] sm:$0xff] (%p1728_p6) }
 0x1a0   : > { %1006 = vst [vmem:[%s1963_s9 + $0x2a8] sm:$0xff] %v764_v5  ;;  %v1165_v5 = vld [vmem:[%s1963_s9 + $0x168] sm:$0xff] (%p1728_p6) }
 0x1a1   : > { %1162 = vst [vmem:[%s2207_s6 + $0x3f8] sm:$0xff] (%p1728_p6), %v1161_v3  ;;  %v1289_v3 = vld [vmem:[%s1963_s9 + $0x358] sm:$0xff] (%p1728_p6) }
 0x1a2   : > { %1164 = vst [vmem:[%s2207_s6 + $0x400] sm:$0xff] (%p1728_p6), %v1163_v4  ;;  %v1291_v4 = vld [vmem:[%s1963_s9 + $0x360] sm:$0xff] (%p1728_p6) }
 0x1a3   : > { %v917_v6 = vpop.f32.mrf.mxu3  ;;  %1166 = vst [vmem:[%s2207_s6 + $0x438] sm:$0xff] (%p1728_p6), %v1165_v5  ;;  %v1293_v5 = vld [vmem:[%s1963_s9 + $0x368] sm:$0xff] (%p1728_p6) }
 0x1a4   : > { %1049 = vst [vmem:[%s1963_s9 + $0x400] sm:$0x3] %v917_v6  ;;  %v1167_v6 = vld [vmem:[%s1963_s9 + $0x170] sm:$0xff] (%p1728_p6) }
 0x1a5   : > { %v882_v7 = vpop.f32.mrf.mxu2  ;;  %v648_v8 = vpop.f32.mrf.mxu0  ;;  %1168 = vst [vmem:[%s2207_s6 + $0x440] sm:$0xff] (%p1728_p6), %v1167_v6  ;;  %v1241_v43 = vld [vmem:[%s1963_s9 + $0x298] sm:$0xff] (%p1728_p6)  ;;  %v1295_v6 = vld [vmem:[%s1963_s9 + $0x370] sm:$0xff] (%p1728_p6) }
 0x1a6   : > { %1007 = vst [vmem:[%s1963_s9 + $0x2b0] sm:$0xff] %v882_v7  ;;  %v766_v9 = vpop.f32.mrf.mxu1  ;;  %v1169_v7 = vld [vmem:[%s1963_s9 + $0x178] sm:$0xff] (%p1728_p6)  ;;  %v1243_v44 = vld [vmem:[%s1963_s9 + $0x2a0] sm:$0xff] (%p1728_p6) }
 0x1a7   : > { %1008 = vst [vmem:[%s1963_s9 + $0x2b8] sm:$0xff] %v648_v8  ;;  %v1171_v8 = vld [vmem:[%s1963_s9 + $0x180] sm:$0xff] (%p1728_p6)  ;;  %v1245_v46 = vld [vmem:[%s1963_s9 + $0x2a8] sm:$0xff] (%p1728_p6) }
 0x1a8   : > { %1009 = vst [vmem:[%s1963_s9 + $0x2c0] sm:$0xff] %v766_v9  ;;  %v1173_v9 = vld [vmem:[%s1963_s9 + $0x188] sm:$0xff] (%p1728_p6) }
 0x1a9   : > { %1170 = vst [vmem:[%s2207_s6 + $0x448] sm:$0xff] (%p1728_p6), %v1169_v7  ;;  %v1297_v7 = vld [vmem:[%s1963_s9 + $0x378] sm:$0xff] (%p1728_p6) }
 0x1aa   : > { %1172 = vst [vmem:[%s2207_s6 + $0x480] sm:$0xff] (%p1728_p6), %v1171_v8  ;;  %v1299_v8 = vld [vmem:[%s1963_s9 + $0x380] sm:$0xff] (%p1728_p6) }
 0x1ab   : > { %v919_v10 = vpop.f32.mrf.mxu3  ;;  %1174 = vst [vmem:[%s2207_s6 + $0x488] sm:$0xff] (%p1728_p6), %v1173_v9  ;;  %v1301_v9 = vld [vmem:[%s1963_s9 + $0x388] sm:$0xff] (%p1728_p6) }
 0x1ac   : > { %v1175_v10 = vld [vmem:[%s1963_s9 + $0x190] sm:$0xff] (%p1728_p6)  ;;  %1204 = vst [vmem:[%s2207_s6 + $0x5f0] sm:$0xff] (%p1728_p6), %v1203_v24  ;;  %v1331_v24 = vld [vmem:[%s1963_s9 + $0x400] sm:$0xff] (%p1728_p6) }
 0x1ad   : > { %v884_v11 = vpop.f32.mrf.mxu2  ;;  %v651_v12 = vpop.f32.mrf.mxu0  ;;  %1176 = vst [vmem:[%s2207_s6 + $0x490] sm:$0xff] (%p1728_p6), %v1175_v10  ;;  %v1247_v45 = vld [vmem:[%s1963_s9 + $0x2b0] sm:$0xff] (%p1728_p6) }
 0x1ae   : > { %1010 = vst [vmem:[%s1963_s9 + $0x2c8] sm:$0xff] %v884_v11  ;;  %v769_v13 = vpop.f32.mrf.mxu1  ;;  %v1177_v11 = vld [vmem:[%s1963_s9 + $0x198] sm:$0xff] (%p1728_p6)  ;;  %v1303_v10 = vld [vmem:[%s1963_s9 + $0x390] sm:$0xff] (%p1728_p6) }
 0x1af   : > { %1011 = vst [vmem:[%s1963_s9 + $0x2d0] sm:$0xff] %v651_v12  ;;  %v1179_v12 = vld [vmem:[%s1963_s9 + $0x1a0] sm:$0xff] (%p1728_p6)  ;;  %v1249_v47 = vld [vmem:[%s1963_s9 + $0x2b8] sm:$0xff] (%p1728_p6) }
 0x1b0   : > { %1012 = vst [vmem:[%s1963_s9 + $0x2d8] sm:$0xff] %v769_v13  ;;  %v1181_v13 = vld [vmem:[%s1963_s9 + $0x1a8] sm:$0xff] (%p1728_p6)  ;;  %v1251_v48 = vld [vmem:[%s1963_s9 + $0x2c0] sm:$0xff] (%p1728_p6) }
 0x1b1   : > { %1178 = vst [vmem:[%s2207_s6 + $0x4c8] sm:$0xff] (%p1728_p6), %v1177_v11  ;;  %v1305_v11 = vld [vmem:[%s1963_s9 + $0x398] sm:$0xff] (%p1728_p6) }
 0x1b2   : > { %1180 = vst [vmem:[%s2207_s6 + $0x4d0] sm:$0xff] (%p1728_p6), %v1179_v12  ;;  %v1307_v12 = vld [vmem:[%s1963_s9 + $0x3a0] sm:$0xff] (%p1728_p6) }
 0x1b3   : > { %1182 = vst [vmem:[%s2207_s6 + $0x4d8] sm:$0xff] (%p1728_p6), %v1181_v13  ;;  %v1309_v13 = vld [vmem:[%s1963_s9 + $0x3a8] sm:$0xff] (%p1728_p6) }
 0x1b4   : > { %1206 = vst [vmem:[%s2207_s6 + $0x5f8] sm:$0xff] (%p1728_p6), %v1205_v25 }
 0x1b5   : > { %v887_v14 = vpop.f32.mrf.mxu2  ;;  %v653_v16 = vpop.f32.mrf.mxu0  ;;  %1208 = vst [vmem:[%s2207_s6 + $0x630] sm:$0xff] (%p1728_p6), %v1207_v26  ;;  %v1253_v49 = vld [vmem:[%s1963_s9 + $0x2c8] sm:$0xff] (%p1728_p6) }
 0x1b6   : > { %1013 = vst [vmem:[%s1963_s9 + $0x2e0] sm:$0xff] %v887_v14  ;;  %v771_v15 = vpop.f32.mrf.mxu1  ;;  %v1183_v14 = vld [vmem:[%s1963_s9 + $0x1b0] sm:$0xff] (%p1728_p6) }
 0x1b7   : > { %1014 = vst [vmem:[%s1963_s9 + $0x2e8] sm:$0xff] %v653_v16  ;;  %v1185_v16 = vld [vmem:[%s1963_s9 + $0x1b8] sm:$0xff] (%p1728_p6)  ;;  %v1255_v50 = vld [vmem:[%s1963_s9 + $0x2d0] sm:$0xff] (%p1728_p6) }
 0x1b8   : > { %1015 = vst [vmem:[%s1963_s9 + $0x2f0] sm:$0xff] %v771_v15  ;;  %v1187_v15 = vld [vmem:[%s1963_s9 + $0x1c0] sm:$0xff] (%p1728_p6)  ;;  %v1257_v51 = vld [vmem:[%s1963_s9 + $0x2d8] sm:$0xff] (%p1728_p6) }
 0x1b9   : > { %1184 = vst [vmem:[%s2207_s6 + $0x510] sm:$0xff] (%p1728_p6), %v1183_v14  ;;  %v1311_v14 = vld [vmem:[%s1963_s9 + $0x3b0] sm:$0xff] (%p1728_p6) }
 0x1ba   : > { %1186 = vst [vmem:[%s2207_s6 + $0x518] sm:$0xff] (%p1728_p6), %v1185_v16  ;;  %v1313_v16 = vld [vmem:[%s1963_s9 + $0x3b8] sm:$0xff] (%p1728_p6) }
 0x1bb   : > { %1188 = vst [vmem:[%s2207_s6 + $0x520] sm:$0xff] (%p1728_p6), %v1187_v15  ;;  %v1315_v15 = vld [vmem:[%s1963_s9 + $0x3c0] sm:$0xff] (%p1728_p6) }
 0x1bc   : > { %1210 = vst [vmem:[%s2207_s6 + $0x638] sm:$0xff] (%p1728_p6), %v1209_v27 }
 0x1bd   : > { %v889_v17 = vpop.f32.mrf.mxu2  ;;  %v656_v19 = vpop.f32.mrf.mxu0  ;;  %1212 = vst [vmem:[%s2207_s6 + $0x640] sm:$0xff] (%p1728_p6), %v1211_v28  ;;  %v1259_v52 = vld [vmem:[%s1963_s9 + $0x2e0] sm:$0xff] (%p1728_p6) }
 0x1be   : > { %1016 = vst [vmem:[%s1963_s9 + $0x2f8] sm:$0xff] %v889_v17  ;;  %v774_v20 = vpop.f32.mrf.mxu1  ;;  %v1189_v17 = vld [vmem:[%s1963_s9 + $0x1c8] sm:$0xff] (%p1728_p6) }
 0x1bf   : > { %1017 = vst [vmem:[%s1963_s9 + $0x300] sm:$0xff] %v656_v19  ;;  %v1191_v19 = vld [vmem:[%s1963_s9 + $0x1d0] sm:$0xff] (%p1728_p6)  ;;  %v1261_v53 = vld [vmem:[%s1963_s9 + $0x2e8] sm:$0xff] (%p1728_p6) }
 0x1c0   : > { %1018 = vst [vmem:[%s1963_s9 + $0x308] sm:$0xff] %v774_v20  ;;  %v1193_v20 = vld [vmem:[%s1963_s9 + $0x1d8] sm:$0xff] (%p1728_p6)  ;;  %v1263_v54 = vld [vmem:[%s1963_s9 + $0x2f0] sm:$0xff] (%p1728_p6) }
 0x1c1   : > { %1190 = vst [vmem:[%s2207_s6 + $0x558] sm:$0xff] (%p1728_p6), %v1189_v17  ;;  %v1317_v17 = vld [vmem:[%s1963_s9 + $0x3c8] sm:$0xff] (%p1728_p6) }
 0x1c2   : > { %1192 = vst [vmem:[%s2207_s6 + $0x560] sm:$0xff] (%p1728_p6), %v1191_v19  ;;  %v1319_v19 = vld [vmem:[%s1963_s9 + $0x3d0] sm:$0xff] (%p1728_p6) }
 0x1c3   : > { %1194 = vst [vmem:[%s2207_s6 + $0x568] sm:$0xff] (%p1728_p6), %v1193_v20  ;;  %v1321_v20 = vld [vmem:[%s1963_s9 + $0x3d8] sm:$0xff] (%p1728_p6) }
 0x1c4   : > { %1214 = vst [vmem:[%s2207_s6 + $0x678] sm:$0xff] (%p1728_p6), %v1213_v29 }
 0x1c5   : > { %v892_v18 = vpop.f32.mrf.mxu2  ;;  %v658_v21 = vpop.f32.mrf.mxu0  ;;  %1216 = vst [vmem:[%s2207_s6 + $0x680] sm:$0xff] (%p1728_p6), %v1215_v30  ;;  %v1265_v55 = vld [vmem:[%s1963_s9 + $0x2f8] sm:$0xff] (%p1728_p6) }
 0x1c6   : > { %1019 = vst [vmem:[%s1963_s9 + $0x310] sm:$0xff] %v892_v18  ;;  %v776_v22 = vpop.f32.mrf.mxu1  ;;  %v1195_v18 = vld [vmem:[%s1963_s9 + $0x1e0] sm:$0xff] (%p1728_p6) }
 0x1c7   : > { %1020 = vst [vmem:[%s1963_s9 + $0x318] sm:$0xff] %v658_v21  ;;  %v1197_v21 = vld [vmem:[%s1963_s9 + $0x1e8] sm:$0xff] (%p1728_p6)  ;;  %v1267_v57 = vld [vmem:[%s1963_s9 + $0x300] sm:$0xff] (%p1728_p6) }
 0x1c8   : > { %1021 = vst [vmem:[%s1963_s9 + $0x320] sm:$0xff] %v776_v22  ;;  %v1199_v22 = vld [vmem:[%s1963_s9 + $0x1f0] sm:$0xff] (%p1728_p6)  ;;  %v1269_v58 = vld [vmem:[%s1963_s9 + $0x308] sm:$0xff] (%p1728_p6) }
 0x1c9   : > { %1196 = vst [vmem:[%s2207_s6 + $0x5a0] sm:$0xff] (%p1728_p6), %v1195_v18  ;;  %v1323_v18 = vld [vmem:[%s1963_s9 + $0x3e0] sm:$0xff] (%p1728_p6) }
 0x1ca   : > { %1056 = sbr.rel (!%p1728_p6) target bundleno = 520 (0x208), region = 62  ;;  %1198 = vst [vmem:[%s2207_s6 + $0x5a8] sm:$0xff] (%p1728_p6), %v1197_v21  ;;  %v1325_v21 = vld [vmem:[%s1963_s9 + $0x3e8] sm:$0xff] (%p1728_p6) }
 0x1cb   : > { %1200 = vst [vmem:[%s2207_s6 + $0x5b0] sm:$0xff] (%p1728_p6), %v1199_v22  ;;  %v1327_v22 = vld [vmem:[%s1963_s9 + $0x3f0] sm:$0xff] (%p1728_p6) }
 0x1cc   : > { %1218 = vst [vmem:[%s2207_s6 + $0x688] sm:$0xff] (%p1728_p6), %v1217_v31 }
 0x1cd   : > { %v894_v23 = vpop.f32.mrf.mxu2  ;;  %1220 = vst [vmem:[%s2207_s6 + $0x6c0] sm:$0xff] (%p1728_p6), %v1219_v32  ;;  %v1271_v59 = vld [vmem:[%s1963_s9 + $0x310] sm:$0xff] (%p1728_p6) }
 0x1ce   : > { %1022 = vst [vmem:[%s1963_s9 + $0x328] sm:$0xff] %v894_v23  ;;  %v1201_v23 = vld [vmem:[%s1963_s9 + $0x1f8] sm:$0xff] (%p1728_p6) }
 0x1cf   : > { %1202 = vst [vmem:[%s2207_s6 + $0x5e8] sm:$0xff] %v1201_v23  ;;  %v1273_v60 = vld [vmem:[%s1963_s9 + $0x318] sm:$0xff]  ;;  %v1275_v61 = vld [vmem:[%s1963_s9 + $0x320] sm:$0xff] }
 0x1d0   : > { %1222 = vst [vmem:[%s2207_s6 + $0x6c8] sm:$0xff] %v1221_v33  ;;  %v1329_v23 = vld [vmem:[%s1963_s9 + $0x3f8] sm:$0xff] }
 0x1d1   : > { %1224 = vst [vmem:[%s2207_s6 + $0x6d0] sm:$0xff] %v1223_v34 }
 0x1d2   : > { %1226 = vst [vmem:[%s2207_s6 + $0x708] sm:$0xff] %v1225_v35 }
 0x1d3   : > { %1228 = vst [vmem:[%s2207_s6 + $0x710] sm:$0xff] %v1227_v36 }
 0x1d4   : > { %1230 = vst [vmem:[%s2207_s6 + $0x718] sm:$0xff] %v1229_v37 }
 0x1d5   : > { %1232 = vst [vmem:[%s2207_s6 + $0x750] sm:$0xff] %v1231_v38  ;;  %v1277_v56 = vld [vmem:[%s1963_s9 + $0x328] sm:$0xff] }
 0x1d6   : > { %1234 = vst [vmem:[%s2207_s6 + $0x758] sm:$0xff] %v1233_v39 }
 0x1d7   : > { %1236 = vst [vmem:[%s2207_s6 + $0x760] sm:$0xff] %v1235_v40 }
 0x1d8   : > { %1238 = vst [vmem:[%s2207_s6 + $0x798] sm:$0xff] %v1237_v41 }
 0x1d9   : > { %1240 = vst [vmem:[%s2207_s6 + $0x7a0] sm:$0xff] %v1239_v42 }
 0x1da   : > { %1242 = vst [vmem:[%s2207_s6 + $0x7a8] sm:$0xff] %v1241_v43 }
 0x1db   : > { %1244 = vst [vmem:[%s2207_s6 + $0x7e0] sm:$0xff] %v1243_v44 }
 0x1dc   : > { %1246 = vst [vmem:[%s2207_s6 + $0x7e8] sm:$0xff] %v1245_v46 }
 0x1dd   : > { %1248 = vst [vmem:[%s2207_s6 + $0x7f0] sm:$0xff] %v1247_v45 }
 0x1de   : > { %1250 = vst [vmem:[%s2207_s6 + $0x828] sm:$0xff] %v1249_v47 }
 0x1df   : > { %1252 = vst [vmem:[%s2207_s6 + $0x830] sm:$0xff] %v1251_v48 }
 0x1e0   : > { %1254 = vst [vmem:[%s2207_s6 + $0x838] sm:$0xff] %v1253_v49 }
 0x1e1   : > { %1256 = vst [vmem:[%s2207_s6 + $0x870] sm:$0xff] %v1255_v50 }
 0x1e2   : > { %1258 = vst [vmem:[%s2207_s6 + $0x878] sm:$0xff] %v1257_v51 }
 0x1e3   : > { %1260 = vst [vmem:[%s2207_s6 + $0x880] sm:$0xff] %v1259_v52 }
 0x1e4   : > { %1262 = vst [vmem:[%s2207_s6 + $0x8b8] sm:$0xff] %v1261_v53 }
 0x1e5   : > { %1264 = vst [vmem:[%s2207_s6 + $0x8c0] sm:$0xff] %v1263_v54 }
 0x1e6   : > { %1266 = vst [vmem:[%s2207_s6 + $0x8c8] sm:$0xff] %v1265_v55 }
 0x1e7   : > { %1268 = vst [vmem:[%s2207_s6 + $0x900] sm:$0xff] %v1267_v57 }
 0x1e8   : > { %1270 = vst [vmem:[%s2207_s6 + $0x908] sm:$0xff] %v1269_v58 }
 0x1e9   : > { %1272 = vst [vmem:[%s2207_s6 + $0x910] sm:$0xff] %v1271_v59 }
 0x1ea   : > { %1274 = vst [vmem:[%s2207_s6 + $0x948] sm:$0xff] %v1273_v60 }
 0x1eb   : > { %1276 = vst [vmem:[%s2207_s6 + $0x950] sm:$0xff] %v1275_v61 }
 0x1ec   : > { %1278 = vst [vmem:[%s2207_s6 + $0x958] sm:$0xff] %v1277_v56 }
 0x1ed   : > { %1280 = vst [vmem:[%s2207_s6 + $0x990] sm:$0xff] %v1279_v62 }
 0x1ee   : > { %1282 = vst [vmem:[%s2207_s6 + $0x998] sm:$0xff] %v1281_v63 }
 0x1ef   : > { %1284 = vst [vmem:[%s2207_s6 + $0x9a0] sm:$0xff] %v1283_v2 }
 0x1f0   : > { %1286 = vst [vmem:[%s2207_s6 + $0x9d8] sm:$0xff] %v1285_v0 }
 0x1f1   : > { %1288 = vst [vmem:[%s2207_s6 + $0x9e0] sm:$0xff] %v1287_v1 }
 0x1f2   : > { %1290 = vst [vmem:[%s2207_s6 + $0x9e8] sm:$0xff] %v1289_v3 }
 0x1f3   : > { %1292 = vst [vmem:[%s2207_s6 + $0xa20] sm:$0xff] %v1291_v4 }
 0x1f4   : > { %1294 = vst [vmem:[%s2207_s6 + $0xa28] sm:$0xff] %v1293_v5 }
 0x1f5   : > { %1296 = vst [vmem:[%s2207_s6 + $0xa30] sm:$0xff] %v1295_v6 }
 0x1f6   : > { %1298 = vst [vmem:[%s2207_s6 + $0xa68] sm:$0xff] %v1297_v7 }
 0x1f7   : > { %1300 = vst [vmem:[%s2207_s6 + $0xa70] sm:$0xff] %v1299_v8 }
 0x1f8   : > { %1302 = vst [vmem:[%s2207_s6 + $0xa78] sm:$0xff] %v1301_v9 }
 0x1f9   : > { %1304 = vst [vmem:[%s2207_s6 + $0xab0] sm:$0xff] %v1303_v10 }
 0x1fa   : > { %1306 = vst [vmem:[%s2207_s6 + $0xab8] sm:$0xff] %v1305_v11 }
 0x1fb   : > { %1308 = vst [vmem:[%s2207_s6 + $0xac0] sm:$0xff] %v1307_v12 }
 0x1fc   : > { %1310 = vst [vmem:[%s2207_s6 + $0xaf8] sm:$0xff] %v1309_v13 }
 0x1fd   : > { %1312 = vst [vmem:[%s2207_s6 + $0xb00] sm:$0xff] %v1311_v14 }
 0x1fe   : > { %1314 = vst [vmem:[%s2207_s6 + $0xb08] sm:$0xff] %v1313_v16 }
 0x1ff   : > { %1316 = vst [vmem:[%s2207_s6 + $0xb40] sm:$0xff] %v1315_v15 }
 0x200   : > { %1318 = vst [vmem:[%s2207_s6 + $0xb48] sm:$0xff] %v1317_v17 }
 0x201   : > { %1320 = vst [vmem:[%s2207_s6 + $0xb50] sm:$0xff] %v1319_v19 }
 0x202   : > { %1322 = vst [vmem:[%s2207_s6 + $0xb88] sm:$0xff] %v1321_v20 }
 0x203   : > { %1324 = vst [vmem:[%s2207_s6 + $0xb90] sm:$0xff] %v1323_v18 }
 0x204   : > { %1326 = vst [vmem:[%s2207_s6 + $0xb98] sm:$0xff] %v1325_v21 }
 0x205   : > { %1328 = vst [vmem:[%s2207_s6 + $0xbd0] sm:$0xff] %v1327_v22 }
 0x206   : > { %1330 = vst [vmem:[%s2207_s6 + $0xbd8] sm:$0xff] %v1329_v23 }
 0x207   : > { %1332 = vst [vmem:[%s2207_s6 + $0xbe0] sm:$0xff] %v1331_v24 }
 0x208 PF: > { %s13_s16 = sadd.s32 1, %s1671_s16   ;;  %s2485_s12 = smov %s1659_s13 }
 0x209   : > { %p10_p11 = scmp.ge.s32.totalorder %s13_s16, 5   ;;  %s2486_s13 = smov %s1733_s22 }
 0x20a   : > { %s2487_s14 = smov %s1667_s15  ;;  %s2488_s15 = smov %s2490_s17 }
 0x20b   :  { %12 = sbr.rel (!%p10_p11) target bundleno = 3 (0x3), region = 125 }

// kernel: decoder_forward.9
= control target key start
LH: loop header
LB: loop body
LE: loop exit
PB: predicated region body
PF: predicated region fallthrough
CT: control target
= control target key end

     0   :  { %s1065_s12 = smov 0   ;;  %s1067_s13 = smov 0   ;;  %s1406_s0 = inlined_call_operand.vmem [shape: f32[1800,32], index: 0, kind: input, shape index: {}]   ;;  %s1407_s1 = inlined_call_operand.vmem [shape: f32[1,32], index: 1, kind: input, shape index: {}]   ;;  %s1408_s2 = inlined_call_operand.vmem [shape: bf16[32,216], index: 2, kind: input, shape index: {}]   ;;  %s1409_s3 = inlined_call_operand.vmem [shape: f32[1800,216], index: 3, kind: output, shape index: {}]  }
   0x1   :  { %s1069_s14 = smov 0  }
   0x2 LB: > { %s22_s15 = sadd.s32 1, %s1039_s13  ;;  %p919_p0 = scmp.ge.s32.totalorder %s1043_s14, 1  ;;  %s1043_s14 = sphi %s1069_s14, %s13_s14   ;;  %s1039_s13 = sphi %s1067_s13, %s1411_s13   ;;  %s1035_s12 = sphi %s1065_s12, %s1410_s12  }
   0x3   : > { %p23_p1 = scmp.ge.s32.totalorder %s22_s15, 5  ;;  %p163_p2 = scmp.lt.s32.totalorder %s1043_s14, 6 }
   0x5   : > { %s1413_s15 = smov (%p23_p1, %s22_s15), 0  ;;  %p164_p3 = pnand %p919_p0, %p163_p2 }
   0x6   : > { %s197_s5 = smul.u32 (!%p164_p3), 45, %s1035_s12 }
   0x7   : > { %167 = sbr.rel (%p164_p3) target bundleno = 336 (0x150), region = 32 }
   0x8   : > { %p198_p4 = scmp.lt.s32.totalorder (!%p164_p3), %s197_s5, 224 }
   0xc   : > { %v933_v0 = vld [vmem:[%s1408_s2 + $0x10] sm:$0xf]  ;;  %v991_v1 = vld [vmem:[%s1408_s2 + $0x14] sm:$0xf0]  ;;  %v990_v2 = vld [vmem:[%s1408_s2 + $0x14] sm:$0xf] }
   0xd   : > { %v934_v3 = vor.u32 %v991_v1, %v933_v0  ;;  %v935_v4 = vld [vmem:[%s1408_s2 + $0x18] sm:$0xf0]  ;;  %v925_v5 = vld [vmem:[%s1408_s2] sm:$0xf]  ;;  %v989_v6 = vld [vmem:[%s1408_s2 + $0x4] sm:$0xf0] }
   0xe   : > { %v938_v7 = vor.u32 %v990_v2, %v935_v4  ;;  %v988_v8 = vld [vmem:[%s1408_s2 + $0x4] sm:$0xf]  ;;  %v927_v9 = vld [vmem:[%s1408_s2 + $0x8] sm:$0xf0]  ;;  %v926_v10 = vor.u32 %v989_v6, %v925_v5  ;;  %s1415_s5 = smov (!%p198_p4, %s197_s5), 224  ;;  %vm408_vm0 = vcmask 261120  }
   0xf   : > { %484 = vmatpush.bf16.msra.mxu0 %v934_v3  ;;  %992 = vmatpush.bf16.msra.mxu2 %v934_v3  ;;  %v930_v11 = vor.u32 %v988_v8, %v927_v9  ;;  %v1112_v12 = vld [vmem:[%s1407_s1] ss:$0 sm:$0xff]  ;;  %s920_s8 = sshll.u32 %s1415_s5, 3  ;;  %s987_s12 = sshll.u32 %s1415_s5, 4  ;;  %vm725_vm1 = vcmask 719872  }
  0x10   : > { %607 = vmatpush.bf16.msra.mxu1 %v938_v7  ;;  %994 = vmatpush.bf16.msra.mxu3 %v938_v7  ;;  %s1118_s11 = scalar_lea.vmem %s1406_s0, %s920_s8  ;;  %s1228_s18 = scalar_lea.vmem %s1409_s3, %s987_s12 }
  0x11   : > { %v222_v13 = vld [vmem:[%s1118_s11] sm:$0xff]  ;;  %v223_v14 = vld [vmem:[%s1118_s11 + $0x8] sm:$0xff]  ;;  %v224_v27 = vld [vmem:[%s1118_s11 + $0x10] sm:$0xff] }
  0x12   : > { %v246_v15 = vld [vmem:[%s1118_s11 + $0xc0] sm:$0xff]  ;;  %v271_v16 = vadd.f32 %v1112_v12, %v222_v13  ;;  %v272_v17 = vadd.f32 %v1112_v12, %v223_v14  ;;  %v247_v18 = vld [vmem:[%s1118_s11 + $0xc8] sm:$0xff]  ;;  %v225_v28 = vld [vmem:[%s1118_s11 + $0x18] sm:$0xff]  ;;  %v273_v31 = vadd.f32 %v1112_v12, %v224_v27 }
  0x13   : > { %485 = vmatpush.bf16.msra.mxu0 %v926_v10  ;;  %993 = vmatpush.bf16.msra.mxu2 %v926_v10  ;;  %v295_v19 = vadd.f32 %v1112_v12, %v246_v15  ;;  %v296_v20 = vadd.f32 %v1112_v12, %v247_v18  ;;  %v248_v29 = vld [vmem:[%s1118_s11 + $0xd0] sm:$0xff]  ;;  %v249_v30 = vld [vmem:[%s1118_s11 + $0xd8] sm:$0xff]  ;;  %v274_v32 = vadd.f32 %v1112_v12, %v225_v28  ;;  %v226_v41 = vld [vmem:[%s1118_s11 + $0x20] sm:$0xff] }
  0x14   : > { %608 = vmatpush.bf16.msra.mxu1 %v930_v11  ;;  %995 = vmatpush.bf16.msra.mxu3 %v930_v11  ;;  %v316_v21 = vmax.f32 %v271_v16, 0.0  ;;  %v317_v22 = vmax.f32 %v272_v17, 0.0  ;;  %v297_v33 = vadd.f32 %v1112_v12, %v248_v29  ;;  %v298_v34 = vadd.f32 %v1112_v12, %v249_v30  ;;  %v227_v42 = vld [vmem:[%s1118_s11 + $0x28] sm:$0xff]  ;;  %v250_v43 = vld [vmem:[%s1118_s11 + $0xe0] sm:$0xff]  ;;  %v228_v55 = vld [vmem:[%s1118_s11 + $0x30] sm:$0xff] }
  0x15   : > { %v340_v23 = vmax.f32 %v295_v19, 0.0  ;;  %v341_v24 = vmax.f32 %v296_v20, 0.0  ;;  %v318_v35 = vmax.f32 %v273_v31, 0.0  ;;  %v319_v36 = vmax.f32 %v274_v32, 0.0  ;;  %v251_v44 = vld [vmem:[%s1118_s11 + $0xe8] sm:$0xff]  ;;  %v229_v56 = vld [vmem:[%s1118_s11 + $0x38] sm:$0xff] }
  0x16   : > { %v361_v25 = vpack.c.bf16 %v317_v22, %v316_v21  ;;  %v342_v37 = vmax.f32 %v297_v33, 0.0  ;;  %v343_v38 = vmax.f32 %v298_v34, 0.0  ;;  %v275_v45 = vadd.f32 %v1112_v12, %v226_v41  ;;  %v252_v57 = vld [vmem:[%s1118_s11 + $0xf0] sm:$0xff]  ;;  %v253_v58 = vld [vmem:[%s1118_s11 + $0xf8] sm:$0xff]  ;;  %v230_v5 = vld [vmem:[%s1118_s11 + $0x40] sm:$0xff] }
  0x17   : > { %v373_v26 = vpack.c.bf16 %v341_v24, %v340_v23  ;;  %v362_v39 = vpack.c.bf16 %v319_v36, %v318_v35  ;;  %v276_v46 = vadd.f32 %v1112_v12, %v227_v42  ;;  %v299_v47 = vadd.f32 %v1112_v12, %v250_v43  ;;  %v231_v6 = vld [vmem:[%s1118_s11 + $0x48] sm:$0xff]  ;;  %v254_v7 = vld [vmem:[%s1118_s11 + $0x100] sm:$0xff]  ;;  %v232_v20 = vld [vmem:[%s1118_s11 + $0x50] sm:$0xff] }
  0x18   : > { %939 = vmatmul.msk.bf16.vlgmr.msra.gmra.mxu0 %vm408_vm0, %v361_v25  ;;  %962 = vmatmul.msk.bf16.vlgmr.msra.gmra.mxu1 %vm408_vm0, %v361_v25  ;;  %v374_v40 = vpack.c.bf16 %v343_v38, %v342_v37  ;;  %v300_v48 = vadd.f32 %v1112_v12, %v251_v44  ;;  %v320_v49 = vmax.f32 %v275_v45, 0.0  ;;  %v277_v59 = vadd.f32 %v1112_v12, %v228_v55  ;;  %v255_v8 = vld [vmem:[%s1118_s11 + $0x108] sm:$0xff]  ;;  %v233_v21 = vld [vmem:[%s1118_s11 + $0x58] sm:$0xff]  ;;  %v256_v22 = vld [vmem:[%s1118_s11 + $0x110] sm:$0xff] }
  0x19   : > { %951 = vmatmul.msk.bf16.vlgmr.msra.gmra.mxu2 %vm408_vm0, %v373_v26  ;;  %974 = vmatmul.msk.bf16.vlgmr.msra.gmra.mxu3 %vm408_vm0, %v373_v26  ;;  %v321_v50 = vmax.f32 %v276_v46, 0.0  ;;  %v344_v51 = vmax.f32 %v299_v47, 0.0  ;;  %v278_v60 = vadd.f32 %v1112_v12, %v229_v56  ;;  %v301_v61 = vadd.f32 %v1112_v12, %v252_v57  ;;  %v257_v23 = vld [vmem:[%s1118_s11 + $0x118] sm:$0xff]  ;;  %v234_v34 = vld [vmem:[%s1118_s11 + $0x60] sm:$0xff]  ;;  %v235_v35 = vld [vmem:[%s1118_s11 + $0x68] sm:$0xff] }
  0x1a   : > { %v345_v52 = vmax.f32 %v300_v48, 0.0  ;;  %v302_v62 = vadd.f32 %v1112_v12, %v253_v58  ;;  %v322_v63 = vmax.f32 %v277_v59, 0.0  ;;  %v279_v9 = vadd.f32 %v1112_v12, %v230_v5  ;;  %v258_v36 = vld [vmem:[%s1118_s11 + $0x120] sm:$0xff]  ;;  %v259_v37 = vld [vmem:[%s1118_s11 + $0x128] sm:$0xff]  ;;  %v236_v48 = vld [vmem:[%s1118_s11 + $0x70] sm:$0xff] }
  0x1b   : > { %v363_v53 = vpack.c.bf16 %v321_v50, %v320_v49  ;;  %v323_v0 = vmax.f32 %v278_v60, 0.0  ;;  %v346_v1 = vmax.f32 %v301_v61, 0.0  ;;  %v280_v10 = vadd.f32 %v1112_v12, %v231_v6  ;;  %v237_v49 = vld [vmem:[%s1118_s11 + $0x78] sm:$0xff]  ;;  %v260_v50 = vld [vmem:[%s1118_s11 + $0x130] sm:$0xff] }
  0x1c   : > { %v375_v54 = vpack.c.bf16 %v345_v52, %v344_v51  ;;  %v347_v2 = vmax.f32 %v302_v62, 0.0  ;;  %v303_v11 = vadd.f32 %v1112_v12, %v254_v7  ;;  %v304_v13 = vadd.f32 %v1112_v12, %v255_v8  ;;  %v261_v51 = vld [vmem:[%s1118_s11 + $0x138] sm:$0xff]  ;;  %v238_v62 = vld [vmem:[%s1118_s11 + $0x80] sm:$0xff] }
  0x1d   : > { %v364_v3 = vpack.c.bf16 %v323_v0, %v322_v63  ;;  %v324_v14 = vmax.f32 %v279_v9, 0.0  ;;  %v325_v15 = vmax.f32 %v280_v10, 0.0  ;;  %v281_v24 = vadd.f32 %v1112_v12, %v232_v20  ;;  %v239_v63 = vld [vmem:[%s1118_s11 + $0x88] sm:$0xff]  ;;  %v262_v0 = vld [vmem:[%s1118_s11 + $0x140] sm:$0xff] }
  0x1e   : > { %v376_v4 = vpack.c.bf16 %v347_v2, %v346_v1  ;;  %v348_v16 = vmax.f32 %v303_v11, 0.0  ;;  %v349_v17 = vmax.f32 %v304_v13, 0.0  ;;  %v282_v25 = vadd.f32 %v1112_v12, %v233_v21  ;;  %v263_v1 = vld [vmem:[%s1118_s11 + $0x148] sm:$0xff] }
  0x1f   : > { %v365_v18 = vpack.c.bf16 %v325_v15, %v324_v14  ;;  %v305_v26 = vadd.f32 %v1112_v12, %v256_v22  ;;  %v306_v27 = vadd.f32 %v1112_v12, %v257_v23  ;;  %v326_v28 = vmax.f32 %v281_v24, 0.0  ;;  %v240_v15 = vld [vmem:[%s1118_s11 + $0x90] sm:$0xff] }
  0x20   : > { %v377_v19 = vpack.c.bf16 %v349_v17, %v348_v16  ;;  %v327_v29 = vmax.f32 %v282_v25, 0.0  ;;  %v283_v38 = vadd.f32 %v1112_v12, %v234_v34  ;;  %v308_v41 = vadd.f32 %v1112_v12, %v259_v37  ;;  %v241_v16 = vld [vmem:[%s1118_s11 + $0x98] sm:$0xff]  ;;  %v264_v17 = vld [vmem:[%s1118_s11 + $0x150] sm:$0xff]  ;;  %v242_v37 = vld [vmem:[%s1118_s11 + $0xa0] sm:$0xff] }
  0x21   : > { %v350_v30 = vmax.f32 %v305_v26, 0.0  ;;  %v351_v31 = vmax.f32 %v306_v27, 0.0  ;;  %v285_v52 = vadd.f32 %v1112_v12, %v236_v48  ;;  %v310_v55 = vadd.f32 %v1112_v12, %v261_v51 }
  0x22   : > { %v366_v32 = vpack.c.bf16 %v327_v29, %v326_v28  ;;  %v328_v42 = vmax.f32 %v283_v38, 0.0  ;;  %v353_v45 = vmax.f32 %v308_v41, 0.0  ;;  %v287_v2 = vadd.f32 %v1112_v12, %v238_v62  ;;  %v243_v38 = vld [vmem:[%s1118_s11 + $0xa8] sm:$0xff] }
  0x23   : > { %v378_v33 = vpack.c.bf16 %v351_v31, %v350_v30  ;;  %v330_v56 = vmax.f32 %v285_v52, 0.0  ;;  %v355_v59 = vmax.f32 %v310_v55, 0.0  ;;  %v312_v5 = vadd.f32 %v1112_v12, %v263_v1 }
  0x24   : > { %v332_v6 = vmax.f32 %v287_v2, 0.0  ;;  %v289_v21 = vadd.f32 %v1112_v12, %v240_v15  ;;  %v290_v22 = vadd.f32 %v1112_v12, %v241_v16  ;;  %v313_v25 = vadd.f32 %v1112_v12, %v264_v17 }
  0x25   : > { %v357_v9 = vmax.f32 %v312_v5, 0.0 }
  0x26   : > { %v334_v27 = vmax.f32 %v289_v21, 0.0  ;;  %v335_v28 = vmax.f32 %v290_v22, 0.0  ;;  %v358_v29 = vmax.f32 %v313_v25, 0.0 }
  0x28   : > { %940 = vmatmul.msk.bf16.gmra.mxu0 %vm408_vm0, %v362_v39  ;;  %963 = vmatmul.msk.bf16.gmra.mxu1 %vm408_vm0, %v362_v39  ;;  %v284_v39 = vadd.f32 %v1112_v12, %v235_v35 }
  0x29   : > { %952 = vmatmul.msk.bf16.gmra.mxu2 %vm408_vm0, %v374_v40  ;;  %975 = vmatmul.msk.bf16.gmra.mxu3 %vm408_vm0, %v374_v40  ;;  %v307_v40 = vadd.f32 %v1112_v12, %v258_v36 }
  0x2a   : > { %v329_v43 = vmax.f32 %v284_v39, 0.0  ;;  %v266_v39 = vld [vmem:[%s1118_s11 + $0x160] sm:$0xff] }
  0x2b   : > { %v352_v44 = vmax.f32 %v307_v40, 0.0 }
  0x2c   : > { %v367_v46 = vpack.c.bf16 %v329_v43, %v328_v42  ;;  %v291_v42 = vadd.f32 %v1112_v12, %v242_v37  ;;  %v292_v43 = vadd.f32 %v1112_v12, %v243_v38 }
  0x2d   : > { %v379_v47 = vpack.c.bf16 %v353_v45, %v352_v44 }
  0x2e   : > { %v337_v48 = vmax.f32 %v292_v43, 0.0 }
  0x38   : > { %941 = vmatmul.msk.bf16.gmra.mxu0 %vm408_vm0, %v363_v53  ;;  %964 = vmatmul.msk.bf16.gmra.mxu1 %vm408_vm0, %v363_v53  ;;  %v286_v53 = vadd.f32 %v1112_v12, %v237_v49 }
  0x39   : > { %953 = vmatmul.msk.bf16.gmra.mxu2 %vm408_vm0, %v375_v54  ;;  %976 = vmatmul.msk.bf16.gmra.mxu3 %vm408_vm0, %v375_v54  ;;  %v309_v54 = vadd.f32 %v1112_v12, %v260_v50 }
  0x3a   : > { %v331_v57 = vmax.f32 %v286_v53, 0.0 }
  0x3b   : > { %v354_v58 = vmax.f32 %v309_v54, 0.0 }
  0x3c   : > { %v368_v60 = vpack.c.bf16 %v331_v57, %v330_v56  ;;  %v244_v56 = vld [vmem:[%s1118_s11 + $0xb0] sm:$0xff]  ;;  %v245_v57 = vld [vmem:[%s1118_s11 + $0xb8] sm:$0xff] }
  0x3d   : > { %v380_v61 = vpack.c.bf16 %v355_v59, %v354_v58 }
  0x48   : > { %942 = vmatmul.msk.bf16.gmra.mxu0 %vm408_vm0, %v364_v3  ;;  %965 = vmatmul.msk.bf16.gmra.mxu1 %vm408_vm0, %v364_v3  ;;  %v288_v3 = vadd.f32 %v1112_v12, %v239_v63 }
  0x49   : > { %954 = vmatmul.msk.bf16.gmra.mxu2 %vm408_vm0, %v376_v4  ;;  %977 = vmatmul.msk.bf16.gmra.mxu3 %vm408_vm0, %v376_v4  ;;  %v311_v4 = vadd.f32 %v1112_v12, %v262_v0 }
  0x4a   : > { %v333_v7 = vmax.f32 %v288_v3, 0.0 }
  0x4b   : > { %v356_v8 = vmax.f32 %v311_v4, 0.0 }
  0x4c   : > { %v369_v10 = vpack.c.bf16 %v333_v7, %v332_v6 }
  0x4d   : > { %v381_v14 = vpack.c.bf16 %v357_v9, %v356_v8 }
  0x58   : > { %943 = vmatmul.msk.bf16.gmra.mxu0 %vm408_vm0, %v365_v18  ;;  %966 = vmatmul.msk.bf16.gmra.mxu1 %vm408_vm0, %v365_v18  ;;  %v265_v18 = vld [vmem:[%s1118_s11 + $0x158] sm:$0xff] }
  0x59   : > { %955 = vmatmul.msk.bf16.gmra.mxu2 %vm408_vm0, %v377_v19  ;;  %978 = vmatmul.msk.bf16.gmra.mxu3 %vm408_vm0, %v377_v19  ;;  %v314_v26 = vadd.f32 %v1112_v12, %v265_v18 }
  0x5b   : > { %v359_v30 = vmax.f32 %v314_v26, 0.0 }
  0x5d   : > { %v382_v36 = vpack.c.bf16 %v359_v30, %v358_v29 }
  0x68   : > { %944 = vmatmul.msk.bf16.gmra.mxu0 %vm408_vm0, %v366_v32  ;;  %967 = vmatmul.msk.bf16.gmra.mxu1 %vm408_vm0, %v366_v32 }
  0x69   : > { %956 = vmatmul.msk.bf16.gmra.mxu2 %vm408_vm0, %v378_v33  ;;  %979 = vmatmul.msk.bf16.gmra.mxu3 %vm408_vm0, %v378_v33  ;;  %v370_v33 = vpack.c.bf16 %v335_v28, %v334_v27 }
  0x78   : > { %945 = vmatmul.msk.bf16.gmra.mxu0 %vm408_vm0, %v367_v46  ;;  %968 = vmatmul.msk.bf16.gmra.mxu1 %vm408_vm0, %v367_v46  ;;  %v315_v46 = vadd.f32 %v1112_v12, %v266_v39 }
  0x79   : > { %957 = vmatmul.msk.bf16.gmra.mxu2 %vm408_vm0, %v379_v47  ;;  %980 = vmatmul.msk.bf16.gmra.mxu3 %vm408_vm0, %v379_v47  ;;  %v336_v47 = vmax.f32 %v291_v42, 0.0 }
  0x7a   : > { %v360_v49 = vmax.f32 %v315_v46, 0.0 }
  0x7b   : > { %v371_v52 = vpack.c.bf16 %v337_v48, %v336_v47 }
  0x7c   : > { %v383_v55 = vpack.c.bf16 %v360_v49, %v360_v49 }
  0x88   : > { %946 = vmatmul.msk.bf16.gmra.mxu0 %vm408_vm0, %v368_v60  ;;  %969 = vmatmul.msk.bf16.gmra.mxu1 %vm408_vm0, %v368_v60  ;;  %v293_v60 = vadd.f32 %v1112_v12, %v244_v56 }
  0x89   : > { %958 = vmatmul.msk.bf16.gmra.mxu2 %vm408_vm0, %v380_v61  ;;  %981 = vmatmul.msk.bf16.gmra.mxu3 %vm408_vm0, %v380_v61  ;;  %v294_v61 = vadd.f32 %v1112_v12, %v245_v57 }
  0x8a   : > { %v338_v0 = vmax.f32 %v293_v60, 0.0 }
  0x8b   : > { %v339_v1 = vmax.f32 %v294_v61, 0.0 }
  0x8d   : > { %v372_v4 = vpack.c.bf16 %v339_v1, %v338_v0 }
  0x95   : > { %v487_v11 = vpop.f32.mrf.mxu0  ;;  %v610_v13 = vpop.f32.mrf.mxu1 }
  0x96   : > { %724 = vst [vmem:[%s1228_s18] sm:$0xff] %v487_v11 }
  0x97   : > { %726 = vst.msk [vmem:[%s1228_s18 + $0x8] sm:$0xff] %vm725_vm1, %v610_v13 }
  0x98   : > { %947 = vmatmul.msk.bf16.gmra.mxu0 %vm408_vm0, %v369_v10  ;;  %970 = vmatmul.msk.bf16.gmra.mxu1 %vm408_vm0, %v369_v10 }
  0x99   : > { %959 = vmatmul.msk.bf16.gmra.mxu2 %vm408_vm0, %v381_v14  ;;  %982 = vmatmul.msk.bf16.gmra.mxu3 %vm408_vm0, %v381_v14 }
  0x9c   : > { %v547_v19 = vpop.f32.mrf.mxu2  ;;  %v670_v20 = vpop.f32.mrf.mxu3 }
  0x9d   : > { %v489_v23 = vpop.f32.mrf.mxu0  ;;  %v612_v24 = vpop.f32.mrf.mxu1  ;;  %773 = vst [vmem:[%s1228_s18 + $0x180] sm:$0xff] %v547_v19 }
  0x9e   : > { %727 = vst [vmem:[%s1228_s18 + $0x10] sm:$0xff] %v489_v23 }
  0x9f   : > { %728 = vst.msk [vmem:[%s1228_s18 + $0x18] sm:$0xff] %vm725_vm1, %v612_v24 }
  0xa0   : > { %774 = vst.msk [vmem:[%s1228_s18 + $0x188] sm:$0xff] %vm725_vm1, %v670_v20 }
  0xa4   : > { %v549_v31 = vpop.f32.mrf.mxu2  ;;  %v672_v32 = vpop.f32.mrf.mxu3 }
  0xa5   : > { %v492_v34 = vpop.f32.mrf.mxu0  ;;  %v615_v35 = vpop.f32.mrf.mxu1  ;;  %775 = vst [vmem:[%s1228_s18 + $0x190] sm:$0xff] %v549_v31 }
  0xa6   : > { %729 = vst [vmem:[%s1228_s18 + $0x20] sm:$0xff] %v492_v34 }
  0xa7   : > { %730 = vst.msk [vmem:[%s1228_s18 + $0x28] sm:$0xff] %vm725_vm1, %v615_v35 }
  0xa8   : > { %776 = vst.msk [vmem:[%s1228_s18 + $0x198] sm:$0xff] %vm725_vm1, %v672_v32  ;;  %948 = vmatmul.msk.bf16.gmra.mxu0 %vm408_vm0, %v370_v33  ;;  %971 = vmatmul.msk.bf16.gmra.mxu1 %vm408_vm0, %v370_v33 }
  0xa9   : > { %960 = vmatmul.msk.bf16.gmra.mxu2 %vm408_vm0, %v382_v36  ;;  %983 = vmatmul.msk.bf16.gmra.mxu3 %vm408_vm0, %v382_v36 }
  0xac   : > { %v552_v40 = vpop.f32.mrf.mxu2  ;;  %v675_v41 = vpop.f32.mrf.mxu3 }
  0xad   : > { %v494_v44 = vpop.f32.mrf.mxu0  ;;  %v617_v45 = vpop.f32.mrf.mxu1  ;;  %777 = vst [vmem:[%s1228_s18 + $0x1a0] sm:$0xff] %v552_v40 }
  0xae   : > { %731 = vst [vmem:[%s1228_s18 + $0x30] sm:$0xff] %v494_v44 }
  0xaf   : > { %732 = vst.msk [vmem:[%s1228_s18 + $0x38] sm:$0xff] %vm725_vm1, %v617_v45 }
  0xb0   : > { %778 = vst.msk [vmem:[%s1228_s18 + $0x1a8] sm:$0xff] %vm725_vm1, %v675_v41 }
  0xb4   : > { %v554_v50 = vpop.f32.mrf.mxu2  ;;  %v677_v51 = vpop.f32.mrf.mxu3 }
  0xb5   : > { %v497_v53 = vpop.f32.mrf.mxu0  ;;  %v620_v54 = vpop.f32.mrf.mxu1  ;;  %779 = vst [vmem:[%s1228_s18 + $0x1b0] sm:$0xff] %v554_v50 }
  0xb6   : > { %733 = vst [vmem:[%s1228_s18 + $0x40] sm:$0xff] %v497_v53 }
  0xb7   : > { %734 = vst.msk [vmem:[%s1228_s18 + $0x48] sm:$0xff] %vm725_vm1, %v620_v54 }
  0xb8   : > { %780 = vst.msk [vmem:[%s1228_s18 + $0x1b8] sm:$0xff] %vm725_vm1, %v677_v51  ;;  %949 = vmatmul.msk.bf16.gmra.mxu0 %vm408_vm0, %v371_v52  ;;  %972 = vmatmul.msk.bf16.gmra.mxu1 %vm408_vm0, %v371_v52 }
  0xb9   : > { %961 = vmatmul.msk.bf16.gmra.mxu2 %vm408_vm0, %v383_v55  ;;  %984 = vmatmul.msk.bf16.gmra.mxu3 %vm408_vm0, %v383_v55 }
  0xbc   : > { %v557_v58 = vpop.f32.mrf.mxu2  ;;  %v680_v59 = vpop.f32.mrf.mxu3 }
  0xbd   : > { %v499_v62 = vpop.f32.mrf.mxu0  ;;  %v622_v63 = vpop.f32.mrf.mxu1  ;;  %781 = vst [vmem:[%s1228_s18 + $0x1c0] sm:$0xff] %v557_v58 }
  0xbe   : > { %735 = vst [vmem:[%s1228_s18 + $0x50] sm:$0xff] %v499_v62 }
  0xbf   : > { %736 = vst.msk [vmem:[%s1228_s18 + $0x58] sm:$0xff] %vm725_vm1, %v622_v63 }
  0xc0   : > { %782 = vst.msk [vmem:[%s1228_s18 + $0x1c8] sm:$0xff] %vm725_vm1, %v680_v59 }
  0xc4   : > { %v559_v2 = vpop.f32.mrf.mxu2  ;;  %v682_v3 = vpop.f32.mrf.mxu3 }
  0xc5   : > { %v502_v12 = vpop.f32.mrf.mxu0  ;;  %v625_v5 = vpop.f32.mrf.mxu1  ;;  %783 = vst [vmem:[%s1228_s18 + $0x1d0] sm:$0xff] %v559_v2 }
  0xc6   : > { %737 = vst [vmem:[%s1228_s18 + $0x60] sm:$0xff] %v502_v12 }
  0xc7   : > { %738 = vst.msk [vmem:[%s1228_s18 + $0x68] sm:$0xff] %vm725_vm1, %v625_v5 }
  0xc8   : > { %784 = vst.msk [vmem:[%s1228_s18 + $0x1d8] sm:$0xff] %vm725_vm1, %v682_v3  ;;  %950 = vmatmul.msk.bf16.gmra.mxu0 %vm408_vm0, %v372_v4  ;;  %973 = vmatmul.msk.bf16.gmra.mxu1 %vm408_vm0, %v372_v4 }
  0xcc   : > { %v562_v6 = vpop.f32.mrf.mxu2  ;;  %v685_v7 = vpop.f32.mrf.mxu3 }
  0xcd   : > { %v504_v8 = vpop.f32.mrf.mxu0  ;;  %v627_v9 = vpop.f32.mrf.mxu1  ;;  %785 = vst [vmem:[%s1228_s18 + $0x1e0] sm:$0xff] %v562_v6 }
  0xce   : > { %739 = vst [vmem:[%s1228_s18 + $0x70] sm:$0xff] %v504_v8 }
  0xcf   : > { %740 = vst.msk [vmem:[%s1228_s18 + $0x78] sm:$0xff] %vm725_vm1, %v627_v9 }
  0xd0   : > { %786 = vst.msk [vmem:[%s1228_s18 + $0x1e8] sm:$0xff] %vm725_vm1, %v685_v7 }
  0xd4   : > { %v564_v10 = vpop.f32.mrf.mxu2  ;;  %v687_v11 = vpop.f32.mrf.mxu3 }
  0xd5   : > { %v507_v13 = vpop.f32.mrf.mxu0  ;;  %v630_v14 = vpop.f32.mrf.mxu1  ;;  %787 = vst [vmem:[%s1228_s18 + $0x1f0] sm:$0xff] %v564_v10 }
  0xd6   : > { %741 = vst [vmem:[%s1228_s18 + $0x80] sm:$0xff] %v507_v13 }
  0xd7   : > { %742 = vst.msk [vmem:[%s1228_s18 + $0x88] sm:$0xff] %vm725_vm1, %v630_v14 }
  0xd8   : > { %788 = vst.msk [vmem:[%s1228_s18 + $0x1f8] sm:$0xff] %vm725_vm1, %v687_v11 }
  0xdc   : > { %v567_v15 = vpop.f32.mrf.mxu2  ;;  %v690_v16 = vpop.f32.mrf.mxu3 }
  0xdd   : > { %v509_v17 = vpop.f32.mrf.mxu0  ;;  %v632_v18 = vpop.f32.mrf.mxu1  ;;  %789 = vst [vmem:[%s1228_s18 + $0x200] sm:$0xff] %v567_v15 }
  0xde   : > { %743 = vst [vmem:[%s1228_s18 + $0x90] sm:$0xff] %v509_v17 }
  0xdf   : > { %744 = vst.msk [vmem:[%s1228_s18 + $0x98] sm:$0xff] %vm725_vm1, %v632_v18 }
  0xe0   : > { %790 = vst.msk [vmem:[%s1228_s18 + $0x208] sm:$0xff] %vm725_vm1, %v690_v16 }
  0xe4   : > { %v569_v19 = vpop.f32.mrf.mxu2  ;;  %v692_v20 = vpop.f32.mrf.mxu3 }
  0xe5   : > { %v512_v21 = vpop.f32.mrf.mxu0  ;;  %v635_v22 = vpop.f32.mrf.mxu1  ;;  %791 = vst [vmem:[%s1228_s18 + $0x210] sm:$0xff] %v569_v19 }
  0xe6   : > { %745 = vst [vmem:[%s1228_s18 + $0xa0] sm:$0xff] %v512_v21 }
  0xe7   : > { %746 = vst.msk [vmem:[%s1228_s18 + $0xa8] sm:$0xff] %vm725_vm1, %v635_v22 }
  0xe8   : > { %792 = vst.msk [vmem:[%s1228_s18 + $0x218] sm:$0xff] %vm725_vm1, %v692_v20 }
  0xec   : > { %v572_v23 = vpop.f32.mrf.mxu2  ;;  %v695_v24 = vpop.f32.mrf.mxu3 }
  0xed   : > { %v514_v25 = vpop.f32.mrf.mxu0  ;;  %v637_v26 = vpop.f32.mrf.mxu1  ;;  %793 = vst [vmem:[%s1228_s18 + $0x220] sm:$0xff] %v572_v23 }
  0xee   : > { %747 = vst [vmem:[%s1228_s18 + $0xb0] sm:$0xff] %v514_v25 }
  0xef   : > { %748 = vst.msk [vmem:[%s1228_s18 + $0xb8] sm:$0xff] %vm725_vm1, %v637_v26 }
  0xf0   : > { %794 = vst.msk [vmem:[%s1228_s18 + $0x228] sm:$0xff] %vm725_vm1, %v695_v24 }
  0xf4   : > { %v574_v27 = vpop.f32.mrf.mxu2  ;;  %v697_v28 = vpop.f32.mrf.mxu3 }
  0xf5   : > { %v517_v29 = vpop.f32.mrf.mxu0  ;;  %v640_v30 = vpop.f32.mrf.mxu1  ;;  %795 = vst [vmem:[%s1228_s18 + $0x230] sm:$0xff] %v574_v27 }
  0xf6   : > { %749 = vst [vmem:[%s1228_s18 + $0xc0] sm:$0xff] %v517_v29 }
  0xf7   : > { %750 = vst.msk [vmem:[%s1228_s18 + $0xc8] sm:$0xff] %vm725_vm1, %v640_v30 }
  0xf8   : > { %796 = vst.msk [vmem:[%s1228_s18 + $0x238] sm:$0xff] %vm725_vm1, %v697_v28 }
  0xfc   : > { %v577_v31 = vpop.f32.mrf.mxu2  ;;  %v700_v32 = vpop.f32.mrf.mxu3 }
  0xfd   : > { %v519_v33 = vpop.f32.mrf.mxu0  ;;  %v642_v34 = vpop.f32.mrf.mxu1  ;;  %797 = vst [vmem:[%s1228_s18 + $0x240] sm:$0xff] %v577_v31 }
  0xfe   : > { %751 = vst [vmem:[%s1228_s18 + $0xd0] sm:$0xff] %v519_v33 }
  0xff   : > { %752 = vst.msk [vmem:[%s1228_s18 + $0xd8] sm:$0xff] %vm725_vm1, %v642_v34 }
 0x100   : > { %798 = vst.msk [vmem:[%s1228_s18 + $0x248] sm:$0xff] %vm725_vm1, %v700_v32 }
 0x104   : > { %v579_v35 = vpop.f32.mrf.mxu2  ;;  %v702_v36 = vpop.f32.mrf.mxu3 }
 0x105   : > { %v522_v37 = vpop.f32.mrf.mxu0  ;;  %v645_v38 = vpop.f32.mrf.mxu1  ;;  %799 = vst [vmem:[%s1228_s18 + $0x250] sm:$0xff] %v579_v35 }
 0x106   : > { %753 = vst [vmem:[%s1228_s18 + $0xe0] sm:$0xff] %v522_v37 }
 0x107   : > { %754 = vst.msk [vmem:[%s1228_s18 + $0xe8] sm:$0xff] %vm725_vm1, %v645_v38 }
 0x108   : > { %800 = vst.msk [vmem:[%s1228_s18 + $0x258] sm:$0xff] %vm725_vm1, %v702_v36 }
 0x10c   : > { %v582_v39 = vpop.f32.mrf.mxu2  ;;  %v705_v40 = vpop.f32.mrf.mxu3 }
 0x10d   : > { %v524_v41 = vpop.f32.mrf.mxu0  ;;  %v647_v42 = vpop.f32.mrf.mxu1  ;;  %801 = vst [vmem:[%s1228_s18 + $0x260] sm:$0xff] %v582_v39 }
 0x10e   : > { %755 = vst [vmem:[%s1228_s18 + $0xf0] sm:$0xff] %v524_v41 }
 0x10f   : > { %756 = vst.msk [vmem:[%s1228_s18 + $0xf8] sm:$0xff] %vm725_vm1, %v647_v42 }
 0x110   : > { %802 = vst.msk [vmem:[%s1228_s18 + $0x268] sm:$0xff] %vm725_vm1, %v705_v40 }
 0x114   : > { %v584_v43 = vpop.f32.mrf.mxu2  ;;  %v707_v44 = vpop.f32.mrf.mxu3 }
 0x115   : > { %v527_v45 = vpop.f32.mrf.mxu0  ;;  %v650_v46 = vpop.f32.mrf.mxu1  ;;  %803 = vst [vmem:[%s1228_s18 + $0x270] sm:$0xff] %v584_v43 }
 0x116   : > { %757 = vst [vmem:[%s1228_s18 + $0x100] sm:$0xff] %v527_v45 }
 0x117   : > { %758 = vst.msk [vmem:[%s1228_s18 + $0x108] sm:$0xff] %vm725_vm1, %v650_v46 }
 0x118   : > { %804 = vst.msk [vmem:[%s1228_s18 + $0x278] sm:$0xff] %vm725_vm1, %v707_v44 }
 0x11c   : > { %v587_v47 = vpop.f32.mrf.mxu2  ;;  %v710_v48 = vpop.f32.mrf.mxu3 }
 0x11d   : > { %v529_v49 = vpop.f32.mrf.mxu0  ;;  %v652_v50 = vpop.f32.mrf.mxu1  ;;  %805 = vst [vmem:[%s1228_s18 + $0x280] sm:$0xff] %v587_v47 }
 0x11e   : > { %759 = vst [vmem:[%s1228_s18 + $0x110] sm:$0xff] %v529_v49 }
 0x11f   : > { %760 = vst.msk [vmem:[%s1228_s18 + $0x118] sm:$0xff] %vm725_vm1, %v652_v50 }
 0x120   : > { %806 = vst.msk [vmem:[%s1228_s18 + $0x288] sm:$0xff] %vm725_vm1, %v710_v48 }
 0x124   : > { %v589_v51 = vpop.f32.mrf.mxu2  ;;  %v712_v52 = vpop.f32.mrf.mxu3 }
 0x125   : > { %v532_v53 = vpop.f32.mrf.mxu0  ;;  %v655_v54 = vpop.f32.mrf.mxu1  ;;  %807 = vst [vmem:[%s1228_s18 + $0x290] sm:$0xff] %v589_v51 }
 0x126   : > { %761 = vst [vmem:[%s1228_s18 + $0x120] sm:$0xff] %v532_v53 }
 0x127   : > { %762 = vst.msk [vmem:[%s1228_s18 + $0x128] sm:$0xff] %vm725_vm1, %v655_v54 }
 0x128   : > { %808 = vst.msk [vmem:[%s1228_s18 + $0x298] sm:$0xff] %vm725_vm1, %v712_v52 }
 0x12c   : > { %v592_v55 = vpop.f32.mrf.mxu2  ;;  %v715_v56 = vpop.f32.mrf.mxu3 }
 0x12d   : > { %v534_v57 = vpop.f32.mrf.mxu0  ;;  %v657_v58 = vpop.f32.mrf.mxu1  ;;  %809 = vst [vmem:[%s1228_s18 + $0x2a0] sm:$0xff] %v592_v55 }
 0x12e   : > { %763 = vst [vmem:[%s1228_s18 + $0x130] sm:$0xff] %v534_v57 }
 0x12f   : > { %764 = vst.msk [vmem:[%s1228_s18 + $0x138] sm:$0xff] %vm725_vm1, %v657_v58 }
 0x130   : > { %810 = vst.msk [vmem:[%s1228_s18 + $0x2a8] sm:$0xff] %vm725_vm1, %v715_v56 }
 0x134   : > { %v594_v59 = vpop.f32.mrf.mxu2  ;;  %v717_v60 = vpop.f32.mrf.mxu3 }
 0x135   : > { %v537_v61 = vpop.f32.mrf.mxu0  ;;  %v660_v62 = vpop.f32.mrf.mxu1  ;;  %811 = vst [vmem:[%s1228_s18 + $0x2b0] sm:$0xff] %v594_v59 }
 0x136   : > { %765 = vst [vmem:[%s1228_s18 + $0x140] sm:$0xff] %v537_v61 }
 0x137   : > { %766 = vst.msk [vmem:[%s1228_s18 + $0x148] sm:$0xff] %vm725_vm1, %v660_v62 }
 0x138   : > { %812 = vst.msk [vmem:[%s1228_s18 + $0x2b8] sm:$0xff] %vm725_vm1, %v717_v60 }
 0x13c   : > { %v597_v63 = vpop.f32.mrf.mxu2  ;;  %v720_v0 = vpop.f32.mrf.mxu3 }
 0x13d   : > { %v539_v1 = vpop.f32.mrf.mxu0  ;;  %v662_v2 = vpop.f32.mrf.mxu1  ;;  %813 = vst [vmem:[%s1228_s18 + $0x2c0] sm:$0xff] %v597_v63 }
 0x13e   : > { %767 = vst [vmem:[%s1228_s18 + $0x150] sm:$0xff] %v539_v1 }
 0x13f   : > { %768 = vst.msk [vmem:[%s1228_s18 + $0x158] sm:$0xff] %vm725_vm1, %v662_v2 }
 0x140   : > { %814 = vst.msk [vmem:[%s1228_s18 + $0x2c8] sm:$0xff] %vm725_vm1, %v720_v0 }
 0x144   : > { %v599_v3 = vpop.f32.mrf.mxu2  ;;  %v722_v4 = vpop.f32.mrf.mxu3 }
 0x145   : > { %v542_v12 = vpop.f32.mrf.mxu0  ;;  %v665_v5 = vpop.f32.mrf.mxu1 }
 0x146   : > { %769 = vst [vmem:[%s1228_s18 + $0x160] sm:$0xff] %v542_v12 }
 0x147   : > { %770 = vst.msk [vmem:[%s1228_s18 + $0x168] sm:$0xff] %vm725_vm1, %v665_v5 }
 0x14d   : > { %v544_v6 = vpop.f32.mrf.mxu0  ;;  %v667_v7 = vpop.f32.mrf.mxu1 }
 0x14e   : > { %771 = vst [vmem:[%s1228_s18 + $0x170] sm:$0xff] %v544_v6 }
 0x14f   : > { %772 = vst.msk [vmem:[%s1228_s18 + $0x178] sm:$0xff] %vm725_vm1, %v667_v7 }
 0x150 PF: > { %s13_s14 = sadd.s32 1, %s1043_s14   ;;  %s1410_s12 = smov %s1039_s13 }
 0x151   : > { %p10_p5 = scmp.ge.s32.totalorder %s13_s14, 7   ;;  %s1411_s13 = smov %s1413_s15 }
 0x153   :  { %12 = sbr.rel (!%p10_p5) target bundleno = 2 (0x2), region = 65 }

</bundles_post_ra>
